<compile_context>
chip_gen: v7x
topology: tpu7x:2x2x1
jax: 0.10.0
libtpu: 0.0.40
codegen_flags: <defaults>
</compile_context>

<pallas_src>
import jax
import jax.numpy as jnp
from jax.experimental import pallas as pl
from jax.experimental.pallas import tpu as pltpu

HIDDEN = 1024


def _mlp_kernel(x_ref, w1_ref, b1_ref, w2_ref, b2_ref, w3_ref, b3_ref, o_ref):
    # Layer 1: (tm, F) @ (F, 1024) + b1, ReLU.  bf16 operands, f32 accumulate.
    x = x_ref[...].astype(jnp.bfloat16)
    h1 = jnp.dot(x, w1_ref[...], preferred_element_type=jnp.float32)
    h1 = jnp.maximum(h1 + b1_ref[...], 0.0)

    # Layer 2: (tm, 1024) @ (1024, 1024) + b2, ReLU.
    h2 = jnp.dot(h1.astype(jnp.bfloat16), w2_ref[...],
                 preferred_element_type=jnp.float32)
    h2 = jnp.maximum(h2 + b2_ref[...], 0.0)

    # Layer 3: (tm, 1024) @ (1024, 1).  An N=1 matmul wastes the MXU, so do it
    # on the VPU/XLU: elementwise multiply by the (1, 1024) weight row and
    # reduce over the lane axis.  b3 is a scalar in SMEM.
    out = jnp.sum(h2 * w3_ref[...], axis=-1, keepdims=True)      # (tm, 1) f32
    o_ref[...] = (out + b3_ref[0, 0]).astype(o_ref.dtype)


def cpua_discriminator(x, params, *, tm=256):
    """Fused 3-layer MLP forward: x (B, in_features) f32 -> (B, 1) f32."""
    w1, b1, w2, b2, w3, b3 = params
    B, F = x.shape
    assert w1.shape == (F, HIDDEN)

    # Pad the batch up to a multiple of the batch tile; padded rows compute
    # garbage that is sliced off below.
    B_pad = pl.cdiv(B, tm) * tm
    if B_pad != B:
        x = jnp.pad(x, ((0, B_pad - B), (0, 0)))

    grid = (B_pad // tm,)
    const = lambda i: (0, 0)  # grid-constant operands (weights / biases)

    out = pl.pallas_call(
        _mlp_kernel,
        out_shape=jax.ShapeDtypeStruct((B_pad, 1), jnp.float32),
        grid_spec=pltpu.PrefetchScalarGridSpec(
            num_scalar_prefetch=0,
            grid=grid,
            in_specs=[
                pl.BlockSpec((tm, F), lambda i: (i, 0)),                              # x tile
                pl.BlockSpec((F, HIDDEN), const, pipeline_mode=pl.Buffered(1)),       # W1 (bf16)
                pl.BlockSpec((1, HIDDEN), const, pipeline_mode=pl.Buffered(1)),       # b1
                pl.BlockSpec((HIDDEN, HIDDEN), const, pipeline_mode=pl.Buffered(1)),  # W2 (bf16)
                pl.BlockSpec((1, HIDDEN), const, pipeline_mode=pl.Buffered(1)),       # b2
                pl.BlockSpec((1, HIDDEN), const, pipeline_mode=pl.Buffered(1)),       # W3 row
                pl.BlockSpec(memory_space=pltpu.MemorySpace.SMEM),                    # b3 scalar
            ],
            out_specs=pl.BlockSpec((tm, 1), lambda i: (i, 0)),
        ),
        compiler_params=pltpu.CompilerParams(
            dimension_semantics=("parallel",),   # batch tiles shard across TCs
            vmem_limit_bytes=32 << 20,           # headroom even on v7x (64 MiB)
        ),
    )(x, w1, b1, w2, b2, w3, b3)
    return out[:B]


def init_params(in_features, key):
    """Synthetic init mirroring the module's shapes.

    Hidden layers: small random init (stand-in for init_weights()).
    Last layer: weight ~ N(0, 0.3) clamped to [-0.6, 0.6], bias = 0 (as in
    CPUADiscriminator.__init__).  W1/W2 stored transposed (in, out) in bf16;
    W3 stored as a (1, 1024) f32 row for the VPU reduction.
    """
    k1, k2, k3, k4, k5 = jax.random.split(key, 5)
    w1 = (0.02 * jax.random.normal(k1, (in_features, HIDDEN), jnp.float32)
          ).astype(jnp.bfloat16)
    b1 = 0.01 * jax.random.normal(k2, (1, HIDDEN), jnp.float32)
    w2 = (0.02 * jax.random.normal(k3, (HIDDEN, HIDDEN), jnp.float32)
          ).astype(jnp.bfloat16)
    b2 = 0.01 * jax.random.normal(k4, (1, HIDDEN), jnp.float32)
    w3 = jnp.clip(0.3 * jax.random.normal(k5, (1, HIDDEN), jnp.float32), -0.6, 0.6)
    b3 = jnp.zeros((1, 1), jnp.float32)
    return w1, b1, w2, b2, w3, b3


def _reference(x, params):
    """Pure-f32 JAX reference of the same forward pass."""
    w1, b1, w2, b2, w3, b3 = params
    h = jnp.maximum(x @ w1.astype(jnp.float32) + b1, 0.0)
    h = jnp.maximum(h @ w2.astype(jnp.float32) + b2, 0.0)
    return jnp.sum(h * w3, axis=-1, keepdims=True) + b3


if __name__ == "__main__":
    key = jax.random.PRNGKey(0)
    kx, kp = jax.random.split(key)

    B, IN_FEATURES = 8, 32
    x = jax.random.normal(kx, (B, IN_FEATURES), jnp.float32)
    params = init_params(IN_FEATURES, kp)

    out = jax.block_until_ready(cpua_discriminator(x, params))
    ref = _reference(x, params)

    assert out.shape == (B, 1)
    # Kernel runs layers 1-2 with bf16 operands (f32 accumulation), so compare
    # against the f32 reference with a bf16-appropriate tolerance.
    max_err = jnp.max(jnp.abs(out - ref))
    assert jnp.allclose(out, ref, atol=5e-2, rtol=5e-2), (
        f"mismatch vs JAX reference, max abs err = {max_err}")

    print("KERNEL_OK")
</pallas_src>

<mosaic_0001>
module attributes {stable_mosaic.version = 11 : i64} {
  func.func @_mlp_kernel(%arg0: i32, %arg1: memref<256x32xf32, #tpu.memory_space<vmem>>, %arg2: memref<32x1024xbf16, #tpu.memory_space<vmem>>, %arg3: memref<1x1024xf32, #tpu.memory_space<vmem>>, %arg4: memref<1024x1024xbf16, #tpu.memory_space<vmem>>, %arg5: memref<1x1024xf32, #tpu.memory_space<vmem>>, %arg6: memref<1x1024xf32, #tpu.memory_space<vmem>>, %arg7: memref<1x1xf32, #tpu.memory_space<smem>>, %arg8: memref<256x1xf32, #tpu.memory_space<vmem>>) attributes {dimension_semantics = [#tpu.dimension_semantics<parallel>], iteration_bounds = array<i64: 1>, scalar_prefetch = 0 : i64, scratch_operands = 0 : i64, tpu.core_type = #tpu.core_type<tc>, window_params = [{transform_indices = @transform_0, window_bounds = array<i64: 256, 32>}, {pipeline_mode = #tpu.pipeline_mode<synchronous>, transform_indices = @transform_1, window_bounds = array<i64: 32, 1024>}, {pipeline_mode = #tpu.pipeline_mode<synchronous>, transform_indices = @transform_2, window_bounds = array<i64: 1, 1024>}, {pipeline_mode = #tpu.pipeline_mode<synchronous>, transform_indices = @transform_3, window_bounds = array<i64: 1024, 1024>}, {pipeline_mode = #tpu.pipeline_mode<synchronous>, transform_indices = @transform_4, window_bounds = array<i64: 1, 1024>}, {pipeline_mode = #tpu.pipeline_mode<synchronous>, transform_indices = @transform_5, window_bounds = array<i64: 1, 1024>}, {transform_indices = @transform_6, window_bounds = array<i64: 1, 1>}, {transform_indices = @transform_7, window_bounds = array<i64: 256, 1>}]} {
    %c0 = arith.constant 0 : index
    %c0_0 = arith.constant 0 : index
    %0 = vector.load %arg1[%c0, %c0_0] : memref<256x32xf32, #tpu.memory_space<vmem>>, vector<256x32xf32>
    %1 = arith.truncf %0 : vector<256x32xf32> to vector<256x32xbf16>
    %c0_1 = arith.constant 0 : index
    %c0_2 = arith.constant 0 : index
    %2 = vector.load %arg2[%c0_1, %c0_2] : memref<32x1024xbf16, #tpu.memory_space<vmem>>, vector<32x1024xbf16>
    %cst = arith.constant dense<0.000000e+00> : vector<256x1024xf32>
    %3 = tpu.matmul %1, %2, %cst {dimension_numbers = #tpu.dot_dimension_numbers<[1], [0], [0], [1], [0, 0, 1, 1], [], []>} : vector<256x32xbf16>, vector<32x1024xbf16>, vector<256x1024xf32> -> vector<256x1024xf32>
    %c0_3 = arith.constant 0 : index
    %c0_4 = arith.constant 0 : index
    %4 = vector.load %arg3[%c0_3, %c0_4] : memref<1x1024xf32, #tpu.memory_space<vmem>>, vector<1x1024xf32>
    %5 = vector.broadcast %4 : vector<1x1024xf32> to vector<256x1024xf32>
    %6 = arith.addf %3, %5 : vector<256x1024xf32>
    %cst_5 = arith.constant 0.000000e+00 : f32
    %7 = vector.broadcast %cst_5 : f32 to vector<256x1024xf32>
    %8 = arith.maximumf %6, %7 : vector<256x1024xf32>
    %9 = arith.truncf %8 : vector<256x1024xf32> to vector<256x1024xbf16>
    %c0_6 = arith.constant 0 : index
    %c0_7 = arith.constant 0 : index
    %10 = vector.load %arg4[%c0_6, %c0_7] : memref<1024x1024xbf16, #tpu.memory_space<vmem>>, vector<1024x1024xbf16>
    %cst_8 = arith.constant dense<0.000000e+00> : vector<256x1024xf32>
    %11 = tpu.matmul %9, %10, %cst_8 {dimension_numbers = #tpu.dot_dimension_numbers<[1], [0], [0], [1], [0, 0, 1, 1], [], []>} : vector<256x1024xbf16>, vector<1024x1024xbf16>, vector<256x1024xf32> -> vector<256x1024xf32>
    %c0_9 = arith.constant 0 : index
    %c0_10 = arith.constant 0 : index
    %12 = vector.load %arg5[%c0_9, %c0_10] : memref<1x1024xf32, #tpu.memory_space<vmem>>, vector<1x1024xf32>
    %13 = vector.broadcast %12 : vector<1x1024xf32> to vector<256x1024xf32>
    %14 = arith.addf %11, %13 : vector<256x1024xf32>
    %cst_11 = arith.constant 0.000000e+00 : f32
    %15 = vector.broadcast %cst_11 : f32 to vector<256x1024xf32>
    %16 = arith.maximumf %14, %15 : vector<256x1024xf32>
    %c0_12 = arith.constant 0 : index
    %c0_13 = arith.constant 0 : index
    %17 = vector.load %arg6[%c0_12, %c0_13] : memref<1x1024xf32, #tpu.memory_space<vmem>>, vector<1x1024xf32>
    %18 = vector.broadcast %17 : vector<1x1024xf32> to vector<256x1024xf32>
    %19 = arith.mulf %16, %18 : vector<256x1024xf32>
    %cst_14 = arith.constant dense<0.000000e+00> : vector<256xf32>
    %20 = vector.multi_reduction <add>, %19, %cst_14 [1] : vector<256x1024xf32> to vector<256xf32>
    %21 = vector.shape_cast %20 : vector<256xf32> to vector<256x1xf32>
    %c0_15 = arith.constant 0 : index
    %c0_16 = arith.constant 0 : index
    %22 = memref.load %arg7[%c0_15, %c0_16] : memref<1x1xf32, #tpu.memory_space<smem>>
    %23 = vector.broadcast %22 : f32 to vector<256x1xf32>
    %24 = arith.addf %21, %23 : vector<256x1xf32>
    %c0_17 = arith.constant 0 : index
    %c0_18 = arith.constant 0 : index
    %25 = vector.load %arg8[%c0_17, %c0_18] : memref<256x1xf32, #tpu.memory_space<vmem>>, vector<256x1xf32>
    tpu.vector_store %arg8[%c0_17, %c0_18], %24 {strides = array<i32>} : memref<256x1xf32, #tpu.memory_space<vmem>>, vector<256x1xf32>,
    return
  }
  func.func @transform_0(%arg0: i32) -> (i32, i32) {
    %c0_i32 = arith.constant 0 : i32
    %c0_i32_0 = arith.constant 0 : i32
    return %arg0, %c0_i32 : i32, i32
  }
  func.func @transform_1(%arg0: i32) -> (i32, i32) {
    %c0_i32 = arith.constant 0 : i32
    %c0_i32_0 = arith.constant 0 : i32
    %c0_i32_1 = arith.constant 0 : i32
    return %c0_i32, %c0_i32_0 : i32, i32
  }
  func.func @transform_2(%arg0: i32) -> (i32, i32) {
    %c0_i32 = arith.constant 0 : i32
    %c0_i32_0 = arith.constant 0 : i32
    %c0_i32_1 = arith.constant 0 : i32
    return %c0_i32, %c0_i32_0 : i32, i32
  }
  func.func @transform_3(%arg0: i32) -> (i32, i32) {
    %c0_i32 = arith.constant 0 : i32
    %c0_i32_0 = arith.constant 0 : i32
    %c0_i32_1 = arith.constant 0 : i32
    return %c0_i32, %c0_i32_0 : i32, i32
  }
  func.func @transform_4(%arg0: i32) -> (i32, i32) {
    %c0_i32 = arith.constant 0 : i32
    %c0_i32_0 = arith.constant 0 : i32
    %c0_i32_1 = arith.constant 0 : i32
    return %c0_i32, %c0_i32_0 : i32, i32
  }
  func.func @transform_5(%arg0: i32) -> (i32, i32) {
    %c0_i32 = arith.constant 0 : i32
    %c0_i32_0 = arith.constant 0 : i32
    %c0_i32_1 = arith.constant 0 : i32
    return %c0_i32, %c0_i32_0 : i32, i32
  }
  func.func @transform_6(%arg0: i32) -> (i32, i32) {
    %c0_i32 = arith.constant 0 : i32
    %c0_i32_0 = arith.constant 0 : i32
    %c0_i32_1 = arith.constant 0 : i32
    return %c0_i32, %c0_i32_0 : i32, i32
  }
  func.func @transform_7(%arg0: i32) -> (i32, i32) {
    %c0_i32 = arith.constant 0 : i32
    %c0_i32_0 = arith.constant 0 : i32
    return %arg0, %c0_i32 : i32, i32
  }
}

</mosaic_0001>

<bundles_post_ra>
// kernel: tpu_custom_call.1
= control target key start
LH: loop header
LB: loop body
LE: loop exit
PB: predicated region body
PF: predicated region fallthrough
CT: control target
= control target key end

     0   :  { %13 = vsyncpa [#allocation4], 0  ;;  %s13713_s0 = inlined_call_operand.vmem [shape: f32[256,32], index: 0, kind: input, shape index: {}]   ;;  %s13714_s1 = inlined_call_operand.hbm [shape: bf16[32,1024], index: 1, kind: input, shape index: {}]   ;;  %s13715_s2 = inlined_call_operand.hbm [shape: f32[1,1024], index: 2, kind: input, shape index: {}]   ;;  %s13716_s3 = inlined_call_operand.hbm [shape: bf16[1024,1024], index: 3, kind: input, shape index: {}]   ;;  %s13717_s4 = inlined_call_operand.hbm [shape: f32[1,1024], index: 4, kind: input, shape index: {}]   ;;  %s13718_s5 = inlined_call_operand.hbm [shape: f32[1,1024], index: 5, kind: input, shape index: {}]   ;;  %s13719_s6 = inlined_call_operand.<no memory space> [shape: f32[1,1], index: 6, kind: input, shape index: {}]   ;;  %s13720_s7 = inlined_call_operand.vmem [shape: f32[256,1], index: 7, kind: output, shape index: {}]  }
   0x1   :  { %14 = vsyncpa [#allocation6], 0 }
   0x2   :  { %15 = vsyncpa [#allocation9], 0  ;;  %s10342_s24 = smov [#allocation5]   ;;  %s10343_s26 = smov [#allocation8]  }
   0x3   :  { %s36_s25 = sshll.u32 %s10342_s24, 4  ;;  %s58_s27 = sshll.u32 %s10343_s26, 4  ;;  %s37_s25 = int_to_ptr.vmem [resolvable:$true] %s36_s25  ;;  %s59_s27 = int_to_ptr.vmem [resolvable:$true] %s58_s27 }
   0x4   :  { %s10226_s30 = scalar_lea.hbm %s13715_s2, 128 }
   0x5   :  { %p10227_p0 = scmp.ne.s32.totalorder %s13715_s2, %s10226_s30  ;;  %p10230_p1 = scmp.lt.u32.totalorder %s10226_s30, %s13715_s2 }
   0x7   :  { %p10232_p2 = pnand %p10230_p1, %p10227_p0 }
   0x9   :  { %10235 = shalt.err (!%p10232_p2)
}
   0xa   :  { %s10236_s12 = scalar_lea.vmem %s37_s25, 128  ;;  %p10241_p4 = scmp.lt.s32.totalorder %s37_s25, %s37_s25 }
   0xb   :  { %p10237_p3 = scmp.ne.s32.totalorder %s37_s25, %s10236_s12  ;;  %p10242_p5 = scmp.lt.s32.totalorder %s10236_s12, %s10236_s12 }
   0xd   :  { %p10243_p6 = por %p10242_p5, %p10241_p4 }
   0xf   :  { %p10244_p7 = pnand %p10243_p6, %p10237_p3 }
  0x11   :  { %10247 = shalt.err (!%p10244_p7)
}
  0x12   :  { %39 = dma.hbm_to_vmem [thread:$0]  %s13715_s2, 128, %s37_s25, [#allocation6]  }
  0x13   :  { %s10248_s17 = scalar_lea.hbm %s13717_s4, 128 }
  0x14   :  { %p10249_p8 = scmp.ne.s32.totalorder %s13717_s4, %s10248_s17  ;;  %p10252_p9 = scmp.lt.u32.totalorder %s10248_s17, %s13717_s4 }
  0x16   :  { %p10254_p10 = pnand %p10252_p9, %p10249_p8 }
  0x18   :  { %10257 = shalt.err (!%p10254_p10)
}
  0x19   :  { %s10258_s22 = scalar_lea.vmem %s59_s27, 128  ;;  %p10263_p12 = scmp.lt.s32.totalorder %s59_s27, %s59_s27 }
  0x1a   :  { %p10259_p11 = scmp.ne.s32.totalorder %s59_s27, %s10258_s22  ;;  %p10264_p13 = scmp.lt.s32.totalorder %s10258_s22, %s10258_s22 }
  0x1c   :  { %p10265_p0 = por %p10264_p13, %p10263_p12 }
  0x1e   :  { %p10266_p1 = pnand %p10265_p0, %p10259_p11 }
  0x20   :  { %10269 = shalt.err (!%p10266_p1)
}
  0x21   :  { %61 = dma.hbm_to_vmem [thread:$0]  %s13717_s4, 128, %s59_s27, [#allocation9]  }
  0x22   :  { %s10344_s24 = smov [#allocation3]   ;;  %s10270_s29 = scalar_lea.hbm %s13714_s1, 2048 }
  0x23   :  { %s23_s25 = sshll.u32 %s10344_s24, 4  ;;  %p10271_p2 = scmp.ne.s32.totalorder %s13714_s1, %s10270_s29  ;;  %s24_s25 = int_to_ptr.vmem [resolvable:$true] %s23_s25 }
  0x24   :  { %p10274_p3 = scmp.lt.u32.totalorder %s10270_s29, %s13714_s1 }
  0x26   :  { %p10276_p4 = pnand %p10274_p3, %p10271_p2 }
  0x28   :  { %10279 = shalt.err (!%p10276_p4)
}
  0x29   :  { %s10280_s11 = scalar_lea.vmem %s24_s25, 2048  ;;  %p10285_p6 = scmp.lt.s32.totalorder %s24_s25, %s24_s25 }
  0x2a   :  { %p10281_p5 = scmp.ne.s32.totalorder %s24_s25, %s10280_s11  ;;  %p10286_p7 = scmp.lt.s32.totalorder %s10280_s11, %s10280_s11 }
  0x2c   :  { %p10287_p8 = por %p10286_p7, %p10285_p6 }
  0x2e   :  { %p10288_p9 = pnand %p10287_p8, %p10281_p5 }
  0x30   :  { %10291 = shalt.err (!%p10288_p9)
}
  0x31   :  { %s10345_s4 = smov 512   ;;  %s10346_s27 = smov 32  }
  0x32   :  { %29 = dma.hbm_to_vmem [thread:$0]  %s13714_s1, 2048, %s24_s25, [#allocation4], %s10345_s4, %s10345_s4, %s10346_s27  }
  0x33   :  { %s10347_s14 = smov [#allocation7]   ;;  %s10348_s16 = smov [#allocation10]  }
  0x34   :  { %s45_s15 = sshll.u32 %s10347_s14, 4  ;;  %s68_s17 = sshll.u32 %s10348_s16, 4  ;;  %s46_s15 = int_to_ptr.vmem [resolvable:$true] %s45_s15  ;;  %s69_s17 = int_to_ptr.vmem [resolvable:$true] %s68_s17 }
  0x35   :  { %s10292_s20 = scalar_lea.hbm %s13716_s3, 65536 }
  0x36   :  { %p10293_p10 = scmp.ne.s32.totalorder %s13716_s3, %s10292_s20  ;;  %p10296_p11 = scmp.lt.u32.totalorder %s10292_s20, %s13716_s3 }
  0x38   :  { %p10298_p12 = pnand %p10296_p11, %p10293_p10 }
  0x3a   :  { %10301 = shalt.err (!%p10298_p12)
}
  0x3b   :  { %s10302_s1 = scalar_lea.vmem %s46_s15, 65536  ;;  %p10307_p0 = scmp.lt.s32.totalorder %s46_s15, %s46_s15 }
  0x3c   :  { %p10303_p13 = scmp.ne.s32.totalorder %s46_s15, %s10302_s1  ;;  %p10308_p1 = scmp.lt.s32.totalorder %s10302_s1, %s10302_s1 }
  0x3e   :  { %p10309_p2 = por %p10308_p1, %p10307_p0 }
  0x40   :  { %p10310_p3 = pnand %p10309_p2, %p10303_p13 }
  0x42   :  { %10313 = shalt.err (!%p10310_p3)
}
  0x43   :  { %51 = dma.hbm_to_vmem [thread:$0]  %s13716_s3, 65536, %s46_s15, [#allocation6], %s10345_s4, %s10345_s4, %s10346_s27  }
  0x44   :  { %s10314_s29 = scalar_lea.hbm %s13718_s5, 128 }
  0x45   :  { %p10315_p4 = scmp.ne.s32.totalorder %s13718_s5, %s10314_s29  ;;  %p10318_p5 = scmp.lt.u32.totalorder %s10314_s29, %s13718_s5 }
  0x47   :  { %p10320_p6 = pnand %p10318_p5, %p10315_p4 }
  0x49   :  { %10323 = shalt.err (!%p10320_p6)
}
  0x4a   :  { %s10324_s11 = scalar_lea.vmem %s69_s17, 128  ;;  %p10329_p8 = scmp.lt.s32.totalorder %s69_s17, %s69_s17 }
  0x4b   :  { %p10325_p7 = scmp.ne.s32.totalorder %s69_s17, %s10324_s11  ;;  %p10330_p9 = scmp.lt.s32.totalorder %s10324_s11, %s10324_s11 }
  0x4d   :  { %p10331_p10 = por %p10330_p9, %p10329_p8 }
  0x4f   :  { %p10332_p11 = pnand %p10331_p10, %p10325_p7 }
  0x51   :  { %10335 = shalt.err (!%p10332_p11)
}
  0x52   :  { %71 = dma.hbm_to_vmem [thread:$0]  %s13718_s5, 128, %s69_s17, [#allocation9]  }
  0x53   :  { %10336 = dma.done.wait [#allocation4], 2048  }
  0x54   :  { %10337 = vsyncadd [#allocation4], 4294965248 }
  0x55   :  { %10338 = dma.done.wait [#allocation6], 65664  }
  0x56   :  { %10339 = vsyncadd [#allocation6], 4294901632 }
  0x57   :  { %10340 = dma.done.wait [#allocation9], 256  }
  0x58   :  { %10341 = vsyncadd [#allocation9], 4294967040  ;;  %v10349_v0 = vmov 0   ;;  %v138_v1 = vld [vmem:[#allocation3] sm:$0xff]  ;;  %v139_v3 = vld [vmem:[#allocation3 + $0x8] sm:$0xff]  ;;  %vm276_vm0 = vcmask 261120  }
  0x59   :  { %357 = vmatprep.mubr.bf16.mxu0 %v10349_v0  ;;  %550 = vmatprep.mubr.bf16.mxu1 %v10349_v0  ;;  %v142_v2 = vld [vmem:[#allocation3 + $0x20] sm:$0xff]  ;;  %v143_v5 = vld [vmem:[#allocation3 + $0x28] sm:$0xff]  ;;  %v140_v16 = vld [vmem:[#allocation3 + $0x10] sm:$0xff]  ;;  %vm8559_vm1 = vcmask 7168  }
  0x5a   :  { %v8600_v4 = vcombine.high %v138_v1, %v142_v2  ;;  %v8599_v6 = vcombine.low %v138_v1, %v142_v2  ;;  %v146_v7 = vld [vmem:[#allocation3 + $0x40] sm:$0xff]  ;;  %v8602_v9 = vcombine.high %v139_v3, %v143_v5  ;;  %v8601_v10 = vcombine.low %v139_v3, %v143_v5  ;;  %v147_v12 = vld [vmem:[#allocation3 + $0x48] sm:$0xff]  ;;  %v144_v17 = vld [vmem:[#allocation3 + $0x30] sm:$0xff] }
  0x5b   :  { %v150_v8 = vld [vmem:[#allocation3 + $0x60] sm:$0xff]  ;;  %v151_v13 = vld [vmem:[#allocation3 + $0x68] sm:$0xff]  ;;  %v141_v20 = vld [vmem:[#allocation3 + $0x18] sm:$0xff]  ;;  %v8604_v23 = vcombine.high %v140_v16, %v144_v17  ;;  %v8603_v26 = vcombine.low %v140_v16, %v144_v17 }
  0x5c   :  { %v8608_v11 = vcombine.high %v146_v7, %v150_v8  ;;  %325 = vmatprep.subr.bf16.mxu0 %v8600_v4  ;;  %v8610_v14 = vcombine.high %v147_v12, %v151_v13  ;;  %v90_v15 = vld [vmem:[%s13713_s0] sm:$0xff]  ;;  %518 = vmatprep.subr.bf16.mxu1 %v8602_v9  ;;  %v8607_v18 = vcombine.low %v146_v7, %v150_v8  ;;  %v91_v19 = vld [vmem:[%s13713_s0 + $0x8] sm:$0xff]  ;;  %v145_v21 = vld [vmem:[#allocation3 + $0x38] sm:$0xff] }
  0x5d   :  { %326 = vmatpush1.bf16.msra.mxu0 %v8599_v6  ;;  %519 = vmatpush1.bf16.msra.mxu1 %v8601_v10  ;;  %v8609_v22 = vcombine.low %v147_v12, %v151_v13  ;;  %v8606_v24 = vcombine.high %v141_v20, %v145_v21  ;;  %v10458_v25 = vpack.c.bf16 %v91_v19, %v90_v15  ;;  %v148_v28 = vld [vmem:[#allocation3 + $0x50] sm:$0xff]  ;;  %v149_v30 = vld [vmem:[#allocation3 + $0x58] sm:$0xff]  ;;  %v10474_v39 = vld [vmem:[#allocation7] sm:$0xff] }
  0x5e   :  { %327 = vmatprep.subr.bf16.mxu0 %v8608_v11  ;;  %520 = vmatprep.subr.bf16.mxu1 %v8610_v14  ;;  %v8605_v27 = vcombine.low %v141_v20, %v145_v21  ;;  %v152_v29 = vld [vmem:[#allocation3 + $0x70] sm:$0xff]  ;;  %v153_v32 = vld [vmem:[#allocation3 + $0x78] sm:$0xff]  ;;  %v10476_v40 = vld [vmem:[#allocation7 + $0x20] sm:$0xff] }
  0x5f   :  { %v8612_v31 = vcombine.high %v148_v28, %v152_v29  ;;  %v92_v33 = vld [vmem:[%s13713_s0 + $0x10] sm:$0xff]  ;;  %v93_v34 = vld [vmem:[%s13713_s0 + $0x18] sm:$0xff]  ;;  %v8611_v35 = vcombine.low %v148_v28, %v152_v29  ;;  %v8614_v36 = vcombine.high %v149_v30, %v153_v32  ;;  %v8613_v37 = vcombine.low %v149_v30, %v153_v32  ;;  %v94_v47 = vld [vmem:[%s13713_s0 + $0x20] sm:$0xff] }
  0x60   :  { %v10472_v38 = vpack.c.bf16 %v93_v34, %v92_v33  ;;  %v10478_v41 = vld [vmem:[#allocation7 + $0x8] sm:$0xff]  ;;  %v8679_v42 = vcombine.low %v10474_v39, %v10476_v40  ;;  %v8680_v43 = vcombine.high %v10474_v39, %v10476_v40  ;;  %v95_v48 = vld [vmem:[%s13713_s0 + $0x28] sm:$0xff]  ;;  %v97_v51 = vld [vmem:[%s13713_s0 + $0x38] sm:$0xff] }
  0x61   :  { %328 = vmatpush1.bf16.msra.mxu0 %v8607_v18  ;;  %521 = vmatpush1.bf16.msra.mxu1 %v8609_v22  ;;  %v10484_v44 = vld [vmem:[#allocation7 + $0x28] sm:$0xff]  ;;  %v10502_v49 = vpack.c.bf16 %v95_v48, %v94_v47  ;;  %v98_v53 = vld [vmem:[%s13713_s0 + $0x40] sm:$0xff]  ;;  %v99_v54 = vld [vmem:[%s13713_s0 + $0x48] sm:$0xff] }
  0x62   :  { %711 = vmatprep.subr.bf16.mxu0 %v8604_v23  ;;  %904 = vmatprep.subr.bf16.mxu1 %v8606_v24  ;;  %v8681_v45 = vcombine.low %v10478_v41, %v10484_v44  ;;  %v8682_v46 = vcombine.high %v10478_v41, %v10484_v44  ;;  %v96_v50 = vld [vmem:[%s13713_s0 + $0x30] sm:$0xff]  ;;  %v10530_v55 = vpack.c.bf16 %v99_v54, %v98_v53  ;;  %v101_v57 = vld [vmem:[%s13713_s0 + $0x58] sm:$0xff]  ;;  %v102_v59 = vld [vmem:[%s13713_s0 + $0x60] sm:$0xff] }
  0x63   :  { %v10516_v52 = vpack.c.bf16 %v97_v51, %v96_v50  ;;  %v100_v56 = vld [vmem:[%s13713_s0 + $0x50] sm:$0xff]  ;;  %v103_v60 = vld [vmem:[%s13713_s0 + $0x68] sm:$0xff]  ;;  %v105_v63 = vld [vmem:[%s13713_s0 + $0x78] sm:$0xff] }
  0x64   :  { %8615 = vmatmul.mubr.msk.bf16.vlgmr.msra.gmra.mrb[0].mxu0 %vm276_vm0, %v10458_v25  ;;  %8631 = vmatmul.mubr.msk.bf16.vlgmr.msra.gmra.mrb[0].mxu1 %vm276_vm0, %v10458_v25  ;;  %v10544_v58 = vpack.c.bf16 %v101_v57, %v100_v56  ;;  %v10558_v61 = vpack.c.bf16 %v103_v60, %v102_v59  ;;  %v104_v62 = vld [vmem:[%s13713_s0 + $0x70] sm:$0xff]  ;;  %v106_v2 = vld [vmem:[%s13713_s0 + $0x80] sm:$0xff]  ;;  %v107_v3 = vld [vmem:[%s13713_s0 + $0x88] sm:$0xff] }
  0x65   :  { %712 = vmatpush1.bf16.msra.mxu0 %v8603_v26  ;;  %905 = vmatpush1.bf16.msra.mxu1 %v8605_v27  ;;  %v10572_v1 = vpack.c.bf16 %v105_v63, %v104_v62  ;;  %v10586_v4 = vpack.c.bf16 %v107_v3, %v106_v2  ;;  %v108_v5 = vld [vmem:[%s13713_s0 + $0x90] sm:$0xff]  ;;  %v109_v6 = vld [vmem:[%s13713_s0 + $0x98] sm:$0xff]  ;;  %v110_v8 = vld [vmem:[%s13713_s0 + $0xa0] sm:$0xff] }
  0x66   :  { %367 = vmatprep.mubr.bf16.mxu0 %v10349_v0  ;;  %560 = vmatprep.mubr.bf16.mxu1 %v10349_v0  ;;  %v10600_v7 = vpack.c.bf16 %v109_v6, %v108_v5  ;;  %v111_v9 = vld [vmem:[%s13713_s0 + $0xa8] sm:$0xff]  ;;  %v112_v11 = vld [vmem:[%s13713_s0 + $0xb0] sm:$0xff]  ;;  %v113_v12 = vld [vmem:[%s13713_s0 + $0xb8] sm:$0xff] }
  0x67   :  { %713 = vmatprep.subr.bf16.mxu0 %v8612_v31  ;;  %906 = vmatprep.subr.bf16.mxu1 %v8614_v36  ;;  %v10614_v10 = vpack.c.bf16 %v111_v9, %v110_v8  ;;  %v10628_v13 = vpack.c.bf16 %v113_v12, %v112_v11  ;;  %v114_v14 = vld [vmem:[%s13713_s0 + $0xc0] sm:$0xff]  ;;  %v115_v15 = vld [vmem:[%s13713_s0 + $0xc8] sm:$0xff]  ;;  %v116_v17 = vld [vmem:[%s13713_s0 + $0xd0] sm:$0xff] }
  0x68   :  { %v10642_v16 = vpack.c.bf16 %v115_v15, %v114_v14  ;;  %v117_v18 = vld [vmem:[%s13713_s0 + $0xd8] sm:$0xff]  ;;  %v118_v20 = vld [vmem:[%s13713_s0 + $0xe0] sm:$0xff]  ;;  %v119_v21 = vld [vmem:[%s13713_s0 + $0xe8] sm:$0xff] }
  0x69   :  { %714 = vmatpush1.bf16.msra.mxu0 %v8611_v35  ;;  %907 = vmatpush1.bf16.msra.mxu1 %v8613_v37  ;;  %v10656_v19 = vpack.c.bf16 %v117_v18, %v116_v17  ;;  %v10670_v22 = vpack.c.bf16 %v119_v21, %v118_v20  ;;  %v120_v23 = vld [vmem:[%s13713_s0 + $0xf0] sm:$0xff]  ;;  %v121_v24 = vld [vmem:[%s13713_s0 + $0xf8] sm:$0xff]  ;;  %v1489_v27 = vld [vmem:[#allocation7 + $0x40] sm:$0xff] }
  0x6a   :  { %4595 = vmatprep.subr.bf16.mxu0 %v8680_v43  ;;  %5367 = vmatprep.subr.bf16.mxu1 %v8682_v46  ;;  %v10684_v26 = vpack.c.bf16 %v121_v24, %v120_v23  ;;  %v1493_v28 = vld [vmem:[#allocation7 + $0x60] sm:$0xff]  ;;  %v1490_v29 = vld [vmem:[#allocation7 + $0x48] sm:$0xff] }
  0x6b   :  { %v1494_v30 = vld [vmem:[#allocation7 + $0x68] sm:$0xff]  ;;  %v8688_v31 = vcombine.high %v1489_v27, %v1493_v28  ;;  %v1497_v32 = vld [vmem:[#allocation7 + $0x80] sm:$0xff]  ;;  %v8687_v37 = vcombine.low %v1489_v27, %v1493_v28 }
  0x6c   :  { %8616 = vmatmul.mubr.msk.bf16.gmra.mrb[4].mxu0 %vm276_vm0, %v10472_v38  ;;  %8632 = vmatmul.mubr.msk.bf16.gmra.mrb[4].mxu1 %vm276_vm0, %v10472_v38  ;;  %v1501_v33 = vld [vmem:[#allocation7 + $0xa0] sm:$0xff]  ;;  %v8690_v34 = vcombine.high %v1490_v29, %v1494_v30  ;;  %v1498_v35 = vld [vmem:[#allocation7 + $0x88] sm:$0xff]  ;;  %v8689_v43 = vcombine.low %v1490_v29, %v1494_v30 }
  0x6d   :  { %377 = vmatprep.mubr.bf16.mxu0 %v10349_v0  ;;  %570 = vmatprep.mubr.bf16.mxu1 %v10349_v0  ;;  %v1502_v36 = vld [vmem:[#allocation7 + $0xa8] sm:$0xff]  ;;  %v8696_v46 = vcombine.high %v1497_v32, %v1501_v33  ;;  %v1505_v48 = vld [vmem:[#allocation7 + $0xc0] sm:$0xff]  ;;  %v8695_v44 = vcombine.low %v1497_v32, %v1501_v33 }
  0x6e   :  { %v8698_v47 = vcombine.high %v1498_v35, %v1502_v36  ;;  %v10704_v50 = vld [vmem:[#allocation7 + $0x400] sm:$0xff]  ;;  %v1506_v40 = vld [vmem:[#allocation7 + $0xc8] sm:$0xff] }
  0x6f   :  { %v10706_v39 = vld [vmem:[#allocation7 + $0x420] sm:$0xff]  ;;  %v10710_v53 = vld [vmem:[#allocation7 + $0x408] sm:$0xff] }
  0x70   :  { %v8807_v41 = vcombine.low %v10704_v50, %v10706_v39  ;;  %v10712_v54 = vld [vmem:[#allocation7 + $0x428] sm:$0xff]  ;;  %v1513_v57 = vld [vmem:[#allocation7 + $0x100] sm:$0xff] }
  0x71   :  { %v1517_v59 = vld [vmem:[#allocation7 + $0x120] sm:$0xff]  ;;  %v8809_v60 = vcombine.low %v10710_v53, %v10712_v54  ;;  %v1514_v62 = vld [vmem:[#allocation7 + $0x108] sm:$0xff] }
  0x72   :  { %v1518_v63 = vld [vmem:[#allocation7 + $0x128] sm:$0xff]  ;;  %v8712_v5 = vcombine.high %v1513_v57, %v1517_v59  ;;  %v1521_v8 = vld [vmem:[#allocation7 + $0x140] sm:$0xff] }
  0x73   :  { %v8714_v6 = vcombine.high %v1514_v62, %v1518_v63  ;;  %v1525_v9 = vld [vmem:[#allocation7 + $0x160] sm:$0xff]  ;;  %v1522_v11 = vld [vmem:[#allocation7 + $0x148] sm:$0xff]  ;;  %v8713_v14 = vcombine.low %v1514_v62, %v1518_v63 }
  0x74   :  { %8617 = vmatmul.mubr.msk.bf16.gmra.mrb[8].mxu0 %vm276_vm0, %v10502_v49  ;;  %8633 = vmatmul.mubr.msk.bf16.gmra.mrb[8].mxu1 %vm276_vm0, %v10502_v49  ;;  %v1526_v12 = vld [vmem:[#allocation7 + $0x168] sm:$0xff]  ;;  %v8720_v15 = vcombine.high %v1521_v8, %v1525_v9  ;;  %v1529_v18 = vld [vmem:[#allocation7 + $0x180] sm:$0xff]  ;;  %v8719_v24 = vcombine.low %v1521_v8, %v1525_v9 }
  0x75   :  { %387 = vmatprep.mubr.bf16.mxu0 %v10349_v0  ;;  %580 = vmatprep.mubr.bf16.mxu1 %v10349_v0  ;;  %v8722_v17 = vcombine.high %v1522_v11, %v1526_v12  ;;  %v1533_v20 = vld [vmem:[#allocation7 + $0x1a0] sm:$0xff]  ;;  %v1530_v21 = vld [vmem:[#allocation7 + $0x188] sm:$0xff]  ;;  %v8721_v27 = vcombine.low %v1522_v11, %v1526_v12 }
  0x76   :  { %v1534_v23 = vld [vmem:[#allocation7 + $0x1a8] sm:$0xff]  ;;  %v8728_v28 = vcombine.high %v1529_v18, %v1533_v20  ;;  %v1537_v30 = vld [vmem:[#allocation7 + $0x1c0] sm:$0xff] }
  0x77   :  { %v8730_v29 = vcombine.high %v1530_v21, %v1534_v23  ;;  %v1538_v32 = vld [vmem:[#allocation7 + $0x1c8] sm:$0xff]  ;;  %v1561_v63 = vld [vmem:[#allocation7 + $0x280] sm:$0xff] }
  0x78   :  { %v1542_v33 = vld [vmem:[#allocation7 + $0x1e8] sm:$0xff]  ;;  %v1569_v12 = vld [vmem:[#allocation7 + $0x2c0] sm:$0xff] }
  0x7c   :  { %8618 = vmatmul.mubr.msk.bf16.gmra.mrb[12].mxu0 %vm276_vm0, %v10516_v52  ;;  %8634 = vmatmul.mubr.msk.bf16.gmra.mrb[12].mxu1 %vm276_vm0, %v10516_v52 }
  0x7d   :  { %397 = vmatprep.mubr.bf16.mxu0 %v10349_v0  ;;  %590 = vmatprep.mubr.bf16.mxu1 %v10349_v0 }
  0x84   :  { %8619 = vmatmul.mubr.msk.bf16.gmra.mrb[16].mxu0 %vm276_vm0, %v10530_v55  ;;  %8635 = vmatmul.mubr.msk.bf16.gmra.mrb[16].mxu1 %vm276_vm0, %v10530_v55 }
  0x85   :  { %407 = vmatprep.mubr.bf16.mxu0 %v10349_v0  ;;  %600 = vmatprep.mubr.bf16.mxu1 %v10349_v0 }
  0x8c   :  { %8620 = vmatmul.mubr.msk.bf16.gmra.mrb[20].mxu0 %vm276_vm0, %v10544_v58  ;;  %8636 = vmatmul.mubr.msk.bf16.gmra.mrb[20].mxu1 %vm276_vm0, %v10544_v58 }
  0x8d   :  { %417 = vmatprep.mubr.bf16.mxu0 %v10349_v0  ;;  %610 = vmatprep.mubr.bf16.mxu1 %v10349_v0 }
  0x94   :  { %8621 = vmatmul.mubr.msk.bf16.gmra.mrb[24].mxu0 %vm276_vm0, %v10558_v61  ;;  %8637 = vmatmul.mubr.msk.bf16.gmra.mrb[24].mxu1 %vm276_vm0, %v10558_v61 }
  0x95   :  { %427 = vmatprep.mubr.bf16.mxu0 %v10349_v0  ;;  %620 = vmatprep.mubr.bf16.mxu1 %v10349_v0 }
  0x9c   :  { %8622 = vmatmul.mubr.msk.bf16.gmra.mrb[28].mxu0 %vm276_vm0, %v10572_v1  ;;  %8638 = vmatmul.mubr.msk.bf16.gmra.mrb[28].mxu1 %vm276_vm0, %v10572_v1 }
  0x9d   :  { %437 = vmatprep.mubr.bf16.mxu0 %v10349_v0  ;;  %630 = vmatprep.mubr.bf16.mxu1 %v10349_v0 }
  0xa4   :  { %8623 = vmatmul.mubr.msk.bf16.gmra.mrb[32].mxu0 %vm276_vm0, %v10586_v4  ;;  %8639 = vmatmul.mubr.msk.bf16.gmra.mrb[32].mxu1 %vm276_vm0, %v10586_v4 }
  0xa5   :  { %447 = vmatprep.mubr.bf16.mxu0 %v10349_v0  ;;  %640 = vmatprep.mubr.bf16.mxu1 %v10349_v0 }
  0xac   :  { %8624 = vmatmul.mubr.msk.bf16.gmra.mrb[36].mxu0 %vm276_vm0, %v10600_v7  ;;  %8640 = vmatmul.mubr.msk.bf16.gmra.mrb[36].mxu1 %vm276_vm0, %v10600_v7 }
  0xad   :  { %457 = vmatprep.mubr.bf16.mxu0 %v10349_v0  ;;  %650 = vmatprep.mubr.bf16.mxu1 %v10349_v0 }
  0xb4   :  { %8625 = vmatmul.mubr.msk.bf16.gmra.mrb[40].mxu0 %vm276_vm0, %v10614_v10  ;;  %8641 = vmatmul.mubr.msk.bf16.gmra.mrb[40].mxu1 %vm276_vm0, %v10614_v10 }
  0xb5   :  { %467 = vmatprep.mubr.bf16.mxu0 %v10349_v0  ;;  %660 = vmatprep.mubr.bf16.mxu1 %v10349_v0 }
  0xbc   :  { %8626 = vmatmul.mubr.msk.bf16.gmra.mrb[44].mxu0 %vm276_vm0, %v10628_v13  ;;  %8642 = vmatmul.mubr.msk.bf16.gmra.mrb[44].mxu1 %vm276_vm0, %v10628_v13 }
  0xbd   :  { %477 = vmatprep.mubr.bf16.mxu0 %v10349_v0  ;;  %670 = vmatprep.mubr.bf16.mxu1 %v10349_v0 }
  0xc4   :  { %8627 = vmatmul.mubr.msk.bf16.gmra.mrb[48].mxu0 %vm276_vm0, %v10642_v16  ;;  %8643 = vmatmul.mubr.msk.bf16.gmra.mrb[48].mxu1 %vm276_vm0, %v10642_v16 }
  0xc5   :  { %487 = vmatprep.mubr.bf16.mxu0 %v10349_v0  ;;  %680 = vmatprep.mubr.bf16.mxu1 %v10349_v0 }
  0xcc   :  { %8628 = vmatmul.mubr.msk.bf16.gmra.mrb[52].mxu0 %vm276_vm0, %v10656_v19  ;;  %8644 = vmatmul.mubr.msk.bf16.gmra.mrb[52].mxu1 %vm276_vm0, %v10656_v19 }
  0xcd   :  { %497 = vmatprep.mubr.bf16.mxu0 %v10349_v0  ;;  %690 = vmatprep.mubr.bf16.mxu1 %v10349_v0 }
  0xd4   :  { %8629 = vmatmul.mubr.msk.bf16.gmra.mrb[56].mxu0 %vm276_vm0, %v10670_v22  ;;  %8645 = vmatmul.mubr.msk.bf16.gmra.mrb[56].mxu1 %vm276_vm0, %v10670_v22 }
  0xd5   :  { %507 = vmatprep.mubr.bf16.mxu0 %v10349_v0  ;;  %700 = vmatprep.mubr.bf16.mxu1 %v10349_v0 }
  0xdc   :  { %8630 = vmatmul.mubr.msk.bf16.gmra.mrb[60].mxu0 %vm276_vm0, %v10684_v26  ;;  %8646 = vmatmul.mubr.msk.bf16.gmra.mrb[60].mxu1 %vm276_vm0, %v10684_v26 }
  0xdd   :  { %743 = vmatprep.mubr.bf16.mxu0 %v10349_v0  ;;  %936 = vmatprep.mubr.bf16.mxu1 %v10349_v0 }
  0xe4   :  { %8647 = vmatmul.mubr.msk.bf16.vlgmr.msra.gmra.mrb[64].mxu0 %vm276_vm0, %v10458_v25  ;;  %8663 = vmatmul.mubr.msk.bf16.vlgmr.msra.gmra.mrb[64].mxu1 %vm276_vm0, %v10458_v25  ;;  %v1509_v25 = vld [vmem:[#allocation7 + $0xe0] sm:$0xff] }
  0xe5   :  { %4596 = vmatpush1.bf16.msra.mxu0 %v8679_v42  ;;  %5368 = vmatpush1.bf16.msra.mxu1 %v8681_v45  ;;  %v1510_v42 = vld [vmem:[#allocation7 + $0xe8] sm:$0xff]  ;;  %v8697_v45 = vcombine.low %v1498_v35, %v1502_v36  ;;  %v8704_v51 = vcombine.high %v1505_v48, %v1509_v25  ;;  %v8703_v2 = vcombine.low %v1505_v48, %v1509_v25 }
  0xe6   :  { %753 = vmatprep.mubr.bf16.mxu0 %v10349_v0  ;;  %946 = vmatprep.mubr.bf16.mxu1 %v10349_v0  ;;  %v8706_v56 = vcombine.high %v1506_v40, %v1510_v42  ;;  %v8705_v3 = vcombine.low %v1506_v40, %v1510_v42  ;;  %v8738_v36 = vcombine.high %v1538_v32, %v1542_v33 }
  0xe7   :  { %4597 = vmatprep.subr.bf16.mxu0 %v8688_v31  ;;  %5369 = vmatprep.subr.bf16.mxu1 %v8690_v34  ;;  %v1541_v31 = vld [vmem:[#allocation7 + $0x1e0] sm:$0xff]  ;;  %v8729_v34 = vcombine.low %v1530_v21, %v1534_v23  ;;  %v8737_v25 = vcombine.low %v1538_v32, %v1542_v33 }
  0xe8   :  { %v8736_v35 = vcombine.high %v1537_v30, %v1541_v31  ;;  %v8735_v48 = vcombine.low %v1537_v30, %v1541_v31  ;;  %v1577_v21 = vld [vmem:[#allocation7 + $0x300] sm:$0xff] }
  0xe9   :  { %4598 = vmatpush1.bf16.msra.mxu0 %v8687_v37  ;;  %5370 = vmatpush1.bf16.msra.mxu1 %v8689_v43  ;;  %v1545_v37 = vld [vmem:[#allocation7 + $0x200] sm:$0xff] }
  0xea   :  { %4599 = vmatprep.subr.bf16.mxu0 %v8696_v46  ;;  %5371 = vmatprep.subr.bf16.mxu1 %v8698_v47  ;;  %v1549_v43 = vld [vmem:[#allocation7 + $0x220] sm:$0xff]  ;;  %v1546_v46 = vld [vmem:[#allocation7 + $0x208] sm:$0xff] }
  0xeb   :  { %v1550_v47 = vld [vmem:[#allocation7 + $0x228] sm:$0xff]  ;;  %v8744_v40 = vcombine.high %v1545_v37, %v1549_v43  ;;  %v1581_v23 = vld [vmem:[#allocation7 + $0x320] sm:$0xff] }
  0xec   :  { %8648 = vmatmul.mubr.msk.bf16.gmra.mrb[68].mxu0 %vm276_vm0, %v10472_v38  ;;  %8664 = vmatmul.mubr.msk.bf16.gmra.mrb[68].mxu1 %vm276_vm0, %v10472_v38  ;;  %v8711_v38 = vcombine.low %v1513_v57, %v1517_v59  ;;  %v8746_v42 = vcombine.high %v1546_v46, %v1550_v47  ;;  %v8745_v57 = vcombine.low %v1546_v46, %v1550_v47  ;;  %v1585_v32 = vld [vmem:[#allocation7 + $0x340] sm:$0xff]  ;;  %v1594_v47 = vld [vmem:[#allocation7 + $0x388] sm:$0xff] }
  0xed   :  { %763 = vmatprep.mubr.bf16.mxu0 %v10349_v0  ;;  %956 = vmatprep.mubr.bf16.mxu1 %v10349_v0  ;;  %v8776_v30 = vcombine.high %v1577_v21, %v1581_v23  ;;  %v1589_v33 = vld [vmem:[#allocation7 + $0x360] sm:$0xff] }
  0xee   :  { %4600 = vmatpush1.bf16.msra.mxu0 %v8695_v44  ;;  %5372 = vmatpush1.bf16.msra.mxu1 %v8697_v45  ;;  %v1553_v44 = vld [vmem:[#allocation7 + $0x240] sm:$0xff] }
  0xef   :  { %4601 = vmatprep.subr.bf16.mxu0 %v8704_v51  ;;  %5373 = vmatprep.subr.bf16.mxu1 %v8706_v56  ;;  %v1557_v45 = vld [vmem:[#allocation7 + $0x260] sm:$0xff]  ;;  %v1554_v51 = vld [vmem:[#allocation7 + $0x248] sm:$0xff] }
  0xf0   :  { %v1558_v56 = vld [vmem:[#allocation7 + $0x268] sm:$0xff]  ;;  %v8752_v59 = vcombine.high %v1553_v44, %v1557_v45  ;;  %v1597_v46 = vld [vmem:[#allocation7 + $0x3a0] sm:$0xff] }
  0xf1   :  { %v8754_v62 = vcombine.high %v1554_v51, %v1558_v56  ;;  %v8753_v8 = vcombine.low %v1554_v51, %v1558_v56  ;;  %v1605_v51 = vld [vmem:[#allocation7 + $0x3e0] sm:$0xff]  ;;  %v1602_v56 = vld [vmem:[#allocation7 + $0x3c8] sm:$0xff] }
  0xf2   :  { %4602 = vmatpush1.bf16.msra.mxu0 %v8703_v2  ;;  %5374 = vmatpush1.bf16.msra.mxu1 %v8705_v3  ;;  %v1565_v2 = vld [vmem:[#allocation7 + $0x2a0] sm:$0xff]  ;;  %v1562_v3 = vld [vmem:[#allocation7 + $0x288] sm:$0xff] }
  0xf3   :  { %4603 = vmatprep.subr.bf16.mxu0 %v8712_v5  ;;  %5375 = vmatprep.subr.bf16.mxu1 %v8714_v6  ;;  %v1566_v5 = vld [vmem:[#allocation7 + $0x2a8] sm:$0xff]  ;;  %v8751_v6 = vcombine.low %v1553_v44, %v1557_v45  ;;  %v8760_v9 = vcombine.high %v1561_v63, %v1565_v2  ;;  %v1601_v45 = vld [vmem:[#allocation7 + $0x3c0] sm:$0xff] }
  0xf4   :  { %8649 = vmatmul.mubr.msk.bf16.gmra.mrb[72].mxu0 %vm276_vm0, %v10502_v49  ;;  %8665 = vmatmul.mubr.msk.bf16.gmra.mrb[72].mxu1 %vm276_vm0, %v10502_v49  ;;  %v8727_v49 = vcombine.low %v1529_v18, %v1533_v20  ;;  %v8762_v11 = vcombine.high %v1562_v3, %v1566_v5 }
  0xf5   :  { %773 = vmatprep.mubr.bf16.mxu0 %v10349_v0  ;;  %966 = vmatprep.mubr.bf16.mxu1 %v10349_v0 }
  0xf6   :  { %4604 = vmatpush1.bf16.msra.mxu0 %v8711_v38  ;;  %5376 = vmatpush1.bf16.msra.mxu1 %v8713_v14  ;;  %v1573_v38 = vld [vmem:[#allocation7 + $0x2e0] sm:$0xff]  ;;  %v1570_v14 = vld [vmem:[#allocation7 + $0x2c8] sm:$0xff] }
  0xf7   :  { %4605 = vmatprep.subr.bf16.mxu0 %v8720_v15  ;;  %5377 = vmatprep.subr.bf16.mxu1 %v8722_v17  ;;  %v1574_v15 = vld [vmem:[#allocation7 + $0x2e8] sm:$0xff]  ;;  %v8761_v17 = vcombine.low %v1562_v3, %v1566_v5  ;;  %v8768_v18 = vcombine.high %v1569_v12, %v1573_v38  ;;  %v8808_v3 = vcombine.high %v10704_v50, %v10706_v39  ;;  %v10968_v39 = vld [vmem:[#allocation7 + $0x4e0] sm:$0xff] }
  0xf8   :  { %v8770_v20 = vcombine.high %v1570_v14, %v1574_v15  ;;  %v8810_v5 = vcombine.high %v10710_v53, %v10712_v54 }
  0xfa   :  { %4606 = vmatpush1.bf16.msra.mxu0 %v8719_v24  ;;  %5378 = vmatpush1.bf16.msra.mxu1 %v8721_v27  ;;  %v1578_v24 = vld [vmem:[#allocation7 + $0x308] sm:$0xff] }
  0xfb   :  { %4607 = vmatprep.subr.bf16.mxu0 %v8728_v28  ;;  %5379 = vmatprep.subr.bf16.mxu1 %v8730_v29  ;;  %v1582_v27 = vld [vmem:[#allocation7 + $0x328] sm:$0xff]  ;;  %v8767_v28 = vcombine.low %v1569_v12, %v1573_v38  ;;  %v8769_v29 = vcombine.low %v1570_v14, %v1574_v15 }
  0xfc   :  { %8650 = vmatmul.mubr.msk.bf16.gmra.mrb[76].mxu0 %vm276_vm0, %v10516_v52  ;;  %8666 = vmatmul.mubr.msk.bf16.gmra.mrb[76].mxu1 %vm276_vm0, %v10516_v52  ;;  %v8743_v52 = vcombine.low %v1545_v37, %v1549_v43  ;;  %v8778_v31 = vcombine.high %v1578_v24, %v1582_v27  ;;  %v1593_v43 = vld [vmem:[#allocation7 + $0x380] sm:$0xff] }
  0xfd   :  { %783 = vmatprep.mubr.bf16.mxu0 %v10349_v0  ;;  %976 = vmatprep.mubr.bf16.mxu1 %v10349_v0 }
  0xfe   :  { %4608 = vmatpush1.bf16.msra.mxu0 %v8727_v49  ;;  %5380 = vmatpush1.bf16.msra.mxu1 %v8729_v34  ;;  %v1586_v49 = vld [vmem:[#allocation7 + $0x348] sm:$0xff] }
  0xff   :  { %4609 = vmatprep.subr.bf16.mxu0 %v8736_v35  ;;  %5381 = vmatprep.subr.bf16.mxu1 %v8738_v36  ;;  %v1590_v34 = vld [vmem:[#allocation7 + $0x368] sm:$0xff]  ;;  %v8777_v35 = vcombine.low %v1578_v24, %v1582_v27  ;;  %v8784_v36 = vcombine.high %v1585_v32, %v1589_v33 }
 0x100   :  { %v8786_v37 = vcombine.high %v1586_v49, %v1590_v34 }
 0x102   :  { %4610 = vmatpush1.bf16.msra.mxu0 %v8735_v48  ;;  %5382 = vmatpush1.bf16.msra.mxu1 %v8737_v25  ;;  %v1598_v48 = vld [vmem:[#allocation7 + $0x3a8] sm:$0xff]  ;;  %v8783_v25 = vcombine.low %v1585_v32, %v1589_v33 }
 0x103   :  { %4611 = vmatprep.subr.bf16.mxu0 %v8744_v40  ;;  %5383 = vmatprep.subr.bf16.mxu1 %v8746_v42  ;;  %v8785_v40 = vcombine.low %v1586_v49, %v1590_v34  ;;  %v8792_v42 = vcombine.high %v1593_v43, %v1597_v46  ;;  %v8794_v44 = vcombine.high %v1594_v47, %v1598_v48 }
 0x104   :  { %8651 = vmatmul.mubr.msk.bf16.gmra.mrb[80].mxu0 %vm276_vm0, %v10530_v55  ;;  %8667 = vmatmul.mubr.msk.bf16.gmra.mrb[80].mxu1 %vm276_vm0, %v10530_v55  ;;  %v8759_v55 = vcombine.low %v1561_v63, %v1565_v2  ;;  %v8799_v63 = vcombine.low %v1601_v45, %v1605_v51 }
 0x105   :  { %793 = vmatprep.mubr.bf16.mxu0 %v10349_v0  ;;  %986 = vmatprep.mubr.bf16.mxu1 %v10349_v0 }
 0x106   :  { %4612 = vmatpush1.bf16.msra.mxu0 %v8743_v52  ;;  %5384 = vmatpush1.bf16.msra.mxu1 %v8745_v57  ;;  %v1606_v52 = vld [vmem:[#allocation7 + $0x3e8] sm:$0xff]  ;;  %v8793_v57 = vcombine.low %v1594_v47, %v1598_v48 }
 0x107   :  { %4613 = vmatprep.subr.bf16.mxu0 %v8752_v59  ;;  %5385 = vmatprep.subr.bf16.mxu1 %v8754_v62  ;;  %v8800_v59 = vcombine.high %v1601_v45, %v1605_v51  ;;  %v8802_v62 = vcombine.high %v1602_v56, %v1606_v52  ;;  %v8801_v2 = vcombine.low %v1602_v56, %v1606_v52 }
 0x10a   :  { %4614 = vmatpush1.bf16.msra.mxu0 %v8751_v6  ;;  %5386 = vmatpush1.bf16.msra.mxu1 %v8753_v8 }
 0x10b   :  { %4615 = vmatprep.subr.bf16.mxu0 %v8760_v9  ;;  %5387 = vmatprep.subr.bf16.mxu1 %v8762_v11 }
 0x10c   :  { %8652 = vmatmul.mubr.msk.bf16.gmra.mrb[84].mxu0 %vm276_vm0, %v10544_v58  ;;  %8668 = vmatmul.mubr.msk.bf16.gmra.mrb[84].mxu1 %vm276_vm0, %v10544_v58  ;;  %v8775_v58 = vcombine.low %v1577_v21, %v1581_v23 }
 0x10d   :  { %803 = vmatprep.mubr.bf16.mxu0 %v10349_v0  ;;  %996 = vmatprep.mubr.bf16.mxu1 %v10349_v0 }
 0x10e   :  { %4616 = vmatpush1.bf16.msra.mxu0 %v8759_v55  ;;  %5388 = vmatpush1.bf16.msra.mxu1 %v8761_v17 }
 0x10f   :  { %4617 = vmatprep.subr.bf16.mxu0 %v8768_v18  ;;  %5389 = vmatprep.subr.bf16.mxu1 %v8770_v20 }
 0x112   :  { %4618 = vmatpush1.bf16.msra.mxu0 %v8767_v28  ;;  %5390 = vmatpush1.bf16.msra.mxu1 %v8769_v29 }
 0x113   :  { %4619 = vmatprep.subr.bf16.mxu0 %v8776_v30  ;;  %5391 = vmatprep.subr.bf16.mxu1 %v8778_v31 }
 0x114   :  { %8653 = vmatmul.mubr.msk.bf16.gmra.mrb[88].mxu0 %vm276_vm0, %v10558_v61  ;;  %8669 = vmatmul.mubr.msk.bf16.gmra.mrb[88].mxu1 %vm276_vm0, %v10558_v61  ;;  %v8791_v61 = vcombine.low %v1593_v43, %v1597_v46 }
 0x115   :  { %813 = vmatprep.mubr.bf16.mxu0 %v10349_v0  ;;  %1006 = vmatprep.mubr.bf16.mxu1 %v10349_v0 }
 0x116   :  { %4620 = vmatpush1.bf16.msra.mxu0 %v8775_v58  ;;  %5392 = vmatpush1.bf16.msra.mxu1 %v8777_v35 }
 0x117   :  { %4621 = vmatprep.subr.bf16.mxu0 %v8784_v36  ;;  %5393 = vmatprep.subr.bf16.mxu1 %v8786_v37 }
 0x11a   :  { %4622 = vmatpush1.bf16.msra.mxu0 %v8783_v25  ;;  %5394 = vmatpush1.bf16.msra.mxu1 %v8785_v40 }
 0x11b   :  { %4623 = vmatprep.subr.bf16.mxu0 %v8792_v42  ;;  %5395 = vmatprep.subr.bf16.mxu1 %v8794_v44 }
 0x11c   :  { %8654 = vmatmul.mubr.msk.bf16.gmra.mrb[92].mxu0 %vm276_vm0, %v10572_v1  ;;  %8670 = vmatmul.mubr.msk.bf16.gmra.mrb[92].mxu1 %vm276_vm0, %v10572_v1  ;;  %v156_v1 = vlaneseq }
 0x11d   :  { %823 = vmatprep.mubr.bf16.mxu0 %v10349_v0  ;;  %1016 = vmatprep.mubr.bf16.mxu1 %v10349_v0 }
 0x11e   :  { %4624 = vmatpush1.bf16.msra.mxu0 %v8791_v61  ;;  %5396 = vmatpush1.bf16.msra.mxu1 %v8793_v57  ;;  %v10770_v6 = vshrl.u32 %v156_v1, 7 }
 0x11f   :  { %4625 = vmatprep.subr.bf16.mxu0 %v8800_v59  ;;  %5397 = vmatprep.subr.bf16.mxu1 %v8802_v62 }
 0x120   :  { %v10777_v8 = vsub.s32 0, %v10770_v6  ;;  %v10780_v9 = vsub.s32 1, %v10770_v6  ;;  %v10783_v11 = vsub.s32 2, %v10770_v6  ;;  %v10786_v12 = vsub.s32 3, %v10770_v6 }
 0x122   :  { %4626 = vmatpush1.bf16.msra.mxu0 %v8799_v63  ;;  %5398 = vmatpush1.bf16.msra.mxu1 %v8801_v2  ;;  %14029 = vst [vmem:[#allocation14_spill] sm:$0xff] %v10777_v8  ;;  %14030 = vst [vmem:[#allocation15_spill] sm:$0xff] %v10780_v9 }
 0x123   :  { %4788 = vmatprep.subr.bf16.mxu0 %v8808_v3  ;;  %5560 = vmatprep.subr.bf16.mxu1 %v8810_v5  ;;  %14031 = vst [vmem:[#allocation16_spill] sm:$0xff] %v10783_v11  ;;  %14032 = vst [vmem:[#allocation17_spill] sm:$0xff] %v10786_v12 }
 0x124   :  { %8655 = vmatmul.mubr.msk.bf16.gmra.mrb[96].mxu0 %vm276_vm0, %v10586_v4  ;;  %8671 = vmatmul.mubr.msk.bf16.gmra.mrb[96].mxu1 %vm276_vm0, %v10586_v4  ;;  %v154_v4 = vld [vmem:[#allocation5] sm:$0xff] }
 0x125   :  { %833 = vmatprep.mubr.bf16.mxu0 %v10349_v0  ;;  %1026 = vmatprep.mubr.bf16.mxu1 %v10349_v0  ;;  %v10796_v38 = vrot.slane %v154_v4, %v10780_v9  ;;  %v10799_v14 = vrot.slane %v154_v4, %v10783_v11  ;;  %v10803_v15 = vrot.slane %v154_v4, %v10786_v12 }
 0x12c   :  { %8656 = vmatmul.mubr.msk.bf16.gmra.mrb[100].mxu0 %vm276_vm0, %v10600_v7  ;;  %8672 = vmatmul.mubr.msk.bf16.gmra.mrb[100].mxu1 %vm276_vm0, %v10600_v7  ;;  %v10791_v7 = vrot.slane %v154_v4, %v10777_v8 }
 0x12d   :  { %843 = vmatprep.mubr.bf16.mxu0 %v10349_v0  ;;  %1036 = vmatprep.mubr.bf16.mxu1 %v10349_v0 }
 0x134   :  { %8657 = vmatmul.mubr.msk.bf16.gmra.mrb[104].mxu0 %vm276_vm0, %v10614_v10  ;;  %8673 = vmatmul.mubr.msk.bf16.gmra.mrb[104].mxu1 %vm276_vm0, %v10614_v10 }
 0x135   :  { %853 = vmatprep.mubr.bf16.mxu0 %v10349_v0  ;;  %1046 = vmatprep.mubr.bf16.mxu1 %v10349_v0 }
 0x137   :  { %v359_v55 = vpop.f32.mrb[0].mxu0  ;;  %v552_v20 = vpop.f32.mrb[0].mxu1 }
 0x138   :  { %v360_v17 = vadd.f32 %v359_v55, %v10791_v7  ;;  %v361_v18 = vpop.f32.mrb[1].mxu0  ;;  %v553_v23 = vadd.f32 %v552_v20, %v10799_v14  ;;  %v554_v24 = vpop.f32.mrb[1].mxu1 }
 0x139   :  { %v362_v10 = vadd.f32 %v361_v18, %v10796_v38  ;;  %v363_v21 = vpop.f32.mrb[2].mxu0  ;;  %v555_v29 = vadd.f32 %v554_v24, %v10803_v15  ;;  %v556_v30 = vpop.f32.mrb[2].mxu1 }
 0x13a   :  { %v364_v27 = vadd.f32 %v363_v21, %v10791_v7  ;;  %v365_v28 = vpop.f32.mrb[3].mxu0  ;;  %v1099_v31 = vmax.f32 %v553_v23, 0.0  ;;  %v557_v33 = vadd.f32 %v556_v30, %v10799_v14  ;;  %v558_v49 = vpop.f32.mrb[3].mxu1  ;;  %v1097_v34 = vmax.f32 %v360_v17, 0.0 }
 0x13b   :  { %v366_v32 = vadd.f32 %v365_v28, %v10796_v38  ;;  %v1100_v35 = vmax.f32 %v555_v29, 0.0  ;;  %v559_v36 = vadd.f32 %v558_v49, %v10803_v15  ;;  %v1098_v37 = vmax.f32 %v362_v10, 0.0 }
 0x13c   :  { %v1105_v58 = vmax.f32 %v364_v27, 0.0  ;;  %8658 = vmatmul.mubr.msk.bf16.gmra.mrb[108].mxu0 %vm276_vm0, %v10628_v13  ;;  %v1107_v46 = vmax.f32 %v557_v33, 0.0  ;;  %8674 = vmatmul.mubr.msk.bf16.gmra.mrb[108].mxu1 %vm276_vm0, %v10628_v13 }
 0x13d   :  { %v1106_v43 = vmax.f32 %v366_v32, 0.0  ;;  %863 = vmatprep.mubr.bf16.mxu0 %v10349_v0  ;;  %v1108_v48 = vmax.f32 %v559_v36, 0.0  ;;  %1056 = vmatprep.mubr.bf16.mxu1 %v10349_v0 }
 0x13e   :  { %v10819_v47 = vpack.c.bf16 %v1105_v58, %v1097_v34  ;;  %v10824_v40 = vpack.c.bf16 %v1107_v46, %v1099_v31 }
 0x13f   :  { %v10822_v25 = vpack.c.bf16 %v1106_v43, %v1098_v37  ;;  %v369_v42 = vpop.f32.mrb[4].mxu0  ;;  %v10826_v44 = vpack.c.bf16 %v1108_v48, %v1100_v35  ;;  %v562_v56 = vpop.f32.mrb[4].mxu1 }
 0x140   :  { %14033 = vst [vmem:[#allocation18_spill] sm:$0xff] %v10819_v47  ;;  %14035 = vst [vmem:[#allocation20_spill] sm:$0xff] %v10824_v40  ;;  %v370_v45 = vadd.f32 %v369_v42, %v10791_v7  ;;  %v371_v51 = vpop.f32.mrb[5].mxu0  ;;  %v563_v61 = vadd.f32 %v562_v56, %v10799_v14  ;;  %v564_v57 = vpop.f32.mrb[5].mxu1 }
 0x141   :  { %14034 = vst [vmem:[#allocation19_spill] sm:$0xff] %v10822_v25  ;;  %14036 = vst [vmem:[#allocation21_spill] sm:$0xff] %v10826_v44  ;;  %v372_v13 = vadd.f32 %v371_v51, %v10796_v38  ;;  %v373_v52 = vpop.f32.mrb[6].mxu0  ;;  %v565_v63 = vadd.f32 %v564_v57, %v10803_v15  ;;  %v566_v2 = vpop.f32.mrb[6].mxu1 }
 0x142   :  { %v374_v59 = vadd.f32 %v373_v52, %v10791_v7  ;;  %v375_v62 = vpop.f32.mrb[7].mxu0  ;;  %v1115_v3 = vmax.f32 %v563_v61, 0.0  ;;  %v567_v1 = vadd.f32 %v566_v2, %v10799_v14  ;;  %v568_v4 = vpop.f32.mrb[7].mxu1  ;;  %v1113_v55 = vmax.f32 %v370_v45, 0.0 }
 0x143   :  { %v376_v5 = vadd.f32 %v375_v62, %v10796_v38  ;;  %v1116_v18 = vmax.f32 %v565_v63, 0.0  ;;  %v569_v20 = vadd.f32 %v568_v4, %v10803_v15  ;;  %v1114_v10 = vmax.f32 %v372_v13, 0.0 }
 0x144   :  { %v1121_v17 = vmax.f32 %v374_v59, 0.0  ;;  %8659 = vmatmul.mubr.msk.bf16.gmra.mrb[112].mxu0 %vm276_vm0, %v10642_v16  ;;  %v1123_v23 = vmax.f32 %v567_v1, 0.0  ;;  %8675 = vmatmul.mubr.msk.bf16.gmra.mrb[112].mxu1 %vm276_vm0, %v10642_v16 }
 0x145   :  { %v1122_v21 = vmax.f32 %v376_v5, 0.0  ;;  %873 = vmatprep.mubr.bf16.mxu0 %v10349_v0  ;;  %v1124_v27 = vmax.f32 %v569_v20, 0.0  ;;  %1066 = vmatprep.mubr.bf16.mxu1 %v10349_v0 }
 0x146   :  { %v10841_v24 = vpack.c.bf16 %v1121_v17, %v1113_v55  ;;  %v10846_v29 = vpack.c.bf16 %v1123_v23, %v1115_v3 }
 0x147   :  { %v10844_v28 = vpack.c.bf16 %v1122_v21, %v1114_v10  ;;  %v379_v30 = vpop.f32.mrb[8].mxu0  ;;  %v10848_v31 = vpack.c.bf16 %v1124_v27, %v1116_v18  ;;  %v572_v49 = vpop.f32.mrb[8].mxu1 }
 0x148   :  { %14037 = vst [vmem:[#allocation22_spill] sm:$0xff] %v10841_v24  ;;  %14039 = vst [vmem:[#allocation24_spill] sm:$0xff] %v10846_v29  ;;  %v380_v32 = vadd.f32 %v379_v30, %v10791_v7  ;;  %v381_v33 = vpop.f32.mrb[9].mxu0  ;;  %v573_v58 = vadd.f32 %v572_v49, %v10799_v14  ;;  %v574_v35 = vpop.f32.mrb[9].mxu1 }
 0x149   :  { %14038 = vst [vmem:[#allocation23_spill] sm:$0xff] %v10844_v28  ;;  %14040 = vst [vmem:[#allocation25_spill] sm:$0xff] %v10848_v31  ;;  %v382_v16 = vadd.f32 %v381_v33, %v10796_v38  ;;  %v383_v34 = vpop.f32.mrb[10].mxu0  ;;  %v575_v43 = vadd.f32 %v574_v35, %v10803_v15  ;;  %v576_v46 = vpop.f32.mrb[10].mxu1 }
 0x14a   :  { %v384_v36 = vadd.f32 %v383_v34, %v10791_v7  ;;  %v385_v37 = vpop.f32.mrb[11].mxu0  ;;  %v1131_v48 = vmax.f32 %v573_v58, 0.0  ;;  %v577_v45 = vadd.f32 %v576_v46, %v10799_v14  ;;  %v578_v51 = vpop.f32.mrb[11].mxu1  ;;  %v1129_v56 = vmax.f32 %v380_v32, 0.0 }
 0x14b   :  { %v386_v42 = vadd.f32 %v385_v37, %v10796_v38  ;;  %v1132_v52 = vmax.f32 %v575_v43, 0.0  ;;  %v579_v61 = vadd.f32 %v578_v51, %v10803_v15  ;;  %v1130_v57 = vmax.f32 %v382_v16, 0.0 }
 0x14c   :  { %v1137_v13 = vmax.f32 %v384_v36, 0.0  ;;  %8660 = vmatmul.mubr.msk.bf16.gmra.mrb[116].mxu0 %vm276_vm0, %v10656_v19  ;;  %v1139_v62 = vmax.f32 %v577_v45, 0.0  ;;  %8676 = vmatmul.mubr.msk.bf16.gmra.mrb[116].mxu1 %vm276_vm0, %v10656_v19 }
 0x14d   :  { %v1138_v59 = vmax.f32 %v386_v42, 0.0  ;;  %883 = vmatprep.mubr.bf16.mxu0 %v10349_v0  ;;  %v1140_v2 = vmax.f32 %v579_v61, 0.0  ;;  %1076 = vmatprep.mubr.bf16.mxu1 %v10349_v0 }
 0x14e   :  { %v10863_v63 = vpack.c.bf16 %v1137_v13, %v1129_v56  ;;  %v10868_v5 = vpack.c.bf16 %v1139_v62, %v1131_v48 }
 0x14f   :  { %v10866_v3 = vpack.c.bf16 %v1138_v59, %v1130_v57  ;;  %v389_v1 = vpop.f32.mrb[12].mxu0  ;;  %v10870_v4 = vpack.c.bf16 %v1140_v2, %v1132_v52  ;;  %v582_v18 = vpop.f32.mrb[12].mxu1 }
 0x150   :  { %14041 = vst [vmem:[#allocation26_spill] sm:$0xff] %v10863_v63  ;;  %14043 = vst [vmem:[#allocation28_spill] sm:$0xff] %v10868_v5  ;;  %v390_v55 = vadd.f32 %v389_v1, %v10791_v7  ;;  %v391_v17 = vpop.f32.mrb[13].mxu0  ;;  %v583_v10 = vadd.f32 %v582_v18, %v10799_v14  ;;  %v584_v21 = vpop.f32.mrb[13].mxu1 }
 0x151   :  { %14042 = vst [vmem:[#allocation27_spill] sm:$0xff] %v10866_v3  ;;  %14044 = vst [vmem:[#allocation29_spill] sm:$0xff] %v10870_v4  ;;  %v392_v19 = vadd.f32 %v391_v17, %v10796_v38  ;;  %v393_v20 = vpop.f32.mrb[14].mxu0  ;;  %v585_v30 = vadd.f32 %v584_v21, %v10803_v15  ;;  %v586_v32 = vpop.f32.mrb[14].mxu1 }
 0x152   :  { %v394_v23 = vadd.f32 %v393_v20, %v10791_v7  ;;  %v395_v27 = vpop.f32.mrb[15].mxu0  ;;  %v1147_v33 = vmax.f32 %v583_v10, 0.0  ;;  %v587_v16 = vadd.f32 %v586_v32, %v10799_v14  ;;  %v588_v34 = vpop.f32.mrb[15].mxu1  ;;  %v1145_v58 = vmax.f32 %v390_v55, 0.0 }
 0x153   :  { %v396_v49 = vadd.f32 %v395_v27, %v10796_v38  ;;  %v1148_v36 = vmax.f32 %v585_v30, 0.0  ;;  %v589_v37 = vadd.f32 %v588_v34, %v10803_v15  ;;  %v1146_v43 = vmax.f32 %v392_v19, 0.0 }
 0x154   :  { %v1153_v35 = vmax.f32 %v394_v23, 0.0  ;;  %8661 = vmatmul.mubr.msk.bf16.gmra.mrb[120].mxu0 %vm276_vm0, %v10670_v22  ;;  %v1155_v48 = vmax.f32 %v587_v16, 0.0  ;;  %8677 = vmatmul.mubr.msk.bf16.gmra.mrb[120].mxu1 %vm276_vm0, %v10670_v22 }
 0x155   :  { %v1154_v46 = vmax.f32 %v396_v49, 0.0  ;;  %893 = vmatprep.mubr.bf16.mxu0 %v10349_v0  ;;  %v1156_v45 = vmax.f32 %v589_v37, 0.0  ;;  %1086 = vmatprep.mubr.bf16.mxu1 %v10349_v0 }
 0x156   :  { %v10885_v42 = vpack.c.bf16 %v1153_v35, %v1145_v58  ;;  %v10890_v56 = vpack.c.bf16 %v1155_v48, %v1147_v33 }
 0x157   :  { %v10888_v51 = vpack.c.bf16 %v1154_v46, %v1146_v43  ;;  %v399_v13 = vpop.f32.mrb[16].mxu0  ;;  %v10892_v52 = vpack.c.bf16 %v1156_v45, %v1148_v36  ;;  %v592_v59 = vpop.f32.mrb[16].mxu1  ;;  %v10914_v43 = vld [vmem:[#allocation7 + $0x440] sm:$0xff] }
 0x158   :  { %14045 = vst [vmem:[#allocation30_spill] sm:$0xff] %v10885_v42  ;;  %14047 = vst [vmem:[#allocation32_spill] sm:$0xff] %v10890_v56  ;;  %v400_v61 = vadd.f32 %v399_v13, %v10791_v7  ;;  %v401_v57 = vpop.f32.mrb[17].mxu0  ;;  %v593_v2 = vadd.f32 %v592_v59, %v10799_v14  ;;  %v594_v1 = vpop.f32.mrb[17].mxu1  ;;  %v10916_v46 = vld [vmem:[#allocation7 + $0x460] sm:$0xff] }
 0x159   :  { %14046 = vst [vmem:[#allocation31_spill] sm:$0xff] %v10888_v51  ;;  %14048 = vst [vmem:[#allocation33_spill] sm:$0xff] %v10892_v52  ;;  %v402_v22 = vadd.f32 %v401_v57, %v10796_v38  ;;  %v403_v62 = vpop.f32.mrb[18].mxu0  ;;  %v595_v17 = vadd.f32 %v594_v1, %v10803_v15  ;;  %v596_v18 = vpop.f32.mrb[18].mxu1  ;;  %v10923_v57 = vld [vmem:[#allocation7 + $0x468] sm:$0xff] }
 0x15a   :  { %v404_v55 = vadd.f32 %v403_v62, %v10791_v7  ;;  %v405_v0 = vpop.f32.mrb[19].mxu0  ;;  %v1163_v19 = vmax.f32 %v593_v2, 0.0  ;;  %v597_v10 = vadd.f32 %v596_v18, %v10799_v14  ;;  %v598_v21 = vpop.f32.mrb[19].mxu1  ;;  %v1161_v23 = vmax.f32 %v400_v61, 0.0  ;;  %v10921_v61 = vld [vmem:[#allocation7 + $0x448] sm:$0xff] }
 0x15b   :  { %v406_v20 = vadd.f32 %v405_v0, %v10796_v38  ;;  %v1164_v30 = vmax.f32 %v595_v17, 0.0  ;;  %v599_v32 = vadd.f32 %v598_v21, %v10803_v15  ;;  %v1162_v33 = vmax.f32 %v402_v22, 0.0 }
 0x15c   :  { %v1169_v27 = vmax.f32 %v404_v55, 0.0  ;;  %8662 = vmatmul.mubr.msk.bf16.gmra.mrb[124].mxu0 %vm276_vm0, %v10684_v26  ;;  %v1171_v16 = vmax.f32 %v597_v10, 0.0  ;;  %8678 = vmatmul.mubr.msk.bf16.gmra.mrb[124].mxu1 %vm276_vm0, %v10684_v26  ;;  %v8816_v18 = vcombine.high %v10914_v43, %v10916_v46 }
 0x15d   :  { %v1170_v49 = vmax.f32 %v406_v20, 0.0  ;;  %4627 = vmatprep.mubr.bf16.mxu0 %v10822_v25  ;;  %v1172_v58 = vmax.f32 %v599_v32, 0.0  ;;  %5399 = vmatprep.mubr.bf16.mxu1 %v10822_v25 }
 0x15e   :  { %v10907_v34 = vpack.c.bf16 %v1169_v27, %v1161_v23  ;;  %v10912_v36 = vpack.c.bf16 %v1171_v16, %v1163_v19  ;;  %v8818_v23 = vcombine.high %v10921_v61, %v10923_v57  ;;  %v10939_v16 = vld [vmem:[#allocation7 + $0x4a0] sm:$0xff] }
 0x15f   :  { %v10910_v35 = vpack.c.bf16 %v1170_v49, %v1162_v33  ;;  %v409_v37 = vpop.f32.mrb[20].mxu0  ;;  %v10918_v48 = vpack.c.bf16 %v1172_v58, %v1164_v30  ;;  %v602_v13 = vpop.f32.mrb[20].mxu1  ;;  %v10937_v49 = vld [vmem:[#allocation7 + $0x480] sm:$0xff] }
 0x160   :  { %14049 = vst [vmem:[#allocation34_spill] sm:$0xff] %v10907_v34  ;;  %14051 = vst [vmem:[#allocation36_spill] sm:$0xff] %v10912_v36  ;;  %v410_v26 = vadd.f32 %v409_v37, %v10791_v7  ;;  %v411_v45 = vpop.f32.mrb[21].mxu0  ;;  %v603_v62 = vadd.f32 %v602_v13, %v10799_v14  ;;  %v604_v2 = vpop.f32.mrb[21].mxu1  ;;  %v10943_v13 = vld [vmem:[#allocation7 + $0x488] sm:$0xff]  ;;  %v8824_v50 = vcombine.high %v10937_v49, %v10939_v16 }
 0x161   :  { %14050 = vst [vmem:[#allocation35_spill] sm:$0xff] %v10910_v35  ;;  %14052 = vst [vmem:[#allocation37_spill] sm:$0xff] %v10918_v48  ;;  %v412_v59 = vadd.f32 %v411_v45, %v10796_v38  ;;  %v413_v22 = vpop.f32.mrb[22].mxu0  ;;  %v605_v0 = vadd.f32 %v604_v2, %v10803_v15  ;;  %v606_v17 = vpop.f32.mrb[22].mxu1  ;;  %v8817_v2 = vcombine.low %v10921_v61, %v10923_v57 }
 0x162   :  { %v414_v1 = vadd.f32 %v413_v22, %v10791_v7  ;;  %v415_v55 = vpop.f32.mrb[23].mxu0  ;;  %v1179_v19 = vmax.f32 %v603_v62, 0.0  ;;  %v607_v10 = vadd.f32 %v606_v17, %v10799_v14  ;;  %v608_v21 = vpop.f32.mrb[23].mxu1  ;;  %v1177_v27 = vmax.f32 %v410_v26, 0.0  ;;  %v10945_v26 = vld [vmem:[#allocation7 + $0x4a8] sm:$0xff] }
 0x163   :  { %v416_v20 = vadd.f32 %v415_v55, %v10796_v38  ;;  %v1180_v32 = vmax.f32 %v605_v0, 0.0  ;;  %v609_v33 = vadd.f32 %v608_v21, %v10803_v15  ;;  %v1178_v58 = vmax.f32 %v412_v59, 0.0 }
 0x164   :  { %v1185_v30 = vmax.f32 %v414_v1, 0.0  ;;  %4628 = vmatmul.mubr.bf16.vlgmr.msra.gmra.mrb[128].mxu0 %v10819_v47  ;;  %v1187_v45 = vmax.f32 %v607_v10, 0.0  ;;  %5400 = vmatmul.mubr.bf16.vlgmr.msra.gmra.mrb[128].mxu1 %v10819_v47  ;;  %v8815_v59 = vcombine.low %v10914_v43, %v10916_v46  ;;  %v10957_v1 = vld [vmem:[#allocation7 + $0x4c0] sm:$0xff]  ;;  %v10972_v43 = vld [vmem:[#allocation7 + $0x4e8] sm:$0xff]  ;;  %v8823_v53 = vcombine.low %v10937_v49, %v10939_v16 }
 0x165   :  { %v1186_v37 = vmax.f32 %v416_v20, 0.0  ;;  %4637 = vmatprep.mubr.bf16.mxu0 %v10844_v28  ;;  %v1188_v62 = vmax.f32 %v609_v33, 0.0  ;;  %4789 = vmatpush1.bf16.msra.mxu0 %v8807_v41  ;;  %v10970_v41 = vld [vmem:[#allocation7 + $0x4c8] sm:$0xff]  ;;  %v8826_v54 = vcombine.high %v10943_v13, %v10945_v26 }
 0x166   :  { %v10947_v22 = vpack.c.bf16 %v1185_v30, %v1177_v27  ;;  %5409 = vmatprep.mubr.bf16.mxu1 %v10844_v28  ;;  %v10961_v0 = vpack.c.bf16 %v1187_v45, %v1179_v19  ;;  %5561 = vmatpush1.bf16.msra.mxu1 %v8809_v60  ;;  %v10981_v60 = vld [vmem:[#allocation7 + $0x800] sm:$0xff]  ;;  %v8825_v30 = vcombine.low %v10943_v13, %v10945_v26 }
 0x167   :  { %v10959_v55 = vpack.c.bf16 %v1186_v37, %v1178_v58  ;;  %v419_v17 = vpop.f32.mrb[24].mxu0  ;;  %4790 = vmatprep.subr.bf16.mxu0 %v8816_v18  ;;  %v10974_v46 = vpack.c.bf16 %v1188_v62, %v1180_v32  ;;  %v612_v19 = vpop.f32.mrb[24].mxu1  ;;  %5562 = vmatprep.subr.bf16.mxu1 %v8818_v23  ;;  %v10983_v18 = vld [vmem:[#allocation7 + $0x820] sm:$0xff]  ;;  %v8832_v58 = vcombine.high %v10957_v1, %v10968_v39 }
 0x168   :  { %14053 = vst [vmem:[#allocation38_spill] sm:$0xff] %v10947_v22  ;;  %14055 = vst [vmem:[#allocation40_spill] sm:$0xff] %v10961_v0  ;;  %v420_v61 = vadd.f32 %v419_v17, %v10791_v7  ;;  %v421_v57 = vpop.f32.mrb[25].mxu0  ;;  %v613_v21 = vadd.f32 %v612_v19, %v10799_v14  ;;  %v614_v27 = vpop.f32.mrb[25].mxu1  ;;  %v8834_v37 = vcombine.high %v10970_v41, %v10972_v43  ;;  %v11001_v19 = vld [vmem:[#allocation7 + $0x828] sm:$0xff] }
 0x169   :  { %14054 = vst [vmem:[#allocation39_spill] sm:$0xff] %v10959_v55  ;;  %14056 = vst [vmem:[#allocation41_spill] sm:$0xff] %v10974_v46  ;;  %v422_v20 = vadd.f32 %v421_v57, %v10796_v38  ;;  %v423_v10 = vpop.f32.mrb[26].mxu0  ;;  %v615_v49 = vadd.f32 %v614_v27, %v10803_v15  ;;  %v616_v16 = vpop.f32.mrb[26].mxu1  ;;  %4791 = vmatpush1.bf16.msra.mxu0 %v8815_v59  ;;  %v10999_v57 = vld [vmem:[#allocation7 + $0x808] sm:$0xff] }
 0x16a   :  { %v424_v32 = vadd.f32 %v423_v10, %v10791_v7  ;;  %v425_v33 = vpop.f32.mrb[27].mxu0  ;;  %v1193_v45 = vmax.f32 %v420_v61, 0.0  ;;  %v1195_v62 = vmax.f32 %v613_v21, 0.0  ;;  %v617_v26 = vadd.f32 %v616_v16, %v10799_v14  ;;  %v618_v17 = vpop.f32.mrb[27].mxu1  ;;  %5563 = vmatpush1.bf16.msra.mxu1 %v8817_v2  ;;  %4792 = vmatprep.subr.bf16.mxu0 %v8824_v50  ;;  %v11005_v61 = vld [vmem:[#allocation7 + $0x500] sm:$0xff] }
 0x16b   :  { %v426_v13 = vadd.f32 %v425_v33, %v10796_v38  ;;  %v1196_v10 = vmax.f32 %v615_v49, 0.0  ;;  %v619_v27 = vadd.f32 %v618_v17, %v10803_v15  ;;  %5564 = vmatprep.subr.bf16.mxu1 %v8826_v54  ;;  %v11007_v21 = vld [vmem:[#allocation7 + $0x520] sm:$0xff]  ;;  %v1194_v2 = vmax.f32 %v422_v20, 0.0  ;;  %v11015_v49 = vld [vmem:[#allocation7 + $0x528] sm:$0xff] }
 0x16c   :  { %v1201_v59 = vmax.f32 %v424_v32, 0.0  ;;  %4638 = vmatmul.mubr.bf16.gmra.mrb[132].mxu0 %v10841_v24  ;;  %v1203_v16 = vmax.f32 %v617_v26, 0.0  ;;  %5410 = vmatmul.mubr.bf16.gmra.mrb[132].mxu1 %v10841_v24  ;;  %v11013_v32 = vld [vmem:[#allocation7 + $0x508] sm:$0xff]  ;;  %v8831_v33 = vcombine.low %v10957_v1, %v10968_v39  ;;  %v8833_v20 = vcombine.low %v10970_v41, %v10972_v43 }
 0x16d   :  { %v1202_v50 = vmax.f32 %v426_v13, 0.0  ;;  %4647 = vmatprep.mubr.bf16.mxu0 %v10866_v3  ;;  %v1204_v54 = vmax.f32 %v619_v27, 0.0  ;;  %5419 = vmatprep.mubr.bf16.mxu1 %v10866_v3  ;;  %v11032_v27 = vld [vmem:[#allocation7 + $0x560] sm:$0xff]  ;;  %v8842_v43 = vcombine.high %v11013_v32, %v11015_v49  ;;  %v8841_v9 = vcombine.low %v11013_v32, %v11015_v49 }
 0x16e   :  { %v11017_v17 = vpack.c.bf16 %v1201_v59, %v1193_v45  ;;  %4793 = vmatpush1.bf16.msra.mxu0 %v8823_v53  ;;  %v11026_v26 = vpack.c.bf16 %v1203_v16, %v1195_v62  ;;  %5565 = vmatpush1.bf16.msra.mxu1 %v8825_v30  ;;  %v8840_v45 = vcombine.high %v11005_v61, %v11007_v21  ;;  %v11030_v59 = vld [vmem:[#allocation7 + $0x540] sm:$0xff]  ;;  %v11039_v62 = vld [vmem:[#allocation7 + $0x548] sm:$0xff] }
 0x16f   :  { %v11024_v13 = vpack.c.bf16 %v1202_v50, %v1194_v2  ;;  %v429_v23 = vpop.f32.mrb[28].mxu0  ;;  %4794 = vmatprep.subr.bf16.mxu0 %v8832_v58  ;;  %v11034_v53 = vpack.c.bf16 %v1204_v54, %v1196_v10  ;;  %v622_v41 = vpop.f32.mrb[28].mxu1  ;;  %5566 = vmatprep.subr.bf16.mxu1 %v8834_v37  ;;  %v11041_v30 = vld [vmem:[#allocation7 + $0x568] sm:$0xff]  ;;  %v8839_v10 = vcombine.low %v11005_v61, %v11007_v21  ;;  %v11059_v32 = vld [vmem:[#allocation7 + $0x580] sm:$0xff] }
 0x170   :  { %14057 = vst [vmem:[#allocation42_spill] sm:$0xff] %v11017_v17  ;;  %14059 = vst [vmem:[#allocation44_spill] sm:$0xff] %v11026_v26  ;;  %v430_v1 = vadd.f32 %v429_v23, %v10791_v7  ;;  %v431_v39 = vpop.f32.mrb[29].mxu0  ;;  %v623_v50 = vadd.f32 %v622_v41, %v10799_v14  ;;  %v624_v16 = vpop.f32.mrb[29].mxu1  ;;  %v8850_v61 = vcombine.high %v11039_v62, %v11041_v30  ;;  %v11061_v49 = vld [vmem:[#allocation7 + $0x5a0] sm:$0xff] }
 0x171   :  { %14058 = vst [vmem:[#allocation43_spill] sm:$0xff] %v11024_v13  ;;  %14060 = vst [vmem:[#allocation45_spill] sm:$0xff] %v11034_v53  ;;  %v432_v58 = vadd.f32 %v431_v39, %v10796_v38  ;;  %v433_v2 = vpop.f32.mrb[30].mxu0  ;;  %v625_v37 = vadd.f32 %v624_v16, %v10803_v15  ;;  %v626_v12 = vpop.f32.mrb[30].mxu1  ;;  %v8848_v39 = vcombine.high %v11030_v59, %v11032_v27 }
 0x172   :  { %v434_v23 = vadd.f32 %v433_v2, %v10791_v7  ;;  %v435_v54 = vpop.f32.mrb[31].mxu0  ;;  %4795 = vmatpush1.bf16.msra.mxu0 %v8831_v33  ;;  %v1211_v11 = vmax.f32 %v623_v50, 0.0  ;;  %v627_v8 = vadd.f32 %v626_v12, %v10799_v14  ;;  %v628_v3 = vpop.f32.mrb[31].mxu1  ;;  %5567 = vmatpush1.bf16.msra.mxu1 %v8833_v20  ;;  %v1209_v21 = vmax.f32 %v430_v1, 0.0  ;;  %v11065_v20 = vld [vmem:[#allocation7 + $0x588] sm:$0xff] }
 0x173   :  { %v436_v41 = vadd.f32 %v435_v54, %v10796_v38  ;;  %4796 = vmatprep.subr.bf16.mxu0 %v8840_v45  ;;  %v1212_v33 = vmax.f32 %v625_v37, 0.0  ;;  %v629_v16 = vadd.f32 %v628_v3, %v10803_v15  ;;  %5568 = vmatprep.subr.bf16.mxu1 %v8842_v43  ;;  %v1210_v50 = vmax.f32 %v432_v58, 0.0  ;;  %v11067_v45 = vld [vmem:[#allocation7 + $0x5a8] sm:$0xff] }
 0x174   :  { %v1217_v2 = vmax.f32 %v434_v23, 0.0  ;;  %4648 = vmatmul.mubr.bf16.gmra.mrb[136].mxu0 %v10863_v63  ;;  %v1219_v54 = vmax.f32 %v627_v8, 0.0  ;;  %5420 = vmatmul.mubr.bf16.gmra.mrb[136].mxu1 %v10863_v63  ;;  %v8847_v43 = vcombine.low %v11030_v59, %v11032_v27  ;;  %v8849_v8 = vcombine.low %v11039_v62, %v11041_v30  ;;  %v11091_v30 = vld [vmem:[#allocation7 + $0x5c8] sm:$0xff] }
 0x175   :  { %v1218_v12 = vmax.f32 %v436_v41, 0.0  ;;  %4657 = vmatprep.mubr.bf16.mxu0 %v10888_v51  ;;  %v1220_v3 = vmax.f32 %v629_v16, 0.0  ;;  %5429 = vmatprep.mubr.bf16.mxu1 %v10888_v51  ;;  %v8856_v41 = vcombine.high %v11059_v32, %v11061_v49  ;;  %v8857_v51 = vcombine.low %v11065_v20, %v11067_v45 }
 0x176   :  { %v11069_v1 = vpack.c.bf16 %v1217_v2, %v1209_v21  ;;  %4797 = vmatpush1.bf16.msra.mxu0 %v8839_v10  ;;  %v11078_v23 = vpack.c.bf16 %v1219_v54, %v1211_v11  ;;  %5569 = vmatpush1.bf16.msra.mxu1 %v8841_v9  ;;  %v11082_v21 = vld [vmem:[#allocation7 + $0x5c0] sm:$0xff]  ;;  %v8858_v11 = vcombine.high %v11065_v20, %v11067_v45  ;;  %v11093_v9 = vld [vmem:[#allocation7 + $0x5e8] sm:$0xff] }
 0x177   :  { %v11076_v58 = vpack.c.bf16 %v1218_v12, %v1210_v50  ;;  %v439_v37 = vpop.f32.mrb[32].mxu0  ;;  %4798 = vmatprep.subr.bf16.mxu0 %v8848_v39  ;;  %v11084_v2 = vld [vmem:[#allocation7 + $0x5e0] sm:$0xff]  ;;  %v11086_v10 = vpack.c.bf16 %v1220_v3, %v1212_v33  ;;  %v632_v62 = vpop.f32.mrb[32].mxu1  ;;  %5570 = vmatprep.subr.bf16.mxu1 %v8850_v61  ;;  %v8855_v33 = vcombine.low %v11059_v32, %v11061_v49 }
 0x178   :  { %14061 = vst [vmem:[#allocation46_spill] sm:$0xff] %v11069_v1  ;;  %14063 = vst [vmem:[#allocation48_spill] sm:$0xff] %v11078_v23  ;;  %v440_v59 = vadd.f32 %v439_v37, %v10791_v7  ;;  %v441_v27 = vpop.f32.mrb[33].mxu0  ;;  %v633_v50 = vadd.f32 %v632_v62, %v10799_v14  ;;  %v634_v12 = vpop.f32.mrb[33].mxu1  ;;  %v8866_v32 = vcombine.high %v11091_v30, %v11093_v9  ;;  %v11111_v20 = vld [vmem:[#allocation7 + $0x600] sm:$0xff] }
 0x179   :  { %14062 = vst [vmem:[#allocation47_spill] sm:$0xff] %v11076_v58  ;;  %14064 = vst [vmem:[#allocation49_spill] sm:$0xff] %v11086_v10  ;;  %v442_v39 = vadd.f32 %v441_v27, %v10796_v38  ;;  %v443_v16 = vpop.f32.mrb[34].mxu0  ;;  %v635_v61 = vadd.f32 %v634_v12, %v10803_v15  ;;  %v636_v37 = vpop.f32.mrb[34].mxu1  ;;  %v8864_v27 = vcombine.high %v11082_v21, %v11084_v2  ;;  %v11113_v45 = vld [vmem:[#allocation7 + $0x620] sm:$0xff] }
 0x17a   :  { %v444_v54 = vadd.f32 %v443_v16, %v10791_v7  ;;  %v445_v3 = vpop.f32.mrb[35].mxu0  ;;  %4799 = vmatpush1.bf16.msra.mxu0 %v8847_v43  ;;  %v1227_v63 = vmax.f32 %v633_v50, 0.0  ;;  %v637_v24 = vadd.f32 %v636_v37, %v10799_v14  ;;  %v638_v28 = vpop.f32.mrb[35].mxu1  ;;  %5571 = vmatpush1.bf16.msra.mxu1 %v8849_v8  ;;  %v1225_v49 = vmax.f32 %v440_v59, 0.0  ;;  %v11117_v8 = vld [vmem:[#allocation7 + $0x608] sm:$0xff] }
 0x17b   :  { %v446_v62 = vadd.f32 %v445_v3, %v10796_v38  ;;  %4800 = vmatprep.subr.bf16.mxu0 %v8856_v41  ;;  %v1228_v43 = vmax.f32 %v635_v61, 0.0  ;;  %v639_v12 = vadd.f32 %v638_v28, %v10803_v15  ;;  %5572 = vmatprep.subr.bf16.mxu1 %v8858_v11  ;;  %v1226_v50 = vmax.f32 %v442_v39, 0.0  ;;  %v11119_v41 = vld [vmem:[#allocation7 + $0x628] sm:$0xff] }
 0x17c   :  { %v1233_v16 = vmax.f32 %v444_v54, 0.0  ;;  %4658 = vmatmul.mubr.bf16.gmra.mrb[140].mxu0 %v10885_v42  ;;  %v1235_v37 = vmax.f32 %v637_v24, 0.0  ;;  %5430 = vmatmul.mubr.bf16.gmra.mrb[140].mxu1 %v10885_v42  ;;  %v8863_v11 = vcombine.low %v11082_v21, %v11084_v2  ;;  %v8865_v24 = vcombine.low %v11091_v30, %v11093_v9  ;;  %v11143_v9 = vld [vmem:[#allocation7 + $0x648] sm:$0xff] }
 0x17d   :  { %v1234_v3 = vmax.f32 %v446_v62, 0.0  ;;  %4667 = vmatprep.mubr.bf16.mxu0 %v10910_v35  ;;  %v1236_v28 = vmax.f32 %v639_v12, 0.0  ;;  %5439 = vmatprep.mubr.bf16.mxu1 %v10910_v35  ;;  %v8872_v62 = vcombine.high %v11111_v20, %v11113_v45  ;;  %v8873_v35 = vcombine.low %v11117_v8, %v11119_v41 }
 0x17e   :  { %v11121_v59 = vpack.c.bf16 %v1233_v16, %v1225_v49  ;;  %4801 = vmatpush1.bf16.msra.mxu0 %v8855_v33  ;;  %v11130_v54 = vpack.c.bf16 %v1235_v37, %v1227_v63  ;;  %5573 = vmatpush1.bf16.msra.mxu1 %v8857_v51  ;;  %v11134_v49 = vld [vmem:[#allocation7 + $0x640] sm:$0xff]  ;;  %v8874_v63 = vcombine.high %v11117_v8, %v11119_v41  ;;  %v11145_v51 = vld [vmem:[#allocation7 + $0x668] sm:$0xff] }
 0x17f   :  { %v11128_v39 = vpack.c.bf16 %v1234_v3, %v1226_v50  ;;  %v449_v61 = vpop.f32.mrb[36].mxu0  ;;  %4802 = vmatprep.subr.bf16.mxu0 %v8864_v27  ;;  %v11136_v16 = vld [vmem:[#allocation7 + $0x660] sm:$0xff]  ;;  %v11138_v33 = vpack.c.bf16 %v1236_v28, %v1228_v43  ;;  %v642_v30 = vpop.f32.mrb[36].mxu1  ;;  %5574 = vmatprep.subr.bf16.mxu1 %v8866_v32  ;;  %v8871_v43 = vcombine.low %v11111_v20, %v11113_v45 }
 0x180   :  { %14065 = vst [vmem:[#allocation50_spill] sm:$0xff] %v11121_v59  ;;  %14067 = vst [vmem:[#allocation52_spill] sm:$0xff] %v11130_v54  ;;  %v450_v21 = vadd.f32 %v449_v61, %v10791_v7  ;;  %v451_v2 = vpop.f32.mrb[37].mxu0  ;;  %v643_v50 = vadd.f32 %v642_v30, %v10799_v14  ;;  %v644_v3 = vpop.f32.mrb[37].mxu1  ;;  %v8882_v20 = vcombine.high %v11143_v9, %v11145_v51  ;;  %v11163_v8 = vld [vmem:[#allocation7 + $0x680] sm:$0xff] }
 0x181   :  { %14066 = vst [vmem:[#allocation51_spill] sm:$0xff] %v11128_v39  ;;  %14068 = vst [vmem:[#allocation53_spill] sm:$0xff] %v11138_v33  ;;  %v452_v27 = vadd.f32 %v451_v2, %v10796_v38  ;;  %v453_v12 = vpop.f32.mrb[38].mxu0  ;;  %v645_v32 = vadd.f32 %v644_v3, %v10803_v15  ;;  %v646_v61 = vpop.f32.mrb[38].mxu1  ;;  %v8880_v2 = vcombine.high %v11134_v49, %v11136_v16  ;;  %v11165_v41 = vld [vmem:[#allocation7 + $0x6a0] sm:$0xff] }
 0x182   :  { %v454_v37 = vadd.f32 %v453_v12, %v10791_v7  ;;  %v455_v28 = vpop.f32.mrb[39].mxu0  ;;  %4803 = vmatpush1.bf16.msra.mxu0 %v8863_v11  ;;  %v1243_v42 = vmax.f32 %v643_v50, 0.0  ;;  %v647_v47 = vadd.f32 %v646_v61, %v10799_v14  ;;  %v648_v25 = vpop.f32.mrb[39].mxu1  ;;  %5575 = vmatpush1.bf16.msra.mxu1 %v8865_v24  ;;  %v1241_v45 = vmax.f32 %v450_v21, 0.0  ;;  %v11169_v24 = vld [vmem:[#allocation7 + $0x688] sm:$0xff] }
 0x183   :  { %v456_v30 = vadd.f32 %v455_v28, %v10796_v38  ;;  %4804 = vmatprep.subr.bf16.mxu0 %v8872_v62  ;;  %v1244_v11 = vmax.f32 %v645_v32, 0.0  ;;  %v649_v3 = vadd.f32 %v648_v25, %v10803_v15  ;;  %5576 = vmatprep.subr.bf16.mxu1 %v8874_v63  ;;  %v1242_v50 = vmax.f32 %v452_v27, 0.0  ;;  %v11171_v62 = vld [vmem:[#allocation7 + $0x6a8] sm:$0xff] }
 0x184   :  { %v1249_v12 = vmax.f32 %v454_v37, 0.0  ;;  %4668 = vmatmul.mubr.bf16.gmra.mrb[144].mxu0 %v10907_v34  ;;  %v1251_v61 = vmax.f32 %v647_v47, 0.0  ;;  %5440 = vmatmul.mubr.bf16.gmra.mrb[144].mxu1 %v10907_v34  ;;  %v8879_v63 = vcombine.low %v11134_v49, %v11136_v16  ;;  %v8881_v47 = vcombine.low %v11143_v9, %v11145_v51  ;;  %v11195_v51 = vld [vmem:[#allocation7 + $0x6c8] sm:$0xff] }
 0x185   :  { %v1250_v28 = vmax.f32 %v456_v30, 0.0  ;;  %4677 = vmatprep.mubr.bf16.mxu0 %v10959_v55  ;;  %v1252_v25 = vmax.f32 %v649_v3, 0.0  ;;  %5449 = vmatprep.mubr.bf16.mxu1 %v10959_v55  ;;  %v8888_v30 = vcombine.high %v11163_v8, %v11165_v41  ;;  %v8889_v55 = vcombine.low %v11169_v24, %v11171_v62 }
 0x186   :  { %v11173_v21 = vpack.c.bf16 %v1249_v12, %v1241_v45  ;;  %4805 = vmatpush1.bf16.msra.mxu0 %v8871_v43  ;;  %v11182_v37 = vpack.c.bf16 %v1251_v61, %v1243_v42  ;;  %5577 = vmatpush1.bf16.msra.mxu1 %v8873_v35  ;;  %v11186_v45 = vld [vmem:[#allocation7 + $0x6c0] sm:$0xff]  ;;  %v8890_v42 = vcombine.high %v11169_v24, %v11171_v62  ;;  %v11197_v35 = vld [vmem:[#allocation7 + $0x6e8] sm:$0xff] }
 0x187   :  { %v11180_v27 = vpack.c.bf16 %v1250_v28, %v1242_v50  ;;  %v459_v32 = vpop.f32.mrb[40].mxu0  ;;  %4806 = vmatprep.subr.bf16.mxu0 %v8880_v2  ;;  %v11188_v12 = vld [vmem:[#allocation7 + $0x6e0] sm:$0xff]  ;;  %v11190_v43 = vpack.c.bf16 %v1252_v25, %v1244_v11  ;;  %v652_v9 = vpop.f32.mrb[40].mxu1  ;;  %5578 = vmatprep.subr.bf16.mxu1 %v8882_v20  ;;  %v8887_v11 = vcombine.low %v11163_v8, %v11165_v41 }
 0x188   :  { %14069 = vst [vmem:[#allocation54_spill] sm:$0xff] %v11173_v21  ;;  %14071 = vst [vmem:[#allocation56_spill] sm:$0xff] %v11182_v37  ;;  %v460_v49 = vadd.f32 %v459_v32, %v10791_v7  ;;  %v461_v16 = vpop.f32.mrb[41].mxu0  ;;  %v653_v50 = vadd.f32 %v652_v9, %v10799_v14  ;;  %v654_v28 = vpop.f32.mrb[41].mxu1  ;;  %v8898_v8 = vcombine.high %v11195_v51, %v11197_v35  ;;  %v11215_v24 = vld [vmem:[#allocation7 + $0x700] sm:$0xff] }
 0x189   :  { %14070 = vst [vmem:[#allocation55_spill] sm:$0xff] %v11180_v27  ;;  %14072 = vst [vmem:[#allocation57_spill] sm:$0xff] %v11190_v43  ;;  %v462_v2 = vadd.f32 %v461_v16, %v10796_v38  ;;  %v463_v3 = vpop.f32.mrb[42].mxu0  ;;  %v655_v20 = vadd.f32 %v654_v28, %v10803_v15  ;;  %v656_v32 = vpop.f32.mrb[42].mxu1  ;;  %v8896_v16 = vcombine.high %v11186_v45, %v11188_v12  ;;  %v11217_v62 = vld [vmem:[#allocation7 + $0x720] sm:$0xff] }
 0x18a   :  { %v464_v61 = vadd.f32 %v463_v3, %v10791_v7  ;;  %v465_v25 = vpop.f32.mrb[43].mxu0  ;;  %4807 = vmatpush1.bf16.msra.mxu0 %v8879_v63  ;;  %v1259_v34 = vmax.f32 %v653_v50, 0.0  ;;  %v657_v37 = vadd.f32 %v656_v32, %v10799_v14  ;;  %v658_v43 = vpop.f32.mrb[43].mxu1  ;;  %5579 = vmatpush1.bf16.msra.mxu1 %v8881_v47  ;;  %v1257_v41 = vmax.f32 %v460_v49, 0.0  ;;  %v11221_v47 = vld [vmem:[#allocation7 + $0x708] sm:$0xff] }
 0x18b   :  { %v466_v9 = vadd.f32 %v465_v25, %v10796_v38  ;;  %4808 = vmatprep.subr.bf16.mxu0 %v8888_v30  ;;  %v1260_v63 = vmax.f32 %v655_v20, 0.0  ;;  %v659_v28 = vadd.f32 %v658_v43, %v10803_v15  ;;  %5580 = vmatprep.subr.bf16.mxu1 %v8890_v42  ;;  %v1258_v50 = vmax.f32 %v462_v2, 0.0  ;;  %v11223_v30 = vld [vmem:[#allocation7 + $0x728] sm:$0xff] }
 0x18c   :  { %v1265_v3 = vmax.f32 %v464_v61, 0.0  ;;  %4678 = vmatmul.mubr.bf16.gmra.mrb[148].mxu0 %v10947_v22  ;;  %v1267_v32 = vmax.f32 %v657_v37, 0.0  ;;  %5450 = vmatmul.mubr.bf16.gmra.mrb[148].mxu1 %v10947_v22  ;;  %v8895_v42 = vcombine.low %v11186_v45, %v11188_v12  ;;  %v8897_v37 = vcombine.low %v11195_v51, %v11197_v35  ;;  %v11247_v35 = vld [vmem:[#allocation7 + $0x748] sm:$0xff] }
 0x18d   :  { %v1266_v25 = vmax.f32 %v466_v9, 0.0  ;;  %4687 = vmatprep.mubr.bf16.mxu0 %v11024_v13  ;;  %v1268_v43 = vmax.f32 %v659_v28, 0.0  ;;  %5459 = vmatprep.mubr.bf16.mxu1 %v11024_v13  ;;  %v8904_v9 = vcombine.high %v11215_v24, %v11217_v62  ;;  %v8905_v13 = vcombine.low %v11221_v47, %v11223_v30 }
 0x18e   :  { %v11225_v49 = vpack.c.bf16 %v1265_v3, %v1257_v41  ;;  %4809 = vmatpush1.bf16.msra.mxu0 %v8887_v11  ;;  %v11234_v61 = vpack.c.bf16 %v1267_v32, %v1259_v34  ;;  %5581 = vmatpush1.bf16.msra.mxu1 %v8889_v55  ;;  %v11238_v41 = vld [vmem:[#allocation7 + $0x740] sm:$0xff]  ;;  %v8906_v34 = vcombine.high %v11221_v47, %v11223_v30  ;;  %v11249_v55 = vld [vmem:[#allocation7 + $0x768] sm:$0xff] }
 0x18f   :  { %v11232_v2 = vpack.c.bf16 %v1266_v25, %v1258_v50  ;;  %v469_v20 = vpop.f32.mrb[44].mxu0  ;;  %4810 = vmatprep.subr.bf16.mxu0 %v8896_v16  ;;  %v11240_v3 = vld [vmem:[#allocation7 + $0x760] sm:$0xff]  ;;  %v11242_v11 = vpack.c.bf16 %v1268_v43, %v1260_v63  ;;  %v662_v51 = vpop.f32.mrb[44].mxu1  ;;  %5582 = vmatprep.subr.bf16.mxu1 %v8898_v8  ;;  %v8903_v63 = vcombine.low %v11215_v24, %v11217_v62 }
 0x190   :  { %14073 = vst [vmem:[#allocation58_spill] sm:$0xff] %v11225_v49  ;;  %14075 = vst [vmem:[#allocation60_spill] sm:$0xff] %v11234_v61  ;;  %v470_v45 = vadd.f32 %v469_v20, %v10791_v7  ;;  %v471_v12 = vpop.f32.mrb[45].mxu0  ;;  %v663_v50 = vadd.f32 %v662_v51, %v10799_v14  ;;  %v664_v25 = vpop.f32.mrb[45].mxu1  ;;  %v8914_v24 = vcombine.high %v11247_v35, %v11249_v55  ;;  %v11267_v47 = vld [vmem:[#allocation7 + $0x780] sm:$0xff] }
 0x191   :  { %14074 = vst [vmem:[#allocation59_spill] sm:$0xff] %v11232_v2  ;;  %14076 = vst [vmem:[#allocation61_spill] sm:$0xff] %v11242_v11  ;;  %v472_v16 = vadd.f32 %v471_v12, %v10796_v38  ;;  %v473_v28 = vpop.f32.mrb[46].mxu0  ;;  %v665_v8 = vadd.f32 %v664_v25, %v10803_v15  ;;  %v666_v20 = vpop.f32.mrb[46].mxu1  ;;  %v8912_v12 = vcombine.high %v11238_v41, %v11240_v3  ;;  %v11269_v30 = vld [vmem:[#allocation7 + $0x7a0] sm:$0xff] }
 0x192   :  { %v474_v32 = vadd.f32 %v473_v28, %v10791_v7  ;;  %v475_v43 = vpop.f32.mrb[47].mxu0  ;;  %4811 = vmatpush1.bf16.msra.mxu0 %v8895_v42  ;;  %v1275_v22 = vmax.f32 %v663_v50, 0.0  ;;  %v667_v61 = vadd.f32 %v666_v20, %v10799_v14  ;;  %v668_v11 = vpop.f32.mrb[47].mxu1  ;;  %5583 = vmatpush1.bf16.msra.mxu1 %v8897_v37  ;;  %v1273_v62 = vmax.f32 %v470_v45, 0.0  ;;  %v11273_v37 = vld [vmem:[#allocation7 + $0x788] sm:$0xff] }
 0x193   :  { %v476_v51 = vadd.f32 %v475_v43, %v10796_v38  ;;  %4812 = vmatprep.subr.bf16.mxu0 %v8904_v9  ;;  %v1276_v42 = vmax.f32 %v665_v8, 0.0  ;;  %v669_v25 = vadd.f32 %v668_v11, %v10803_v15  ;;  %5584 = vmatprep.subr.bf16.mxu1 %v8906_v34  ;;  %v1274_v50 = vmax.f32 %v472_v16, 0.0  ;;  %v1726_v9 = vld [vmem:[#allocation7 + $0x7a8] sm:$0xff] }
 0x194   :  { %v1281_v28 = vmax.f32 %v474_v32, 0.0  ;;  %4688 = vmatmul.mubr.bf16.gmra.mrb[152].mxu0 %v11017_v17  ;;  %v1283_v20 = vmax.f32 %v667_v61, 0.0  ;;  %5460 = vmatmul.mubr.bf16.gmra.mrb[152].mxu1 %v11017_v17  ;;  %v8911_v34 = vcombine.low %v11238_v41, %v11240_v3  ;;  %v8913_v16 = vcombine.low %v11247_v35, %v11249_v55  ;;  %v11296_v55 = vld [vmem:[#allocation7 + $0x7c8] sm:$0xff] }
 0x195   :  { %v1282_v43 = vmax.f32 %v476_v51, 0.0  ;;  %4697 = vmatprep.mubr.bf16.mxu0 %v11076_v58  ;;  %v1284_v11 = vmax.f32 %v669_v25, 0.0  ;;  %5469 = vmatprep.mubr.bf16.mxu1 %v11076_v58  ;;  %v8920_v51 = vcombine.high %v11267_v47, %v11269_v30  ;;  %v8921_v58 = vcombine.low %v11273_v37, %v1726_v9 }
 0x196   :  { %v11275_v45 = vpack.c.bf16 %v1281_v28, %v1273_v62  ;;  %4813 = vmatpush1.bf16.msra.mxu0 %v8903_v63  ;;  %v11284_v32 = vpack.c.bf16 %v1283_v20, %v1275_v22  ;;  %5585 = vmatpush1.bf16.msra.mxu1 %v8905_v13  ;;  %v11288_v62 = vld [vmem:[#allocation7 + $0x7c0] sm:$0xff]  ;;  %v8922_v22 = vcombine.high %v11273_v37, %v1726_v9  ;;  %v1734_v13 = vld [vmem:[#allocation7 + $0x7e8] sm:$0xff] }
 0x197   :  { %v11282_v61 = vpack.c.bf16 %v1282_v43, %v1274_v50  ;;  %v479_v8 = vpop.f32.mrb[48].mxu0  ;;  %4814 = vmatprep.subr.bf16.mxu0 %v8912_v12  ;;  %v11290_v28 = vld [vmem:[#allocation7 + $0x7e0] sm:$0xff]  ;;  %v11292_v63 = vpack.c.bf16 %v1284_v11, %v1276_v42  ;;  %v672_v35 = vpop.f32.mrb[48].mxu1  ;;  %5586 = vmatprep.subr.bf16.mxu1 %v8914_v24  ;;  %v8919_v42 = vcombine.low %v11267_v47, %v11269_v30 }
 0x198   :  { %14077 = vst [vmem:[#allocation62_spill] sm:$0xff] %v11275_v45  ;;  %14079 = vst [vmem:[#allocation64_spill] sm:$0xff] %v11284_v32  ;;  %v480_v41 = vadd.f32 %v479_v8, %v10791_v7  ;;  %v481_v3 = vpop.f32.mrb[49].mxu0  ;;  %v673_v50 = vadd.f32 %v672_v35, %v10799_v14  ;;  %v674_v43 = vpop.f32.mrb[49].mxu1  ;;  %v8928_v17 = vcombine.high %v11288_v62, %v11290_v28 }
 0x199   :  { %14078 = vst [vmem:[#allocation63_spill] sm:$0xff] %v11282_v61  ;;  %14080 = vst [vmem:[#allocation65_spill] sm:$0xff] %v11292_v63  ;;  %v482_v12 = vadd.f32 %v481_v3, %v10796_v38  ;;  %v483_v25 = vpop.f32.mrb[50].mxu0  ;;  %v675_v8 = vadd.f32 %v674_v43, %v10803_v15  ;;  %v676_v24 = vpop.f32.mrb[50].mxu1  ;;  %v8930_v47 = vcombine.high %v11296_v55, %v1734_v13 }
 0x19a   :  { %v484_v20 = vadd.f32 %v483_v25, %v10791_v7  ;;  %v485_v11 = vpop.f32.mrb[51].mxu0  ;;  %4815 = vmatpush1.bf16.msra.mxu0 %v8911_v34  ;;  %v1291_v3 = vmax.f32 %v673_v50, 0.0  ;;  %v677_v35 = vadd.f32 %v676_v24, %v10799_v14  ;;  %v678_v63 = vpop.f32.mrb[51].mxu1  ;;  %5587 = vmatpush1.bf16.msra.mxu1 %v8913_v16  ;;  %v1289_v30 = vmax.f32 %v480_v41, 0.0 }
 0x19b   :  { %v486_v32 = vadd.f32 %v485_v11, %v10796_v38  ;;  %4816 = vmatprep.subr.bf16.mxu0 %v8920_v51  ;;  %v1292_v43 = vmax.f32 %v675_v8, 0.0  ;;  %v679_v34 = vadd.f32 %v678_v63, %v10803_v15  ;;  %5588 = vmatprep.subr.bf16.mxu1 %v8922_v22  ;;  %v1290_v37 = vmax.f32 %v482_v12, 0.0 }
 0x19c   :  { %v1297_v25 = vmax.f32 %v484_v20, 0.0  ;;  %4698 = vmatmul.mubr.bf16.gmra.mrb[156].mxu0 %v11069_v1  ;;  %v1299_v50 = vmax.f32 %v677_v35, 0.0  ;;  %5470 = vmatmul.mubr.bf16.gmra.mrb[156].mxu1 %v11069_v1  ;;  %v8927_v51 = vcombine.low %v11288_v62, %v11290_v28  ;;  %v8929_v63 = vcombine.low %v11296_v55, %v1734_v13 }
 0x19d   :  { %v1298_v9 = vmax.f32 %v486_v32, 0.0  ;;  %4707 = vmatprep.mubr.bf16.mxu0 %v11128_v39  ;;  %v1300_v16 = vmax.f32 %v679_v34, 0.0  ;;  %5479 = vmatprep.mubr.bf16.mxu1 %v11128_v39  ;;  %v8936_v12 = vcombine.high %v10981_v60, %v10983_v18  ;;  %v8938_v62 = vcombine.high %v10999_v57, %v11001_v19 }
 0x19e   :  { %v11314_v11 = vpack.c.bf16 %v1297_v25, %v1289_v30  ;;  %4817 = vmatpush1.bf16.msra.mxu0 %v8919_v42  ;;  %v11322_v22 = vpack.c.bf16 %v1299_v50, %v1291_v3  ;;  %5589 = vmatpush1.bf16.msra.mxu1 %v8921_v58 }
 0x19f   :  { %v11320_v41 = vpack.c.bf16 %v1298_v9, %v1290_v37  ;;  %v489_v32 = vpop.f32.mrb[52].mxu0  ;;  %4818 = vmatprep.subr.bf16.mxu0 %v8928_v17  ;;  %v11326_v20 = vpack.c.bf16 %v1300_v16, %v1292_v43  ;;  %v682_v24 = vpop.f32.mrb[52].mxu1  ;;  %5590 = vmatprep.subr.bf16.mxu1 %v8930_v47 }
 0x1a0   :  { %14081 = vst [vmem:[#allocation66_spill] sm:$0xff] %v11314_v11  ;;  %14083 = vst [vmem:[#allocation68_spill] sm:$0xff] %v11322_v22  ;;  %v490_v8 = vadd.f32 %v489_v32, %v10791_v7  ;;  %v491_v42 = vpop.f32.mrb[53].mxu0  ;;  %v683_v13 = vadd.f32 %v682_v24, %v10799_v14  ;;  %v684_v58 = vpop.f32.mrb[53].mxu1 }
 0x1a1   :  { %14082 = vst [vmem:[#allocation67_spill] sm:$0xff] %v11320_v41  ;;  %14084 = vst [vmem:[#allocation69_spill] sm:$0xff] %v11326_v20  ;;  %v492_v28 = vadd.f32 %v491_v42, %v10796_v38  ;;  %v493_v55 = vpop.f32.mrb[54].mxu0  ;;  %v685_v35 = vadd.f32 %v684_v58, %v10803_v15  ;;  %v686_v30 = vpop.f32.mrb[54].mxu1 }
 0x1a2   :  { %v494_v17 = vadd.f32 %v493_v55, %v10791_v7  ;;  %v495_v3 = vpop.f32.mrb[55].mxu0  ;;  %4819 = vmatpush1.bf16.msra.mxu0 %v8927_v51  ;;  %v1307_v25 = vmax.f32 %v683_v13, 0.0  ;;  %v687_v47 = vadd.f32 %v686_v30, %v10799_v14  ;;  %v688_v34 = vpop.f32.mrb[55].mxu1  ;;  %5591 = vmatpush1.bf16.msra.mxu1 %v8929_v63  ;;  %v1305_v37 = vmax.f32 %v490_v8, 0.0 }
 0x1a3   :  { %v496_v43 = vadd.f32 %v495_v3, %v10796_v38  ;;  %4981 = vmatprep.subr.bf16.mxu0 %v8936_v12  ;;  %v1308_v50 = vmax.f32 %v685_v35, 0.0  ;;  %v689_v16 = vadd.f32 %v688_v34, %v10803_v15  ;;  %5753 = vmatprep.subr.bf16.mxu1 %v8938_v62  ;;  %v1306_v32 = vmax.f32 %v492_v28, 0.0 }
 0x1a4   :  { %v1313_v9 = vmax.f32 %v494_v17, 0.0  ;;  %4708 = vmatmul.mubr.bf16.gmra.mrb[160].mxu0 %v11121_v59  ;;  %v1315_v24 = vmax.f32 %v687_v47, 0.0  ;;  %5480 = vmatmul.mubr.bf16.gmra.mrb[160].mxu1 %v11121_v59 }
 0x1a5   :  { %v1314_v42 = vmax.f32 %v496_v43, 0.0  ;;  %4717 = vmatprep.mubr.bf16.mxu0 %v11180_v27  ;;  %v1316_v55 = vmax.f32 %v689_v16, 0.0  ;;  %5489 = vmatprep.mubr.bf16.mxu1 %v11180_v27 }
 0x1a6   :  { %v11341_v51 = vpack.c.bf16 %v1313_v9, %v1305_v37  ;;  %v11346_v12 = vpack.c.bf16 %v1315_v24, %v1307_v25 }
 0x1a7   :  { %v11344_v63 = vpack.c.bf16 %v1314_v42, %v1306_v32  ;;  %v499_v8 = vpop.f32.mrb[56].mxu0  ;;  %v11348_v13 = vpack.c.bf16 %v1316_v55, %v1308_v50  ;;  %v692_v58 = vpop.f32.mrb[56].mxu1 }
 0x1a8   :  { %14085 = vst [vmem:[#allocation70_spill] sm:$0xff] %v11341_v51  ;;  %14087 = vst [vmem:[#allocation72_spill] sm:$0xff] %v11346_v12  ;;  %v500_v62 = vadd.f32 %v499_v8, %v10791_v7  ;;  %v501_v28 = vpop.f32.mrb[57].mxu0  ;;  %v693_v35 = vadd.f32 %v692_v58, %v10799_v14  ;;  %v694_v30 = vpop.f32.mrb[57].mxu1 }
 0x1a9   :  { %14086 = vst [vmem:[#allocation71_spill] sm:$0xff] %v11344_v63  ;;  %14088 = vst [vmem:[#allocation73_spill] sm:$0xff] %v11348_v13  ;;  %v502_v17 = vadd.f32 %v501_v28, %v10796_v38  ;;  %v503_v3 = vpop.f32.mrb[58].mxu0  ;;  %v695_v34 = vadd.f32 %v694_v30, %v10803_v15  ;;  %v696_v25 = vpop.f32.mrb[58].mxu1 }
 0x1aa   :  { %v504_v43 = vadd.f32 %v503_v3, %v10791_v7  ;;  %v505_v47 = vpop.f32.mrb[59].mxu0  ;;  %v1323_v37 = vmax.f32 %v693_v35, 0.0  ;;  %v697_v50 = vadd.f32 %v696_v25, %v10799_v14  ;;  %v698_v16 = vpop.f32.mrb[59].mxu1  ;;  %v1321_v32 = vmax.f32 %v500_v62, 0.0 }
 0x1ab   :  { %v506_v9 = vadd.f32 %v505_v47, %v10796_v38  ;;  %v1324_v24 = vmax.f32 %v695_v34, 0.0  ;;  %v699_v55 = vadd.f32 %v698_v16, %v10803_v15  ;;  %v1322_v8 = vmax.f32 %v502_v17, 0.0 }
 0x1ac   :  { %v1329_v42 = vmax.f32 %v504_v43, 0.0  ;;  %4718 = vmatmul.mubr.bf16.gmra.mrb[164].mxu0 %v11173_v21  ;;  %v1331_v58 = vmax.f32 %v697_v50, 0.0  ;;  %5490 = vmatmul.mubr.bf16.gmra.mrb[164].mxu1 %v11173_v21  ;;  %v11365_v62 = vsub.s32 4, %v10770_v6  ;;  %v11372_v17 = vsub.s32 5, %v10770_v6 }
 0x1ad   :  { %v1330_v28 = vmax.f32 %v506_v9, 0.0  ;;  %4727 = vmatprep.mubr.bf16.mxu0 %v11232_v2  ;;  %v1332_v35 = vmax.f32 %v699_v55, 0.0  ;;  %5499 = vmatprep.mubr.bf16.mxu1 %v11232_v2  ;;  %v11388_v2 = vsub.s32 7, %v10770_v6 }
 0x1ae   :  { %v11361_v3 = vpack.c.bf16 %v1329_v42, %v1321_v32  ;;  %14090 = vst [vmem:[#allocation75_spill] sm:$0xff] %v11365_v62  ;;  %v11369_v43 = vpack.c.bf16 %v1331_v58, %v1323_v37  ;;  %14093 = vst [vmem:[#allocation78_spill] sm:$0xff] %v11372_v17 }
 0x1af   :  { %v11367_v30 = vpack.c.bf16 %v1330_v28, %v1322_v8  ;;  %v509_v47 = vpop.f32.mrb[60].mxu0  ;;  %v11374_v34 = vpack.c.bf16 %v1332_v35, %v1324_v24  ;;  %v702_v50 = vpop.f32.mrb[60].mxu1  ;;  %v11380_v8 = vsub.s32 6, %v10770_v6  ;;  %v10223_v35 = vld [vmem:[#allocation5] sm:$0xff]  ;;  %14096 = vst [vmem:[#allocation81_spill] sm:$0xff] %v11388_v2 }
 0x1b0   :  { %14089 = vst [vmem:[#allocation74_spill] sm:$0xff] %v11361_v3  ;;  %14092 = vst [vmem:[#allocation77_spill] sm:$0xff] %v11369_v43  ;;  %v510_v25 = vadd.f32 %v509_v47, %v10791_v7  ;;  %v511_v9 = vpop.f32.mrb[61].mxu0  ;;  %v703_v42 = vadd.f32 %v702_v50, %v10799_v14  ;;  %v704_v55 = vpop.f32.mrb[61].mxu1  ;;  %v11385_v47 = vrot.slane %v10223_v35, %v11365_v62 }
 0x1b1   :  { %14091 = vst [vmem:[#allocation76_spill] sm:$0xff] %v11367_v30  ;;  %14094 = vst [vmem:[#allocation79_spill] sm:$0xff] %v11374_v34  ;;  %v512_v16 = vadd.f32 %v511_v9, %v10796_v38  ;;  %v513_v32 = vpop.f32.mrb[62].mxu0  ;;  %v705_v58 = vadd.f32 %v704_v55, %v10803_v15  ;;  %v706_v24 = vpop.f32.mrb[62].mxu1  ;;  %v11393_v59 = vrot.slane %v10223_v35, %v11372_v17 }
 0x1b2   :  { %14095 = vst [vmem:[#allocation80_spill] sm:$0xff] %v11380_v8  ;;  %v514_v37 = vadd.f32 %v513_v32, %v10791_v7  ;;  %v515_v28 = vpop.f32.mrb[63].mxu0  ;;  %v1339_v9 = vmax.f32 %v703_v42, 0.0  ;;  %v707_v21 = vadd.f32 %v706_v24, %v10799_v14  ;;  %v708_v27 = vpop.f32.mrb[63].mxu1  ;;  %v1337_v7 = vmax.f32 %v510_v25, 0.0 }
 0x1b3   :  { %v516_v50 = vadd.f32 %v515_v28, %v10796_v38  ;;  %v1340_v55 = vmax.f32 %v705_v58, 0.0  ;;  %v709_v39 = vadd.f32 %v708_v27, %v10803_v15  ;;  %v1338_v62 = vmax.f32 %v512_v16, 0.0 }
 0x1b4   :  { %v1345_v32 = vmax.f32 %v514_v37, 0.0  ;;  %4728 = vmatmul.mubr.bf16.gmra.mrb[168].mxu0 %v11225_v49  ;;  %v1347_v6 = vmax.f32 %v707_v21, 0.0  ;;  %5500 = vmatmul.mubr.bf16.gmra.mrb[168].mxu1 %v11225_v49  ;;  %v11400_v38 = vrot.slane %v10223_v35, %v11380_v8  ;;  %v11406_v25 = vrot.slane %v10223_v35, %v11388_v2 }
 0x1b5   :  { %v1346_v1 = vmax.f32 %v516_v50, 0.0  ;;  %4737 = vmatprep.mubr.bf16.mxu0 %v11282_v61  ;;  %v1348_v42 = vmax.f32 %v709_v39, 0.0  ;;  %5509 = vmatprep.mubr.bf16.mxu1 %v11282_v61 }
 0x1b6   :  { %v11402_v14 = vpack.c.bf16 %v1345_v32, %v1337_v7  ;;  %v11410_v27 = vpack.c.bf16 %v1347_v6, %v1339_v9 }
 0x1b7   :  { %v11408_v15 = vpack.c.bf16 %v1346_v1, %v1338_v62  ;;  %v745_v21 = vpop.f32.mrb[64].mxu0  ;;  %v11412_v16 = vpack.c.bf16 %v1348_v42, %v1340_v55  ;;  %v938_v58 = vpop.f32.mrb[64].mxu1 }
 0x1b8   :  { %14097 = vst [vmem:[#allocation82_spill] sm:$0xff] %v11402_v14  ;;  %14099 = vst [vmem:[#allocation84_spill] sm:$0xff] %v11410_v27  ;;  %v746_v37 = vadd.f32 %v745_v21, %v11385_v47  ;;  %v747_v28 = vpop.f32.mrb[65].mxu0  ;;  %v939_v39 = vadd.f32 %v938_v58, %v11400_v38  ;;  %v940_v7 = vpop.f32.mrb[65].mxu1 }
 0x1b9   :  { %14098 = vst [vmem:[#allocation83_spill] sm:$0xff] %v11408_v15  ;;  %14100 = vst [vmem:[#allocation85_spill] sm:$0xff] %v11412_v16  ;;  %v748_v24 = vadd.f32 %v747_v28, %v11393_v59  ;;  %v749_v50 = vpop.f32.mrb[66].mxu0  ;;  %v941_v1 = vadd.f32 %v940_v7, %v11406_v25  ;;  %v942_v62 = vpop.f32.mrb[66].mxu1 }
 0x1ba   :  { %v750_v35 = vadd.f32 %v749_v50, %v11385_v47  ;;  %v751_v32 = vpop.f32.mrb[67].mxu0  ;;  %v1103_v9 = vmax.f32 %v939_v39, 0.0  ;;  %v943_v6 = vadd.f32 %v942_v62, %v11400_v38  ;;  %v944_v42 = vpop.f32.mrb[67].mxu1  ;;  %v1101_v21 = vmax.f32 %v746_v37, 0.0 }
 0x1bb   :  { %v752_v55 = vadd.f32 %v751_v32, %v11393_v59  ;;  %v1104_v17 = vmax.f32 %v941_v1, 0.0  ;;  %v945_v28 = vadd.f32 %v944_v42, %v11406_v25  ;;  %v1102_v58 = vmax.f32 %v748_v24, 0.0 }
 0x1bc   :  { %v1109_v2 = vmax.f32 %v750_v35, 0.0  ;;  %4738 = vmatmul.mubr.bf16.gmra.mrb[172].mxu0 %v11275_v45  ;;  %v1111_v50 = vmax.f32 %v943_v6, 0.0  ;;  %5510 = vmatmul.mubr.bf16.gmra.mrb[172].mxu1 %v11275_v45 }
 0x1bd   :  { %v1110_v8 = vmax.f32 %v752_v55, 0.0  ;;  %4747 = vmatprep.mubr.bf16.mxu0 %v11320_v41  ;;  %v1112_v7 = vmax.f32 %v945_v28, 0.0  ;;  %5519 = vmatprep.mubr.bf16.mxu1 %v11320_v41 }
 0x1be   :  { %v11425_v39 = vpack.c.bf16 %v1109_v2, %v1101_v21  ;;  %v11430_v37 = vpack.c.bf16 %v1111_v50, %v1103_v9 }
 0x1bf   :  { %v11428_v32 = vpack.c.bf16 %v1110_v8, %v1102_v58  ;;  %v755_v35 = vpop.f32.mrb[68].mxu0  ;;  %v11432_v1 = vpack.c.bf16 %v1112_v7, %v1104_v17  ;;  %v948_v55 = vpop.f32.mrb[68].mxu1 }
 0x1c0   :  { %14101 = vst [vmem:[#allocation86_spill] sm:$0xff] %v11425_v39  ;;  %14103 = vst [vmem:[#allocation88_spill] sm:$0xff] %v11430_v37  ;;  %v756_v24 = vadd.f32 %v755_v35, %v11385_v47  ;;  %v757_v62 = vpop.f32.mrb[69].mxu0  ;;  %v949_v2 = vadd.f32 %v948_v55, %v11400_v38  ;;  %v950_v21 = vpop.f32.mrb[69].mxu1 }
 0x1c1   :  { %14102 = vst [vmem:[#allocation87_spill] sm:$0xff] %v11428_v32  ;;  %14104 = vst [vmem:[#allocation89_spill] sm:$0xff] %v11432_v1  ;;  %v758_v6 = vadd.f32 %v757_v62, %v11393_v59  ;;  %v759_v42 = vpop.f32.mrb[70].mxu0  ;;  %v951_v8 = vadd.f32 %v950_v21, %v11406_v25  ;;  %v952_v9 = vpop.f32.mrb[70].mxu1  ;;  %v11537_v1 = vld [vmem:[#allocation7 + $0x8a0] sm:$0xff] }
 0x1c2   :  { %v760_v28 = vadd.f32 %v759_v42, %v11385_v47  ;;  %v761_v41 = vpop.f32.mrb[71].mxu0  ;;  %v1119_v58 = vmax.f32 %v949_v2, 0.0  ;;  %v953_v50 = vadd.f32 %v952_v9, %v11400_v38  ;;  %v954_v7 = vpop.f32.mrb[71].mxu1  ;;  %v1117_v35 = vmax.f32 %v756_v24, 0.0 }
 0x1c3   :  { %v762_v17 = vadd.f32 %v761_v41, %v11393_v59  ;;  %v1120_v61 = vmax.f32 %v951_v8, 0.0  ;;  %v955_v62 = vadd.f32 %v954_v7, %v11406_v25  ;;  %v1118_v55 = vmax.f32 %v758_v6, 0.0 }
 0x1c4   :  { %v1125_v45 = vmax.f32 %v760_v28, 0.0  ;;  %4748 = vmatmul.mubr.bf16.gmra.mrb[176].mxu0 %v11314_v11  ;;  %v1127_v42 = vmax.f32 %v953_v50, 0.0  ;;  %5520 = vmatmul.mubr.bf16.gmra.mrb[176].mxu1 %v11314_v11 }
 0x1c5   :  { %v1126_v49 = vmax.f32 %v762_v17, 0.0  ;;  %4757 = vmatprep.mubr.bf16.mxu0 %v11344_v63  ;;  %v1128_v41 = vmax.f32 %v955_v62, 0.0  ;;  %5529 = vmatprep.mubr.bf16.mxu1 %v11344_v63 }
 0x1c6   :  { %v11445_v2 = vpack.c.bf16 %v1125_v45, %v1117_v35  ;;  %v11450_v24 = vpack.c.bf16 %v1127_v42, %v1119_v58 }
 0x1c7   :  { %v11448_v21 = vpack.c.bf16 %v1126_v49, %v1118_v55  ;;  %v765_v28 = vpop.f32.mrb[72].mxu0  ;;  %v11452_v8 = vpack.c.bf16 %v1128_v41, %v1120_v61  ;;  %v958_v17 = vpop.f32.mrb[72].mxu1 }
 0x1c8   :  { %14105 = vst [vmem:[#allocation90_spill] sm:$0xff] %v11445_v2  ;;  %14107 = vst [vmem:[#allocation92_spill] sm:$0xff] %v11450_v24  ;;  %v766_v6 = vadd.f32 %v765_v28, %v11385_v47  ;;  %v767_v9 = vpop.f32.mrb[73].mxu0  ;;  %v959_v45 = vadd.f32 %v958_v17, %v11400_v38  ;;  %v960_v35 = vpop.f32.mrb[73].mxu1 }
 0x1c9   :  { %14106 = vst [vmem:[#allocation91_spill] sm:$0xff] %v11448_v21  ;;  %14108 = vst [vmem:[#allocation93_spill] sm:$0xff] %v11452_v8  ;;  %v768_v50 = vadd.f32 %v767_v9, %v11393_v59  ;;  %v769_v7 = vpop.f32.mrb[74].mxu0  ;;  %v961_v49 = vadd.f32 %v960_v35, %v11406_v25  ;;  %v962_v58 = vpop.f32.mrb[74].mxu1 }
 0x1ca   :  { %v770_v62 = vadd.f32 %v769_v7, %v11385_v47  ;;  %v771_v63 = vpop.f32.mrb[75].mxu0  ;;  %v1135_v55 = vmax.f32 %v959_v45, 0.0  ;;  %v963_v42 = vadd.f32 %v962_v58, %v11400_v38  ;;  %v964_v41 = vpop.f32.mrb[75].mxu1  ;;  %v1133_v28 = vmax.f32 %v766_v6, 0.0 }
 0x1cb   :  { %v772_v61 = vadd.f32 %v771_v63, %v11393_v59  ;;  %v1136_v24 = vmax.f32 %v961_v49, 0.0  ;;  %v965_v9 = vadd.f32 %v964_v41, %v11406_v25  ;;  %v1134_v17 = vmax.f32 %v768_v50, 0.0 }
 0x1cc   :  { %v1141_v11 = vmax.f32 %v770_v62, 0.0  ;;  %4758 = vmatmul.mubr.bf16.gmra.mrb[180].mxu0 %v11341_v51  ;;  %v1143_v7 = vmax.f32 %v963_v42, 0.0  ;;  %5530 = vmatmul.mubr.bf16.gmra.mrb[180].mxu1 %v11341_v51 }
 0x1cd   :  { %v1142_v8 = vmax.f32 %v772_v61, 0.0  ;;  %4767 = vmatprep.mubr.bf16.mxu0 %v11367_v30  ;;  %v1144_v63 = vmax.f32 %v965_v9, 0.0  ;;  %5539 = vmatprep.mubr.bf16.mxu1 %v11367_v30 }
 0x1ce   :  { %v11465_v45 = vpack.c.bf16 %v1141_v11, %v1133_v28  ;;  %v11470_v6 = vpack.c.bf16 %v1143_v7, %v1135_v55 }
 0x1cf   :  { %v11468_v35 = vpack.c.bf16 %v1142_v8, %v1134_v17  ;;  %v775_v62 = vpop.f32.mrb[76].mxu0  ;;  %v11472_v49 = vpack.c.bf16 %v1144_v63, %v1136_v24  ;;  %v968_v61 = vpop.f32.mrb[76].mxu1 }
 0x1d0   :  { %14109 = vst [vmem:[#allocation94_spill] sm:$0xff] %v11465_v45  ;;  %14111 = vst [vmem:[#allocation96_spill] sm:$0xff] %v11470_v6  ;;  %v776_v50 = vadd.f32 %v775_v62, %v11385_v47  ;;  %v777_v58 = vpop.f32.mrb[77].mxu0  ;;  %v969_v11 = vadd.f32 %v968_v61, %v11400_v38  ;;  %v970_v28 = vpop.f32.mrb[77].mxu1  ;;  %v14122_v45 = vcombine.low %v10981_v60, %v10983_v18  ;;  %v11574_v18 = vld [vmem:[#allocation7 + $0x8c0] sm:$0xff] }
 0x1d1   :  { %14110 = vst [vmem:[#allocation95_spill] sm:$0xff] %v11468_v35  ;;  %14112 = vst [vmem:[#allocation97_spill] sm:$0xff] %v11472_v49  ;;  %v778_v42 = vadd.f32 %v777_v58, %v11393_v59  ;;  %v779_v41 = vpop.f32.mrb[78].mxu0  ;;  %v971_v8 = vadd.f32 %v970_v28, %v11406_v25  ;;  %v972_v55 = vpop.f32.mrb[78].mxu1  ;;  %v14125_v60 = vcombine.low %v10999_v57, %v11001_v19  ;;  %v11585_v57 = vld [vmem:[#allocation7 + $0x8c8] sm:$0xff] }
 0x1d2   :  { %v780_v9 = vadd.f32 %v779_v41, %v11385_v47  ;;  %v781_v30 = vpop.f32.mrb[79].mxu0  ;;  %v1151_v17 = vmax.f32 %v969_v11, 0.0  ;;  %v973_v7 = vadd.f32 %v972_v55, %v11400_v38  ;;  %v974_v63 = vpop.f32.mrb[79].mxu1  ;;  %v1149_v62 = vmax.f32 %v776_v50, 0.0  ;;  %v11587_v19 = vld [vmem:[#allocation7 + $0x8e8] sm:$0xff] }
 0x1d3   :  { %v782_v24 = vadd.f32 %v781_v30, %v11393_v59  ;;  %v1152_v6 = vmax.f32 %v971_v8, 0.0  ;;  %v975_v58 = vadd.f32 %v974_v63, %v11406_v25  ;;  %v1150_v61 = vmax.f32 %v778_v42, 0.0 }
 0x1d4   :  { %v1157_v51 = vmax.f32 %v780_v9, 0.0  ;;  %4768 = vmatmul.mubr.bf16.gmra.mrb[184].mxu0 %v11361_v3  ;;  %v1159_v41 = vmax.f32 %v973_v7, 0.0  ;;  %5540 = vmatmul.mubr.bf16.gmra.mrb[184].mxu1 %v11361_v3 }
 0x1d5   :  { %v1158_v49 = vmax.f32 %v782_v24, 0.0  ;;  %4777 = vmatprep.mubr.bf16.mxu0 %v11408_v15  ;;  %v1160_v30 = vmax.f32 %v975_v58, 0.0  ;;  %5549 = vmatprep.mubr.bf16.mxu1 %v11408_v15 }
 0x1d6   :  { %v11485_v11 = vpack.c.bf16 %v1157_v51, %v1149_v62  ;;  %v11490_v50 = vpack.c.bf16 %v1159_v41, %v1151_v17 }
 0x1d7   :  { %v11488_v28 = vpack.c.bf16 %v1158_v49, %v1150_v61  ;;  %v785_v9 = vpop.f32.mrb[80].mxu0  ;;  %v11492_v8 = vpack.c.bf16 %v1160_v30, %v1152_v6  ;;  %v978_v24 = vpop.f32.mrb[80].mxu1 }
 0x1d8   :  { %14113 = vst [vmem:[#allocation98_spill] sm:$0xff] %v11485_v11  ;;  %14115 = vst [vmem:[#allocation100_spill] sm:$0xff] %v11490_v50  ;;  %v786_v42 = vadd.f32 %v785_v9, %v11385_v47  ;;  %v787_v55 = vpop.f32.mrb[81].mxu0  ;;  %v979_v51 = vadd.f32 %v978_v24, %v11400_v38  ;;  %v980_v62 = vpop.f32.mrb[81].mxu1 }
 0x1d9   :  { %14114 = vst [vmem:[#allocation99_spill] sm:$0xff] %v11488_v28  ;;  %14116 = vst [vmem:[#allocation101_spill] sm:$0xff] %v11492_v8  ;;  %v788_v7 = vadd.f32 %v787_v55, %v11393_v59  ;;  %v789_v63 = vpop.f32.mrb[82].mxu0  ;;  %v981_v49 = vadd.f32 %v980_v62, %v11406_v25  ;;  %v982_v17 = vpop.f32.mrb[82].mxu1  ;;  %v11547_v28 = vld [vmem:[#allocation7 + $0x888] sm:$0xff] }
 0x1da   :  { %v790_v58 = vadd.f32 %v789_v63, %v11385_v47  ;;  %v791_v15 = vpop.f32.mrb[83].mxu0  ;;  %v1167_v61 = vmax.f32 %v979_v51, 0.0  ;;  %v983_v41 = vadd.f32 %v982_v17, %v11400_v38  ;;  %v984_v30 = vpop.f32.mrb[83].mxu1  ;;  %v1165_v9 = vmax.f32 %v786_v42, 0.0  ;;  %v11514_v17 = vld [vmem:[#allocation7 + $0x860] sm:$0xff] }
 0x1db   :  { %v792_v6 = vadd.f32 %v791_v15, %v11393_v59  ;;  %v1168_v50 = vmax.f32 %v981_v49, 0.0  ;;  %v985_v55 = vadd.f32 %v984_v30, %v11406_v25  ;;  %v1166_v24 = vmax.f32 %v788_v7, 0.0  ;;  %v11512_v49 = vld [vmem:[#allocation7 + $0x840] sm:$0xff] }
 0x1dc   :  { %v1173_v3 = vmax.f32 %v790_v58, 0.0  ;;  %4778 = vmatmul.mubr.bf16.gmra.mrb[188].mxu0 %v11402_v14  ;;  %v1175_v63 = vmax.f32 %v983_v41, 0.0  ;;  %5550 = vmatmul.mubr.bf16.gmra.mrb[188].mxu1 %v11402_v14  ;;  %v8944_v14 = vcombine.high %v11512_v49, %v11514_v17 }
 0x1dd   :  { %v1174_v8 = vmax.f32 %v792_v6, 0.0  ;;  %4820 = vmatprep.mubr.bf16.mxu0 %v10826_v44  ;;  %v1176_v15 = vmax.f32 %v985_v55, 0.0  ;;  %5592 = vmatprep.mubr.bf16.mxu1 %v10826_v44 }
 0x1de   :  { %v11505_v51 = vpack.c.bf16 %v1173_v3, %v1165_v9  ;;  %v11510_v42 = vpack.c.bf16 %v1175_v63, %v1167_v61  ;;  %v11519_v3 = vld [vmem:[#allocation7 + $0x848] sm:$0xff] }
 0x1df   :  { %v11508_v62 = vpack.c.bf16 %v1174_v8, %v1166_v24  ;;  %v795_v58 = vpop.f32.mrb[84].mxu0  ;;  %v11516_v7 = vpack.c.bf16 %v1176_v15, %v1168_v50  ;;  %v988_v30 = vpop.f32.mrb[84].mxu1  ;;  %v11521_v9 = vld [vmem:[#allocation7 + $0x868] sm:$0xff] }
 0x1e0   :  { %14117 = vst [vmem:[#allocation102_spill] sm:$0xff] %v11505_v51  ;;  %14119 = vst [vmem:[#allocation104_spill] sm:$0xff] %v11510_v42  ;;  %v796_v6 = vadd.f32 %v795_v58, %v11385_v47  ;;  %v797_v41 = vpop.f32.mrb[85].mxu0  ;;  %v989_v61 = vadd.f32 %v988_v30, %v11400_v38  ;;  %v990_v24 = vpop.f32.mrb[85].mxu1  ;;  %v8943_v58 = vcombine.low %v11512_v49, %v11514_v17  ;;  %v11541_v49 = vld [vmem:[#allocation7 + $0xc00] sm:$0xff] }
 0x1e1   :  { %14118 = vst [vmem:[#allocation103_spill] sm:$0xff] %v11508_v62  ;;  %14120 = vst [vmem:[#allocation105_spill] sm:$0xff] %v11516_v7  ;;  %v798_v8 = vadd.f32 %v797_v41, %v11393_v59  ;;  %v799_v55 = vpop.f32.mrb[86].mxu0  ;;  %v991_v50 = vadd.f32 %v990_v24, %v11406_v25  ;;  %v992_v15 = vpop.f32.mrb[86].mxu1  ;;  %v8946_v30 = vcombine.high %v11519_v3, %v11521_v9 }
 0x1e2   :  { %v800_v63 = vadd.f32 %v799_v55, %v11385_v47  ;;  %v801_v44 = vpop.f32.mrb[87].mxu0  ;;  %v1183_v42 = vmax.f32 %v989_v61, 0.0  ;;  %v993_v41 = vadd.f32 %v992_v15, %v11400_v38  ;;  %v994_v37 = vpop.f32.mrb[87].mxu1  ;;  %v11535_v55 = vld [vmem:[#allocation7 + $0x880] sm:$0xff]  ;;  %v1181_v24 = vmax.f32 %v796_v6, 0.0  ;;  %v11549_v6 = vld [vmem:[#allocation7 + $0x8a8] sm:$0xff] }
 0x1e3   :  { %v802_v7 = vadd.f32 %v801_v44, %v11393_v59  ;;  %v1184_v62 = vmax.f32 %v991_v50, 0.0  ;;  %v995_v11 = vadd.f32 %v994_v37, %v11406_v25  ;;  %v11543_v44 = vld [vmem:[#allocation7 + $0xc20] sm:$0xff]  ;;  %v1182_v17 = vmax.f32 %v798_v8, 0.0 }
 0x1e4   :  { %v1189_v51 = vmax.f32 %v800_v63, 0.0  ;;  %4821 = vmatmul.mubr.bf16.vlgmr.msra.gmra.mrb[128].mxu0 %v10824_v40  ;;  %v1191_v15 = vmax.f32 %v993_v41, 0.0  ;;  %5593 = vmatmul.mubr.bf16.vlgmr.msra.gmra.mrb[128].mxu1 %v10824_v40  ;;  %v8952_v8 = vcombine.high %v11535_v55, %v11537_v1  ;;  %v11563_v41 = vld [vmem:[#allocation7 + $0xc08] sm:$0xff] }
 0x1e5   :  { %v1190_v61 = vmax.f32 %v802_v7, 0.0  ;;  %4830 = vmatprep.mubr.bf16.mxu0 %v10848_v31  ;;  %v1192_v50 = vmax.f32 %v995_v11, 0.0  ;;  %4982 = vmatpush1.bf16.msra.mxu0 %v14122_v45  ;;  %v8945_v7 = vcombine.low %v11519_v3, %v11521_v9  ;;  %v11565_v40 = vld [vmem:[#allocation7 + $0xc28] sm:$0xff]  ;;  %v11576_v45 = vld [vmem:[#allocation7 + $0x8e0] sm:$0xff] }
 0x1e6   :  { %v11553_v63 = vpack.c.bf16 %v1189_v51, %v1181_v24  ;;  %5602 = vmatprep.mubr.bf16.mxu1 %v10848_v31  ;;  %v11569_v51 = vpack.c.bf16 %v1191_v15, %v1183_v42  ;;  %5754 = vmatpush1.bf16.msra.mxu1 %v14125_v60 }
 0x1e7   :  { %v11567_v37 = vpack.c.bf16 %v1190_v61, %v1182_v17  ;;  %v805_v11 = vpop.f32.mrb[88].mxu0  ;;  %4983 = vmatprep.subr.bf16.mxu0 %v8944_v14  ;;  %v11580_v9 = vpack.c.bf16 %v1192_v50, %v1184_v62  ;;  %v998_v42 = vpop.f32.mrb[88].mxu1  ;;  %5755 = vmatprep.subr.bf16.mxu1 %v8946_v30  ;;  %v8954_v61 = vcombine.high %v11547_v28, %v11549_v6 }
 0x1e8   :  { %14121 = vst [vmem:[#allocation106_spill] sm:$0xff] %v11553_v63  ;;  %14124 = vst [vmem:[#allocation108_spill] sm:$0xff] %v11569_v51  ;;  %v806_v24 = vadd.f32 %v805_v11, %v11385_v47  ;;  %v807_v17 = vpop.f32.mrb[89].mxu0  ;;  %v999_v60 = vadd.f32 %v998_v42, %v11400_v38  ;;  %v1000_v3 = vpop.f32.mrb[89].mxu1  ;;  %v8951_v62 = vcombine.low %v11535_v55, %v11537_v1 }
 0x1e9   :  { %14123 = vst [vmem:[#allocation107_spill] sm:$0xff] %v11567_v37  ;;  %14126 = vst [vmem:[#allocation109_spill] sm:$0xff] %v11580_v9  ;;  %v808_v14 = vadd.f32 %v807_v17, %v11393_v59  ;;  %v809_v15 = vpop.f32.mrb[90].mxu0  ;;  %v1001_v30 = vadd.f32 %v1000_v3, %v11406_v25  ;;  %v1002_v31 = vpop.f32.mrb[90].mxu1  ;;  %4984 = vmatpush1.bf16.msra.mxu0 %v8943_v58  ;;  %v8953_v51 = vcombine.low %v11547_v28, %v11549_v6  ;;  %v11605_v28 = vld [vmem:[#allocation7 + $0x900] sm:$0xff] }
 0x1ea   :  { %v810_v50 = vadd.f32 %v809_v15, %v11385_v47  ;;  %v811_v11 = vpop.f32.mrb[91].mxu0  ;;  %v8960_v17 = vcombine.high %v11574_v18, %v11576_v45  ;;  %v1199_v9 = vmax.f32 %v999_v60, 0.0  ;;  %v1003_v63 = vadd.f32 %v1002_v31, %v11400_v38  ;;  %v1004_v37 = vpop.f32.mrb[91].mxu1  ;;  %5756 = vmatpush1.bf16.msra.mxu1 %v8945_v7  ;;  %4985 = vmatprep.subr.bf16.mxu0 %v8952_v8  ;;  %v11607_v6 = vld [vmem:[#allocation7 + $0x920] sm:$0xff]  ;;  %v11611_v7 = vld [vmem:[#allocation7 + $0x908] sm:$0xff] }
 0x1eb   :  { %v812_v42 = vadd.f32 %v811_v11, %v11393_v59  ;;  %v8962_v1 = vcombine.high %v11585_v57, %v11587_v19  ;;  %v1197_v55 = vmax.f32 %v806_v24, 0.0  ;;  %v1200_v58 = vmax.f32 %v1001_v30, 0.0  ;;  %5757 = vmatprep.subr.bf16.mxu1 %v8954_v61  ;;  %v11613_v8 = vld [vmem:[#allocation7 + $0x928] sm:$0xff] }
 0x1ec   :  { %v1205_v3 = vmax.f32 %v810_v50, 0.0  ;;  %v1005_v15 = vadd.f32 %v1004_v37, %v11406_v25  ;;  %4831 = vmatmul.mubr.bf16.gmra.mrb[132].mxu0 %v10846_v29  ;;  %v1198_v60 = vmax.f32 %v808_v14, 0.0  ;;  %v1207_v11 = vmax.f32 %v1003_v63, 0.0  ;;  %5603 = vmatmul.mubr.bf16.gmra.mrb[132].mxu1 %v10846_v29 }
 0x1ed   :  { %v1206_v31 = vmax.f32 %v812_v42, 0.0  ;;  %4840 = vmatprep.mubr.bf16.mxu0 %v10870_v4  ;;  %5612 = vmatprep.mubr.bf16.mxu1 %v10870_v4  ;;  %v8959_v61 = vcombine.low %v11574_v18, %v11576_v45  ;;  %v8961_v63 = vcombine.low %v11585_v57, %v11587_v19  ;;  %v8968_v42 = vcombine.high %v11605_v28, %v11607_v6  ;;  %v11637_v19 = vld [vmem:[#allocation7 + $0x948] sm:$0xff] }
 0x1ee   :  { %v11615_v24 = vpack.c.bf16 %v1205_v3, %v1197_v55  ;;  %v1208_v37 = vmax.f32 %v1005_v15, 0.0  ;;  %4986 = vmatpush1.bf16.msra.mxu0 %v8951_v62  ;;  %v11624_v50 = vpack.c.bf16 %v1207_v11, %v1199_v9  ;;  %5758 = vmatpush1.bf16.msra.mxu1 %v8953_v51  ;;  %v11628_v55 = vld [vmem:[#allocation7 + $0x940] sm:$0xff]  ;;  %v8970_v9 = vcombine.high %v11611_v7, %v11613_v8  ;;  %v11639_v51 = vld [vmem:[#allocation7 + $0x968] sm:$0xff] }
 0x1ef   :  { %v11622_v14 = vpack.c.bf16 %v1206_v31, %v1198_v60  ;;  %v815_v30 = vpop.f32.mrb[92].mxu0  ;;  %4987 = vmatprep.subr.bf16.mxu0 %v8960_v17  ;;  %v11630_v3 = vld [vmem:[#allocation7 + $0x960] sm:$0xff]  ;;  %v1008_v57 = vpop.f32.mrb[92].mxu1  ;;  %5759 = vmatprep.subr.bf16.mxu1 %v8962_v1  ;;  %v8969_v4 = vcombine.low %v11611_v7, %v11613_v8 }
 0x1f0   :  { %14127 = vst [vmem:[#allocation110_spill] sm:$0xff] %v11615_v24  ;;  %14129 = vst [vmem:[#allocation112_spill] sm:$0xff] %v11624_v50  ;;  %v11632_v62 = vpack.c.bf16 %v1208_v37, %v1200_v58  ;;  %v816_v18 = vadd.f32 %v815_v30, %v11385_v47  ;;  %v817_v45 = vpop.f32.mrb[93].mxu0  ;;  %v1009_v60 = vadd.f32 %v1008_v57, %v11400_v38  ;;  %v1010_v31 = vpop.f32.mrb[93].mxu1  ;;  %v11657_v7 = vld [vmem:[#allocation7 + $0x980] sm:$0xff] }
 0x1f1   :  { %14128 = vst [vmem:[#allocation111_spill] sm:$0xff] %v11622_v14  ;;  %v818_v17 = vadd.f32 %v817_v45, %v11393_v59  ;;  %v819_v15 = vpop.f32.mrb[94].mxu0  ;;  %v8967_v58 = vcombine.low %v11605_v28, %v11607_v6  ;;  %v1011_v1 = vadd.f32 %v1010_v31, %v11406_v25  ;;  %v1012_v30 = vpop.f32.mrb[94].mxu1  ;;  %v8976_v45 = vcombine.high %v11628_v55, %v11630_v3  ;;  %v11659_v8 = vld [vmem:[#allocation7 + $0x9a0] sm:$0xff] }
 0x1f2   :  { %14130 = vst [vmem:[#allocation113_spill] sm:$0xff] %v11632_v62  ;;  %v820_v11 = vadd.f32 %v819_v15, %v11385_v47  ;;  %v821_v37 = vpop.f32.mrb[95].mxu0  ;;  %4988 = vmatpush1.bf16.msra.mxu0 %v8959_v61  ;;  %v1215_v29 = vmax.f32 %v1009_v60, 0.0  ;;  %v1013_v50 = vadd.f32 %v1012_v30, %v11400_v38  ;;  %v1014_v62 = vpop.f32.mrb[95].mxu1  ;;  %5760 = vmatpush1.bf16.msra.mxu1 %v8961_v63  ;;  %v1213_v6 = vmax.f32 %v816_v18, 0.0  ;;  %v11663_v63 = vld [vmem:[#allocation7 + $0x988] sm:$0xff] }
 0x1f3   :  { %v822_v57 = vadd.f32 %v821_v37, %v11393_v59  ;;  %4989 = vmatprep.subr.bf16.mxu0 %v8968_v42  ;;  %v8978_v28 = vcombine.high %v11637_v19, %v11639_v51  ;;  %v1216_v61 = vmax.f32 %v1011_v1, 0.0  ;;  %v1015_v31 = vadd.f32 %v1014_v62, %v11406_v25  ;;  %5761 = vmatprep.subr.bf16.mxu1 %v8970_v9  ;;  %v11665_v42 = vld [vmem:[#allocation7 + $0x9a8] sm:$0xff] }
 0x1f4   :  { %v1221_v15 = vmax.f32 %v820_v11, 0.0  ;;  %4841 = vmatmul.mubr.bf16.gmra.mrb[136].mxu0 %v10868_v5  ;;  %v1214_v60 = vmax.f32 %v818_v17, 0.0  ;;  %v1223_v30 = vmax.f32 %v1013_v50, 0.0  ;;  %5613 = vmatmul.mubr.bf16.gmra.mrb[136].mxu1 %v10868_v5  ;;  %v8975_v9 = vcombine.low %v11628_v55, %v11630_v3 }
 0x1f5   :  { %v1222_v37 = vmax.f32 %v822_v57, 0.0  ;;  %4850 = vmatprep.mubr.bf16.mxu0 %v10892_v52  ;;  %v1224_v62 = vmax.f32 %v1015_v31, 0.0  ;;  %5622 = vmatprep.mubr.bf16.mxu1 %v10892_v52  ;;  %v8977_v50 = vcombine.low %v11637_v19, %v11639_v51  ;;  %v8984_v57 = vcombine.high %v11657_v7, %v11659_v8  ;;  %v11689_v51 = vld [vmem:[#allocation7 + $0x9c8] sm:$0xff] }
 0x1f6   :  { %v11667_v18 = vpack.c.bf16 %v1221_v15, %v1213_v6  ;;  %4990 = vmatpush1.bf16.msra.mxu0 %v8967_v58  ;;  %v11676_v11 = vpack.c.bf16 %v1223_v30, %v1215_v29  ;;  %5762 = vmatpush1.bf16.msra.mxu1 %v8969_v4  ;;  %v11680_v6 = vld [vmem:[#allocation7 + $0x9c0] sm:$0xff]  ;;  %v8986_v29 = vcombine.high %v11663_v63, %v11665_v42  ;;  %v11691_v4 = vld [vmem:[#allocation7 + $0x9e8] sm:$0xff] }
 0x1f7   :  { %v11674_v17 = vpack.c.bf16 %v1222_v37, %v1214_v60  ;;  %v825_v1 = vpop.f32.mrb[96].mxu0  ;;  %4991 = vmatprep.subr.bf16.mxu0 %v8976_v45  ;;  %v11682_v15 = vld [vmem:[#allocation7 + $0x9e0] sm:$0xff]  ;;  %v11684_v58 = vpack.c.bf16 %v1224_v62, %v1216_v61  ;;  %v1018_v19 = vpop.f32.mrb[96].mxu1  ;;  %5763 = vmatprep.subr.bf16.mxu1 %v8978_v28  ;;  %v8983_v61 = vcombine.low %v11657_v7, %v11659_v8 }
 0x1f8   :  { %14131 = vst [vmem:[#allocation114_spill] sm:$0xff] %v11667_v18  ;;  %14133 = vst [vmem:[#allocation116_spill] sm:$0xff] %v11676_v11  ;;  %v826_v55 = vadd.f32 %v825_v1, %v11385_v47  ;;  %v827_v3 = vpop.f32.mrb[97].mxu0  ;;  %v1019_v60 = vadd.f32 %v1018_v19, %v11400_v38  ;;  %v1020_v37 = vpop.f32.mrb[97].mxu1  ;;  %v8985_v52 = vcombine.low %v11663_v63, %v11665_v42  ;;  %v11709_v63 = vld [vmem:[#allocation7 + $0xa00] sm:$0xff] }
 0x1f9   :  { %14132 = vst [vmem:[#allocation115_spill] sm:$0xff] %v11674_v17  ;;  %14134 = vst [vmem:[#allocation117_spill] sm:$0xff] %v11684_v58  ;;  %v828_v45 = vadd.f32 %v827_v3, %v11393_v59  ;;  %v829_v31 = vpop.f32.mrb[98].mxu0  ;;  %v1021_v28 = vadd.f32 %v1020_v37, %v11406_v25  ;;  %v1022_v1 = vpop.f32.mrb[98].mxu1  ;;  %v8992_v3 = vcombine.high %v11680_v6, %v11682_v15  ;;  %v11711_v42 = vld [vmem:[#allocation7 + $0xa20] sm:$0xff] }
 0x1fa   :  { %v830_v30 = vadd.f32 %v829_v31, %v11385_v47  ;;  %v831_v62 = vpop.f32.mrb[99].mxu0  ;;  %4992 = vmatpush1.bf16.msra.mxu0 %v8975_v9  ;;  %v1231_v5 = vmax.f32 %v1019_v60, 0.0  ;;  %v1023_v11 = vadd.f32 %v1022_v1, %v11400_v38  ;;  %v1024_v58 = vpop.f32.mrb[99].mxu1  ;;  %5764 = vmatpush1.bf16.msra.mxu1 %v8977_v50  ;;  %v8994_v7 = vcombine.high %v11689_v51, %v11691_v4  ;;  %v11715_v50 = vld [vmem:[#allocation7 + $0xa08] sm:$0xff] }
 0x1fb   :  { %v832_v19 = vadd.f32 %v831_v62, %v11393_v59  ;;  %4993 = vmatprep.subr.bf16.mxu0 %v8984_v57  ;;  %v1229_v8 = vmax.f32 %v826_v55, 0.0  ;;  %v1232_v9 = vmax.f32 %v1021_v28, 0.0  ;;  %v1025_v37 = vadd.f32 %v1024_v58, %v11406_v25  ;;  %5765 = vmatprep.subr.bf16.mxu1 %v8986_v29  ;;  %v11717_v57 = vld [vmem:[#allocation7 + $0xa28] sm:$0xff] }
 0x1fc   :  { %v1237_v31 = vmax.f32 %v830_v30, 0.0  ;;  %4851 = vmatmul.mubr.bf16.gmra.mrb[140].mxu0 %v10890_v56  ;;  %v1230_v60 = vmax.f32 %v828_v45, 0.0  ;;  %v1239_v1 = vmax.f32 %v1023_v11, 0.0  ;;  %5623 = vmatmul.mubr.bf16.gmra.mrb[140].mxu1 %v10890_v56  ;;  %v8991_v29 = vcombine.low %v11680_v6, %v11682_v15 }
 0x1fd   :  { %v1238_v62 = vmax.f32 %v832_v19, 0.0  ;;  %4860 = vmatprep.mubr.bf16.mxu0 %v10918_v48  ;;  %v1240_v58 = vmax.f32 %v1025_v37, 0.0  ;;  %5632 = vmatprep.mubr.bf16.mxu1 %v10918_v48  ;;  %v8993_v11 = vcombine.low %v11689_v51, %v11691_v4  ;;  %v9000_v19 = vcombine.high %v11709_v63, %v11711_v42  ;;  %v11741_v4 = vld [vmem:[#allocation7 + $0xa48] sm:$0xff] }
 0x1fe   :  { %v11719_v55 = vpack.c.bf16 %v1237_v31, %v1229_v8  ;;  %4994 = vmatpush1.bf16.msra.mxu0 %v8983_v61  ;;  %v11728_v30 = vpack.c.bf16 %v1239_v1, %v1231_v5  ;;  %5766 = vmatpush1.bf16.msra.mxu1 %v8985_v52  ;;  %v11732_v8 = vld [vmem:[#allocation7 + $0xa40] sm:$0xff]  ;;  %v9002_v5 = vcombine.high %v11715_v50, %v11717_v57  ;;  %v11743_v52 = vld [vmem:[#allocation7 + $0xa68] sm:$0xff] }
 0x1ff   :  { %v11726_v45 = vpack.c.bf16 %v1238_v62, %v1230_v60  ;;  %v835_v28 = vpop.f32.mrb[100].mxu0  ;;  %4995 = vmatprep.subr.bf16.mxu0 %v8992_v3  ;;  %v11734_v31 = vld [vmem:[#allocation7 + $0xa60] sm:$0xff]  ;;  %v11736_v61 = vpack.c.bf16 %v1240_v58, %v1232_v9  ;;  %v1028_v51 = vpop.f32.mrb[100].mxu1  ;;  %5767 = vmatprep.subr.bf16.mxu1 %v8994_v7  ;;  %v8999_v9 = vcombine.low %v11709_v63, %v11711_v42 }
 0x200   :  { %14135 = vst [vmem:[#allocation118_spill] sm:$0xff] %v11719_v55  ;;  %14137 = vst [vmem:[#allocation120_spill] sm:$0xff] %v11728_v30  ;;  %v836_v6 = vadd.f32 %v835_v28, %v11385_v47  ;;  %v837_v15 = vpop.f32.mrb[101].mxu0  ;;  %v1029_v60 = vadd.f32 %v1028_v51, %v11400_v38  ;;  %v1030_v62 = vpop.f32.mrb[101].mxu1  ;;  %v9001_v48 = vcombine.low %v11715_v50, %v11717_v57  ;;  %v11761_v50 = vld [vmem:[#allocation7 + $0xa80] sm:$0xff] }
 0x201   :  { %14136 = vst [vmem:[#allocation119_spill] sm:$0xff] %v11726_v45  ;;  %14138 = vst [vmem:[#allocation121_spill] sm:$0xff] %v11736_v61  ;;  %v838_v3 = vadd.f32 %v837_v15, %v11393_v59  ;;  %v839_v37 = vpop.f32.mrb[102].mxu0  ;;  %v1031_v7 = vadd.f32 %v1030_v62, %v11406_v25  ;;  %v1032_v28 = vpop.f32.mrb[102].mxu1  ;;  %v9008_v15 = vcombine.high %v11732_v8, %v11734_v31  ;;  %v11763_v57 = vld [vmem:[#allocation7 + $0xaa0] sm:$0xff] }
 0x202   :  { %v840_v1 = vadd.f32 %v839_v37, %v11385_v47  ;;  %v841_v58 = vpop.f32.mrb[103].mxu0  ;;  %4996 = vmatpush1.bf16.msra.mxu0 %v8991_v29  ;;  %v1247_v56 = vmax.f32 %v1029_v60, 0.0  ;;  %v1033_v30 = vadd.f32 %v1032_v28, %v11400_v38  ;;  %v1034_v61 = vpop.f32.mrb[103].mxu1  ;;  %5768 = vmatpush1.bf16.msra.mxu1 %v8993_v11  ;;  %v9010_v63 = vcombine.high %v11741_v4, %v11743_v52  ;;  %v11767_v11 = vld [vmem:[#allocation7 + $0xa88] sm:$0xff] }
 0x203   :  { %v842_v51 = vadd.f32 %v841_v58, %v11393_v59  ;;  %4997 = vmatprep.subr.bf16.mxu0 %v9000_v19  ;;  %v1245_v42 = vmax.f32 %v836_v6, 0.0  ;;  %v1248_v29 = vmax.f32 %v1031_v7, 0.0  ;;  %v1035_v62 = vadd.f32 %v1034_v61, %v11406_v25  ;;  %5769 = vmatprep.subr.bf16.mxu1 %v9002_v5  ;;  %v11769_v19 = vld [vmem:[#allocation7 + $0xaa8] sm:$0xff] }
 0x204   :  { %v1253_v37 = vmax.f32 %v840_v1, 0.0  ;;  %4861 = vmatmul.mubr.bf16.gmra.mrb[144].mxu0 %v10912_v36  ;;  %v1246_v60 = vmax.f32 %v838_v3, 0.0  ;;  %v1255_v28 = vmax.f32 %v1033_v30, 0.0  ;;  %5633 = vmatmul.mubr.bf16.gmra.mrb[144].mxu1 %v10912_v36  ;;  %v9007_v5 = vcombine.low %v11732_v8, %v11734_v31 }
 0x205   :  { %v1254_v58 = vmax.f32 %v842_v51, 0.0  ;;  %4870 = vmatprep.mubr.bf16.mxu0 %v10974_v46  ;;  %v1256_v61 = vmax.f32 %v1035_v62, 0.0  ;;  %5642 = vmatprep.mubr.bf16.mxu1 %v10974_v46  ;;  %v9009_v30 = vcombine.low %v11741_v4, %v11743_v52  ;;  %v9016_v51 = vcombine.high %v11761_v50, %v11763_v57  ;;  %v11793_v52 = vld [vmem:[#allocation7 + $0xac8] sm:$0xff] }
 0x206   :  { %v11771_v6 = vpack.c.bf16 %v1253_v37, %v1245_v42  ;;  %4998 = vmatpush1.bf16.msra.mxu0 %v8999_v9  ;;  %v11780_v1 = vpack.c.bf16 %v1255_v28, %v1247_v56  ;;  %5770 = vmatpush1.bf16.msra.mxu1 %v9001_v48  ;;  %v11784_v42 = vld [vmem:[#allocation7 + $0xac0] sm:$0xff]  ;;  %v9018_v56 = vcombine.high %v11767_v11, %v11769_v19  ;;  %v11795_v48 = vld [vmem:[#allocation7 + $0xae8] sm:$0xff] }
 0x207   :  { %v11778_v3 = vpack.c.bf16 %v1254_v58, %v1246_v60  ;;  %v845_v7 = vpop.f32.mrb[104].mxu0  ;;  %4999 = vmatprep.subr.bf16.mxu0 %v9008_v15  ;;  %v11786_v37 = vld [vmem:[#allocation7 + $0xae0] sm:$0xff]  ;;  %v11788_v9 = vpack.c.bf16 %v1256_v61, %v1248_v29  ;;  %v1038_v4 = vpop.f32.mrb[104].mxu1  ;;  %5771 = vmatprep.subr.bf16.mxu1 %v9010_v63  ;;  %v9015_v29 = vcombine.low %v11761_v50, %v11763_v57 }
 0x208   :  { %14139 = vst [vmem:[#allocation122_spill] sm:$0xff] %v11771_v6  ;;  %14141 = vst [vmem:[#allocation124_spill] sm:$0xff] %v11780_v1  ;;  %v846_v8 = vadd.f32 %v845_v7, %v11385_v47  ;;  %v847_v31 = vpop.f32.mrb[105].mxu0  ;;  %v1039_v60 = vadd.f32 %v1038_v4, %v11400_v38  ;;  %v1040_v58 = vpop.f32.mrb[105].mxu1  ;;  %v9017_v46 = vcombine.low %v11767_v11, %v11769_v19  ;;  %v11813_v11 = vld [vmem:[#allocation7 + $0xb00] sm:$0xff] }
 0x209   :  { %14140 = vst [vmem:[#allocation123_spill] sm:$0xff] %v11778_v3  ;;  %14142 = vst [vmem:[#allocation125_spill] sm:$0xff] %v11788_v9  ;;  %v848_v15 = vadd.f32 %v847_v31, %v11393_v59  ;;  %v849_v62 = vpop.f32.mrb[106].mxu0  ;;  %v1041_v63 = vadd.f32 %v1040_v58, %v11406_v25  ;;  %v1042_v7 = vpop.f32.mrb[106].mxu1  ;;  %v9024_v31 = vcombine.high %v11784_v42, %v11786_v37  ;;  %v11815_v19 = vld [vmem:[#allocation7 + $0xb20] sm:$0xff] }
 0x20a   :  { %v850_v28 = vadd.f32 %v849_v62, %v11385_v47  ;;  %v851_v61 = vpop.f32.mrb[107].mxu0  ;;  %5000 = vmatpush1.bf16.msra.mxu0 %v9007_v5  ;;  %v1263_v36 = vmax.f32 %v1039_v60, 0.0  ;;  %v1043_v1 = vadd.f32 %v1042_v7, %v11400_v38  ;;  %v1044_v9 = vpop.f32.mrb[107].mxu1  ;;  %5772 = vmatpush1.bf16.msra.mxu1 %v9009_v30  ;;  %v9026_v50 = vcombine.high %v11793_v52, %v11795_v48  ;;  %v11819_v30 = vld [vmem:[#allocation7 + $0xb08] sm:$0xff] }
 0x20b   :  { %v852_v4 = vadd.f32 %v851_v61, %v11393_v59  ;;  %5001 = vmatprep.subr.bf16.mxu0 %v9016_v51  ;;  %v1261_v57 = vmax.f32 %v846_v8, 0.0  ;;  %v1264_v5 = vmax.f32 %v1041_v63, 0.0  ;;  %v1045_v58 = vadd.f32 %v1044_v9, %v11406_v25  ;;  %5773 = vmatprep.subr.bf16.mxu1 %v9018_v56  ;;  %v11821_v51 = vld [vmem:[#allocation7 + $0xb28] sm:$0xff] }
 0x20c   :  { %v1269_v62 = vmax.f32 %v850_v28, 0.0  ;;  %4871 = vmatmul.mubr.bf16.gmra.mrb[148].mxu0 %v10961_v0  ;;  %v1262_v60 = vmax.f32 %v848_v15, 0.0  ;;  %v1271_v7 = vmax.f32 %v1043_v1, 0.0  ;;  %5643 = vmatmul.mubr.bf16.gmra.mrb[148].mxu1 %v10961_v0  ;;  %v9023_v56 = vcombine.low %v11784_v42, %v11786_v37 }
 0x20d   :  { %v1270_v61 = vmax.f32 %v852_v4, 0.0  ;;  %4880 = vmatprep.mubr.bf16.mxu0 %v11034_v53  ;;  %v1272_v9 = vmax.f32 %v1045_v58, 0.0  ;;  %5652 = vmatprep.mubr.bf16.mxu1 %v11034_v53  ;;  %v9025_v1 = vcombine.low %v11793_v52, %v11795_v48  ;;  %v9032_v4 = vcombine.high %v11813_v11, %v11815_v19  ;;  %v11845_v48 = vld [vmem:[#allocation7 + $0xb48] sm:$0xff] }
 0x20e   :  { %v11823_v8 = vpack.c.bf16 %v1269_v62, %v1261_v57  ;;  %5002 = vmatpush1.bf16.msra.mxu0 %v9015_v29  ;;  %v11832_v28 = vpack.c.bf16 %v1271_v7, %v1263_v36  ;;  %5774 = vmatpush1.bf16.msra.mxu1 %v9017_v46  ;;  %v11836_v57 = vld [vmem:[#allocation7 + $0xb40] sm:$0xff]  ;;  %v9034_v36 = vcombine.high %v11819_v30, %v11821_v51  ;;  %v11847_v46 = vld [vmem:[#allocation7 + $0xb68] sm:$0xff] }
 0x20f   :  { %v11830_v15 = vpack.c.bf16 %v1270_v61, %v1262_v60  ;;  %v855_v63 = vpop.f32.mrb[108].mxu0  ;;  %5003 = vmatprep.subr.bf16.mxu0 %v9024_v31  ;;  %v11838_v62 = vld [vmem:[#allocation7 + $0xb60] sm:$0xff]  ;;  %v11840_v29 = vpack.c.bf16 %v1272_v9, %v1264_v5  ;;  %v1048_v52 = vpop.f32.mrb[108].mxu1  ;;  %5775 = vmatprep.subr.bf16.mxu1 %v9026_v50  ;;  %v9031_v5 = vcombine.low %v11813_v11, %v11815_v19 }
 0x210   :  { %14143 = vst [vmem:[#allocation126_spill] sm:$0xff] %v11823_v8  ;;  %14145 = vst [vmem:[#allocation128_spill] sm:$0xff] %v11832_v28  ;;  %v856_v42 = vadd.f32 %v855_v63, %v11385_v47  ;;  %v857_v37 = vpop.f32.mrb[109].mxu0  ;;  %v1049_v60 = vadd.f32 %v1048_v52, %v11400_v38  ;;  %v1050_v61 = vpop.f32.mrb[109].mxu1  ;;  %v9033_v53 = vcombine.low %v11819_v30, %v11821_v51  ;;  %v11865_v30 = vld [vmem:[#allocation7 + $0xb80] sm:$0xff] }
 0x211   :  { %14144 = vst [vmem:[#allocation127_spill] sm:$0xff] %v11830_v15  ;;  %14146 = vst [vmem:[#allocation129_spill] sm:$0xff] %v11840_v29  ;;  %v858_v31 = vadd.f32 %v857_v37, %v11393_v59  ;;  %v859_v58 = vpop.f32.mrb[110].mxu0  ;;  %v1051_v50 = vadd.f32 %v1050_v61, %v11406_v25  ;;  %v1052_v63 = vpop.f32.mrb[110].mxu1  ;;  %v9040_v37 = vcombine.high %v11836_v57, %v11838_v62  ;;  %v11867_v51 = vld [vmem:[#allocation7 + $0xba0] sm:$0xff] }
 0x212   :  { %v860_v7 = vadd.f32 %v859_v58, %v11385_v47  ;;  %v861_v9 = vpop.f32.mrb[111].mxu0  ;;  %5004 = vmatpush1.bf16.msra.mxu0 %v9023_v56  ;;  %v1279_v0 = vmax.f32 %v1049_v60, 0.0  ;;  %v1053_v28 = vadd.f32 %v1052_v63, %v11400_v38  ;;  %v1054_v29 = vpop.f32.mrb[111].mxu1  ;;  %5776 = vmatpush1.bf16.msra.mxu1 %v9025_v1  ;;  %v9042_v11 = vcombine.high %v11845_v48, %v11847_v46  ;;  %v11871_v1 = vld [vmem:[#allocation7 + $0xb88] sm:$0xff] }
 0x213   :  { %v862_v52 = vadd.f32 %v861_v9, %v11393_v59  ;;  %5005 = vmatprep.subr.bf16.mxu0 %v9032_v4  ;;  %v1277_v19 = vmax.f32 %v856_v42, 0.0  ;;  %v1280_v56 = vmax.f32 %v1051_v50, 0.0  ;;  %v1055_v61 = vadd.f32 %v1054_v29, %v11406_v25  ;;  %5777 = vmatprep.subr.bf16.mxu1 %v9034_v36  ;;  %v1854_v4 = vld [vmem:[#allocation7 + $0xba8] sm:$0xff] }
 0x214   :  { %v1285_v58 = vmax.f32 %v860_v7, 0.0  ;;  %4881 = vmatmul.mubr.bf16.gmra.mrb[152].mxu0 %v11026_v26  ;;  %v1278_v60 = vmax.f32 %v858_v31, 0.0  ;;  %v1287_v63 = vmax.f32 %v1053_v28, 0.0  ;;  %5653 = vmatmul.mubr.bf16.gmra.mrb[152].mxu1 %v11026_v26  ;;  %v9039_v36 = vcombine.low %v11836_v57, %v11838_v62 }
 0x215   :  { %v1286_v9 = vmax.f32 %v862_v52, 0.0  ;;  %4890 = vmatprep.mubr.bf16.mxu0 %v11086_v10  ;;  %v1288_v29 = vmax.f32 %v1055_v61, 0.0  ;;  %5662 = vmatprep.mubr.bf16.mxu1 %v11086_v10  ;;  %v9041_v31 = vcombine.low %v11845_v48, %v11847_v46  ;;  %v9048_v52 = vcombine.high %v11865_v30, %v11867_v51  ;;  %v11894_v46 = vld [vmem:[#allocation7 + $0xbc8] sm:$0xff] }
 0x216   :  { %v11873_v42 = vpack.c.bf16 %v1285_v58, %v1277_v19  ;;  %5006 = vmatpush1.bf16.msra.mxu0 %v9031_v5  ;;  %v11882_v7 = vpack.c.bf16 %v1287_v63, %v1279_v0  ;;  %5778 = vmatpush1.bf16.msra.mxu1 %v9033_v53  ;;  %v11886_v19 = vld [vmem:[#allocation7 + $0xbc0] sm:$0xff]  ;;  %v9050_v0 = vcombine.high %v11871_v1, %v1854_v4  ;;  %v1862_v53 = vld [vmem:[#allocation7 + $0xbe8] sm:$0xff] }
 0x217   :  { %v11880_v28 = vpack.c.bf16 %v1286_v9, %v1278_v60  ;;  %v865_v50 = vpop.f32.mrb[112].mxu0  ;;  %5007 = vmatprep.subr.bf16.mxu0 %v9040_v37  ;;  %v11888_v58 = vld [vmem:[#allocation7 + $0xbe0] sm:$0xff]  ;;  %v11890_v5 = vpack.c.bf16 %v1288_v29, %v1280_v56  ;;  %v1058_v48 = vpop.f32.mrb[112].mxu1  ;;  %5779 = vmatprep.subr.bf16.mxu1 %v9042_v11  ;;  %v9047_v56 = vcombine.low %v11865_v30, %v11867_v51 }
 0x218   :  { %14147 = vst [vmem:[#allocation130_spill] sm:$0xff] %v11873_v42  ;;  %14149 = vst [vmem:[#allocation132_spill] sm:$0xff] %v11882_v7  ;;  %v866_v57 = vadd.f32 %v865_v50, %v11385_v47  ;;  %v867_v62 = vpop.f32.mrb[113].mxu0  ;;  %v1059_v60 = vadd.f32 %v1058_v48, %v11400_v38  ;;  %v1060_v9 = vpop.f32.mrb[113].mxu1  ;;  %v9049_v10 = vcombine.low %v11871_v1, %v1854_v4 }
 0x219   :  { %14148 = vst [vmem:[#allocation131_spill] sm:$0xff] %v11880_v28  ;;  %14150 = vst [vmem:[#allocation133_spill] sm:$0xff] %v11890_v5  ;;  %v868_v37 = vadd.f32 %v867_v62, %v11393_v59  ;;  %v869_v61 = vpop.f32.mrb[114].mxu0  ;;  %v1061_v50 = vadd.f32 %v1060_v9, %v11406_v25  ;;  %v1062_v11 = vpop.f32.mrb[114].mxu1  ;;  %v9056_v26 = vcombine.high %v11886_v19, %v11888_v58 }
 0x21a   :  { %v870_v63 = vadd.f32 %v869_v61, %v11385_v47  ;;  %v871_v29 = vpop.f32.mrb[115].mxu0  ;;  %5008 = vmatpush1.bf16.msra.mxu0 %v9039_v36  ;;  %v1295_v62 = vmax.f32 %v1059_v60, 0.0  ;;  %v1063_v48 = vadd.f32 %v1062_v11, %v11400_v38  ;;  %v1064_v5 = vpop.f32.mrb[115].mxu1  ;;  %5780 = vmatpush1.bf16.msra.mxu1 %v9041_v31  ;;  %v9058_v30 = vcombine.high %v11894_v46, %v1862_v53 }
 0x21b   :  { %v872_v7 = vadd.f32 %v871_v29, %v11393_v59  ;;  %5009 = vmatprep.subr.bf16.mxu0 %v9048_v52  ;;  %v1293_v51 = vmax.f32 %v866_v57, 0.0  ;;  %v1296_v9 = vmax.f32 %v1061_v50, 0.0  ;;  %v1065_v36 = vadd.f32 %v1064_v5, %v11406_v25  ;;  %5781 = vmatprep.subr.bf16.mxu1 %v9050_v0 }
 0x21c   :  { %v1301_v61 = vmax.f32 %v870_v63, 0.0  ;;  %4891 = vmatmul.mubr.bf16.gmra.mrb[156].mxu0 %v11078_v23  ;;  %v1294_v1 = vmax.f32 %v868_v37, 0.0  ;;  %v1303_v60 = vmax.f32 %v1063_v48, 0.0  ;;  %5663 = vmatmul.mubr.bf16.gmra.mrb[156].mxu1 %v11078_v23  ;;  %v9055_v52 = vcombine.low %v11886_v19, %v11888_v58  ;;  %v14166_v23 = vld [vmem:[#allocation60_spill] sm:$0xff] }
 0x21d   :  { %v1302_v4 = vmax.f32 %v872_v7, 0.0  ;;  %4900 = vmatprep.mubr.bf16.mxu0 %v11138_v33  ;;  %v1304_v31 = vmax.f32 %v1065_v36, 0.0  ;;  %5672 = vmatprep.mubr.bf16.mxu1 %v11138_v33  ;;  %v9057_v5 = vcombine.low %v11894_v46, %v1862_v53  ;;  %v9064_v37 = vcombine.high %v11541_v49, %v11543_v44 }
 0x21e   :  { %v11912_v29 = vpack.c.bf16 %v1301_v61, %v1293_v51  ;;  %5010 = vmatpush1.bf16.msra.mxu0 %v9047_v56  ;;  %v11920_v0 = vpack.c.bf16 %v1303_v60, %v1295_v62  ;;  %5782 = vmatpush1.bf16.msra.mxu1 %v9049_v10  ;;  %v9066_v19 = vcombine.high %v11563_v41, %v11565_v40 }
 0x21f   :  { %v11918_v57 = vpack.c.bf16 %v1302_v4, %v1294_v1  ;;  %v875_v7 = vpop.f32.mrb[116].mxu0  ;;  %5011 = vmatprep.subr.bf16.mxu0 %v9056_v26  ;;  %v11924_v63 = vpack.c.bf16 %v1304_v31, %v1296_v9  ;;  %v1068_v11 = vpop.f32.mrb[116].mxu1  ;;  %5783 = vmatprep.subr.bf16.mxu1 %v9058_v30 }
 0x220   :  { %14151 = vst [vmem:[#allocation134_spill] sm:$0xff] %v11912_v29  ;;  %14153 = vst [vmem:[#allocation136_spill] sm:$0xff] %v11920_v0  ;;  %v876_v50 = vadd.f32 %v875_v7, %v11385_v47  ;;  %v877_v56 = vpop.f32.mrb[117].mxu0  ;;  %v1069_v53 = vadd.f32 %v1068_v11, %v11400_v38  ;;  %v1070_v10 = vpop.f32.mrb[117].mxu1 }
 0x221   :  { %14152 = vst [vmem:[#allocation135_spill] sm:$0xff] %v11918_v57  ;;  %14154 = vst [vmem:[#allocation137_spill] sm:$0xff] %v11924_v63  ;;  %v878_v58 = vadd.f32 %v877_v56, %v11393_v59  ;;  %v879_v46 = vpop.f32.mrb[118].mxu0  ;;  %v1071_v48 = vadd.f32 %v1070_v10, %v11406_v25  ;;  %v1072_v51 = vpop.f32.mrb[118].mxu1 }
 0x222   :  { %v880_v26 = vadd.f32 %v879_v46, %v11385_v47  ;;  %v881_v62 = vpop.f32.mrb[119].mxu0  ;;  %5012 = vmatpush1.bf16.msra.mxu0 %v9055_v52  ;;  %v1311_v61 = vmax.f32 %v1069_v53, 0.0  ;;  %v1073_v30 = vadd.f32 %v1072_v51, %v11400_v38  ;;  %v1074_v36 = vpop.f32.mrb[119].mxu1  ;;  %5784 = vmatpush1.bf16.msra.mxu1 %v9057_v5  ;;  %v1309_v1 = vmax.f32 %v876_v50, 0.0  ;;  %v14155_v52 = vld [vmem:[#allocation57_spill] sm:$0xff] }
 0x223   :  { %v882_v9 = vadd.f32 %v881_v62, %v11393_v59  ;;  %5174 = vmatprep.subr.bf16.mxu0 %v9064_v37  ;;  %v1312_v60 = vmax.f32 %v1071_v48, 0.0  ;;  %v1075_v31 = vadd.f32 %v1074_v36, %v11406_v25  ;;  %5946 = vmatprep.subr.bf16.mxu1 %v9066_v19  ;;  %v1310_v7 = vmax.f32 %v878_v58, 0.0 }
 0x224   :  { %v1317_v4 = vmax.f32 %v880_v26, 0.0  ;;  %4901 = vmatmul.mubr.bf16.gmra.mrb[160].mxu0 %v11130_v54  ;;  %v1319_v11 = vmax.f32 %v1073_v30, 0.0  ;;  %5673 = vmatmul.mubr.bf16.gmra.mrb[160].mxu1 %v11130_v54 }
 0x225   :  { %v1318_v56 = vmax.f32 %v882_v9, 0.0  ;;  %4910 = vmatprep.mubr.bf16.mxu0 %v14155_v52  ;;  %v1320_v53 = vmax.f32 %v1075_v31, 0.0  ;;  %5682 = vmatprep.mubr.bf16.mxu1 %v14155_v52 }
 0x226   :  { %v11939_v46 = vpack.c.bf16 %v1317_v4, %v1309_v1  ;;  %v11944_v37 = vpack.c.bf16 %v1319_v11, %v1311_v61 }
 0x227   :  { %v11942_v5 = vpack.c.bf16 %v1318_v56, %v1310_v7  ;;  %v885_v50 = vpop.f32.mrb[120].mxu0  ;;  %v11946_v10 = vpack.c.bf16 %v1320_v53, %v1312_v60  ;;  %v1078_v26 = vpop.f32.mrb[120].mxu1 }
 0x228   :  { %14156 = vst [vmem:[#allocation138_spill] sm:$0xff] %v11939_v46  ;;  %14158 = vst [vmem:[#allocation140_spill] sm:$0xff] %v11944_v37  ;;  %v886_v19 = vadd.f32 %v885_v50, %v11385_v47  ;;  %v887_v58 = vpop.f32.mrb[121].mxu0  ;;  %v1079_v51 = vadd.f32 %v1078_v26, %v11400_v38  ;;  %v1080_v9 = vpop.f32.mrb[121].mxu1 }
 0x229   :  { %14157 = vst [vmem:[#allocation139_spill] sm:$0xff] %v11942_v5  ;;  %14159 = vst [vmem:[#allocation141_spill] sm:$0xff] %v11946_v10  ;;  %v888_v62 = vadd.f32 %v887_v58, %v11393_v59  ;;  %v889_v48 = vpop.f32.mrb[122].mxu0  ;;  %v1081_v1 = vadd.f32 %v1080_v9, %v11406_v25  ;;  %v1082_v61 = vpop.f32.mrb[122].mxu1  ;;  %v14160_v58 = vld [vmem:[#allocation56_spill] sm:$0xff]  ;;  %v14161_v9 = vld [vmem:[#allocation61_spill] sm:$0xff] }
 0x22a   :  { %v890_v30 = vadd.f32 %v889_v48, %v11385_v47  ;;  %v891_v36 = vpop.f32.mrb[123].mxu0  ;;  %v1327_v4 = vmax.f32 %v1079_v51, 0.0  ;;  %v1083_v31 = vadd.f32 %v1082_v61, %v11400_v38  ;;  %v1084_v7 = vpop.f32.mrb[123].mxu1  ;;  %v1325_v56 = vmax.f32 %v886_v19, 0.0 }
 0x22b   :  { %v892_v60 = vadd.f32 %v891_v36, %v11393_v59  ;;  %v1328_v53 = vmax.f32 %v1081_v1, 0.0  ;;  %v1085_v50 = vadd.f32 %v1084_v7, %v11406_v25  ;;  %v1326_v26 = vmax.f32 %v888_v62, 0.0 }
 0x22c   :  { %v1333_v11 = vmax.f32 %v890_v30, 0.0  ;;  %4911 = vmatmul.mubr.bf16.gmra.mrb[164].mxu0 %v14160_v58  ;;  %v1335_v48 = vmax.f32 %v1083_v31, 0.0  ;;  %5683 = vmatmul.mubr.bf16.gmra.mrb[164].mxu1 %v14160_v58 }
 0x22d   :  { %v1334_v52 = vmax.f32 %v892_v60, 0.0  ;;  %4920 = vmatprep.mubr.bf16.mxu0 %v14161_v9  ;;  %v1336_v36 = vmax.f32 %v1085_v50, 0.0  ;;  %5692 = vmatprep.mubr.bf16.mxu1 %v14161_v9 }
 0x22e   :  { %v11959_v51 = vpack.c.bf16 %v1333_v11, %v1325_v56  ;;  %v11964_v19 = vpack.c.bf16 %v1335_v48, %v1327_v4 }
 0x22f   :  { %v11962_v61 = vpack.c.bf16 %v1334_v52, %v1326_v26  ;;  %v895_v30 = vpop.f32.mrb[124].mxu0  ;;  %v11966_v1 = vpack.c.bf16 %v1336_v36, %v1328_v53  ;;  %v1088_v31 = vpop.f32.mrb[124].mxu1 }
 0x230   :  { %14162 = vst [vmem:[#allocation142_spill] sm:$0xff] %v11959_v51  ;;  %14164 = vst [vmem:[#allocation144_spill] sm:$0xff] %v11964_v19  ;;  %v896_v62 = vadd.f32 %v895_v30, %v11385_v47  ;;  %v897_v60 = vpop.f32.mrb[125].mxu0  ;;  %v1089_v56 = vadd.f32 %v1088_v31, %v11400_v38  ;;  %v1090_v11 = vpop.f32.mrb[125].mxu1 }
 0x231   :  { %14163 = vst [vmem:[#allocation143_spill] sm:$0xff] %v11962_v61  ;;  %14165 = vst [vmem:[#allocation145_spill] sm:$0xff] %v11966_v1  ;;  %v898_v7 = vadd.f32 %v897_v60, %v11393_v59  ;;  %v899_v58 = vpop.f32.mrb[126].mxu0  ;;  %v1091_v52 = vadd.f32 %v1090_v11, %v11406_v25  ;;  %v1092_v4 = vpop.f32.mrb[126].mxu1 }
 0x232   :  { %v900_v50 = vadd.f32 %v899_v58, %v11385_v47  ;;  %v901_v9 = vpop.f32.mrb[127].mxu0  ;;  %v1343_v26 = vmax.f32 %v1089_v56, 0.0  ;;  %v1093_v48 = vadd.f32 %v1092_v4, %v11400_v38  ;;  %v1094_v36 = vpop.f32.mrb[127].mxu1  ;;  %v1341_v30 = vmax.f32 %v896_v62, 0.0  ;;  %v14167_v58 = vld [vmem:[#allocation65_spill] sm:$0xff]  ;;  %v1885_v4 = vld [vmem:[#allocation7 + $0xca0] sm:$0xff] }
 0x233   :  { %v902_v53 = vadd.f32 %v901_v9, %v11393_v59  ;;  %v1344_v33 = vmax.f32 %v1091_v52, 0.0  ;;  %v1095_v60 = vadd.f32 %v1094_v36, %v11406_v25  ;;  %v1342_v31 = vmax.f32 %v898_v7, 0.0  ;;  %v14172_v25 = vld [vmem:[#allocation64_spill] sm:$0xff]  ;;  %v1878_v7 = vld [vmem:[#allocation7 + $0xc68] sm:$0xff]  ;;  %v12013_v36 = vld [vmem:[#allocation7 + $0x30] sm:$0xff] }
 0x234   :  { %v1349_v54 = vmax.f32 %v900_v50, 0.0  ;;  %4921 = vmatmul.mubr.bf16.gmra.mrb[168].mxu0 %v14166_v23  ;;  %v1351_v47 = vmax.f32 %v1093_v48, 0.0  ;;  %5693 = vmatmul.mubr.bf16.gmra.mrb[168].mxu1 %v14166_v23  ;;  %v1881_v52 = vld [vmem:[#allocation7 + $0xc80] sm:$0xff]  ;;  %v12011_v48 = vld [vmem:[#allocation7 + $0x10] sm:$0xff] }
 0x235   :  { %v1350_v19 = vmax.f32 %v902_v53, 0.0  ;;  %4930 = vmatprep.mubr.bf16.mxu0 %v14167_v58  ;;  %v1352_v59 = vmax.f32 %v1095_v60, 0.0  ;;  %5702 = vmatprep.mubr.bf16.mxu1 %v14167_v58  ;;  %v1886_v53 = vld [vmem:[#allocation7 + $0xca8] sm:$0xff]  ;;  %v14248_v58 = vld [vmem:[#allocation67_spill] sm:$0xff] }
 0x236   :  { %v11979_v56 = vpack.c.bf16 %v1349_v54, %v1341_v30  ;;  %v11984_v9 = vpack.c.bf16 %v1351_v47, %v1343_v26  ;;  %v1873_v54 = vld [vmem:[#allocation7 + $0xc40] sm:$0xff]  ;;  %v1882_v26 = vld [vmem:[#allocation7 + $0xc88] sm:$0xff]  ;;  %v14173_v30 = vcombine.low %v11541_v49, %v11543_v44  ;;  %v12021_v47 = vld [vmem:[#allocation7 + $0x18] sm:$0xff] }
 0x237   :  { %v11982_v38 = vpack.c.bf16 %v1350_v19, %v1342_v31  ;;  %v11986_v62 = vpack.c.bf16 %v1352_v59, %v1344_v33  ;;  %v1877_v33 = vld [vmem:[#allocation7 + $0xc60] sm:$0xff]  ;;  %v1874_v19 = vld [vmem:[#allocation7 + $0xc48] sm:$0xff]  ;;  %v12023_v59 = vld [vmem:[#allocation7 + $0x38] sm:$0xff]  ;;  %v9082_v44 = vcombine.high %v1882_v26, %v1886_v53 }
 0x238   :  { %14168 = vst [vmem:[#allocation146_spill] sm:$0xff] %v11979_v56  ;;  %14170 = vst [vmem:[#allocation148_spill] sm:$0xff] %v11984_v9  ;;  %v9072_v11 = vcombine.high %v1873_v54, %v1877_v33  ;;  %v9074_v50 = vcombine.high %v1874_v19, %v1878_v7  ;;  %v9071_v60 = vcombine.low %v1873_v54, %v1877_v33  ;;  %v1889_v54 = vld [vmem:[#allocation7 + $0xcc0] sm:$0xff]  ;;  %v1894_v31 = vld [vmem:[#allocation7 + $0xce8] sm:$0xff] }
 0x239   :  { %14169 = vst [vmem:[#allocation147_spill] sm:$0xff] %v11982_v38  ;;  %14171 = vst [vmem:[#allocation149_spill] sm:$0xff] %v11986_v62  ;;  %v1893_v33 = vld [vmem:[#allocation7 + $0xce0] sm:$0xff] }
 0x23c   :  { %4931 = vmatmul.mubr.bf16.gmra.mrb[172].mxu0 %v14172_v25  ;;  %5703 = vmatmul.mubr.bf16.gmra.mrb[172].mxu1 %v14172_v25  ;;  %v14245_v25 = vld [vmem:[#allocation62_spill] sm:$0xff] }
 0x23d   :  { %4940 = vmatprep.mubr.bf16.mxu0 %v11326_v20  ;;  %5712 = vmatprep.mubr.bf16.mxu1 %v11326_v20 }
 0x244   :  { %4941 = vmatmul.mubr.bf16.gmra.mrb[176].mxu0 %v11322_v22  ;;  %5713 = vmatmul.mubr.bf16.gmra.mrb[176].mxu1 %v11322_v22  ;;  %v12395_v22 = vld [vmem:[#allocation7 + $0xa18] sm:$0xff] }
 0x245   :  { %4950 = vmatprep.mubr.bf16.mxu0 %v11348_v13  ;;  %5722 = vmatprep.mubr.bf16.mxu1 %v11348_v13 }
 0x24c   :  { %4951 = vmatmul.mubr.bf16.gmra.mrb[180].mxu0 %v11346_v12  ;;  %5723 = vmatmul.mubr.bf16.gmra.mrb[180].mxu1 %v11346_v12 }
 0x24d   :  { %4960 = vmatprep.mubr.bf16.mxu0 %v11374_v34  ;;  %5732 = vmatprep.mubr.bf16.mxu1 %v11374_v34 }
 0x254   :  { %4961 = vmatmul.mubr.bf16.gmra.mrb[184].mxu0 %v11369_v43  ;;  %5733 = vmatmul.mubr.bf16.gmra.mrb[184].mxu1 %v11369_v43  ;;  %v9088_v43 = vcombine.high %v1889_v54, %v1893_v33 }
 0x255   :  { %4970 = vmatprep.mubr.bf16.mxu0 %v11412_v16  ;;  %5742 = vmatprep.mubr.bf16.mxu1 %v11412_v16  ;;  %v9081_v16 = vcombine.low %v1882_v26, %v1886_v53  ;;  %v1906_v26 = vld [vmem:[#allocation7 + $0xd48] sm:$0xff] }
 0x256   :  { %v1910_v53 = vld [vmem:[#allocation7 + $0xd68] sm:$0xff] }
 0x25c   :  { %4971 = vmatmul.mubr.bf16.gmra.mrb[188].mxu0 %v11410_v27  ;;  %5743 = vmatmul.mubr.bf16.gmra.mrb[188].mxu1 %v11410_v27  ;;  %v9080_v27 = vcombine.high %v1881_v52, %v1885_v4 }
 0x25d   :  { %5013 = vmatprep.mubr.bf16.mxu0 %v11428_v32  ;;  %5785 = vmatprep.mubr.bf16.mxu1 %v11428_v32  ;;  %v9073_v32 = vcombine.low %v1874_v19, %v1878_v7  ;;  %v1898_v19 = vld [vmem:[#allocation7 + $0xd08] sm:$0xff] }
 0x25e   :  { %v1902_v7 = vld [vmem:[#allocation7 + $0xd28] sm:$0xff] }
 0x264   :  { %5014 = vmatmul.mubr.bf16.vlgmr.msra.gmra.mrb[128].mxu0 %v11425_v39  ;;  %5786 = vmatmul.mubr.bf16.vlgmr.msra.gmra.mrb[128].mxu1 %v11425_v39  ;;  %v14174_v39 = vcombine.low %v11563_v41, %v11565_v40  ;;  %v1901_v41 = vld [vmem:[#allocation7 + $0xd20] sm:$0xff] }
 0x265   :  { %5023 = vmatprep.mubr.bf16.mxu0 %v11448_v21  ;;  %5175 = vmatpush1.bf16.msra.mxu0 %v14173_v30  ;;  %v1890_v30 = vld [vmem:[#allocation7 + $0xcc8] sm:$0xff] }
 0x266   :  { %5795 = vmatprep.mubr.bf16.mxu1 %v11448_v21  ;;  %5947 = vmatpush1.bf16.msra.mxu1 %v14174_v39  ;;  %v9079_v21 = vcombine.low %v1881_v52, %v1885_v4  ;;  %v9090_v40 = vcombine.high %v1890_v30, %v1894_v31  ;;  %v1897_v39 = vld [vmem:[#allocation7 + $0xd00] sm:$0xff] }
 0x267   :  { %5176 = vmatprep.subr.bf16.mxu0 %v9072_v11  ;;  %5948 = vmatprep.subr.bf16.mxu1 %v9074_v50  ;;  %v9087_v11 = vcombine.low %v1889_v54, %v1893_v33  ;;  %v9098_v50 = vcombine.high %v1898_v19, %v1902_v7  ;;  %v1905_v52 = vld [vmem:[#allocation7 + $0xd40] sm:$0xff]  ;;  %v1914_v54 = vld [vmem:[#allocation7 + $0xd88] sm:$0xff] }
 0x268   :  { %v1909_v4 = vld [vmem:[#allocation7 + $0xd60] sm:$0xff]  ;;  %v1918_v33 = vld [vmem:[#allocation7 + $0xda8] sm:$0xff] }
 0x269   :  { %5177 = vmatpush1.bf16.msra.mxu0 %v9071_v60  ;;  %v9095_v60 = vcombine.low %v1897_v39, %v1901_v41  ;;  %v9104_v49 = vcombine.high %v1905_v52, %v1909_v4 }
 0x26a   :  { %5949 = vmatpush1.bf16.msra.mxu1 %v9073_v32  ;;  %5178 = vmatprep.subr.bf16.mxu0 %v9080_v27  ;;  %v9089_v27 = vcombine.low %v1890_v30, %v1894_v31  ;;  %v9096_v32 = vcombine.high %v1897_v39, %v1901_v41  ;;  %v14176_v31 = vld [vmem:[#allocation99_spill] sm:$0xff]  ;;  %v9103_v30 = vcombine.low %v1905_v52, %v1909_v4  ;;  %v1929_v4 = vld [vmem:[#allocation7 + $0xe00] sm:$0xff] }
 0x26b   :  { %5950 = vmatprep.subr.bf16.mxu1 %v9082_v44  ;;  %v9097_v44 = vcombine.low %v1898_v19, %v1902_v7  ;;  %v9114_v41 = vcombine.high %v1914_v54, %v1918_v33  ;;  %v1921_v19 = vld [vmem:[#allocation7 + $0xdc0] sm:$0xff] }
 0x26c   :  { %5024 = vmatmul.mubr.bf16.gmra.mrb[132].mxu0 %v11445_v2  ;;  %5796 = vmatmul.mubr.bf16.gmra.mrb[132].mxu1 %v11445_v2  ;;  %v14175_v2 = vld [vmem:[#allocation94_spill] sm:$0xff]  ;;  %v1925_v7 = vld [vmem:[#allocation7 + $0xde0] sm:$0xff] }
 0x26d   :  { %5033 = vmatprep.mubr.bf16.mxu0 %v11468_v35  ;;  %5805 = vmatprep.mubr.bf16.mxu1 %v11468_v35  ;;  %v14177_v35 = vld [vmem:[#allocation98_spill] sm:$0xff] }
 0x26e   :  { %5179 = vmatpush1.bf16.msra.mxu0 %v9079_v21  ;;  %5951 = vmatpush1.bf16.msra.mxu1 %v9081_v16  ;;  %v9106_v21 = vcombine.high %v1906_v26, %v1910_v53  ;;  %v1913_v16 = vld [vmem:[#allocation7 + $0xd80] sm:$0xff] }
 0x26f   :  { %5180 = vmatprep.subr.bf16.mxu0 %v9088_v43  ;;  %5952 = vmatprep.subr.bf16.mxu1 %v9090_v40  ;;  %v1917_v43 = vld [vmem:[#allocation7 + $0xda0] sm:$0xff]  ;;  %v9105_v40 = vcombine.low %v1906_v26, %v1910_v53  ;;  %v14178_v26 = vld [vmem:[#allocation103_spill] sm:$0xff]  ;;  %v1930_v53 = vld [vmem:[#allocation7 + $0xe08] sm:$0xff] }
 0x270   :  { %v9112_v39 = vcombine.high %v1913_v16, %v1917_v43 }
 0x272   :  { %5181 = vmatpush1.bf16.msra.mxu0 %v9087_v11  ;;  %5953 = vmatpush1.bf16.msra.mxu1 %v9089_v27  ;;  %v1922_v11 = vld [vmem:[#allocation7 + $0xdc8] sm:$0xff] }
 0x273   :  { %5182 = vmatprep.subr.bf16.mxu0 %v9096_v32  ;;  %5954 = vmatprep.subr.bf16.mxu1 %v9098_v50  ;;  %v1926_v27 = vld [vmem:[#allocation7 + $0xde8] sm:$0xff]  ;;  %v9111_v32 = vcombine.low %v1913_v16, %v1917_v43  ;;  %v9113_v50 = vcombine.low %v1914_v54, %v1918_v33  ;;  %v1937_v54 = vld [vmem:[#allocation7 + $0xe40] sm:$0xff] }
 0x274   :  { %5034 = vmatmul.mubr.bf16.gmra.mrb[136].mxu0 %v14175_v2  ;;  %5806 = vmatmul.mubr.bf16.gmra.mrb[136].mxu1 %v14175_v2  ;;  %v9120_v2 = vcombine.high %v1921_v19, %v1925_v7  ;;  %v9122_v52 = vcombine.high %v1922_v11, %v1926_v27  ;;  %v1941_v33 = vld [vmem:[#allocation7 + $0xe60] sm:$0xff] }
 0x275   :  { %5043 = vmatprep.mubr.bf16.mxu0 %v14176_v31  ;;  %5815 = vmatprep.mubr.bf16.mxu1 %v14176_v31  ;;  %v14179_v31 = vld [vmem:[#allocation102_spill] sm:$0xff] }
 0x276   :  { %5183 = vmatpush1.bf16.msra.mxu0 %v9095_v60  ;;  %5955 = vmatpush1.bf16.msra.mxu1 %v9097_v44  ;;  %v1934_v60 = vld [vmem:[#allocation7 + $0xe28] sm:$0xff]  ;;  %v9119_v44 = vcombine.low %v1921_v19, %v1925_v7  ;;  %v1945_v7 = vld [vmem:[#allocation7 + $0xe80] sm:$0xff] }
 0x277   :  { %5184 = vmatprep.subr.bf16.mxu0 %v9104_v49  ;;  %5956 = vmatprep.subr.bf16.mxu1 %v9106_v21  ;;  %v1933_v49 = vld [vmem:[#allocation7 + $0xe20] sm:$0xff]  ;;  %v9121_v21 = vcombine.low %v1922_v11, %v1926_v27  ;;  %v9130_v43 = vcombine.high %v1930_v53, %v1934_v60  ;;  %v14180_v11 = vld [vmem:[#allocation107_spill] sm:$0xff]  ;;  %v1946_v27 = vld [vmem:[#allocation7 + $0xe88] sm:$0xff] }
 0x278   :  { %v9128_v16 = vcombine.high %v1929_v4, %v1933_v49 }
 0x27a   :  { %5185 = vmatpush1.bf16.msra.mxu0 %v9103_v30  ;;  %5957 = vmatpush1.bf16.msra.mxu1 %v9105_v40  ;;  %v1938_v30 = vld [vmem:[#allocation7 + $0xe48] sm:$0xff] }
 0x27b   :  { %5186 = vmatprep.subr.bf16.mxu0 %v9112_v39  ;;  %5958 = vmatprep.subr.bf16.mxu1 %v9114_v41  ;;  %v1942_v40 = vld [vmem:[#allocation7 + $0xe68] sm:$0xff]  ;;  %v9127_v39 = vcombine.low %v1929_v4, %v1933_v49  ;;  %v9129_v41 = vcombine.low %v1930_v53, %v1934_v60  ;;  %v1953_v53 = vld [vmem:[#allocation7 + $0xec0] sm:$0xff] }
 0x27c   :  { %5044 = vmatmul.mubr.bf16.gmra.mrb[140].mxu0 %v14177_v35  ;;  %5816 = vmatmul.mubr.bf16.gmra.mrb[140].mxu1 %v14177_v35  ;;  %v9136_v35 = vcombine.high %v1937_v54, %v1941_v33  ;;  %v9138_v19 = vcombine.high %v1938_v30, %v1942_v40  ;;  %v1957_v60 = vld [vmem:[#allocation7 + $0xee0] sm:$0xff] }
 0x27d   :  { %5053 = vmatprep.mubr.bf16.mxu0 %v14178_v26  ;;  %5825 = vmatprep.mubr.bf16.mxu1 %v14178_v26  ;;  %v14181_v26 = vld [vmem:[#allocation106_spill] sm:$0xff] }
 0x27e   :  { %5187 = vmatpush1.bf16.msra.mxu0 %v9111_v32  ;;  %5959 = vmatpush1.bf16.msra.mxu1 %v9113_v50  ;;  %v1950_v32 = vld [vmem:[#allocation7 + $0xea8] sm:$0xff]  ;;  %v9135_v50 = vcombine.low %v1937_v54, %v1941_v33  ;;  %v1961_v33 = vld [vmem:[#allocation7 + $0xf00] sm:$0xff] }
 0x27f   :  { %5188 = vmatprep.subr.bf16.mxu0 %v9120_v2  ;;  %5960 = vmatprep.subr.bf16.mxu1 %v9122_v52  ;;  %v1949_v2 = vld [vmem:[#allocation7 + $0xea0] sm:$0xff]  ;;  %v9137_v52 = vcombine.low %v1938_v30, %v1942_v40  ;;  %v9146_v49 = vcombine.high %v1946_v27, %v1950_v32  ;;  %v1962_v30 = vld [vmem:[#allocation7 + $0xf08] sm:$0xff] }
 0x280   :  { %v9144_v4 = vcombine.high %v1945_v7, %v1949_v2  ;;  %v1966_v40 = vld [vmem:[#allocation7 + $0xf28] sm:$0xff] }
 0x282   :  { %5189 = vmatpush1.bf16.msra.mxu0 %v9119_v44  ;;  %5961 = vmatpush1.bf16.msra.mxu1 %v9121_v21  ;;  %v1954_v44 = vld [vmem:[#allocation7 + $0xec8] sm:$0xff] }
 0x283   :  { %5190 = vmatprep.subr.bf16.mxu0 %v9128_v16  ;;  %5962 = vmatprep.subr.bf16.mxu1 %v9130_v43  ;;  %v1958_v21 = vld [vmem:[#allocation7 + $0xee8] sm:$0xff]  ;;  %v9143_v16 = vcombine.low %v1945_v7, %v1949_v2  ;;  %v9145_v43 = vcombine.low %v1946_v27, %v1950_v32  ;;  %v9162_v7 = vcombine.high %v1962_v30, %v1966_v40  ;;  %v1969_v2 = vld [vmem:[#allocation7 + $0xf40] sm:$0xff] }
 0x284   :  { %5054 = vmatmul.mubr.bf16.gmra.mrb[144].mxu0 %v14179_v31  ;;  %5826 = vmatmul.mubr.bf16.gmra.mrb[144].mxu1 %v14179_v31  ;;  %v9152_v31 = vcombine.high %v1953_v53, %v1957_v60  ;;  %v9154_v54 = vcombine.high %v1954_v44, %v1958_v21  ;;  %v1973_v27 = vld [vmem:[#allocation7 + $0xf60] sm:$0xff]  ;;  %v1970_v32 = vld [vmem:[#allocation7 + $0xf48] sm:$0xff] }
 0x285   :  { %5063 = vmatprep.mubr.bf16.mxu0 %v14180_v11  ;;  %5835 = vmatprep.mubr.bf16.mxu1 %v14180_v11 }
 0x286   :  { %5191 = vmatpush1.bf16.msra.mxu0 %v9127_v39  ;;  %5963 = vmatpush1.bf16.msra.mxu1 %v9129_v41  ;;  %v9151_v39 = vcombine.low %v1953_v53, %v1957_v60  ;;  %v9153_v41 = vcombine.low %v1954_v44, %v1958_v21  ;;  %v1977_v60 = vld [vmem:[#allocation7 + $0xf80] sm:$0xff]  ;;  %v1978_v44 = vld [vmem:[#allocation7 + $0xf88] sm:$0xff] }
 0x287   :  { %5192 = vmatprep.subr.bf16.mxu0 %v9136_v35  ;;  %5964 = vmatprep.subr.bf16.mxu1 %v9138_v19  ;;  %v1965_v35 = vld [vmem:[#allocation7 + $0xf20] sm:$0xff]  ;;  %v1982_v21 = vld [vmem:[#allocation7 + $0xfa8] sm:$0xff] }
 0x288   :  { %v9160_v19 = vcombine.high %v1961_v33, %v1965_v35 }
 0x28a   :  { %5193 = vmatpush1.bf16.msra.mxu0 %v9135_v50  ;;  %5965 = vmatpush1.bf16.msra.mxu1 %v9137_v52  ;;  %v1974_v50 = vld [vmem:[#allocation7 + $0xf68] sm:$0xff]  ;;  %v9159_v52 = vcombine.low %v1961_v33, %v1965_v35  ;;  %v9178_v33 = vcombine.high %v1978_v44, %v1982_v21  ;;  %v1985_v35 = vld [vmem:[#allocation7 + $0xfc0] sm:$0xff] }
 0x28b   :  { %5194 = vmatprep.subr.bf16.mxu0 %v9144_v4  ;;  %5966 = vmatprep.subr.bf16.mxu1 %v9146_v49  ;;  %v9161_v4 = vcombine.low %v1962_v30, %v1966_v40  ;;  %v9168_v49 = vcombine.high %v1969_v2, %v1973_v27  ;;  %v9170_v53 = vcombine.high %v1970_v32, %v1974_v50  ;;  %v1989_v30 = vld [vmem:[#allocation7 + $0xfe0] sm:$0xff]  ;;  %v1986_v40 = vld [vmem:[#allocation7 + $0xfc8] sm:$0xff] }
 0x28c   :  { %5064 = vmatmul.mubr.bf16.gmra.mrb[148].mxu0 %v14181_v26  ;;  %5836 = vmatmul.mubr.bf16.gmra.mrb[148].mxu1 %v14181_v26 }
 0x28d   :  { %5073 = vmatprep.mubr.bf16.mxu0 %v11622_v14  ;;  %5845 = vmatprep.mubr.bf16.mxu1 %v11622_v14  ;;  %v12397_v14 = vld [vmem:[#allocation7 + $0xa38] sm:$0xff] }
 0x28e   :  { %5195 = vmatpush1.bf16.msra.mxu0 %v9143_v16  ;;  %5967 = vmatpush1.bf16.msra.mxu1 %v9145_v43  ;;  %v9167_v16 = vcombine.low %v1969_v2, %v1973_v27  ;;  %v9169_v43 = vcombine.low %v1970_v32, %v1974_v50  ;;  %v9183_v27 = vcombine.low %v1985_v35, %v1989_v30 }
 0x28f   :  { %5196 = vmatprep.subr.bf16.mxu0 %v9152_v31  ;;  %5968 = vmatprep.subr.bf16.mxu1 %v9154_v54  ;;  %v1981_v31 = vld [vmem:[#allocation7 + $0xfa0] sm:$0xff]  ;;  %v8684_v50 = vcombine.high %v12011_v48, %v12013_v36 }
 0x290   :  { %v9176_v54 = vcombine.high %v1977_v60, %v1981_v31 }
 0x292   :  { %5197 = vmatpush1.bf16.msra.mxu0 %v9151_v39  ;;  %5969 = vmatpush1.bf16.msra.mxu1 %v9153_v41  ;;  %v1990_v39 = vld [vmem:[#allocation7 + $0xfe8] sm:$0xff]  ;;  %v9175_v41 = vcombine.low %v1977_v60, %v1981_v31  ;;  %v1492_v60 = vld [vmem:[#allocation7 + $0x58] sm:$0xff] }
 0x293   :  { %5198 = vmatprep.subr.bf16.mxu0 %v9160_v19  ;;  %5970 = vmatprep.subr.bf16.mxu1 %v9162_v7  ;;  %v9177_v19 = vcombine.low %v1978_v44, %v1982_v21  ;;  %v9184_v7 = vcombine.high %v1985_v35, %v1989_v30  ;;  %v9186_v2 = vcombine.high %v1986_v40, %v1990_v39  ;;  %v1496_v31 = vld [vmem:[#allocation7 + $0x78] sm:$0xff]  ;;  %v1499_v21 = vld [vmem:[#allocation7 + $0x90] sm:$0xff]  ;;  %v14184_v30 = vld [vmem:[#allocation93_spill] sm:$0xff] }
 0x294   :  { %5074 = vmatmul.mubr.bf16.gmra.mrb[152].mxu0 %v11615_v24  ;;  %5846 = vmatmul.mubr.bf16.gmra.mrb[152].mxu1 %v11615_v24  ;;  %v9185_v32 = vcombine.low %v1986_v40, %v1990_v39  ;;  %v12097_v35 = vld [vmem:[#allocation7 + $0x430] sm:$0xff]  ;;  %v1500_v40 = vld [vmem:[#allocation7 + $0x98] sm:$0xff] }
 0x295   :  { %5083 = vmatprep.mubr.bf16.mxu0 %v11674_v17  ;;  %5855 = vmatprep.mubr.bf16.mxu1 %v11674_v17  ;;  %v1504_v39 = vld [vmem:[#allocation7 + $0xb8] sm:$0xff] }
 0x296   :  { %5199 = vmatpush1.bf16.msra.mxu0 %v9159_v52  ;;  %5971 = vmatpush1.bf16.msra.mxu1 %v9161_v4  ;;  %v8686_v52 = vcombine.high %v12021_v47, %v12023_v59  ;;  %v14182_v4 = vld [vmem:[#allocation89_spill] sm:$0xff] }
 0x297   :  { %5200 = vmatprep.subr.bf16.mxu0 %v9168_v49  ;;  %5972 = vmatprep.subr.bf16.mxu1 %v9170_v53  ;;  %v1491_v49 = vld [vmem:[#allocation7 + $0x50] sm:$0xff] }
 0x298   :  { %v1495_v53 = vld [vmem:[#allocation7 + $0x70] sm:$0xff] }
 0x299   :  { %v8692_v44 = vcombine.high %v1491_v49, %v1495_v53 }
 0x29a   :  { %5201 = vmatpush1.bf16.msra.mxu0 %v9167_v16  ;;  %5973 = vmatpush1.bf16.msra.mxu1 %v9169_v43  ;;  %v14183_v16 = vld [vmem:[#allocation88_spill] sm:$0xff]  ;;  %v8694_v43 = vcombine.high %v1492_v60, %v1496_v31 }
 0x29b   :  { %5202 = vmatprep.subr.bf16.mxu0 %v9176_v54  ;;  %5974 = vmatprep.subr.bf16.mxu1 %v9178_v33  ;;  %v1503_v54 = vld [vmem:[#allocation7 + $0xb0] sm:$0xff] }
 0x29c   :  { %5084 = vmatmul.mubr.bf16.gmra.mrb[156].mxu0 %v11667_v18  ;;  %5856 = vmatmul.mubr.bf16.gmra.mrb[156].mxu1 %v11667_v18  ;;  %v12095_v33 = vld [vmem:[#allocation7 + $0x410] sm:$0xff] }
 0x29d   :  { %5093 = vmatprep.mubr.bf16.mxu0 %v11726_v45  ;;  %5865 = vmatprep.mubr.bf16.mxu1 %v11726_v45 }
 0x29e   :  { %5203 = vmatpush1.bf16.msra.mxu0 %v9175_v41  ;;  %5975 = vmatpush1.bf16.msra.mxu1 %v9177_v19  ;;  %v14185_v19 = vcombine.low %v12011_v48, %v12013_v36  ;;  %v1511_v48 = vld [vmem:[#allocation7 + $0xf0] sm:$0xff]  ;;  %v1508_v36 = vld [vmem:[#allocation7 + $0xd8] sm:$0xff] }
 0x29f   :  { %5204 = vmatprep.subr.bf16.mxu0 %v9184_v7  ;;  %5976 = vmatprep.subr.bf16.mxu1 %v9186_v2  ;;  %v8691_v7 = vcombine.low %v1491_v49, %v1495_v53  ;;  %v12107_v2 = vld [vmem:[#allocation7 + $0x418] sm:$0xff]  ;;  %v8699_v53 = vcombine.low %v1499_v21, %v1503_v54 }
 0x2a0   :  { %v1512_v49 = vld [vmem:[#allocation7 + $0xf8] sm:$0xff] }
 0x2a2   :  { %5205 = vmatpush1.bf16.msra.mxu0 %v9183_v27  ;;  %5977 = vmatpush1.bf16.msra.mxu1 %v9185_v32  ;;  %v12109_v27 = vld [vmem:[#allocation7 + $0x438] sm:$0xff]  ;;  %v14186_v32 = vcombine.low %v12021_v47, %v12023_v59  ;;  %v14187_v47 = vld [vmem:[#allocation92_spill] sm:$0xff]  ;;  %v8710_v59 = vcombine.high %v1508_v36, %v1512_v49 }
 0x2a3   :  { %6139 = vmatprep.subr.bf16.mxu0 %v8684_v50  ;;  %6911 = vmatprep.subr.bf16.mxu1 %v8686_v52  ;;  %v8693_v50 = vcombine.low %v1492_v60, %v1496_v31  ;;  %v8700_v52 = vcombine.high %v1499_v21, %v1503_v54  ;;  %v1515_v60 = vld [vmem:[#allocation7 + $0x110] sm:$0xff]  ;;  %v8709_v54 = vcombine.low %v1508_v36, %v1512_v49  ;;  %v14190_v36 = vld [vmem:[#allocation101_spill] sm:$0xff]  ;;  %v1532_v49 = vld [vmem:[#allocation7 + $0x198] sm:$0xff] }
 0x2a4   :  { %5094 = vmatmul.mubr.bf16.gmra.mrb[160].mxu0 %v11719_v55  ;;  %5866 = vmatmul.mubr.bf16.gmra.mrb[160].mxu1 %v11719_v55  ;;  %v1519_v31 = vld [vmem:[#allocation7 + $0x130] sm:$0xff] }
 0x2a5   :  { %5103 = vmatprep.mubr.bf16.mxu0 %v11778_v3  ;;  %5875 = vmatprep.mubr.bf16.mxu1 %v11778_v3  ;;  %v8715_v41 = vcombine.low %v1515_v60, %v1519_v31 }
 0x2ac   :  { %5104 = vmatmul.mubr.bf16.gmra.mrb[164].mxu0 %v11771_v6  ;;  %5876 = vmatmul.mubr.bf16.gmra.mrb[164].mxu1 %v11771_v6  ;;  %v12372_v6 = vld [vmem:[#allocation7 + $0xa10] sm:$0xff] }
 0x2ad   :  { %5113 = vmatprep.mubr.bf16.mxu0 %v11830_v15  ;;  %5885 = vmatprep.mubr.bf16.mxu1 %v11830_v15 }
 0x2b4   :  { %5114 = vmatmul.mubr.bf16.gmra.mrb[168].mxu0 %v11823_v8  ;;  %5886 = vmatmul.mubr.bf16.gmra.mrb[168].mxu1 %v11823_v8  ;;  %v12360_v8 = vld [vmem:[#allocation7 + $0x9d8] sm:$0xff] }
 0x2b5   :  { %5123 = vmatprep.mubr.bf16.mxu0 %v11880_v28  ;;  %5895 = vmatprep.mubr.bf16.mxu1 %v11880_v28 }
 0x2bc   :  { %5124 = vmatmul.mubr.bf16.gmra.mrb[172].mxu0 %v11873_v42  ;;  %5896 = vmatmul.mubr.bf16.gmra.mrb[172].mxu1 %v11873_v42  ;;  %v12349_v42 = vld [vmem:[#allocation7 + $0x9f0] sm:$0xff] }
 0x2bd   :  { %5133 = vmatprep.mubr.bf16.mxu0 %v11918_v57  ;;  %5905 = vmatprep.mubr.bf16.mxu1 %v11918_v57  ;;  %v14237_v57 = vld [vmem:[#allocation63_spill] sm:$0xff] }
 0x2c4   :  { %5134 = vmatmul.mubr.bf16.gmra.mrb[176].mxu0 %v11912_v29  ;;  %5906 = vmatmul.mubr.bf16.gmra.mrb[176].mxu1 %v11912_v29  ;;  %v12337_v29 = vld [vmem:[#allocation7 + $0x9b8] sm:$0xff] }
 0x2c5   :  { %5143 = vmatprep.mubr.bf16.mxu0 %v11942_v5  ;;  %5915 = vmatprep.mubr.bf16.mxu1 %v11942_v5  ;;  %v12335_v5 = vld [vmem:[#allocation7 + $0x998] sm:$0xff] }
 0x2cc   :  { %5144 = vmatmul.mubr.bf16.gmra.mrb[180].mxu0 %v11939_v46  ;;  %5916 = vmatmul.mubr.bf16.gmra.mrb[180].mxu1 %v11939_v46  ;;  %v12333_v46 = vld [vmem:[#allocation7 + $0x9b0] sm:$0xff] }
 0x2cd   :  { %5153 = vmatprep.mubr.bf16.mxu0 %v11962_v61  ;;  %5925 = vmatprep.mubr.bf16.mxu1 %v11962_v61  ;;  %v14236_v61 = vld [vmem:[#allocation58_spill] sm:$0xff] }
 0x2d4   :  { %5154 = vmatmul.mubr.bf16.gmra.mrb[184].mxu0 %v11959_v51  ;;  %5926 = vmatmul.mubr.bf16.gmra.mrb[184].mxu1 %v11959_v51  ;;  %v12322_v51 = vld [vmem:[#allocation7 + $0x990] sm:$0xff] }
 0x2d5   :  { %5163 = vmatprep.mubr.bf16.mxu0 %v11982_v38  ;;  %5935 = vmatprep.mubr.bf16.mxu1 %v11982_v38  ;;  %v14189_v38 = vld [vmem:[#allocation96_spill] sm:$0xff] }
 0x2dc   :  { %5164 = vmatmul.mubr.bf16.gmra.mrb[188].mxu0 %v11979_v56  ;;  %5936 = vmatmul.mubr.bf16.gmra.mrb[188].mxu1 %v11979_v56 }
 0x2dd   :  { %5206 = vmatprep.mubr.bf16.mxu0 %v14182_v4  ;;  %5978 = vmatprep.mubr.bf16.mxu1 %v14182_v4 }
 0x2e4   :  { %5207 = vmatmul.mubr.bf16.vlgmr.msra.gmra.mrb[128].mxu0 %v14183_v16  ;;  %5979 = vmatmul.mubr.bf16.vlgmr.msra.gmra.mrb[128].mxu1 %v14183_v16  ;;  %v1507_v16 = vld [vmem:[#allocation7 + $0xd0] sm:$0xff] }
 0x2e5   :  { %5216 = vmatprep.mubr.bf16.mxu0 %v14184_v30  ;;  %5988 = vmatprep.mubr.bf16.mxu1 %v14184_v30  ;;  %v8702_v30 = vcombine.high %v1500_v40, %v1504_v39  ;;  %v8708_v4 = vcombine.high %v1507_v16, %v1511_v48  ;;  %v8707_v21 = vcombine.low %v1507_v16, %v1511_v48  ;;  %v1531_v48 = vld [vmem:[#allocation7 + $0x190] sm:$0xff] }
 0x2e6   :  { %6140 = vmatpush1.bf16.msra.mxu0 %v14185_v19  ;;  %6912 = vmatpush1.bf16.msra.mxu1 %v14186_v32  ;;  %v8701_v19 = vcombine.low %v1500_v40, %v1504_v39  ;;  %v1520_v32 = vld [vmem:[#allocation7 + $0x138] sm:$0xff]  ;;  %v8716_v40 = vcombine.high %v1515_v60, %v1519_v31 }
 0x2e7   :  { %6141 = vmatprep.subr.bf16.mxu0 %v8692_v44  ;;  %6913 = vmatprep.subr.bf16.mxu1 %v8694_v43  ;;  %v14188_v44 = vld [vmem:[#allocation97_spill] sm:$0xff]  ;;  %v1516_v43 = vld [vmem:[#allocation7 + $0x118] sm:$0xff] }
 0x2e8   :  { %v8718_v39 = vcombine.high %v1516_v43, %v1520_v32 }
 0x2ea   :  { %6142 = vmatpush1.bf16.msra.mxu0 %v8691_v7  ;;  %6914 = vmatpush1.bf16.msra.mxu1 %v8693_v50  ;;  %v1527_v7 = vld [vmem:[#allocation7 + $0x170] sm:$0xff]  ;;  %v1524_v50 = vld [vmem:[#allocation7 + $0x158] sm:$0xff] }
 0x2eb   :  { %6143 = vmatprep.subr.bf16.mxu0 %v8700_v52  ;;  %6915 = vmatprep.subr.bf16.mxu1 %v8702_v30  ;;  %v1523_v30 = vld [vmem:[#allocation7 + $0x150] sm:$0xff]  ;;  %v1528_v52 = vld [vmem:[#allocation7 + $0x178] sm:$0xff] }
 0x2ec   :  { %5217 = vmatmul.mubr.bf16.gmra.mrb[132].mxu0 %v14187_v47  ;;  %5989 = vmatmul.mubr.bf16.gmra.mrb[132].mxu1 %v14187_v47  ;;  %v8717_v47 = vcombine.low %v1516_v43, %v1520_v32  ;;  %v8724_v56 = vcombine.high %v1523_v30, %v1527_v7  ;;  %v8726_v16 = vcombine.high %v1524_v50, %v1528_v52  ;;  %v1539_v43 = vld [vmem:[#allocation7 + $0x1d0] sm:$0xff] }
 0x2ed   :  { %5226 = vmatprep.mubr.bf16.mxu0 %v14188_v44  ;;  %5998 = vmatprep.mubr.bf16.mxu1 %v14188_v44  ;;  %v1543_v32 = vld [vmem:[#allocation7 + $0x1f0] sm:$0xff]  ;;  %v14191_v44 = vld [vmem:[#allocation100_spill] sm:$0xff] }
 0x2ee   :  { %6144 = vmatpush1.bf16.msra.mxu0 %v8699_v53  ;;  %6916 = vmatpush1.bf16.msra.mxu1 %v8701_v19  ;;  %v1536_v53 = vld [vmem:[#allocation7 + $0x1b8] sm:$0xff]  ;;  %v8723_v19 = vcombine.low %v1523_v30, %v1527_v7  ;;  %v14192_v30 = vld [vmem:[#allocation105_spill] sm:$0xff] }
 0x2ef   :  { %6145 = vmatprep.subr.bf16.mxu0 %v8708_v4  ;;  %6917 = vmatprep.subr.bf16.mxu1 %v8710_v59  ;;  %v1535_v4 = vld [vmem:[#allocation7 + $0x1b0] sm:$0xff]  ;;  %v8725_v59 = vcombine.low %v1524_v50, %v1528_v52  ;;  %v8734_v31 = vcombine.high %v1532_v49, %v1536_v53  ;;  %v1548_v7 = vld [vmem:[#allocation7 + $0x218] sm:$0xff]  ;;  %v8739_v52 = vcombine.low %v1539_v43, %v1543_v32 }
 0x2f0   :  { %v8732_v60 = vcombine.high %v1531_v48, %v1535_v4  ;;  %v1552_v50 = vld [vmem:[#allocation7 + $0x238] sm:$0xff] }
 0x2f2   :  { %6146 = vmatpush1.bf16.msra.mxu0 %v8707_v21  ;;  %6918 = vmatpush1.bf16.msra.mxu1 %v8709_v54  ;;  %v1540_v21 = vld [vmem:[#allocation7 + $0x1d8] sm:$0xff] }
 0x2f3   :  { %6147 = vmatprep.subr.bf16.mxu0 %v8716_v40  ;;  %6919 = vmatprep.subr.bf16.mxu1 %v8718_v39  ;;  %v1544_v54 = vld [vmem:[#allocation7 + $0x1f8] sm:$0xff]  ;;  %v8731_v40 = vcombine.low %v1531_v48, %v1535_v4  ;;  %v8733_v39 = vcombine.low %v1532_v49, %v1536_v53  ;;  %v8750_v4 = vcombine.high %v1548_v7, %v1552_v50  ;;  %v1555_v49 = vld [vmem:[#allocation7 + $0x250] sm:$0xff] }
 0x2f4   :  { %5227 = vmatmul.mubr.bf16.gmra.mrb[136].mxu0 %v14189_v38  ;;  %5999 = vmatmul.mubr.bf16.gmra.mrb[136].mxu1 %v14189_v38  ;;  %v8740_v38 = vcombine.high %v1539_v43, %v1543_v32  ;;  %v1559_v53 = vld [vmem:[#allocation7 + $0x270] sm:$0xff] }
 0x2f5   :  { %5236 = vmatprep.mubr.bf16.mxu0 %v14190_v36  ;;  %6008 = vmatprep.mubr.bf16.mxu1 %v14190_v36  ;;  %v14193_v36 = vld [vmem:[#allocation104_spill] sm:$0xff]  ;;  %v1563_v32 = vld [vmem:[#allocation7 + $0x290] sm:$0xff] }
 0x2f6   :  { %6148 = vmatpush1.bf16.msra.mxu0 %v8715_v41  ;;  %6920 = vmatpush1.bf16.msra.mxu1 %v8717_v47  ;;  %v8742_v41 = vcombine.high %v1540_v21, %v1544_v54  ;;  %v1547_v47 = vld [vmem:[#allocation7 + $0x210] sm:$0xff] }
 0x2f7   :  { %6149 = vmatprep.subr.bf16.mxu0 %v8724_v56  ;;  %6921 = vmatprep.subr.bf16.mxu1 %v8726_v16  ;;  %v1551_v56 = vld [vmem:[#allocation7 + $0x230] sm:$0xff]  ;;  %v8741_v16 = vcombine.low %v1540_v21, %v1544_v54  ;;  %v14194_v21 = vld [vmem:[#allocation109_spill] sm:$0xff]  ;;  %v1564_v54 = vld [vmem:[#allocation7 + $0x298] sm:$0xff] }
 0x2f8   :  { %v8748_v48 = vcombine.high %v1547_v47, %v1551_v56 }
 0x2fa   :  { %6150 = vmatpush1.bf16.msra.mxu0 %v8723_v19  ;;  %6922 = vmatpush1.bf16.msra.mxu1 %v8725_v59  ;;  %v1556_v19 = vld [vmem:[#allocation7 + $0x258] sm:$0xff] }
 0x2fb   :  { %6151 = vmatprep.subr.bf16.mxu0 %v8732_v60  ;;  %6923 = vmatprep.subr.bf16.mxu1 %v8734_v31  ;;  %v1560_v59 = vld [vmem:[#allocation7 + $0x278] sm:$0xff]  ;;  %v8747_v60 = vcombine.low %v1547_v47, %v1551_v56  ;;  %v8749_v31 = vcombine.low %v1548_v7, %v1552_v50  ;;  %v1571_v7 = vld [vmem:[#allocation7 + $0x2d0] sm:$0xff] }
 0x2fc   :  { %5237 = vmatmul.mubr.bf16.gmra.mrb[140].mxu0 %v14191_v44  ;;  %6009 = vmatmul.mubr.bf16.gmra.mrb[140].mxu1 %v14191_v44  ;;  %v8756_v44 = vcombine.high %v1555_v49, %v1559_v53  ;;  %v8758_v43 = vcombine.high %v1556_v19, %v1560_v59  ;;  %v1575_v50 = vld [vmem:[#allocation7 + $0x2f0] sm:$0xff] }
 0x2fd   :  { %5246 = vmatprep.mubr.bf16.mxu0 %v14192_v30  ;;  %6018 = vmatprep.mubr.bf16.mxu1 %v14192_v30  ;;  %v14195_v30 = vld [vmem:[#allocation108_spill] sm:$0xff] }
 0x2fe   :  { %6152 = vmatpush1.bf16.msra.mxu0 %v8731_v40  ;;  %6924 = vmatpush1.bf16.msra.mxu1 %v8733_v39  ;;  %v1568_v40 = vld [vmem:[#allocation7 + $0x2b8] sm:$0xff]  ;;  %v8755_v39 = vcombine.low %v1555_v49, %v1559_v53  ;;  %v1579_v53 = vld [vmem:[#allocation7 + $0x310] sm:$0xff] }
 0x2ff   :  { %6153 = vmatprep.subr.bf16.mxu0 %v8740_v38  ;;  %6925 = vmatprep.subr.bf16.mxu1 %v8742_v41  ;;  %v1567_v38 = vld [vmem:[#allocation7 + $0x2b0] sm:$0xff]  ;;  %v8757_v41 = vcombine.low %v1556_v19, %v1560_v59  ;;  %v8766_v56 = vcombine.high %v1564_v54, %v1568_v40  ;;  %v14196_v19 = vld [vmem:[#allocation113_spill] sm:$0xff]  ;;  %v1580_v59 = vld [vmem:[#allocation7 + $0x318] sm:$0xff] }
 0x300   :  { %v8764_v47 = vcombine.high %v1563_v32, %v1567_v38 }
 0x302   :  { %6154 = vmatpush1.bf16.msra.mxu0 %v8739_v52  ;;  %6926 = vmatpush1.bf16.msra.mxu1 %v8741_v16  ;;  %v1572_v52 = vld [vmem:[#allocation7 + $0x2d8] sm:$0xff] }
 0x303   :  { %6155 = vmatprep.subr.bf16.mxu0 %v8748_v48  ;;  %6927 = vmatprep.subr.bf16.mxu1 %v8750_v4  ;;  %v1576_v16 = vld [vmem:[#allocation7 + $0x2f8] sm:$0xff]  ;;  %v8763_v48 = vcombine.low %v1563_v32, %v1567_v38  ;;  %v8765_v4 = vcombine.low %v1564_v54, %v1568_v40  ;;  %v1587_v54 = vld [vmem:[#allocation7 + $0x350] sm:$0xff] }
 0x304   :  { %5247 = vmatmul.mubr.bf16.gmra.mrb[144].mxu0 %v14193_v36  ;;  %6019 = vmatmul.mubr.bf16.gmra.mrb[144].mxu1 %v14193_v36  ;;  %v8772_v36 = vcombine.high %v1571_v7, %v1575_v50  ;;  %v8774_v49 = vcombine.high %v1572_v52, %v1576_v16  ;;  %v1591_v40 = vld [vmem:[#allocation7 + $0x370] sm:$0xff] }
 0x305   :  { %5256 = vmatprep.mubr.bf16.mxu0 %v14194_v21  ;;  %6028 = vmatprep.mubr.bf16.mxu1 %v14194_v21  ;;  %v14197_v21 = vld [vmem:[#allocation112_spill] sm:$0xff] }
 0x306   :  { %6156 = vmatpush1.bf16.msra.mxu0 %v8747_v60  ;;  %6928 = vmatpush1.bf16.msra.mxu1 %v8749_v31  ;;  %v1584_v60 = vld [vmem:[#allocation7 + $0x338] sm:$0xff]  ;;  %v8771_v31 = vcombine.low %v1571_v7, %v1575_v50  ;;  %v1595_v50 = vld [vmem:[#allocation7 + $0x390] sm:$0xff] }
 0x307   :  { %6157 = vmatprep.subr.bf16.mxu0 %v8756_v44  ;;  %6929 = vmatprep.subr.bf16.mxu1 %v8758_v43  ;;  %v1583_v44 = vld [vmem:[#allocation7 + $0x330] sm:$0xff]  ;;  %v8773_v43 = vcombine.low %v1572_v52, %v1576_v16  ;;  %v8782_v38 = vcombine.high %v1580_v59, %v1584_v60  ;;  %v14198_v52 = vld [vmem:[#allocation117_spill] sm:$0xff]  ;;  %v1596_v16 = vld [vmem:[#allocation7 + $0x398] sm:$0xff] }
 0x308   :  { %v8780_v32 = vcombine.high %v1579_v53, %v1583_v44 }
 0x30a   :  { %6158 = vmatpush1.bf16.msra.mxu0 %v8755_v39  ;;  %6930 = vmatpush1.bf16.msra.mxu1 %v8757_v41  ;;  %v1588_v39 = vld [vmem:[#allocation7 + $0x358] sm:$0xff] }
 0x30b   :  { %6159 = vmatprep.subr.bf16.mxu0 %v8764_v47  ;;  %6931 = vmatprep.subr.bf16.mxu1 %v8766_v56  ;;  %v1592_v41 = vld [vmem:[#allocation7 + $0x378] sm:$0xff]  ;;  %v8779_v47 = vcombine.low %v1579_v53, %v1583_v44  ;;  %v8781_v56 = vcombine.low %v1580_v59, %v1584_v60  ;;  %v1603_v59 = vld [vmem:[#allocation7 + $0x3d0] sm:$0xff] }
 0x30c   :  { %5257 = vmatmul.mubr.bf16.gmra.mrb[148].mxu0 %v14195_v30  ;;  %6029 = vmatmul.mubr.bf16.gmra.mrb[148].mxu1 %v14195_v30  ;;  %v8788_v30 = vcombine.high %v1587_v54, %v1591_v40  ;;  %v8790_v7 = vcombine.high %v1588_v39, %v1592_v41  ;;  %v1607_v60 = vld [vmem:[#allocation7 + $0x3f0] sm:$0xff] }
 0x30d   :  { %5266 = vmatprep.mubr.bf16.mxu0 %v14196_v19  ;;  %6038 = vmatprep.mubr.bf16.mxu1 %v14196_v19  ;;  %v14199_v19 = vld [vmem:[#allocation116_spill] sm:$0xff] }
 0x30e   :  { %6160 = vmatpush1.bf16.msra.mxu0 %v8763_v48  ;;  %6932 = vmatpush1.bf16.msra.mxu1 %v8765_v4  ;;  %v1600_v48 = vld [vmem:[#allocation7 + $0x3b8] sm:$0xff]  ;;  %v8787_v4 = vcombine.low %v1587_v54, %v1591_v40  ;;  %v8803_v40 = vcombine.low %v1603_v59, %v1607_v60 }
 0x30f   :  { %6161 = vmatprep.subr.bf16.mxu0 %v8772_v36  ;;  %6933 = vmatprep.subr.bf16.mxu1 %v8774_v49  ;;  %v1599_v36 = vld [vmem:[#allocation7 + $0x3b0] sm:$0xff]  ;;  %v8789_v49 = vcombine.low %v1588_v39, %v1592_v41  ;;  %v8798_v44 = vcombine.high %v1596_v16, %v1600_v48  ;;  %v8812_v41 = vcombine.high %v12095_v33, %v12097_v35 }
 0x310   :  { %v8796_v53 = vcombine.high %v1595_v50, %v1599_v36 }
 0x312   :  { %6162 = vmatpush1.bf16.msra.mxu0 %v8771_v31  ;;  %6934 = vmatpush1.bf16.msra.mxu1 %v8773_v43  ;;  %v1604_v31 = vld [vmem:[#allocation7 + $0x3d8] sm:$0xff] }
 0x313   :  { %6163 = vmatprep.subr.bf16.mxu0 %v8780_v32  ;;  %6935 = vmatprep.subr.bf16.mxu1 %v8782_v38  ;;  %v1608_v43 = vld [vmem:[#allocation7 + $0x3f8] sm:$0xff]  ;;  %v8795_v32 = vcombine.low %v1595_v50, %v1599_v36  ;;  %v8797_v38 = vcombine.low %v1596_v16, %v1600_v48  ;;  %v14204_v50 = vld [vmem:[#allocation129_spill] sm:$0xff]  ;;  %v14205_v36 = vld [vmem:[#allocation128_spill] sm:$0xff] }
 0x314   :  { %5267 = vmatmul.mubr.bf16.gmra.mrb[152].mxu0 %v14197_v21  ;;  %6039 = vmatmul.mubr.bf16.gmra.mrb[152].mxu1 %v14197_v21  ;;  %v8804_v21 = vcombine.high %v1603_v59, %v1607_v60  ;;  %v8806_v54 = vcombine.high %v1604_v31, %v1608_v43  ;;  %v8805_v39 = vcombine.low %v1604_v31, %v1608_v43  ;;  %v14206_v16 = vld [vmem:[#allocation133_spill] sm:$0xff]  ;;  %v14207_v48 = vld [vmem:[#allocation132_spill] sm:$0xff]  ;;  %v1620_v59 = vld [vmem:[#allocation7 + $0x458] sm:$0xff] }
 0x315   :  { %5276 = vmatprep.mubr.bf16.mxu0 %v14198_v52  ;;  %6048 = vmatprep.mubr.bf16.mxu1 %v14198_v52  ;;  %v1624_v60 = vld [vmem:[#allocation7 + $0x478] sm:$0xff]  ;;  %v14210_v43 = vld [vmem:[#allocation18_spill] sm:$0xff] }
 0x316   :  { %6164 = vmatpush1.bf16.msra.mxu0 %v8779_v47  ;;  %6936 = vmatpush1.bf16.msra.mxu1 %v8781_v56  ;;  %v8814_v47 = vcombine.high %v12107_v2, %v12109_v27  ;;  %v14201_v56 = vld [vmem:[#allocation120_spill] sm:$0xff]  ;;  %v12318_v52 = vld [vmem:[#allocation7 + $0x958] sm:$0xff]  ;;  %14239 = vst [vmem:[#allocation18_spill] sm:$0xff] %v12360_v8 }
 0x317   :  { %6165 = vmatprep.subr.bf16.mxu0 %v8788_v30  ;;  %6937 = vmatprep.subr.bf16.mxu1 %v8790_v7  ;;  %v14200_v30 = vld [vmem:[#allocation121_spill] sm:$0xff]  ;;  %v12431_v8 = vld [vmem:[#allocation7 + $0xa58] sm:$0xff] }
 0x318   :  { %v14202_v7 = vld [vmem:[#allocation125_spill] sm:$0xff] }
 0x31a   :  { %6166 = vmatpush1.bf16.msra.mxu0 %v8787_v4  ;;  %6938 = vmatpush1.bf16.msra.mxu1 %v8789_v49  ;;  %v14208_v4 = vld [vmem:[#allocation144_spill] sm:$0xff]  ;;  %v14209_v49 = vld [vmem:[#allocation19_spill] sm:$0xff] }
 0x31b   :  { %6167 = vmatprep.subr.bf16.mxu0 %v8796_v53  ;;  %6939 = vmatprep.subr.bf16.mxu1 %v8798_v44  ;;  %v1619_v53 = vld [vmem:[#allocation7 + $0x450] sm:$0xff]  ;;  %14238 = vst [vmem:[#allocation19_spill] sm:$0xff] %v12349_v42 }
 0x31c   :  { %5277 = vmatmul.mubr.bf16.gmra.mrb[156].mxu0 %v14199_v19  ;;  %6049 = vmatmul.mubr.bf16.gmra.mrb[156].mxu1 %v14199_v19  ;;  %v1623_v44 = vld [vmem:[#allocation7 + $0x470] sm:$0xff] }
 0x31d   :  { %5286 = vmatprep.mubr.bf16.mxu0 %v14200_v30  ;;  %6058 = vmatprep.mubr.bf16.mxu1 %v14200_v30  ;;  %v8820_v31 = vcombine.high %v1619_v53, %v1623_v44  ;;  %v12308_v30 = vld [vmem:[#allocation7 + $0x970] sm:$0xff] }
 0x31e   :  { %6168 = vmatpush1.bf16.msra.mxu0 %v8795_v32  ;;  %6940 = vmatpush1.bf16.msra.mxu1 %v8797_v38  ;;  %v8822_v32 = vcombine.high %v1620_v59, %v1624_v60  ;;  %v1627_v38 = vld [vmem:[#allocation7 + $0x490] sm:$0xff] }
 0x31f   :  { %6169 = vmatprep.subr.bf16.mxu0 %v8804_v21  ;;  %6941 = vmatprep.subr.bf16.mxu1 %v8806_v54  ;;  %v14203_v21 = vld [vmem:[#allocation124_spill] sm:$0xff]  ;;  %v1631_v54 = vld [vmem:[#allocation7 + $0x4b0] sm:$0xff] }
 0x322   :  { %6170 = vmatpush1.bf16.msra.mxu0 %v8803_v40  ;;  %6942 = vmatpush1.bf16.msra.mxu1 %v8805_v39  ;;  %v14211_v40 = vld [vmem:[#allocation23_spill] sm:$0xff] }
 0x323   :  { %6332 = vmatprep.subr.bf16.mxu0 %v8812_v41  ;;  %7104 = vmatprep.subr.bf16.mxu1 %v8814_v47  ;;  %v1628_v39 = vld [vmem:[#allocation7 + $0x498] sm:$0xff]  ;;  %v14212_v47 = vcombine.low %v12095_v33, %v12097_v35 }
 0x324   :  { %5287 = vmatmul.mubr.bf16.gmra.mrb[160].mxu0 %v14201_v56  ;;  %6059 = vmatmul.mubr.bf16.gmra.mrb[160].mxu1 %v14201_v56  ;;  %v1632_v41 = vld [vmem:[#allocation7 + $0x4b8] sm:$0xff]  ;;  %v12374_v56 = vld [vmem:[#allocation7 + $0xa30] sm:$0xff] }
 0x325   :  { %5296 = vmatprep.mubr.bf16.mxu0 %v14202_v7  ;;  %6068 = vmatprep.mubr.bf16.mxu1 %v14202_v7  ;;  %v8829_v33 = vcombine.low %v1628_v39, %v1632_v41  ;;  %v12294_v7 = vld [vmem:[#allocation7 + $0x918] sm:$0xff] }
 0x32c   :  { %5297 = vmatmul.mubr.bf16.gmra.mrb[164].mxu0 %v14203_v21  ;;  %6069 = vmatmul.mubr.bf16.gmra.mrb[164].mxu1 %v14203_v21  ;;  %v12292_v21 = vld [vmem:[#allocation7 + $0x930] sm:$0xff] }
 0x32d   :  { %5306 = vmatprep.mubr.bf16.mxu0 %v14204_v50  ;;  %6078 = vmatprep.mubr.bf16.mxu1 %v14204_v50 }
 0x334   :  { %5307 = vmatmul.mubr.bf16.gmra.mrb[168].mxu0 %v14205_v36  ;;  %6079 = vmatmul.mubr.bf16.gmra.mrb[168].mxu1 %v14205_v36  ;;  %v14218_v36 = vld [vmem:[#allocation30_spill] sm:$0xff] }
 0x335   :  { %5316 = vmatprep.mubr.bf16.mxu0 %v14206_v16  ;;  %6088 = vmatprep.mubr.bf16.mxu1 %v14206_v16 }
 0x33c   :  { %5317 = vmatmul.mubr.bf16.gmra.mrb[172].mxu0 %v14207_v48  ;;  %6089 = vmatmul.mubr.bf16.gmra.mrb[172].mxu1 %v14207_v48 }
 0x33d   :  { %5326 = vmatprep.mubr.bf16.mxu0 %v11924_v63  ;;  %6098 = vmatprep.mubr.bf16.mxu1 %v11924_v63  ;;  %v8827_v63 = vcombine.low %v1627_v38, %v1631_v54 }
 0x344   :  { %5327 = vmatmul.mubr.bf16.gmra.mrb[176].mxu0 %v11920_v0  ;;  %6099 = vmatmul.mubr.bf16.gmra.mrb[176].mxu1 %v11920_v0  ;;  %v1640_v0 = vld [vmem:[#allocation7 + $0x4f8] sm:$0xff] }
 0x345   :  { %5336 = vmatprep.mubr.bf16.mxu0 %v11946_v10  ;;  %6108 = vmatprep.mubr.bf16.mxu1 %v11946_v10  ;;  %v1636_v10 = vld [vmem:[#allocation7 + $0x4d8] sm:$0xff] }
 0x34c   :  { %5337 = vmatmul.mubr.bf16.gmra.mrb[180].mxu0 %v11944_v37  ;;  %6109 = vmatmul.mubr.bf16.gmra.mrb[180].mxu1 %v11944_v37  ;;  %v1639_v37 = vld [vmem:[#allocation7 + $0x4f0] sm:$0xff] }
 0x34d   :  { %5346 = vmatprep.mubr.bf16.mxu0 %v11966_v1  ;;  %6118 = vmatprep.mubr.bf16.mxu1 %v11966_v1  ;;  %v1635_v1 = vld [vmem:[#allocation7 + $0x4d0] sm:$0xff] }
 0x34e   :  { %v8836_v35 = vcombine.high %v1635_v1, %v1639_v37 }
 0x354   :  { %5347 = vmatmul.mubr.bf16.gmra.mrb[184].mxu0 %v14208_v4  ;;  %6119 = vmatmul.mubr.bf16.gmra.mrb[184].mxu1 %v14208_v4  ;;  %v8828_v4 = vcombine.high %v1627_v38, %v1631_v54  ;;  %v12196_v38 = vld [vmem:[#allocation7 + $0x830] sm:$0xff] }
 0x355   :  { %5356 = vmatprep.mubr.bf16.mxu0 %v11986_v62  ;;  %6128 = vmatprep.mubr.bf16.mxu1 %v11986_v62  ;;  %v8821_v62 = vcombine.low %v1620_v59, %v1624_v60  ;;  %v1644_v59 = vld [vmem:[#allocation7 + $0x518] sm:$0xff] }
 0x356   :  { %v1648_v60 = vld [vmem:[#allocation7 + $0x538] sm:$0xff] }
 0x357   :  { %v8846_v54 = vcombine.high %v1644_v59, %v1648_v60 }
 0x35c   :  { %5357 = vmatmul.mubr.bf16.gmra.mrb[188].mxu0 %v11984_v9  ;;  %6129 = vmatmul.mubr.bf16.gmra.mrb[188].mxu1 %v11984_v9  ;;  %v14213_v9 = vcombine.low %v12107_v2, %v12109_v27  ;;  %v8838_v2 = vcombine.high %v1636_v10, %v1640_v0  ;;  %v1647_v27 = vld [vmem:[#allocation7 + $0x530] sm:$0xff] }
 0x35d   :  { %6171 = vmatprep.mubr.bf16.mxu0 %v14209_v49  ;;  %6943 = vmatprep.mubr.bf16.mxu1 %v14209_v49  ;;  %v8819_v49 = vcombine.low %v1619_v53, %v1623_v44  ;;  %v14214_v53 = vld [vmem:[#allocation22_spill] sm:$0xff]  ;;  %v14215_v44 = vld [vmem:[#allocation27_spill] sm:$0xff] }
 0x35e   :  { %14241 = vst [vmem:[#allocation22_spill] sm:$0xff] %v12372_v6  ;;  %14242 = vst [vmem:[#allocation27_spill] sm:$0xff] %v12374_v56 }
 0x364   :  { %6172 = vmatmul.mubr.bf16.vlgmr.msra.gmra.mrb[192].mxu0 %v14210_v43  ;;  %6944 = vmatmul.mubr.bf16.vlgmr.msra.gmra.mrb[192].mxu1 %v14210_v43  ;;  %v8830_v43 = vcombine.high %v1628_v39, %v1632_v41  ;;  %v1655_v39 = vld [vmem:[#allocation7 + $0x570] sm:$0xff]  ;;  %v1668_v41 = vld [vmem:[#allocation7 + $0x5d8] sm:$0xff] }
 0x365   :  { %6181 = vmatprep.mubr.bf16.mxu0 %v14211_v40  ;;  %6333 = vmatpush1.bf16.msra.mxu0 %v14212_v47  ;;  %v1652_v47 = vld [vmem:[#allocation7 + $0x558] sm:$0xff] }
 0x366   :  { %6953 = vmatprep.mubr.bf16.mxu1 %v14211_v40  ;;  %7105 = vmatpush1.bf16.msra.mxu1 %v14213_v9  ;;  %v1643_v9 = vld [vmem:[#allocation7 + $0x510] sm:$0xff] }
 0x367   :  { %6334 = vmatprep.subr.bf16.mxu0 %v8820_v31  ;;  %7106 = vmatprep.subr.bf16.mxu1 %v8822_v32  ;;  %v8835_v31 = vcombine.low %v1635_v1, %v1639_v37  ;;  %v12194_v32 = vld [vmem:[#allocation7 + $0x810] sm:$0xff]  ;;  %v8845_v37 = vcombine.low %v1644_v59, %v1648_v60  ;;  %v12202_v1 = vld [vmem:[#allocation7 + $0x838] sm:$0xff] }
 0x368   :  { %v1651_v40 = vld [vmem:[#allocation7 + $0x550] sm:$0xff] }
 0x369   :  { %6335 = vmatpush1.bf16.msra.mxu0 %v8819_v49  ;;  %v1656_v49 = vld [vmem:[#allocation7 + $0x578] sm:$0xff]  ;;  %v8851_v59 = vcombine.low %v1651_v40, %v1655_v39 }
 0x36a   :  { %7107 = vmatpush1.bf16.msra.mxu1 %v8821_v62  ;;  %6336 = vmatprep.subr.bf16.mxu0 %v8828_v4  ;;  %v8837_v62 = vcombine.low %v1636_v10, %v1640_v0  ;;  %v8844_v4 = vcombine.high %v1643_v9, %v1647_v27  ;;  %v8852_v0 = vcombine.high %v1651_v40, %v1655_v39  ;;  %v12200_v10 = vld [vmem:[#allocation7 + $0x818] sm:$0xff]  ;;  %v1675_v39 = vld [vmem:[#allocation7 + $0x610] sm:$0xff] }
 0x36b   :  { %7108 = vmatprep.subr.bf16.mxu1 %v8830_v43  ;;  %v14216_v43 = vld [vmem:[#allocation26_spill] sm:$0xff]  ;;  %v8853_v60 = vcombine.low %v1652_v47, %v1656_v49 }
 0x36c   :  { %6182 = vmatmul.mubr.bf16.gmra.mrb[196].mxu0 %v14214_v53  ;;  %6954 = vmatmul.mubr.bf16.gmra.mrb[196].mxu1 %v14214_v53  ;;  %v1663_v53 = vld [vmem:[#allocation7 + $0x5b0] sm:$0xff]  ;;  %14243 = vst [vmem:[#allocation26_spill] sm:$0xff] %v12395_v22 }
 0x36d   :  { %6191 = vmatprep.mubr.bf16.mxu0 %v14215_v44  ;;  %6963 = vmatprep.mubr.bf16.mxu1 %v14215_v44  ;;  %v1664_v44 = vld [vmem:[#allocation7 + $0x5b8] sm:$0xff] }
 0x36e   :  { %6337 = vmatpush1.bf16.msra.mxu0 %v8827_v63  ;;  %7109 = vmatpush1.bf16.msra.mxu1 %v8829_v33  ;;  %v8843_v63 = vcombine.low %v1643_v9, %v1647_v27  ;;  %v8854_v33 = vcombine.high %v1652_v47, %v1656_v49  ;;  %v14217_v9 = vld [vmem:[#allocation31_spill] sm:$0xff] }
 0x36f   :  { %6338 = vmatprep.subr.bf16.mxu0 %v8836_v35  ;;  %7110 = vmatprep.subr.bf16.mxu1 %v8838_v2  ;;  %v1659_v35 = vld [vmem:[#allocation7 + $0x590] sm:$0xff]  ;;  %v1660_v27 = vld [vmem:[#allocation7 + $0x598] sm:$0xff]  ;;  %14244 = vst [vmem:[#allocation31_spill] sm:$0xff] %v12397_v14 }
 0x370   :  { %v1672_v2 = vld [vmem:[#allocation7 + $0x5f8] sm:$0xff]  ;;  %v8861_v48 = vcombine.low %v1660_v27, %v1664_v44 }
 0x371   :  { %v8870_v40 = vcombine.high %v1668_v41, %v1672_v2  ;;  %v14219_v47 = vld [vmem:[#allocation35_spill] sm:$0xff] }
 0x372   :  { %6339 = vmatpush1.bf16.msra.mxu0 %v8835_v31  ;;  %7111 = vmatpush1.bf16.msra.mxu1 %v8837_v62  ;;  %v8860_v31 = vcombine.high %v1659_v35, %v1663_v53  ;;  %v8862_v62 = vcombine.high %v1660_v27, %v1664_v44  ;;  %v1676_v49 = vld [vmem:[#allocation7 + $0x618] sm:$0xff]  ;;  %v1687_v27 = vld [vmem:[#allocation7 + $0x670] sm:$0xff] }
 0x373   :  { %6340 = vmatprep.subr.bf16.mxu0 %v8844_v4  ;;  %7112 = vmatprep.subr.bf16.mxu1 %v8846_v54  ;;  %v1667_v4 = vld [vmem:[#allocation7 + $0x5d0] sm:$0xff]  ;;  %v1684_v44 = vld [vmem:[#allocation7 + $0x658] sm:$0xff] }
 0x374   :  { %6192 = vmatmul.mubr.bf16.gmra.mrb[200].mxu0 %v14216_v43  ;;  %6964 = vmatmul.mubr.bf16.gmra.mrb[200].mxu1 %v14216_v43  ;;  %v1671_v54 = vld [vmem:[#allocation7 + $0x5f0] sm:$0xff]  ;;  %v8859_v43 = vcombine.low %v1659_v35, %v1663_v53 }
 0x375   :  { %6201 = vmatprep.mubr.bf16.mxu0 %v14217_v9  ;;  %6973 = vmatprep.mubr.bf16.mxu1 %v14217_v9  ;;  %v8868_v16 = vcombine.high %v1667_v4, %v1671_v54  ;;  %v1683_v9 = vld [vmem:[#allocation7 + $0x650] sm:$0xff] }
 0x376   :  { %6341 = vmatpush1.bf16.msra.mxu0 %v8843_v63  ;;  %7113 = vmatpush1.bf16.msra.mxu1 %v8845_v37  ;;  %v1679_v63 = vld [vmem:[#allocation7 + $0x630] sm:$0xff]  ;;  %v1680_v37 = vld [vmem:[#allocation7 + $0x638] sm:$0xff] }
 0x377   :  { %6342 = vmatprep.subr.bf16.mxu0 %v8852_v0  ;;  %7114 = vmatprep.subr.bf16.mxu1 %v8854_v33  ;;  %v8867_v0 = vcombine.low %v1667_v4, %v1671_v54  ;;  %v8869_v33 = vcombine.low %v1668_v41, %v1672_v2  ;;  %v8876_v35 = vcombine.high %v1675_v39, %v1679_v63  ;;  %v14221_v41 = vld [vmem:[#allocation39_spill] sm:$0xff] }
 0x378   :  { %v8878_v53 = vcombine.high %v1676_v49, %v1680_v37  ;;  %v1692_v2 = vld [vmem:[#allocation7 + $0x698] sm:$0xff] }
 0x379   :  { %v1696_v54 = vld [vmem:[#allocation7 + $0x6b8] sm:$0xff] }
 0x37a   :  { %6343 = vmatpush1.bf16.msra.mxu0 %v8851_v59  ;;  %7115 = vmatpush1.bf16.msra.mxu1 %v8853_v60  ;;  %v1688_v59 = vld [vmem:[#allocation7 + $0x678] sm:$0xff]  ;;  %v8877_v60 = vcombine.low %v1676_v49, %v1680_v37  ;;  %v1703_v49 = vld [vmem:[#allocation7 + $0x6f0] sm:$0xff] }
 0x37b   :  { %6344 = vmatprep.subr.bf16.mxu0 %v8860_v31  ;;  %7116 = vmatprep.subr.bf16.mxu1 %v8862_v62  ;;  %v8884_v31 = vcombine.high %v1683_v9, %v1687_v27  ;;  %v14220_v62 = vld [vmem:[#allocation34_spill] sm:$0xff]  ;;  %v8886_v4 = vcombine.high %v1684_v44, %v1688_v59  ;;  %v1700_v37 = vld [vmem:[#allocation7 + $0x6d8] sm:$0xff] }
 0x37c   :  { %6202 = vmatmul.mubr.bf16.gmra.mrb[204].mxu0 %v14218_v36  ;;  %6974 = vmatmul.mubr.bf16.gmra.mrb[204].mxu1 %v14218_v36  ;;  %v8875_v36 = vcombine.low %v1675_v39, %v1679_v63  ;;  %v8894_v63 = vcombine.high %v1692_v2, %v1696_v54 }
 0x37d   :  { %6211 = vmatprep.mubr.bf16.mxu0 %v14219_v47  ;;  %6983 = vmatprep.mubr.bf16.mxu1 %v14219_v47  ;;  %v1699_v47 = vld [vmem:[#allocation7 + $0x6d0] sm:$0xff] }
 0x37e   :  { %6345 = vmatpush1.bf16.msra.mxu0 %v8859_v43  ;;  %7117 = vmatpush1.bf16.msra.mxu1 %v8861_v48  ;;  %v1691_v48 = vld [vmem:[#allocation7 + $0x690] sm:$0xff]  ;;  %v8883_v43 = vcombine.low %v1683_v9, %v1687_v27 }
 0x37f   :  { %6346 = vmatprep.subr.bf16.mxu0 %v8868_v16  ;;  %7118 = vmatprep.subr.bf16.mxu1 %v8870_v40  ;;  %v1695_v16 = vld [vmem:[#allocation7 + $0x6b0] sm:$0xff]  ;;  %v8885_v40 = vcombine.low %v1684_v44, %v1688_v59  ;;  %v14223_v44 = vld [vmem:[#allocation43_spill] sm:$0xff] }
 0x380   :  { %v8892_v39 = vcombine.high %v1691_v48, %v1695_v16  ;;  %v1707_v27 = vld [vmem:[#allocation7 + $0x710] sm:$0xff]  ;;  %v1708_v59 = vld [vmem:[#allocation7 + $0x718] sm:$0xff] }
 0x382   :  { %6347 = vmatpush1.bf16.msra.mxu0 %v8867_v0  ;;  %7119 = vmatpush1.bf16.msra.mxu1 %v8869_v33  ;;  %v1704_v0 = vld [vmem:[#allocation7 + $0x6f8] sm:$0xff]  ;;  %v8891_v33 = vcombine.low %v1691_v48, %v1695_v16 }
 0x383   :  { %6348 = vmatprep.subr.bf16.mxu0 %v8876_v35  ;;  %7120 = vmatprep.subr.bf16.mxu1 %v8878_v53  ;;  %v8893_v35 = vcombine.low %v1692_v2, %v1696_v54  ;;  %v8900_v53 = vcombine.high %v1699_v47, %v1703_v49  ;;  %v8902_v9 = vcombine.high %v1700_v37, %v1704_v0  ;;  %v1719_v2 = vld [vmem:[#allocation7 + $0x770] sm:$0xff]  ;;  %v1716_v54 = vld [vmem:[#allocation7 + $0x758] sm:$0xff] }
 0x384   :  { %6212 = vmatmul.mubr.bf16.gmra.mrb[208].mxu0 %v14220_v62  ;;  %6984 = vmatmul.mubr.bf16.gmra.mrb[208].mxu1 %v14220_v62  ;;  %v14222_v62 = vld [vmem:[#allocation38_spill] sm:$0xff] }
 0x385   :  { %6221 = vmatprep.mubr.bf16.mxu0 %v14221_v41  ;;  %6993 = vmatprep.mubr.bf16.mxu1 %v14221_v41  ;;  %v1715_v41 = vld [vmem:[#allocation7 + $0x750] sm:$0xff] }
 0x386   :  { %6349 = vmatpush1.bf16.msra.mxu0 %v8875_v36  ;;  %7121 = vmatpush1.bf16.msra.mxu1 %v8877_v60  ;;  %v1711_v36 = vld [vmem:[#allocation7 + $0x730] sm:$0xff]  ;;  %v1712_v60 = vld [vmem:[#allocation7 + $0x738] sm:$0xff] }
 0x387   :  { %6350 = vmatprep.subr.bf16.mxu0 %v8884_v31  ;;  %7122 = vmatprep.subr.bf16.mxu1 %v8886_v4  ;;  %v8899_v31 = vcombine.low %v1699_v47, %v1703_v49  ;;  %v8901_v4 = vcombine.low %v1700_v37, %v1704_v0  ;;  %v8908_v48 = vcombine.high %v1707_v27, %v1711_v36  ;;  %v1723_v49 = vld [vmem:[#allocation7 + $0x790] sm:$0xff]  ;;  %v14225_v37 = vld [vmem:[#allocation47_spill] sm:$0xff] }
 0x388   :  { %v8910_v16 = vcombine.high %v1708_v59, %v1712_v60  ;;  %v1724_v0 = vld [vmem:[#allocation7 + $0x798] sm:$0xff] }
 0x38a   :  { %6351 = vmatpush1.bf16.msra.mxu0 %v8883_v43  ;;  %7123 = vmatpush1.bf16.msra.mxu1 %v8885_v40  ;;  %v1720_v43 = vld [vmem:[#allocation7 + $0x778] sm:$0xff]  ;;  %v8907_v40 = vcombine.low %v1707_v27, %v1711_v36 }
 0x38b   :  { %6352 = vmatprep.subr.bf16.mxu0 %v8892_v39  ;;  %7124 = vmatprep.subr.bf16.mxu1 %v8894_v63  ;;  %v8909_v39 = vcombine.low %v1708_v59, %v1712_v60  ;;  %v8916_v63 = vcombine.high %v1715_v41, %v1719_v2  ;;  %v8918_v47 = vcombine.high %v1716_v54, %v1720_v43  ;;  %v1735_v59 = vld [vmem:[#allocation7 + $0x7f0] sm:$0xff]  ;;  %v1732_v60 = vld [vmem:[#allocation7 + $0x7d8] sm:$0xff] }
 0x38c   :  { %6222 = vmatmul.mubr.bf16.gmra.mrb[212].mxu0 %v14222_v62  ;;  %6994 = vmatmul.mubr.bf16.gmra.mrb[212].mxu1 %v14222_v62  ;;  %v14224_v62 = vld [vmem:[#allocation42_spill] sm:$0xff] }
 0x38d   :  { %6231 = vmatprep.mubr.bf16.mxu0 %v14223_v44  ;;  %7003 = vmatprep.mubr.bf16.mxu1 %v14223_v44  ;;  %v1731_v44 = vld [vmem:[#allocation7 + $0x7d0] sm:$0xff] }
 0x38e   :  { %6353 = vmatpush1.bf16.msra.mxu0 %v8891_v33  ;;  %7125 = vmatpush1.bf16.msra.mxu1 %v8893_v35  ;;  %v1727_v33 = vld [vmem:[#allocation7 + $0x7b0] sm:$0xff]  ;;  %v1728_v35 = vld [vmem:[#allocation7 + $0x7b8] sm:$0xff] }
 0x38f   :  { %6354 = vmatprep.subr.bf16.mxu0 %v8900_v53  ;;  %7126 = vmatprep.subr.bf16.mxu1 %v8902_v9  ;;  %v8915_v53 = vcombine.low %v1715_v41, %v1719_v2  ;;  %v8917_v9 = vcombine.low %v1716_v54, %v1720_v43  ;;  %v8924_v27 = vcombine.high %v1723_v49, %v1727_v33  ;;  %v14227_v2 = vld [vmem:[#allocation51_spill] sm:$0xff] }
 0x390   :  { %v8926_v36 = vcombine.high %v1724_v0, %v1728_v35  ;;  %v8931_v54 = vcombine.low %v1731_v44, %v1735_v59 }
 0x392   :  { %6355 = vmatpush1.bf16.msra.mxu0 %v8899_v31  ;;  %7127 = vmatpush1.bf16.msra.mxu1 %v8901_v4  ;;  %v1736_v31 = vld [vmem:[#allocation7 + $0x7f8] sm:$0xff]  ;;  %v8923_v4 = vcombine.low %v1723_v49, %v1727_v33  ;;  %v14230_v49 = vld [vmem:[#allocation54_spill] sm:$0xff]  ;;  %v1993_v33 = vld [vmem:[#allocation8] sm:$0xff] }
 0x393   :  { %6356 = vmatprep.subr.bf16.mxu0 %v8908_v48  ;;  %7128 = vmatprep.subr.bf16.mxu1 %v8910_v16  ;;  %v8925_v48 = vcombine.low %v1724_v0, %v1728_v35  ;;  %v8932_v16 = vcombine.high %v1731_v44, %v1735_v59  ;;  %v8934_v41 = vcombine.high %v1732_v60, %v1736_v31  ;;  %v14231_v0 = vld [vmem:[#allocation59_spill] sm:$0xff]  ;;  %v12241_v35 = vld [vmem:[#allocation7 + $0x850] sm:$0xff] }
 0x394   :  { %6232 = vmatmul.mubr.bf16.gmra.mrb[216].mxu0 %v14224_v62  ;;  %7004 = vmatmul.mubr.bf16.gmra.mrb[216].mxu1 %v14224_v62  ;;  %v14226_v62 = vld [vmem:[#allocation46_spill] sm:$0xff]  ;;  %v8933_v43 = vcombine.low %v1732_v60, %v1736_v31  ;;  %v12254_v59 = vld [vmem:[#allocation7 + $0x898] sm:$0xff] }
 0x395   :  { %6241 = vmatprep.mubr.bf16.mxu0 %v14225_v37  ;;  %7013 = vmatprep.mubr.bf16.mxu1 %v14225_v37  ;;  %v7939_v37 = vld [vmem:[#allocation10] sm:$0xff]  ;;  %v12252_v44 = vld [vmem:[#allocation7 + $0x8b0] sm:$0xff]  ;;  %v12256_v60 = vld [vmem:[#allocation7 + $0x8b8] sm:$0xff] }
 0x396   :  { %6357 = vmatpush1.bf16.msra.mxu0 %v8907_v40  ;;  %7129 = vmatpush1.bf16.msra.mxu1 %v8909_v39  ;;  %v8940_v40 = vcombine.high %v12194_v32, %v12196_v38  ;;  %v8942_v39 = vcombine.high %v12200_v10, %v12202_v1  ;;  %v12258_v31 = vld [vmem:[#allocation7 + $0x8d0] sm:$0xff] }
 0x397   :  { %6358 = vmatprep.subr.bf16.mxu0 %v8916_v63  ;;  %7130 = vmatprep.subr.bf16.mxu1 %v8918_v47  ;;  %v14228_v63 = vld [vmem:[#allocation50_spill] sm:$0xff]  ;;  %v14229_v47 = vld [vmem:[#allocation55_spill] sm:$0xff] }
 0x39a   :  { %6359 = vmatpush1.bf16.msra.mxu0 %v8915_v53  ;;  %7131 = vmatpush1.bf16.msra.mxu1 %v8917_v9  ;;  %v12243_v53 = vld [vmem:[#allocation7 + $0x870] sm:$0xff]  ;;  %v12245_v9 = vld [vmem:[#allocation7 + $0x858] sm:$0xff] }
 0x39b   :  { %6360 = vmatprep.subr.bf16.mxu0 %v8924_v27  ;;  %7132 = vmatprep.subr.bf16.mxu1 %v8926_v36  ;;  %v12248_v27 = vld [vmem:[#allocation7 + $0x878] sm:$0xff]  ;;  %v12250_v36 = vld [vmem:[#allocation7 + $0x890] sm:$0xff] }
 0x39c   :  { %6242 = vmatmul.mubr.bf16.gmra.mrb[220].mxu0 %v14226_v62  ;;  %7014 = vmatmul.mubr.bf16.gmra.mrb[220].mxu1 %v14226_v62 }
 0x39d   :  { %6251 = vmatprep.mubr.bf16.mxu0 %v14227_v2  ;;  %7023 = vmatprep.mubr.bf16.mxu1 %v14227_v2 }
 0x39e   :  { %6361 = vmatpush1.bf16.msra.mxu0 %v8923_v4  ;;  %7133 = vmatpush1.bf16.msra.mxu1 %v8925_v48  ;;  %v14232_v4 = vld [vmem:[#allocation14_spill] sm:$0xff] }
 0x39f   :  { %6362 = vmatprep.subr.bf16.mxu0 %v8932_v16  ;;  %7134 = vmatprep.subr.bf16.mxu1 %v8934_v41  ;;  %v12261_v48 = vrot.slane %v1993_v33, %v14232_v4  ;;  %v14233_v16 = vld [vmem:[#allocation16_spill] sm:$0xff]  ;;  %v14234_v41 = vld [vmem:[#allocation15_spill] sm:$0xff] }
 0x3a0   :  { %v12264_v62 = vrot.slane %v1993_v33, %v14233_v16  ;;  %v12267_v2 = vrot.slane %v1993_v33, %v14234_v41 }
 0x3a2   :  { %6363 = vmatpush1.bf16.msra.mxu0 %v8931_v54  ;;  %7135 = vmatpush1.bf16.msra.mxu1 %v8933_v43  ;;  %v14235_v54 = vld [vmem:[#allocation17_spill] sm:$0xff] }
 0x3a3   :  { %6525 = vmatprep.subr.bf16.mxu0 %v8940_v40  ;;  %7297 = vmatprep.subr.bf16.mxu1 %v8942_v39  ;;  %v12270_v43 = vrot.slane %v1993_v33, %v14235_v54  ;;  %v12272_v40 = vld [vmem:[#allocation7 + $0x8f0] sm:$0xff]  ;;  %v12274_v39 = vld [vmem:[#allocation7 + $0x8d8] sm:$0xff]  ;;  %v12288_v50 = vrot.slane %v7939_v37, %v14235_v54 }
 0x3a4   :  { %6252 = vmatmul.mubr.bf16.gmra.mrb[224].mxu0 %v14228_v63  ;;  %7024 = vmatmul.mubr.bf16.gmra.mrb[224].mxu1 %v14228_v63  ;;  %v12276_v63 = vld [vmem:[#allocation7 + $0x8f8] sm:$0xff]  ;;  %v12290_v33 = vld [vmem:[#allocation7 + $0x910] sm:$0xff] }
 0x3a5   :  { %6261 = vmatprep.mubr.bf16.mxu0 %v14229_v47  ;;  %7033 = vmatprep.mubr.bf16.mxu1 %v14229_v47  ;;  %v12279_v47 = vrot.slane %v7939_v37, %v14232_v4  ;;  %v12306_v54 = vld [vmem:[#allocation7 + $0x950] sm:$0xff]  ;;  %v12362_v4 = vld [vmem:[#allocation7 + $0x9f8] sm:$0xff] }
 0x3a6   :  { %14240 = vst [vmem:[#allocation23_spill] sm:$0xff] %v12362_v4 }
 0x3ac   :  { %6262 = vmatmul.mubr.bf16.gmra.mrb[228].mxu0 %v14230_v49  ;;  %7034 = vmatmul.mubr.bf16.gmra.mrb[228].mxu1 %v14230_v49  ;;  %v12282_v49 = vrot.slane %v7939_v37, %v14233_v16  ;;  %v12347_v16 = vld [vmem:[#allocation7 + $0x9d0] sm:$0xff] }
 0x3ad   :  { %6271 = vmatprep.mubr.bf16.mxu0 %v14231_v0  ;;  %7043 = vmatprep.mubr.bf16.mxu1 %v14231_v0  ;;  %v12285_v0 = vrot.slane %v7939_v37, %v14234_v41  ;;  %v12304_v37 = vld [vmem:[#allocation7 + $0x938] sm:$0xff] }
 0x3ae   :  { %v12320_v41 = vld [vmem:[#allocation7 + $0x978] sm:$0xff] }
 0x3b4   :  { %6272 = vmatmul.mubr.bf16.gmra.mrb[232].mxu0 %v14236_v61  ;;  %7044 = vmatmul.mubr.bf16.gmra.mrb[232].mxu1 %v14236_v61 }
 0x3b5   :  { %6281 = vmatprep.mubr.bf16.mxu0 %v14237_v57  ;;  %7053 = vmatprep.mubr.bf16.mxu1 %v14237_v57 }
 0x3b7   :  { %v5208_v15 = vpop.f32.mrb[128].mxu0  ;;  %v5980_v55 = vpop.f32.mrb[128].mxu1 }
 0x3b8   :  { %v9191_v3 = vadd.f32 %v5208_v15, %v12261_v48  ;;  %v5210_v45 = vpop.f32.mrb[129].mxu0  ;;  %v9255_v18 = vadd.f32 %v5980_v55, %v12264_v62  ;;  %v5982_v17 = vpop.f32.mrb[129].mxu1  ;;  %v12402_v55 = vld [vmem:[#allocation7 + $0xa50] sm:$0xff] }
 0x3b9   :  { %v9192_v19 = vadd.f32 %v5210_v45, %v12267_v2  ;;  %v5212_v24 = vpop.f32.mrb[130].mxu0  ;;  %v9256_v57 = vadd.f32 %v5982_v17, %v12270_v43  ;;  %v5984_v11 = vpop.f32.mrb[130].mxu1  ;;  %14246 = vst [vmem:[#allocation30_spill] sm:$0xff] %v12402_v55  ;;  %v14253_v55 = vld [vmem:[#allocation66_spill] sm:$0xff] }
 0x3ba   :  { %v7683_v26 = vmax.f32 %v9191_v3, 0.0  ;;  %v9193_v61 = vadd.f32 %v5212_v24, %v12261_v48  ;;  %v5214_v34 = vpop.f32.mrb[131].mxu0  ;;  %v7685_v28 = vmax.f32 %v9255_v18, 0.0  ;;  %v9257_v12 = vadd.f32 %v5984_v11, %v12264_v62  ;;  %v5986_v15 = vpop.f32.mrb[131].mxu1  ;;  %v12404_v18 = vld [vmem:[#allocation7 + $0xa70] sm:$0xff] }
 0x3bb   :  { %v7684_v45 = vmax.f32 %v9192_v19, 0.0  ;;  %v9194_v13 = vadd.f32 %v5214_v34, %v12267_v2  ;;  %v7686_v3 = vmax.f32 %v9256_v57, 0.0  ;;  %v9258_v20 = vadd.f32 %v5986_v15, %v12270_v43  ;;  %14247 = vst [vmem:[#allocation35_spill] sm:$0xff] %v12404_v18 }
 0x3bc   :  { %v7981_v17 = vmul.f32 %v12279_v47, %v7683_v26  ;;  %v7691_v24 = vmax.f32 %v9193_v61, 0.0  ;;  %6282 = vmatmul.mubr.bf16.gmra.mrb[236].mxu0 %v14245_v25  ;;  %v7693_v34 = vmax.f32 %v9257_v12, 0.0  ;;  %7054 = vmatmul.mubr.bf16.gmra.mrb[236].mxu1 %v14245_v25  ;;  %v7983_v12 = vmul.f32 %v12282_v49, %v7685_v28 }
 0x3bd   :  { %v7982_v11 = vmul.f32 %v12285_v0, %v7684_v45  ;;  %v7692_v19 = vmax.f32 %v9194_v13, 0.0  ;;  %6291 = vmatprep.mubr.bf16.mxu0 %v14248_v58  ;;  %v7694_v57 = vmax.f32 %v9258_v20, 0.0  ;;  %7063 = vmatprep.mubr.bf16.mxu1 %v14248_v58  ;;  %v12433_v45 = vld [vmem:[#allocation7 + $0xa78] sm:$0xff] }
 0x3be   :  { %v7989_v61 = vmul.f32 %v12279_v47, %v7691_v24  ;;  %v7984_v24 = vmul.f32 %v12288_v50, %v7686_v3  ;;  %v7991_v20 = vmul.f32 %v12282_v49, %v7693_v34  ;;  %14249 = vst [vmem:[#allocation34_spill] sm:$0xff] %v12433_v45 }
 0x3bf   :  { %v8237_v13 = vadd.f32 %v7982_v11, %v7981_v17  ;;  %v7990_v25 = vmul.f32 %v12285_v0, %v7692_v19  ;;  %v5218_v23 = vpop.f32.mrb[132].mxu0  ;;  %v5990_v56 = vpop.f32.mrb[132].mxu1  ;;  %v7992_v26 = vmul.f32 %v12288_v50, %v7694_v57  ;;  %v12439_v57 = vld [vmem:[#allocation7 + $0xab0] sm:$0xff] }
 0x3c0   :  { %v9195_v58 = vadd.f32 %v5218_v23, %v12261_v48  ;;  %v5220_v15 = vpop.f32.mrb[133].mxu0  ;;  %v9259_v17 = vadd.f32 %v5990_v56, %v12264_v62  ;;  %v5992_v19 = vpop.f32.mrb[133].mxu1  ;;  %14252 = vst [vmem:[#allocation43_spill] sm:$0xff] %v12439_v57 }
 0x3c1   :  { %v8238_v6 = vadd.f32 %v8237_v13, %v7983_v12  ;;  %v8246_v28 = vadd.f32 %v7990_v25, %v7989_v61  ;;  %v9196_v11 = vadd.f32 %v5220_v15, %v12267_v2  ;;  %v5222_v14 = vpop.f32.mrb[134].mxu0  ;;  %v9260_v34 = vadd.f32 %v5992_v19, %v12270_v43  ;;  %v5994_v22 = vpop.f32.mrb[134].mxu1  ;;  %v12437_v25 = vld [vmem:[#allocation7 + $0xa90] sm:$0xff] }
 0x3c2   :  { %v7699_v3 = vmax.f32 %v9195_v58, 0.0  ;;  %v9197_v23 = vadd.f32 %v5222_v14, %v12261_v48  ;;  %v5224_v4 = vpop.f32.mrb[135].mxu0  ;;  %v7701_v12 = vmax.f32 %v9259_v17, 0.0  ;;  %v5996_v13 = vpop.f32.mrb[135].mxu1  ;;  %14251 = vst [vmem:[#allocation38_spill] sm:$0xff] %v12437_v25  ;;  %v9261_v18 = vadd.f32 %v5994_v22, %v12264_v62  ;;  %v14259_v25 = vld [vmem:[#allocation70_spill] sm:$0xff] }
 0x3c3   :  { %v12435_v61 = vadd.f32 %v8238_v6, %v7984_v24  ;;  %v8247_v56 = vadd.f32 %v8246_v28, %v7991_v20  ;;  %v7700_v15 = vmax.f32 %v9196_v11, 0.0  ;;  %v7702_v19 = vmax.f32 %v9260_v34, 0.0  ;;  %v14255_v11 = vld [vmem:[#allocation71_spill] sm:$0xff] }
 0x3c4   :  { %v7997_v58 = vmul.f32 %v12279_v47, %v7699_v3  ;;  %v7707_v14 = vmax.f32 %v9197_v23, 0.0  ;;  %6292 = vmatmul.mubr.bf16.gmra.mrb[240].mxu0 %v14253_v55  ;;  %v9198_v24 = vadd.f32 %v5224_v4, %v12267_v2  ;;  %7064 = vmatmul.mubr.bf16.gmra.mrb[240].mxu1 %v14253_v55  ;;  %v7709_v28 = vmax.f32 %v9261_v18, 0.0 }
 0x3c5   :  { %14250 = vst [vmem:[#allocation39_spill] sm:$0xff] %v12435_v61  ;;  %v12444_v42 = vadd.f32 %v8247_v56, %v7992_v26  ;;  %v7998_v6 = vmul.f32 %v12285_v0, %v7700_v15  ;;  %v9262_v17 = vadd.f32 %v5996_v13, %v12270_v43  ;;  %6301 = vmatprep.mubr.bf16.mxu0 %v14255_v11 }
 0x3c6   :  { %7073 = vmatprep.mubr.bf16.mxu1 %v14255_v11  ;;  %v7999_v4 = vmul.f32 %v12282_v49, %v7701_v12  ;;  %v8005_v55 = vmul.f32 %v12279_v47, %v7707_v14  ;;  %v7708_v34 = vmax.f32 %v9198_v24, 0.0  ;;  %v8000_v18 = vmul.f32 %v12288_v50, %v7702_v19 }
 0x3c7   :  { %14254 = vst [vmem:[#allocation42_spill] sm:$0xff] %v12444_v42  ;;  %v8255_v3 = vadd.f32 %v7998_v6, %v7997_v58  ;;  %v5228_v23 = vpop.f32.mrb[136].mxu0  ;;  %v7710_v56 = vmax.f32 %v9262_v17, 0.0  ;;  %v6000_v13 = vpop.f32.mrb[136].mxu1  ;;  %v8007_v24 = vmul.f32 %v12282_v49, %v7709_v28 }
 0x3c8   :  { %v9199_v15 = vadd.f32 %v5228_v23, %v12261_v48  ;;  %v5230_v11 = vpop.f32.mrb[137].mxu0  ;;  %v8006_v26 = vmul.f32 %v12285_v0, %v7708_v34  ;;  %v9263_v12 = vadd.f32 %v6000_v13, %v12264_v62  ;;  %v6002_v14 = vpop.f32.mrb[137].mxu1  ;;  %v12472_v13 = vld [vmem:[#allocation7 + $0xa98] sm:$0xff] }
 0x3c9   :  { %v8256_v22 = vadd.f32 %v8255_v3, %v7999_v4  ;;  %v9200_v58 = vadd.f32 %v5230_v11, %v12267_v2  ;;  %v5232_v6 = vpop.f32.mrb[138].mxu0  ;;  %v9264_v17 = vadd.f32 %v6002_v14, %v12270_v43  ;;  %v6004_v42 = vpop.f32.mrb[138].mxu1  ;;  %14257 = vst [vmem:[#allocation46_spill] sm:$0xff] %v12472_v13  ;;  %v12474_v11 = vld [vmem:[#allocation7 + $0xab8] sm:$0xff]  ;;  %v14265_v13 = vld [vmem:[#allocation74_spill] sm:$0xff] }
 0x3ca   :  { %v7715_v19 = vmax.f32 %v9199_v15, 0.0  ;;  %v9201_v23 = vadd.f32 %v5232_v6, %v12261_v48  ;;  %v5234_v61 = vpop.f32.mrb[139].mxu0  ;;  %v8264_v4 = vadd.f32 %v8006_v26, %v8005_v55  ;;  %v7717_v3 = vmax.f32 %v9263_v12, 0.0  ;;  %v6006_v20 = vpop.f32.mrb[139].mxu1  ;;  %14258 = vst [vmem:[#allocation51_spill] sm:$0xff] %v12474_v11 }
 0x3cb   :  { %v12470_v45 = vadd.f32 %v8256_v22, %v8000_v18  ;;  %v7716_v34 = vmax.f32 %v9200_v58, 0.0  ;;  %v7718_v28 = vmax.f32 %v9264_v17, 0.0  ;;  %v9265_v14 = vadd.f32 %v6004_v42, %v12264_v62 }
 0x3cc   :  { %v8013_v57 = vmul.f32 %v12279_v47, %v7715_v19  ;;  %v7723_v15 = vmax.f32 %v9201_v23, 0.0  ;;  %6302 = vmatmul.mubr.bf16.gmra.mrb[244].mxu0 %v14259_v25  ;;  %v8008_v6 = vmul.f32 %v12288_v50, %v7710_v56  ;;  %v8265_v22 = vadd.f32 %v8264_v4, %v8007_v24  ;;  %7074 = vmatmul.mubr.bf16.gmra.mrb[244].mxu1 %v14259_v25  ;;  %v14260_v19 = vld [vmem:[#allocation76_spill] sm:$0xff] }
 0x3cd   :  { %14256 = vst [vmem:[#allocation47_spill] sm:$0xff] %v12470_v45  ;;  %v8014_v26 = vmul.f32 %v12285_v0, %v7716_v34  ;;  %v9202_v55 = vadd.f32 %v5234_v61, %v12267_v2  ;;  %v8015_v18 = vmul.f32 %v12282_v49, %v7717_v3  ;;  %v7725_v12 = vmax.f32 %v9265_v14, 0.0  ;;  %6311 = vmatprep.mubr.bf16.mxu0 %v14260_v19 }
 0x3ce   :  { %v9266_v58 = vadd.f32 %v6006_v20, %v12270_v43  ;;  %7083 = vmatprep.mubr.bf16.mxu1 %v14260_v19  ;;  %v12489_v56 = vadd.f32 %v8265_v22, %v8008_v6  ;;  %v8021_v17 = vmul.f32 %v12279_v47, %v7723_v15  ;;  %v8016_v25 = vmul.f32 %v12288_v50, %v7718_v28 }
 0x3cf   :  { %v8273_v24 = vadd.f32 %v8014_v26, %v8013_v57  ;;  %v7724_v61 = vmax.f32 %v9202_v55, 0.0  ;;  %v5238_v23 = vpop.f32.mrb[140].mxu0  ;;  %v6010_v20 = vpop.f32.mrb[140].mxu1  ;;  %v8023_v26 = vmul.f32 %v12282_v49, %v7725_v12 }
 0x3d0   :  { %14261 = vst [vmem:[#allocation50_spill] sm:$0xff] %v12489_v56  ;;  %v7726_v4 = vmax.f32 %v9266_v58, 0.0  ;;  %v9203_v3 = vadd.f32 %v5238_v23, %v12261_v48  ;;  %v5240_v34 = vpop.f32.mrb[141].mxu0  ;;  %v9267_v6 = vadd.f32 %v6010_v20, %v12264_v62  ;;  %v6012_v15 = vpop.f32.mrb[141].mxu1  ;;  %v12504_v20 = vld [vmem:[#allocation7 + $0xad0] sm:$0xff] }
 0x3d1   :  { %v8274_v19 = vadd.f32 %v8273_v24, %v8015_v18  ;;  %v8022_v42 = vmul.f32 %v12285_v0, %v7724_v61  ;;  %v9204_v57 = vadd.f32 %v5240_v34, %v12267_v2  ;;  %v5242_v22 = vpop.f32.mrb[142].mxu0  ;;  %v9268_v55 = vadd.f32 %v6012_v15, %v12270_v43  ;;  %v6014_v23 = vpop.f32.mrb[142].mxu1  ;;  %14263 = vst [vmem:[#allocation54_spill] sm:$0xff] %v12504_v20  ;;  %v12506_v34 = vld [vmem:[#allocation7 + $0xaf0] sm:$0xff] }
 0x3d2   :  { %v7731_v28 = vmax.f32 %v9203_v3, 0.0  ;;  %v9205_v58 = vadd.f32 %v5242_v22, %v12261_v48  ;;  %v5244_v56 = vpop.f32.mrb[143].mxu0  ;;  %v7733_v24 = vmax.f32 %v9267_v6, 0.0  ;;  %v6016_v14 = vpop.f32.mrb[143].mxu1  ;;  %14264 = vst [vmem:[#allocation59_spill] sm:$0xff] %v12506_v34  ;;  %v9269_v15 = vadd.f32 %v6014_v23, %v12264_v62  ;;  %v14271_v20 = vld [vmem:[#allocation82_spill] sm:$0xff] }
 0x3d3   :  { %v12502_v45 = vadd.f32 %v8274_v19, %v8016_v25  ;;  %v8282_v18 = vadd.f32 %v8022_v42, %v8021_v17  ;;  %v7732_v61 = vmax.f32 %v9204_v57, 0.0  ;;  %v7734_v12 = vmax.f32 %v9268_v55, 0.0 }
 0x3d4   :  { %v8029_v11 = vmul.f32 %v12279_v47, %v7731_v28  ;;  %v7739_v3 = vmax.f32 %v9205_v58, 0.0  ;;  %6312 = vmatmul.mubr.bf16.gmra.mrb[248].mxu0 %v14265_v13  ;;  %v8024_v22 = vmul.f32 %v12288_v50, %v7726_v4  ;;  %v9206_v17 = vadd.f32 %v5244_v56, %v12267_v2  ;;  %7084 = vmatmul.mubr.bf16.gmra.mrb[248].mxu1 %v14265_v13  ;;  %v14266_v28 = vld [vmem:[#allocation83_spill] sm:$0xff] }
 0x3d5   :  { %14262 = vst [vmem:[#allocation55_spill] sm:$0xff] %v12502_v45  ;;  %v8283_v25 = vadd.f32 %v8282_v18, %v8023_v26  ;;  %v8030_v42 = vmul.f32 %v12285_v0, %v7732_v61  ;;  %v8031_v19 = vmul.f32 %v12282_v49, %v7733_v24  ;;  %v7741_v6 = vmax.f32 %v9269_v15, 0.0  ;;  %6321 = vmatprep.mubr.bf16.mxu0 %v14266_v28 }
 0x3d6   :  { %v9270_v57 = vadd.f32 %v6016_v14, %v12270_v43  ;;  %7093 = vmatprep.mubr.bf16.mxu1 %v14266_v28  ;;  %v8037_v58 = vmul.f32 %v12279_v47, %v7739_v3  ;;  %v7740_v56 = vmax.f32 %v9206_v17, 0.0  ;;  %v8032_v13 = vmul.f32 %v12288_v50, %v7734_v12 }
 0x3d7   :  { %v12521_v4 = vadd.f32 %v8283_v25, %v8024_v22  ;;  %v8291_v26 = vadd.f32 %v8030_v42, %v8029_v11  ;;  %v5248_v23 = vpop.f32.mrb[144].mxu0  ;;  %v6020_v14 = vpop.f32.mrb[144].mxu1  ;;  %v8039_v42 = vmul.f32 %v12282_v49, %v7741_v6 }
 0x3d8   :  { %v7742_v18 = vmax.f32 %v9270_v57, 0.0  ;;  %v9207_v24 = vadd.f32 %v5248_v23, %v12261_v48  ;;  %v5250_v61 = vpop.f32.mrb[145].mxu0  ;;  %v8038_v55 = vmul.f32 %v12285_v0, %v7740_v56  ;;  %v9271_v22 = vadd.f32 %v6020_v14, %v12264_v62  ;;  %v6022_v3 = vpop.f32.mrb[145].mxu1  ;;  %v12536_v14 = vld [vmem:[#allocation7 + $0xad8] sm:$0xff] }
 0x3d9   :  { %14267 = vst [vmem:[#allocation14_spill] sm:$0xff] %v12521_v4  ;;  %v8292_v28 = vadd.f32 %v8291_v26, %v8031_v19  ;;  %v9208_v11 = vadd.f32 %v5250_v61, %v12267_v2  ;;  %v5252_v25 = vpop.f32.mrb[146].mxu0  ;;  %v9272_v17 = vadd.f32 %v6022_v3, %v12270_v43  ;;  %v6024_v23 = vpop.f32.mrb[146].mxu1  ;;  %14269 = vst [vmem:[#allocation15_spill] sm:$0xff] %v12536_v14  ;;  %v12538_v61 = vld [vmem:[#allocation7 + $0xaf8] sm:$0xff]  ;;  %v14274_v14 = vld [vmem:[#allocation20_spill] sm:$0xff] }
 0x3da   :  { %v7747_v12 = vmax.f32 %v9207_v24, 0.0  ;;  %v9209_v57 = vadd.f32 %v5252_v25, %v12261_v48  ;;  %v5254_v4 = vpop.f32.mrb[147].mxu0  ;;  %v8300_v19 = vadd.f32 %v8038_v55, %v8037_v58  ;;  %v7749_v26 = vmax.f32 %v9271_v22, 0.0  ;;  %v6026_v15 = vpop.f32.mrb[147].mxu1  ;;  %14270 = vst [vmem:[#allocation17_spill] sm:$0xff] %v12538_v61 }
 0x3db   :  { %v12534_v45 = vadd.f32 %v8292_v28, %v8032_v13  ;;  %v7748_v56 = vmax.f32 %v9208_v11, 0.0  ;;  %v7750_v6 = vmax.f32 %v9272_v17, 0.0  ;;  %v9273_v3 = vadd.f32 %v6024_v23, %v12264_v62 }
 0x3dc   :  { %v8045_v34 = vmul.f32 %v12279_v47, %v7747_v12  ;;  %v7755_v24 = vmax.f32 %v9209_v57, 0.0  ;;  %6322 = vmatmul.mubr.bf16.gmra.mrb[252].mxu0 %v14271_v20  ;;  %v8040_v25 = vmul.f32 %v12288_v50, %v7742_v18  ;;  %v8301_v13 = vadd.f32 %v8300_v19, %v8039_v42  ;;  %7094 = vmatmul.mubr.bf16.gmra.mrb[252].mxu1 %v14271_v20  ;;  %v14272_v12 = vld [vmem:[#allocation21_spill] sm:$0xff] }
 0x3dd   :  { %14268 = vst [vmem:[#allocation16_spill] sm:$0xff] %v12534_v45  ;;  %v8046_v55 = vmul.f32 %v12285_v0, %v7748_v56  ;;  %v9210_v58 = vadd.f32 %v5254_v4, %v12267_v2  ;;  %v8047_v28 = vmul.f32 %v12282_v49, %v7749_v26  ;;  %v7757_v22 = vmax.f32 %v9273_v3, 0.0  ;;  %6364 = vmatprep.mubr.bf16.mxu0 %v14272_v12 }
 0x3de   :  { %v9274_v11 = vadd.f32 %v6026_v15, %v12270_v43  ;;  %7136 = vmatprep.mubr.bf16.mxu1 %v14272_v12  ;;  %v12553_v18 = vadd.f32 %v8301_v13, %v8040_v25  ;;  %v8053_v57 = vmul.f32 %v12279_v47, %v7755_v24  ;;  %v8048_v20 = vmul.f32 %v12288_v50, %v7750_v6 }
 0x3df   :  { %v8309_v42 = vadd.f32 %v8046_v55, %v8045_v34  ;;  %v7756_v4 = vmax.f32 %v9210_v58, 0.0  ;;  %v5258_v23 = vpop.f32.mrb[148].mxu0  ;;  %v6030_v15 = vpop.f32.mrb[148].mxu1  ;;  %v8055_v55 = vmul.f32 %v12282_v49, %v7757_v22 }
 0x3e0   :  { %14273 = vst [vmem:[#allocation58_spill] sm:$0xff] %v12553_v18  ;;  %v7758_v19 = vmax.f32 %v9274_v11, 0.0  ;;  %v9211_v26 = vadd.f32 %v5258_v23, %v12261_v48  ;;  %v5260_v56 = vpop.f32.mrb[149].mxu0  ;;  %v9275_v25 = vadd.f32 %v6030_v15, %v12264_v62  ;;  %v6032_v24 = vpop.f32.mrb[149].mxu1  ;;  %v12568_v15 = vld [vmem:[#allocation7 + $0xb10] sm:$0xff] }
 0x3e1   :  { %v8310_v12 = vadd.f32 %v8309_v42, %v8047_v28  ;;  %v8054_v17 = vmul.f32 %v12285_v0, %v7756_v4  ;;  %v9212_v34 = vadd.f32 %v5260_v56, %v12267_v2  ;;  %v5262_v13 = vpop.f32.mrb[150].mxu0  ;;  %v9276_v58 = vadd.f32 %v6032_v24, %v12270_v43  ;;  %v6034_v23 = vpop.f32.mrb[150].mxu1  ;;  %v12570_v56 = vld [vmem:[#allocation7 + $0xb30] sm:$0xff] }
 0x3e2   :  { %v7763_v6 = vmax.f32 %v9211_v26, 0.0  ;;  %v9213_v11 = vadd.f32 %v5262_v13, %v12261_v48  ;;  %v5264_v18 = vpop.f32.mrb[151].mxu0  ;;  %v7765_v42 = vmax.f32 %v9275_v25, 0.0  ;;  %v6036_v3 = vpop.f32.mrb[151].mxu1  ;;  %v9277_v24 = vadd.f32 %v6034_v23, %v12264_v62 }
 0x3e3   :  { %v12566_v45 = vadd.f32 %v8310_v12, %v8048_v20  ;;  %v8318_v28 = vadd.f32 %v8054_v17, %v8053_v57  ;;  %v7764_v4 = vmax.f32 %v9212_v34, 0.0  ;;  %v7766_v22 = vmax.f32 %v9276_v58, 0.0 }
 0x3e4   :  { %v8061_v61 = vmul.f32 %v12279_v47, %v7763_v6  ;;  %v7771_v26 = vmax.f32 %v9213_v11, 0.0  ;;  %6365 = vmatmul.mubr.bf16.vlgmr.msra.gmra.mrb[192].mxu0 %v14274_v14  ;;  %v8056_v13 = vmul.f32 %v12288_v50, %v7758_v19  ;;  %v9214_v57 = vadd.f32 %v5264_v18, %v12267_v2  ;;  %7137 = vmatmul.mubr.bf16.vlgmr.msra.gmra.mrb[192].mxu1 %v14274_v14  ;;  %v14275_v6 = vld [vmem:[#allocation25_spill] sm:$0xff] }
 0x3e5   :  { %v8319_v20 = vadd.f32 %v8318_v28, %v8055_v55  ;;  %v8062_v17 = vmul.f32 %v12285_v0, %v7764_v4  ;;  %v8063_v12 = vmul.f32 %v12282_v49, %v7765_v42  ;;  %v7773_v25 = vmax.f32 %v9277_v24, 0.0  ;;  %6374 = vmatprep.mubr.bf16.mxu0 %v14275_v6  ;;  %7146 = vmatprep.mubr.bf16.mxu1 %v14275_v6 }
 0x3e6   :  { %v9278_v34 = vadd.f32 %v6036_v3, %v12270_v43  ;;  %v14276_v58 = vcombine.low %v12194_v32, %v12196_v38  ;;  %v9035_v19 = vcombine.low %v12568_v15, %v12570_v56  ;;  %v8069_v18 = vmul.f32 %v12279_v47, %v7771_v26 }
 0x3e7   :  { %v12587_v55 = vadd.f32 %v8319_v20, %v8056_v13  ;;  %v8327_v11 = vadd.f32 %v8062_v17, %v8061_v61  ;;  %v7772_v14 = vmax.f32 %v9214_v57, 0.0  ;;  %v5268_v23 = vpop.f32.mrb[152].mxu0  ;;  %v14277_v3 = vcombine.low %v12200_v10, %v12202_v1  ;;  %v6040_v42 = vpop.f32.mrb[152].mxu1 }
 0x3e8   :  { %6526 = vmatpush1.bf16.msra.mxu0 %v14276_v58  ;;  %v8064_v28 = vmul.f32 %v12288_v50, %v7766_v22  ;;  %v7774_v32 = vmax.f32 %v9278_v34, 0.0  ;;  %v9215_v38 = vadd.f32 %v5268_v23, %v12261_v48  ;;  %v5270_v4 = vpop.f32.mrb[153].mxu0  ;;  %v14278_v61 = vcombine.high %v12241_v35, %v12243_v53  ;;  %v6042_v20 = vpop.f32.mrb[153].mxu1 }
 0x3e9   :  { %7298 = vmatpush1.bf16.msra.mxu1 %v14277_v3  ;;  %v14279_v26 = vcombine.high %v12245_v9, %v12248_v27  ;;  %v9036_v24 = vcombine.high %v12568_v15, %v12570_v56  ;;  %v8328_v10 = vadd.f32 %v8327_v11, %v8063_v12  ;;  %v8070_v1 = vmul.f32 %v12285_v0, %v7772_v14  ;;  %v5272_v17 = vpop.f32.mrb[154].mxu0  ;;  %v6044_v23 = vpop.f32.mrb[154].mxu1 }
 0x3ea   :  { %6527 = vmatprep.subr.bf16.mxu0 %v14278_v61  ;;  %v9279_v22 = vadd.f32 %v6040_v42, %v12264_v62  ;;  %v9216_v13 = vadd.f32 %v5270_v4, %v12267_v2  ;;  %v8071_v57 = vmul.f32 %v12282_v49, %v7773_v25  ;;  %v7779_v34 = vmax.f32 %v9215_v38, 0.0  ;;  %v5274_v3 = vpop.f32.mrb[155].mxu0  ;;  %v6046_v61 = vpop.f32.mrb[155].mxu1 }
 0x3eb   :  { %7299 = vmatprep.subr.bf16.mxu1 %v14279_v26  ;;  %v9280_v6 = vadd.f32 %v6042_v20, %v12270_v43  ;;  %v9217_v58 = vadd.f32 %v5272_v17, %v12261_v48  ;;  %v14280_v12 = vcombine.low %v12241_v35, %v12243_v53  ;;  %v12613_v11 = vadd.f32 %v8328_v10, %v8064_v28  ;;  %v12621_v26 = vld [vmem:[#allocation7 + $0xb18] sm:$0xff]  ;;  %v14283_v10 = vld [vmem:[#allocation24_spill] sm:$0xff] }
 0x3ec   :  { %v8336_v14 = vadd.f32 %v8070_v1, %v8069_v18  ;;  %v7781_v42 = vmax.f32 %v9279_v22, 0.0  ;;  %v7780_v4 = vmax.f32 %v9216_v13, 0.0  ;;  %v14281_v25 = vcombine.low %v12245_v9, %v12248_v27  ;;  %v12623_v20 = vld [vmem:[#allocation7 + $0xb38] sm:$0xff]  ;;  %6375 = vmatmul.mubr.bf16.gmra.mrb[196].mxu0 %v14283_v10  ;;  %7147 = vmatmul.mubr.bf16.gmra.mrb[196].mxu1 %v14283_v10 }
 0x3ed   :  { %6528 = vmatpush1.bf16.msra.mxu0 %v14280_v12  ;;  %v14282_v38 = vcombine.high %v12250_v36, %v12252_v44  ;;  %v8077_v35 = vmul.f32 %v12279_v47, %v7779_v34  ;;  %v7782_v53 = vmax.f32 %v9280_v6, 0.0  ;;  %v7787_v28 = vmax.f32 %v9217_v58, 0.0  ;;  %v14285_v58 = vld [vmem:[#allocation29_spill] sm:$0xff] }
 0x3ee   :  { %7300 = vmatpush1.bf16.msra.mxu1 %v14281_v25  ;;  %v9281_v18 = vadd.f32 %v6044_v23, %v12264_v62  ;;  %v14284_v9 = vcombine.high %v12254_v59, %v12256_v60  ;;  %v8072_v27 = vmul.f32 %v12288_v50, %v7774_v32  ;;  %v8337_v1 = vadd.f32 %v8336_v14, %v8071_v57 }
 0x3ef   :  { %6529 = vmatprep.subr.bf16.mxu0 %v14282_v38  ;;  %v8078_v22 = vmul.f32 %v12285_v0, %v7780_v4  ;;  %v9218_v13 = vadd.f32 %v5274_v3, %v12267_v2  ;;  %v8079_v17 = vmul.f32 %v12282_v49, %v7781_v42  ;;  %v9282_v6 = vadd.f32 %v6046_v61, %v12270_v43  ;;  %v5278_v14 = vpop.f32.mrb[156].mxu0 }
 0x3f0   :  { %7301 = vmatprep.subr.bf16.mxu1 %v14284_v9  ;;  %v7789_v34 = vmax.f32 %v9281_v18, 0.0  ;;  %6384 = vmatprep.mubr.bf16.mxu0 %v14285_v58  ;;  %v12641_v32 = vadd.f32 %v8337_v1, %v8072_v27  ;;  %v8085_v12 = vmul.f32 %v12279_v47, %v7787_v28  ;;  %v14286_v42 = vcombine.low %v12250_v36, %v12252_v44  ;;  %v6050_v18 = vpop.f32.mrb[156].mxu1  ;;  %v5280_v10 = vpop.f32.mrb[157].mxu0 }
 0x3f1   :  { %7156 = vmatprep.mubr.bf16.mxu1 %v14285_v58  ;;  %v8345_v57 = vadd.f32 %v8078_v22, %v8077_v35  ;;  %v7788_v3 = vmax.f32 %v9218_v13, 0.0  ;;  %v14287_v4 = vcombine.low %v12254_v59, %v12256_v60  ;;  %v8080_v61 = vmul.f32 %v12288_v50, %v7782_v53  ;;  %v6052_v9 = vpop.f32.mrb[157].mxu1  ;;  %v5282_v27 = vpop.f32.mrb[158].mxu0 }
 0x3f2   :  { %6530 = vmatpush1.bf16.msra.mxu0 %v14286_v42  ;;  %v7790_v25 = vmax.f32 %v9282_v6, 0.0  ;;  %v9219_v38 = vadd.f32 %v5278_v14, %v12261_v48  ;;  %v14288_v35 = vcombine.high %v12258_v31, %v12272_v40  ;;  %v14289_v28 = vcombine.high %v12274_v39, %v12276_v63  ;;  %v6054_v58 = vpop.f32.mrb[158].mxu1  ;;  %v5284_v14 = vpop.f32.mrb[159].mxu0 }
 0x3f3   :  { %7302 = vmatpush1.bf16.msra.mxu1 %v14287_v4  ;;  %v9038_v36 = vcombine.high %v12621_v26, %v12623_v20  ;;  %v8346_v44 = vadd.f32 %v8345_v57, %v8079_v17  ;;  %v8086_v59 = vmul.f32 %v12285_v0, %v7788_v3  ;;  %v9283_v60 = vadd.f32 %v6050_v18, %v12264_v62  ;;  %v6056_v4 = vpop.f32.mrb[159].mxu1 }
 0x3f4   :  { %6531 = vmatprep.subr.bf16.mxu0 %v14288_v35  ;;  %7303 = vmatprep.subr.bf16.mxu1 %v14289_v28  ;;  %v9220_v53 = vadd.f32 %v5280_v10, %v12267_v2  ;;  %v8087_v1 = vmul.f32 %v12282_v49, %v7789_v34  ;;  %v7795_v22 = vmax.f32 %v9219_v38, 0.0  ;;  %v9284_v13 = vadd.f32 %v6052_v9, %v12270_v43  ;;  %v12674_v38 = vld [vmem:[#allocation7 + $0xb50] sm:$0xff] }
 0x3f5   :  { %v9221_v6 = vadd.f32 %v5282_v27, %v12261_v48  ;;  %v12666_v42 = vadd.f32 %v8346_v44, %v8080_v61  ;;  %v8354_v17 = vadd.f32 %v8086_v59, %v8085_v12  ;;  %v7797_v57 = vmax.f32 %v9283_v60, 0.0  ;;  %v12676_v10 = vld [vmem:[#allocation7 + $0xb70] sm:$0xff]  ;;  %v14292_v44 = vld [vmem:[#allocation28_spill] sm:$0xff]  ;;  %v14294_v27 = vld [vmem:[#allocation33_spill] sm:$0xff] }
 0x3f6   :  { %v7796_v3 = vmax.f32 %v9220_v53, 0.0  ;;  %v14290_v18 = vcombine.low %v12258_v31, %v12272_v40  ;;  %v14291_v34 = vcombine.low %v12274_v39, %v12276_v63  ;;  %v8093_v35 = vmul.f32 %v12279_v47, %v7795_v22  ;;  %6385 = vmatmul.mubr.bf16.gmra.mrb[200].mxu0 %v14292_v44  ;;  %7157 = vmatmul.mubr.bf16.gmra.mrb[200].mxu1 %v14292_v44 }
 0x3f7   :  { %v7798_v61 = vmax.f32 %v9284_v13, 0.0  ;;  %v7803_v28 = vmax.f32 %v9221_v6, 0.0  ;;  %v9285_v12 = vadd.f32 %v6054_v58, %v12264_v62  ;;  %v14293_v31 = vcombine.high %v12290_v33, %v12292_v21  ;;  %6394 = vmatprep.mubr.bf16.mxu0 %v14294_v27  ;;  %7166 = vmatprep.mubr.bf16.mxu1 %v14294_v27  ;;  %v5288_v58 = vpop.f32.mrb[160].mxu0 }
 0x3f8   :  { %6532 = vmatpush1.bf16.msra.mxu0 %v14290_v18  ;;  %7304 = vmatpush1.bf16.msra.mxu1 %v14291_v34  ;;  %v8088_v40 = vmul.f32 %v12288_v50, %v7790_v25  ;;  %v8355_v39 = vadd.f32 %v8354_v17, %v8087_v1  ;;  %v8094_v63 = vmul.f32 %v12285_v0, %v7796_v3  ;;  %v6060_v18 = vpop.f32.mrb[160].mxu1  ;;  %v5290_v34 = vpop.f32.mrb[161].mxu0 }
 0x3f9   :  { %6533 = vmatprep.subr.bf16.mxu0 %v14293_v31  ;;  %v9222_v59 = vadd.f32 %v5284_v14, %v12267_v2  ;;  %v8095_v60 = vmul.f32 %v12282_v49, %v7797_v57  ;;  %v7805_v53 = vmax.f32 %v9285_v12, 0.0  ;;  %v9286_v9 = vadd.f32 %v6056_v4, %v12270_v43  ;;  %v6062_v31 = vpop.f32.mrb[161].mxu1 }
 0x3fa   :  { %v12694_v25 = vadd.f32 %v8355_v39, %v8088_v40  ;;  %v8363_v1 = vadd.f32 %v8094_v63, %v8093_v35  ;;  %v8101_v13 = vmul.f32 %v12279_v47, %v7803_v28  ;;  %v14295_v14 = vcombine.low %v12290_v33, %v12292_v21  ;;  %v5292_v40 = vpop.f32.mrb[162].mxu0 }
 0x3fb   :  { %v7804_v6 = vmax.f32 %v9222_v59, 0.0  ;;  %v14296_v17 = vcombine.high %v12294_v7, %v12304_v37  ;;  %v8096_v57 = vmul.f32 %v12288_v50, %v7798_v61  ;;  %v7806_v3 = vmax.f32 %v9286_v9, 0.0  ;;  %v5294_v9 = vpop.f32.mrb[163].mxu0 }
 0x3fc   :  { %6534 = vmatpush1.bf16.msra.mxu0 %v14295_v14  ;;  %v9223_v4 = vadd.f32 %v5288_v58, %v12261_v48  ;;  %v14297_v35 = vcombine.low %v12294_v7, %v12304_v37  ;;  %v14298_v28 = vcombine.high %v12306_v54, %v12308_v30  ;;  %v8364_v33 = vadd.f32 %v8363_v1, %v8095_v60  ;;  %v6064_v60 = vpop.f32.mrb[162].mxu1 }
 0x3fd   :  { %7305 = vmatprep.subr.bf16.mxu1 %v14296_v17  ;;  %v8102_v12 = vmul.f32 %v12285_v0, %v7804_v6  ;;  %v9287_v61 = vadd.f32 %v6060_v18, %v12264_v62  ;;  %v9224_v44 = vadd.f32 %v5290_v34, %v12267_v2  ;;  %v14299_v7 = vcombine.high %v12318_v52, %v12320_v41  ;;  %v6066_v14 = vpop.f32.mrb[163].mxu1  ;;  %v12727_v18 = vld [vmem:[#allocation7 + $0xb58] sm:$0xff] }
 0x3fe   :  { %7306 = vmatpush1.bf16.msra.mxu1 %v14297_v35  ;;  %6535 = vmatprep.subr.bf16.mxu0 %v14298_v28  ;;  %v8103_v37 = vmul.f32 %v12282_v49, %v7805_v53  ;;  %v7811_v39 = vmax.f32 %v9223_v4, 0.0  ;;  %v9288_v63 = vadd.f32 %v6062_v31, %v12270_v43  ;;  %v9225_v59 = vadd.f32 %v5292_v40, %v12261_v48  ;;  %v12729_v53 = vld [vmem:[#allocation7 + $0xb78] sm:$0xff]  ;;  %v14303_v40 = vld [vmem:[#allocation37_spill] sm:$0xff] }
 0x3ff   :  { %7307 = vmatprep.subr.bf16.mxu1 %v14299_v7  ;;  %v12722_v27 = vadd.f32 %v8364_v33, %v8096_v57  ;;  %v8372_v1 = vadd.f32 %v8102_v12, %v8101_v13  ;;  %v7813_v6 = vmax.f32 %v9287_v61, 0.0  ;;  %v7812_v58 = vmax.f32 %v9224_v44, 0.0  ;;  %v14301_v57 = vld [vmem:[#allocation32_spill] sm:$0xff] }
 0x400   :  { %v14300_v17 = vcombine.low %v12306_v54, %v12308_v30  ;;  %v8109_v4 = vmul.f32 %v12279_v47, %v7811_v39  ;;  %v7814_v34 = vmax.f32 %v9288_v63, 0.0  ;;  %v7819_v35 = vmax.f32 %v9225_v59, 0.0  ;;  %6395 = vmatmul.mubr.bf16.gmra.mrb[204].mxu0 %v14301_v57  ;;  %7167 = vmatmul.mubr.bf16.gmra.mrb[204].mxu1 %v14301_v57  ;;  %v5298_v39 = vpop.f32.mrb[164].mxu0 }
 0x401   :  { %v9289_v28 = vadd.f32 %v6064_v60, %v12264_v62  ;;  %v14302_v13 = vcombine.low %v12318_v52, %v12320_v41  ;;  %v8104_v33 = vmul.f32 %v12288_v50, %v7806_v3  ;;  %v8373_v30 = vadd.f32 %v8372_v1, %v8103_v37  ;;  %6404 = vmatprep.mubr.bf16.mxu0 %v14303_v40 }
 0x402   :  { %6536 = vmatpush1.bf16.msra.mxu0 %v14300_v17  ;;  %v8110_v54 = vmul.f32 %v12285_v0, %v7812_v58  ;;  %v9226_v12 = vadd.f32 %v5294_v9, %v12267_v2  ;;  %v8111_v61 = vmul.f32 %v12282_v49, %v7813_v6  ;;  %v9290_v31 = vadd.f32 %v6066_v14, %v12270_v43  ;;  %v6070_v6 = vpop.f32.mrb[164].mxu1  ;;  %v5300_v58 = vpop.f32.mrb[165].mxu0 }
 0x403   :  { %7308 = vmatpush1.bf16.msra.mxu1 %v14302_v13  ;;  %v7821_v44 = vmax.f32 %v9289_v28, 0.0  ;;  %7176 = vmatprep.mubr.bf16.mxu1 %v14303_v40  ;;  %v12747_v41 = vadd.f32 %v8373_v30, %v8104_v33  ;;  %v8117_v7 = vmul.f32 %v12279_v47, %v7819_v35  ;;  %v14304_v63 = vcombine.high %v12322_v51, %v12333_v46  ;;  %v6072_v13 = vpop.f32.mrb[165].mxu1  ;;  %v5302_v33 = vpop.f32.mrb[166].mxu0  ;;  %v14308_v30 = vld [vmem:[#allocation19_spill] sm:$0xff] }
 0x404   :  { %v8381_v3 = vadd.f32 %v8110_v54, %v8109_v4  ;;  %v7820_v37 = vmax.f32 %v9226_v12, 0.0  ;;  %v14305_v59 = vcombine.high %v12335_v5, %v12337_v29  ;;  %v8112_v60 = vmul.f32 %v12288_v50, %v7814_v34  ;;  %v6074_v12 = vpop.f32.mrb[166].mxu1  ;;  %v14311_v40 = vld [vmem:[#allocation23_spill] sm:$0xff] }
 0x405   :  { %6537 = vmatprep.subr.bf16.mxu0 %v14304_v63  ;;  %v7822_v9 = vmax.f32 %v9290_v31, 0.0  ;;  %v9227_v1 = vadd.f32 %v5298_v39, %v12261_v48  ;;  %v14306_v14 = vcombine.low %v12322_v51, %v12333_v46  ;;  %v14307_v17 = vcombine.low %v12335_v5, %v12337_v29  ;;  %v14310_v31 = vld [vmem:[#allocation18_spill] sm:$0xff] }
 0x406   :  { %7309 = vmatprep.subr.bf16.mxu1 %v14305_v59  ;;  %v8382_v35 = vadd.f32 %v8381_v3, %v8111_v61  ;;  %v8118_v28 = vmul.f32 %v12285_v0, %v7820_v37  ;;  %v9291_v34 = vadd.f32 %v6070_v6, %v12264_v62  ;;  %v9228_v57 = vadd.f32 %v5300_v58, %v12267_v2  ;;  %v5304_v61 = vpop.f32.mrb[167].mxu0  ;;  %v6076_v6 = vpop.f32.mrb[167].mxu1  ;;  %v12780_v58 = vld [vmem:[#allocation7 + $0xb90] sm:$0xff] }
 0x407   :  { %6538 = vmatpush1.bf16.msra.mxu0 %v14306_v14  ;;  %7310 = vmatpush1.bf16.msra.mxu1 %v14307_v17  ;;  %v14309_v46 = vcombine.high %v12347_v16, %v14308_v30  ;;  %v8119_v51 = vmul.f32 %v12282_v49, %v7821_v44  ;;  %v7827_v29 = vmax.f32 %v9227_v1, 0.0  ;;  %v9292_v5 = vadd.f32 %v6072_v13, %v12270_v43  ;;  %v12782_v44 = vld [vmem:[#allocation7 + $0xbb0] sm:$0xff] }
 0x408   :  { %v9229_v54 = vadd.f32 %v5302_v33, %v12261_v48  ;;  %v14312_v3 = vcombine.high %v14310_v31, %v14311_v40  ;;  %v12778_v37 = vadd.f32 %v8382_v35, %v8112_v60  ;;  %v8390_v39 = vadd.f32 %v8118_v28, %v8117_v7  ;;  %v14313_v33 = vld [vmem:[#allocation36_spill] sm:$0xff] }
 0x409   :  { %6539 = vmatprep.subr.bf16.mxu0 %v14309_v46  ;;  %v7829_v63 = vmax.f32 %v9291_v34, 0.0  ;;  %v7828_v59 = vmax.f32 %v9228_v57, 0.0  ;;  %v8125_v1 = vmul.f32 %v12279_v47, %v7827_v29  ;;  %v7830_v14 = vmax.f32 %v9292_v5, 0.0  ;;  %6405 = vmatmul.mubr.bf16.gmra.mrb[208].mxu0 %v14313_v33  ;;  %v14315_v5 = vld [vmem:[#allocation41_spill] sm:$0xff] }
 0x40a   :  { %7311 = vmatprep.subr.bf16.mxu1 %v14312_v3  ;;  %v7835_v17 = vmax.f32 %v9229_v54, 0.0  ;;  %v9293_v13 = vadd.f32 %v6074_v12, %v12264_v62  ;;  %v14314_v60 = vcombine.low %v14310_v31, %v14311_v40  ;;  %v8120_v7 = vmul.f32 %v12288_v50, %v7822_v9  ;;  %7177 = vmatmul.mubr.bf16.gmra.mrb[208].mxu1 %v14313_v33  ;;  %v5308_v31 = vpop.f32.mrb[168].mxu0  ;;  %v14317_v3 = vld [vmem:[#allocation26_spill] sm:$0xff]  ;;  %v6080_v33 = vpop.f32.mrb[168].mxu1 }
 0x40b   :  { %v8391_v35 = vadd.f32 %v8390_v39, %v8119_v51  ;;  %v8126_v28 = vmul.f32 %v12285_v0, %v7828_v59  ;;  %v9230_v34 = vadd.f32 %v5304_v61, %v12267_v2  ;;  %v8127_v57 = vmul.f32 %v12282_v49, %v7829_v63  ;;  %6414 = vmatprep.mubr.bf16.mxu0 %v14315_v5  ;;  %v14318_v39 = vld [vmem:[#allocation31_spill] sm:$0xff] }
 0x40c   :  { %7312 = vmatpush1.bf16.msra.mxu1 %v14314_v60  ;;  %v7837_v46 = vmax.f32 %v9293_v13, 0.0  ;;  %v9294_v29 = vadd.f32 %v6076_v6, %v12270_v43  ;;  %7186 = vmatprep.mubr.bf16.mxu1 %v14315_v5  ;;  %v8133_v12 = vmul.f32 %v12279_v47, %v7835_v17  ;;  %v14316_v40 = vcombine.low %v12347_v16, %v14308_v30  ;;  %v5310_v60 = vpop.f32.mrb[169].mxu0 }
 0x40d   :  { %v12800_v9 = vadd.f32 %v8391_v35, %v8120_v7  ;;  %v8399_v51 = vadd.f32 %v8126_v28, %v8125_v1  ;;  %v7836_v61 = vmax.f32 %v9230_v34, 0.0  ;;  %v14319_v63 = vcombine.high %v14317_v3, %v14318_v39  ;;  %v14320_v1 = vld [vmem:[#allocation22_spill] sm:$0xff]  ;;  %v14321_v7 = vld [vmem:[#allocation27_spill] sm:$0xff]  ;;  %v5312_v5 = vpop.f32.mrb[170].mxu0 }
 0x40e   :  { %6540 = vmatpush1.bf16.msra.mxu0 %v14316_v40  ;;  %v8128_v59 = vmul.f32 %v12288_v50, %v7830_v14  ;;  %v7838_v6 = vmax.f32 %v9294_v29, 0.0  ;;  %v9231_v13 = vadd.f32 %v5308_v31, %v12261_v48  ;;  %v14322_v17 = vcombine.high %v14320_v1, %v14321_v7  ;;  %v6082_v29 = vpop.f32.mrb[169].mxu1  ;;  %v14324_v31 = vld [vmem:[#allocation34_spill] sm:$0xff] }
 0x40f   :  { %7313 = vmatprep.subr.bf16.mxu1 %v14319_v63  ;;  %v14323_v35 = vcombine.low %v14317_v3, %v14318_v39  ;;  %v8400_v30 = vadd.f32 %v8399_v51, %v8127_v57  ;;  %v8134_v28 = vmul.f32 %v12285_v0, %v7836_v61  ;;  %v9295_v14 = vadd.f32 %v6080_v33, %v12264_v62  ;;  %v6084_v57 = vpop.f32.mrb[170].mxu1  ;;  %v5314_v51 = vpop.f32.mrb[171].mxu0 }
 0x410   :  { %6541 = vmatprep.subr.bf16.mxu0 %v14322_v17  ;;  %v9232_v34 = vadd.f32 %v5310_v60, %v12267_v2  ;;  %v14325_v40 = vcombine.high %v12431_v8, %v14324_v31  ;;  %v8135_v63 = vmul.f32 %v12282_v49, %v7837_v46  ;;  %v7843_v3 = vmax.f32 %v9231_v13, 0.0  ;;  %v6086_v54 = vpop.f32.mrb[171].mxu1  ;;  %v12835_v46 = vld [vmem:[#allocation7 + $0xbb8] sm:$0xff] }
 0x411   :  { %7314 = vmatpush1.bf16.msra.mxu1 %v14323_v35  ;;  %v9296_v39 = vadd.f32 %v6082_v29, %v12270_v43  ;;  %v9233_v17 = vadd.f32 %v5312_v5, %v12261_v48  ;;  %v12828_v61 = vadd.f32 %v8400_v30, %v8128_v59  ;;  %v8408_v33 = vadd.f32 %v8134_v28, %v8133_v12  ;;  %v14327_v59 = vld [vmem:[#allocation40_spill] sm:$0xff]  ;;  %v14328_v12 = vld [vmem:[#allocation30_spill] sm:$0xff]  ;;  %v14329_v30 = vld [vmem:[#allocation35_spill] sm:$0xff] }
 0x412   :  { %7315 = vmatprep.subr.bf16.mxu1 %v14325_v40  ;;  %v7845_v35 = vmax.f32 %v9295_v14, 0.0  ;;  %v7844_v60 = vmax.f32 %v9232_v34, 0.0  ;;  %v14326_v16 = vcombine.low %v14320_v1, %v14321_v7  ;;  %v12833_v40 = vld [vmem:[#allocation7 + $0xb98] sm:$0xff]  ;;  %v8141_v13 = vmul.f32 %v12279_v47, %v7843_v3  ;;  %6415 = vmatmul.mubr.bf16.gmra.mrb[212].mxu0 %v14327_v59 }
 0x413   :  { %v7846_v29 = vmax.f32 %v9296_v39, 0.0  ;;  %v7851_v5 = vmax.f32 %v9233_v17, 0.0  ;;  %v9297_v52 = vadd.f32 %v6084_v57, %v12264_v62  ;;  %v14330_v28 = vcombine.high %v14328_v12, %v14329_v30  ;;  %7187 = vmatmul.mubr.bf16.gmra.mrb[212].mxu1 %v14327_v59  ;;  %v14331_v17 = vld [vmem:[#allocation45_spill] sm:$0xff] }
 0x414   :  { %6542 = vmatpush1.bf16.msra.mxu0 %v14326_v16  ;;  %v8136_v14 = vmul.f32 %v12288_v50, %v7838_v6  ;;  %v8409_v1 = vadd.f32 %v8408_v33, %v8135_v63  ;;  %v8142_v7 = vmul.f32 %v12285_v0, %v7844_v60  ;;  %v9234_v16 = vadd.f32 %v5314_v51, %v12267_v2  ;;  %v5318_v60 = vpop.f32.mrb[172].mxu0 }
 0x415   :  { %6543 = vmatprep.subr.bf16.mxu0 %v14330_v28  ;;  %v8143_v34 = vmul.f32 %v12282_v49, %v7845_v35  ;;  %v7853_v3 = vmax.f32 %v9297_v52, 0.0  ;;  %v9298_v39 = vadd.f32 %v6086_v54, %v12270_v43  ;;  %6424 = vmatprep.mubr.bf16.mxu0 %v14331_v17  ;;  %v8149_v33 = vmul.f32 %v12279_v47, %v7851_v5 }
 0x416   :  { %7196 = vmatprep.mubr.bf16.mxu1 %v14331_v17  ;;  %v12853_v6 = vadd.f32 %v8409_v1, %v8136_v14  ;;  %v8417_v63 = vadd.f32 %v8142_v7, %v8141_v13  ;;  %v7852_v51 = vmax.f32 %v9234_v16, 0.0  ;;  %v14332_v35 = vcombine.low %v14328_v12, %v14329_v30  ;;  %v6090_v14 = vpop.f32.mrb[172].mxu1  ;;  %v5320_v1 = vpop.f32.mrb[173].mxu0  ;;  %v14334_v13 = vld [vmem:[#allocation38_spill] sm:$0xff]  ;;  %v14335_v7 = vld [vmem:[#allocation43_spill] sm:$0xff] }
 0x417   :  { %v14333_v52 = vcombine.low %v12431_v8, %v14324_v31  ;;  %v8144_v54 = vmul.f32 %v12288_v50, %v7846_v29  ;;  %v7854_v59 = vmax.f32 %v9298_v39, 0.0  ;;  %v9235_v28 = vadd.f32 %v5318_v60, %v12261_v48  ;;  %v14337_v16 = vld [vmem:[#allocation46_spill] sm:$0xff]  ;;  %v14338_v17 = vld [vmem:[#allocation51_spill] sm:$0xff]  ;;  %v6092_v39 = vpop.f32.mrb[173].mxu1  ;;  %v5322_v60 = vpop.f32.mrb[174].mxu0 }
 0x418   :  { %6544 = vmatpush1.bf16.msra.mxu0 %v14332_v35  ;;  %v14336_v5 = vcombine.high %v14334_v13, %v14335_v7  ;;  %v14339_v57 = vcombine.high %v14337_v16, %v14338_v17  ;;  %v8418_v8 = vadd.f32 %v8417_v63, %v8143_v34  ;;  %v8150_v31 = vmul.f32 %v12285_v0, %v7852_v51  ;;  %v5324_v4 = vpop.f32.mrb[175].mxu0 }
 0x419   :  { %7316 = vmatpush1.bf16.msra.mxu1 %v14333_v52  ;;  %v9299_v29 = vadd.f32 %v6090_v14, %v12264_v62  ;;  %v9236_v30 = vadd.f32 %v5320_v1, %v12267_v2  ;;  %v8151_v35 = vmul.f32 %v12282_v49, %v7853_v3  ;;  %v7859_v52 = vmax.f32 %v9235_v28, 0.0  ;;  %v12886_v28 = vld [vmem:[#allocation7 + $0xbd0] sm:$0xff] }
 0x41a   :  { %6545 = vmatprep.subr.bf16.mxu0 %v14336_v5  ;;  %7317 = vmatprep.subr.bf16.mxu1 %v14339_v57  ;;  %v9300_v5 = vadd.f32 %v6092_v39, %v12270_v43  ;;  %v9237_v22 = vadd.f32 %v5322_v60, %v12261_v48  ;;  %v6094_v57 = vpop.f32.mrb[174].mxu1  ;;  %v12878_v21 = vadd.f32 %v8418_v8, %v8144_v54  ;;  %v12888_v1 = vld [vmem:[#allocation7 + $0xbf0] sm:$0xff] }
 0x41b   :  { %v8426_v34 = vadd.f32 %v8150_v31, %v8149_v33  ;;  %v7861_v63 = vmax.f32 %v9299_v29, 0.0  ;;  %v7860_v51 = vmax.f32 %v9236_v30, 0.0  ;;  %v6096_v12 = vpop.f32.mrb[175].mxu1  ;;  %v14340_v14 = vcombine.low %v14334_v13, %v14335_v7  ;;  %v14342_v31 = vld [vmem:[#allocation44_spill] sm:$0xff]  ;;  %v14343_v29 = vld [vmem:[#allocation54_spill] sm:$0xff]  ;;  %v14344_v30 = vld [vmem:[#allocation59_spill] sm:$0xff] }
 0x41c   :  { %v14341_v3 = vcombine.low %v14337_v16, %v14338_v17  ;;  %v8157_v39 = vmul.f32 %v12279_v47, %v7859_v52  ;;  %v7862_v54 = vmax.f32 %v9300_v5, 0.0  ;;  %v7867_v8 = vmax.f32 %v9237_v22, 0.0  ;;  %6425 = vmatmul.mubr.bf16.gmra.mrb[216].mxu0 %v14342_v31  ;;  %7197 = vmatmul.mubr.bf16.gmra.mrb[216].mxu1 %v14342_v31  ;;  %v12900_v52 = vld [vmem:[#allocation7 + $0xbd8] sm:$0xff]  ;;  %v5328_v31 = vpop.f32.mrb[176].mxu0 }
 0x41d   :  { %6546 = vmatpush1.bf16.msra.mxu0 %v14340_v14  ;;  %v9301_v33 = vadd.f32 %v6094_v57, %v12264_v62  ;;  %v14345_v13 = vcombine.high %v14343_v29, %v14344_v30  ;;  %v8152_v7 = vmul.f32 %v12288_v50, %v7854_v59  ;;  %v8427_v16 = vadd.f32 %v8426_v34, %v8151_v35  ;;  %v12902_v22 = vld [vmem:[#allocation7 + $0xbf8] sm:$0xff] }
 0x41e   :  { %7318 = vmatpush1.bf16.msra.mxu1 %v14341_v3  ;;  %v8158_v17 = vmul.f32 %v12285_v0, %v7860_v51  ;;  %v9238_v60 = vadd.f32 %v5324_v4, %v12267_v2  ;;  %v8159_v5 = vmul.f32 %v12282_v49, %v7861_v63  ;;  %v9302_v14 = vadd.f32 %v6096_v12, %v12270_v43  ;;  %v14346_v3 = vld [vmem:[#allocation49_spill] sm:$0xff] }
 0x41f   :  { %6547 = vmatprep.subr.bf16.mxu0 %v14345_v13  ;;  %v7869_v57 = vmax.f32 %v9301_v33, 0.0  ;;  %6434 = vmatprep.mubr.bf16.mxu0 %v14346_v3  ;;  %v12910_v35 = vadd.f32 %v8427_v16, %v8152_v7  ;;  %v8165_v34 = vmul.f32 %v12279_v47, %v7867_v8  ;;  %v14347_v63 = vcombine.low %v14343_v29, %v14344_v30  ;;  %v14348_v33 = vld [vmem:[#allocation15_spill] sm:$0xff]  ;;  %v14349_v12 = vld [vmem:[#allocation17_spill] sm:$0xff]  ;;  %v6100_v7 = vpop.f32.mrb[176].mxu1  ;;  %v5330_v16 = vpop.f32.mrb[177].mxu0 }
 0x420   :  { %7206 = vmatprep.mubr.bf16.mxu1 %v14346_v3  ;;  %v8435_v4 = vadd.f32 %v8158_v17, %v8157_v39  ;;  %v7868_v51 = vmax.f32 %v9238_v60, 0.0  ;;  %v14350_v13 = vcombine.high %v14348_v33, %v14349_v12  ;;  %v8160_v3 = vmul.f32 %v12288_v50, %v7862_v54  ;;  %v6102_v60 = vpop.f32.mrb[177].mxu1 }
 0x421   :  { %6548 = vmatpush1.bf16.msra.mxu0 %v14347_v63  ;;  %v7870_v23 = vmax.f32 %v9302_v14, 0.0  ;;  %v9239_v59 = vadd.f32 %v5328_v31, %v12261_v48  ;;  %v14351_v39 = vcombine.low %v14348_v33, %v14349_v12  ;;  %v9061_v8 = vcombine.low %v12900_v52, %v12902_v22  ;;  %v5332_v14 = vpop.f32.mrb[178].mxu0 }
 0x422   :  { %7319 = vmatprep.subr.bf16.mxu1 %v14350_v13  ;;  %6549 = vmatprep.subr.bf16.mxu0 %v9036_v24  ;;  %v8436_v29 = vadd.f32 %v8435_v4, %v8159_v5  ;;  %v8166_v30 = vmul.f32 %v12285_v0, %v7868_v51  ;;  %v9303_v54 = vadd.f32 %v6100_v7, %v12264_v62  ;;  %v6104_v5 = vpop.f32.mrb[178].mxu1  ;;  %v5334_v4 = vpop.f32.mrb[179].mxu0 }
 0x423   :  { %7320 = vmatpush1.bf16.msra.mxu1 %v14351_v39  ;;  %v9240_v17 = vadd.f32 %v5330_v16, %v12267_v2  ;;  %v8167_v31 = vmul.f32 %v12282_v49, %v7869_v57  ;;  %v7875_v63 = vmax.f32 %v9239_v59, 0.0  ;;  %v9304_v24 = vadd.f32 %v6102_v60, %v12270_v43  ;;  %v6106_v16 = vpop.f32.mrb[179].mxu1  ;;  %v14352_v60 = vld [vmem:[#allocation48_spill] sm:$0xff] }
 0x424   :  { %7321 = vmatprep.subr.bf16.mxu1 %v9038_v36  ;;  %v9241_v33 = vadd.f32 %v5332_v14, %v12261_v48  ;;  %v12938_v51 = vadd.f32 %v8436_v29, %v8160_v3  ;;  %v8444_v12 = vadd.f32 %v8166_v30, %v8165_v34  ;;  %v7877_v13 = vmax.f32 %v9303_v54, 0.0  ;;  %6435 = vmatmul.mubr.bf16.gmra.mrb[220].mxu0 %v14352_v60 }
 0x425   :  { %v7876_v7 = vmax.f32 %v9240_v17, 0.0  ;;  %6550 = vmatpush1.bf16.msra.mxu0 %v9035_v19  ;;  %v8173_v36 = vmul.f32 %v12279_v47, %v7875_v63  ;;  %v7878_v57 = vmax.f32 %v9304_v24, 0.0  ;;  %v9305_v39 = vadd.f32 %v6104_v5, %v12264_v62  ;;  %7207 = vmatmul.mubr.bf16.gmra.mrb[220].mxu1 %v14352_v60  ;;  %v14354_v17 = vld [vmem:[#allocation53_spill] sm:$0xff]  ;;  %v5338_v63 = vpop.f32.mrb[180].mxu0  ;;  %v12968_v5 = vld [vmem:[#allocation7 + $0xc18] sm:$0xff] }
 0x426   :  { %v7883_v59 = vmax.f32 %v9241_v33, 0.0  ;;  %v14353_v3 = vcombine.low %v12621_v26, %v12623_v20  ;;  %v8168_v34 = vmul.f32 %v12288_v50, %v7870_v23  ;;  %v8445_v29 = vadd.f32 %v8444_v12, %v8167_v31  ;;  %6444 = vmatprep.mubr.bf16.mxu0 %v14354_v17  ;;  %7216 = vmatprep.mubr.bf16.mxu1 %v14354_v17 }
 0x427   :  { %v8174_v30 = vmul.f32 %v12285_v0, %v7876_v7  ;;  %v9242_v15 = vadd.f32 %v5334_v4, %v12267_v2  ;;  %v8175_v56 = vmul.f32 %v12282_v49, %v7877_v13  ;;  %v7885_v19 = vmax.f32 %v9305_v39, 0.0  ;;  %v12970_v4 = vld [vmem:[#allocation7 + $0xc38] sm:$0xff] }
 0x428   :  { %7322 = vmatpush1.bf16.msra.mxu1 %v14353_v3  ;;  %v9306_v54 = vadd.f32 %v6106_v16, %v12270_v43  ;;  %v9062_v26 = vcombine.high %v12900_v52, %v12902_v22  ;;  %v12959_v20 = vadd.f32 %v8445_v29, %v8168_v34  ;;  %v8181_v14 = vmul.f32 %v12279_v47, %v7883_v59  ;;  %v5340_v59 = vpop.f32.mrb[181].mxu0 }
 0x429   :  { %v8453_v23 = vadd.f32 %v8174_v30, %v8173_v36  ;;  %v7884_v31 = vmax.f32 %v9242_v15, 0.0  ;;  %v14355_v24 = vcombine.high %v12674_v38, %v12676_v10  ;;  %v14356_v33 = vcombine.high %v12727_v18, %v12729_v53  ;;  %v6110_v36 = vpop.f32.mrb[180].mxu1  ;;  %v5342_v15 = vpop.f32.mrb[182].mxu0 }
 0x42a   :  { %v8176_v12 = vmul.f32 %v12288_v50, %v7878_v57  ;;  %v8183_v13 = vmul.f32 %v12282_v49, %v7885_v19  ;;  %v7886_v7 = vmax.f32 %v9306_v54, 0.0  ;;  %v9243_v16 = vadd.f32 %v5338_v63, %v12261_v48  ;;  %v6112_v30 = vpop.f32.mrb[181].mxu1 }
 0x42b   :  { %6551 = vmatprep.subr.bf16.mxu0 %v14355_v24  ;;  %7323 = vmatprep.subr.bf16.mxu1 %v14356_v33  ;;  %v14357_v39 = vcombine.low %v12674_v38, %v12676_v10  ;;  %v14358_v60 = vcombine.low %v12727_v18, %v12729_v53  ;;  %v8454_v3 = vadd.f32 %v8453_v23, %v8175_v56  ;;  %v6114_v18 = vpop.f32.mrb[182].mxu1  ;;  %v5344_v53 = vpop.f32.mrb[183].mxu0 }
 0x42c   :  { %v8182_v34 = vmul.f32 %v12285_v0, %v7884_v31  ;;  %v9307_v57 = vadd.f32 %v6110_v36, %v12264_v62  ;;  %v9244_v29 = vadd.f32 %v5340_v59, %v12267_v2  ;;  %v14359_v19 = vcombine.high %v12780_v58, %v12782_v44  ;;  %v6116_v33 = vpop.f32.mrb[183].mxu1 }
 0x42d   :  { %6552 = vmatpush1.bf16.msra.mxu0 %v14357_v39  ;;  %7324 = vmatpush1.bf16.msra.mxu1 %v14358_v60  ;;  %v7891_v54 = vmax.f32 %v9243_v16, 0.0  ;;  %v9308_v38 = vadd.f32 %v6112_v30, %v12270_v43  ;;  %v9245_v10 = vadd.f32 %v5342_v15, %v12261_v48  ;;  %v14360_v56 = vcombine.high %v12833_v40, %v12835_v46  ;;  %v14361_v60 = vld [vmem:[#allocation52_spill] sm:$0xff] }
 0x42e   :  { %6553 = vmatprep.subr.bf16.mxu0 %v14359_v19  ;;  %v9070_v17 = vcombine.high %v12968_v5, %v12970_v4  ;;  %v12994_v23 = vadd.f32 %v8454_v3, %v8176_v12  ;;  %v8462_v31 = vadd.f32 %v8182_v34, %v8181_v14  ;;  %v7893_v63 = vmax.f32 %v9307_v57, 0.0  ;;  %6445 = vmatmul.mubr.bf16.gmra.mrb[224].mxu0 %v14361_v60  ;;  %v13006_v34 = vld [vmem:[#allocation7 + $0xc10] sm:$0xff] }
 0x42f   :  { %7325 = vmatprep.subr.bf16.mxu1 %v14360_v56  ;;  %v7892_v24 = vmax.f32 %v9244_v29, 0.0  ;;  %v8189_v16 = vmul.f32 %v12279_v47, %v7891_v54  ;;  %v7894_v36 = vmax.f32 %v9308_v38, 0.0  ;;  %v7899_v59 = vmax.f32 %v9245_v10, 0.0  ;;  %7217 = vmatmul.mubr.bf16.gmra.mrb[224].mxu1 %v14361_v60  ;;  %v13008_v57 = vld [vmem:[#allocation7 + $0xc30] sm:$0xff] }
 0x430   :  { %v9309_v39 = vadd.f32 %v6114_v18, %v12264_v62  ;;  %v14362_v30 = vcombine.low %v12833_v40, %v12835_v46  ;;  %v8184_v15 = vmul.f32 %v12288_v50, %v7886_v7  ;;  %v8463_v12 = vadd.f32 %v8462_v31, %v8183_v13  ;;  %v14363_v40 = vld [vmem:[#allocation57_spill] sm:$0xff]  ;;  %v5348_v18 = vpop.f32.mrb[184].mxu0 }
 0x431   :  { %v8190_v14 = vmul.f32 %v12285_v0, %v7892_v24  ;;  %v9246_v3 = vadd.f32 %v5344_v53, %v12267_v2  ;;  %v8191_v29 = vmul.f32 %v12282_v49, %v7893_v63  ;;  %v9310_v54 = vadd.f32 %v6116_v33, %v12270_v43  ;;  %6454 = vmatprep.mubr.bf16.mxu0 %v14363_v40  ;;  %v6120_v24 = vpop.f32.mrb[184].mxu1  ;;  %v5350_v33 = vpop.f32.mrb[185].mxu0 }
 0x432   :  { %7326 = vmatpush1.bf16.msra.mxu1 %v14362_v30  ;;  %v7901_v19 = vmax.f32 %v9309_v39, 0.0  ;;  %7226 = vmatprep.mubr.bf16.mxu1 %v14363_v40  ;;  %v9059_v46 = vcombine.low %v12886_v28, %v12888_v1  ;;  %v13016_v13 = vadd.f32 %v8463_v12, %v8184_v15  ;;  %v8197_v38 = vmul.f32 %v12279_v47, %v7899_v59  ;;  %v6122_v59 = vpop.f32.mrb[185].mxu1  ;;  %v5352_v60 = vpop.f32.mrb[186].mxu0 }
 0x433   :  { %v8471_v7 = vadd.f32 %v8190_v14, %v8189_v16  ;;  %v7900_v10 = vmax.f32 %v9246_v3, 0.0  ;;  %v14364_v53 = vcombine.low %v12780_v58, %v12782_v44  ;;  %7327 = vmatprep.subr.bf16.mxu1 %v9062_v26  ;;  %v8192_v56 = vmul.f32 %v12288_v50, %v7894_v36  ;;  %v6124_v22 = vpop.f32.mrb[186].mxu1 }
 0x434   :  { %v7902_v31 = vmax.f32 %v9310_v54, 0.0  ;;  %v9247_v63 = vadd.f32 %v5348_v18, %v12261_v48  ;;  %v14365_v39 = vcombine.high %v12886_v28, %v12888_v1  ;;  %v9068_v58 = vcombine.high %v13006_v34, %v13008_v57 }
 0x435   :  { %6554 = vmatpush1.bf16.msra.mxu0 %v14364_v53  ;;  %v8472_v44 = vadd.f32 %v8471_v7, %v8191_v29  ;;  %v8198_v26 = vmul.f32 %v12285_v0, %v7900_v10  ;;  %v9311_v16 = vadd.f32 %v6120_v24, %v12264_v62  ;;  %v9248_v36 = vadd.f32 %v5350_v33, %v12267_v2  ;;  %v6126_v29 = vpop.f32.mrb[187].mxu1  ;;  %v14366_v7 = vld [vmem:[#allocation56_spill] sm:$0xff]  ;;  %v14367_v24 = vld [vmem:[#allocation61_spill] sm:$0xff] }
 0x436   :  { %6555 = vmatprep.subr.bf16.mxu0 %v14365_v39  ;;  %7328 = vmatpush1.bf16.msra.mxu1 %v9061_v8  ;;  %v8199_v28 = vmul.f32 %v12282_v49, %v7901_v19  ;;  %v7907_v1 = vmax.f32 %v9247_v63, 0.0  ;;  %v9312_v30 = vadd.f32 %v6122_v59, %v12270_v43  ;;  %v9249_v52 = vadd.f32 %v5352_v60, %v12261_v48  ;;  %v5354_v8 = vpop.f32.mrb[187].mxu0  ;;  %v6130_v59 = vpop.f32.mrb[188].mxu1 }
 0x437   :  { %7490 = vmatprep.subr.bf16.mxu1 %v9070_v17  ;;  %v13038_v15 = vadd.f32 %v8472_v44, %v8192_v56  ;;  %v8480_v12 = vadd.f32 %v8198_v26, %v8197_v38  ;;  %v7909_v14 = vmax.f32 %v9311_v16, 0.0  ;;  %v7908_v3 = vmax.f32 %v9248_v36, 0.0  ;;  %6455 = vmatmul.mubr.bf16.gmra.mrb[228].mxu0 %v14366_v7  ;;  %v5358_v44 = vpop.f32.mrb[188].mxu0 }
 0x438   :  { %v8205_v54 = vmul.f32 %v12279_v47, %v7907_v1  ;;  %v7910_v40 = vmax.f32 %v9312_v30, 0.0  ;;  %v7915_v17 = vmax.f32 %v9249_v52, 0.0  ;;  %v9313_v19 = vadd.f32 %v6124_v22, %v12264_v62  ;;  %7227 = vmatmul.mubr.bf16.gmra.mrb[228].mxu1 %v14366_v7  ;;  %6464 = vmatprep.mubr.bf16.mxu0 %v14367_v24  ;;  %v5360_v60 = vpop.f32.mrb[189].mxu0  ;;  %v6132_v22 = vpop.f32.mrb[189].mxu1 }
 0x439   :  { %6556 = vmatpush1.bf16.msra.mxu0 %v9059_v46  ;;  %v8200_v10 = vmul.f32 %v12288_v50, %v7902_v31  ;;  %v8481_v18 = vadd.f32 %v8480_v12, %v8199_v28  ;;  %v8206_v53 = vmul.f32 %v12285_v0, %v7908_v3  ;;  %v9250_v38 = vadd.f32 %v5354_v8, %v12267_v2  ;;  %v5362_v8 = vpop.f32.mrb[190].mxu0 }
 0x43a   :  { %6718 = vmatprep.subr.bf16.mxu0 %v9068_v58  ;;  %v8207_v46 = vmul.f32 %v12282_v49, %v7909_v14  ;;  %v7917_v56 = vmax.f32 %v9313_v19, 0.0  ;;  %v9314_v63 = vadd.f32 %v6126_v29, %v12270_v43  ;;  %7236 = vmatprep.mubr.bf16.mxu1 %v14367_v24  ;;  %v8213_v31 = vmul.f32 %v12279_v47, %v7915_v17 }
 0x43b   :  { %v13051_v33 = vadd.f32 %v8481_v18, %v8200_v10  ;;  %v8489_v39 = vadd.f32 %v8206_v53, %v8205_v54  ;;  %v7916_v58 = vmax.f32 %v9250_v38, 0.0  ;;  %v8208_v26 = vmul.f32 %v12288_v50, %v7910_v40  ;;  %v6134_v54 = vpop.f32.mrb[190].mxu1  ;;  %v5364_v40 = vpop.f32.mrb[191].mxu0 }
 0x43c   :  { %v7918_v16 = vmax.f32 %v9314_v63, 0.0  ;;  %v9251_v36 = vadd.f32 %v5358_v44, %v12261_v48  ;;  %v9315_v30 = vadd.f32 %v6130_v59, %v12264_v62  ;;  %v9252_v52 = vadd.f32 %v5360_v60, %v12267_v2  ;;  %v6136_v18 = vpop.f32.mrb[191].mxu1  ;;  %v14368_v63 = vld [vmem:[#allocation60_spill] sm:$0xff] }
 0x43d   :  { %v8490_v28 = vadd.f32 %v8489_v39, %v8207_v46  ;;  %v8214_v1 = vmul.f32 %v12285_v0, %v7916_v58  ;;  %v8215_v12 = vmul.f32 %v12282_v49, %v7917_v56  ;;  %v9316_v3 = vadd.f32 %v6132_v22, %v12270_v43  ;;  %v14370_v22 = vld [vmem:[#allocation64_spill] sm:$0xff] }
 0x43e   :  { %v7923_v14 = vmax.f32 %v9251_v36, 0.0  ;;  %v9253_v29 = vadd.f32 %v5362_v8, %v12261_v48  ;;  %v7925_v7 = vmax.f32 %v9315_v30, 0.0  ;;  %v7924_v10 = vmax.f32 %v9252_v52, 0.0 }
 0x43f   :  { %v13062_v17 = vadd.f32 %v8490_v28, %v8208_v26  ;;  %v8498_v19 = vadd.f32 %v8214_v1, %v8213_v31  ;;  %v8216_v53 = vmul.f32 %v12288_v50, %v7918_v16  ;;  %v9317_v56 = vadd.f32 %v6134_v54, %v12264_v62  ;;  %6465 = vmatmul.mubr.bf16.gmra.mrb[232].mxu0 %v14368_v63  ;;  %v14369_v16 = vld [vmem:[#allocation65_spill] sm:$0xff] }
 0x440   :  { %v8221_v38 = vmul.f32 %v12279_v47, %v7923_v14  ;;  %v7931_v46 = vmax.f32 %v9253_v29, 0.0  ;;  %v8222_v48 = vmul.f32 %v12285_v0, %v7924_v10  ;;  %v7926_v39 = vmax.f32 %v9316_v3, 0.0  ;;  %7237 = vmatmul.mubr.bf16.gmra.mrb[232].mxu1 %v14368_v63  ;;  %6474 = vmatprep.mubr.bf16.mxu0 %v14369_v16  ;;  %v14371_v14 = vld [vmem:[#allocation69_spill] sm:$0xff]  ;;  %v1875_v10 = vld [vmem:[#allocation7 + $0xc50] sm:$0xff] }
 0x441   :  { %v8499_v24 = vadd.f32 %v8498_v19, %v8215_v12  ;;  %v9254_v58 = vadd.f32 %v5364_v40, %v12267_v2  ;;  %v8223_v31 = vmul.f32 %v12282_v49, %v7925_v7  ;;  %v9318_v26 = vadd.f32 %v6136_v18, %v12270_v43  ;;  %7246 = vmatprep.mubr.bf16.mxu1 %v14369_v16  ;;  %v14373_v29 = vld [vmem:[#allocation73_spill] sm:$0xff]  ;;  %v14378_v19 = vld [vmem:[#allocation84_spill] sm:$0xff]  ;;  %v14379_v7 = vld [vmem:[#allocation87_spill] sm:$0xff] }
 0x442   :  { %v8229_v44 = vmul.f32 %v12279_v47, %v7931_v46  ;;  %v8507_v36 = vadd.f32 %v8222_v48, %v8221_v38  ;;  %v7933_v59 = vmax.f32 %v9317_v56, 0.0  ;;  %v8224_v28 = vmul.f32 %v12288_v50, %v7926_v39  ;;  %v14376_v54 = vld [vmem:[#allocation77_spill] sm:$0xff]  ;;  %v1879_v18 = vld [vmem:[#allocation7 + $0xc70] sm:$0xff]  ;;  %v1880_v38 = vld [vmem:[#allocation7 + $0xc78] sm:$0xff] }
 0x443   :  { %v13076_v62 = vadd.f32 %v8499_v24, %v8216_v53  ;;  %v7932_v60 = vmax.f32 %v9254_v58, 0.0  ;;  %v7934_v30 = vmax.f32 %v9318_v26, 0.0  ;;  %v14377_v40 = vld [vmem:[#allocation85_spill] sm:$0xff]  ;;  %v1876_v53 = vld [vmem:[#allocation7 + $0xc58] sm:$0xff]  ;;  %v9067_v46 = vcombine.low %v13006_v34, %v13008_v57  ;;  %v14380_v24 = vld [vmem:[#allocation86_spill] sm:$0xff] }
 0x444   :  { %v8508_v2 = vadd.f32 %v8507_v36, %v8223_v31  ;;  %v8231_v47 = vmul.f32 %v12282_v49, %v7933_v59  ;;  %v14374_v49 = vld [vmem:[#allocation72_spill] sm:$0xff]  ;;  %v9069_v56 = vcombine.low %v12968_v5, %v12970_v4  ;;  %v9076_v63 = vcombine.high %v1875_v10, %v1879_v18  ;;  %v1883_v39 = vld [vmem:[#allocation7 + $0xc90] sm:$0xff]  ;;  %v14381_v31 = vld [vmem:[#allocation91_spill] sm:$0xff] }
 0x445   :  { %v8230_v1 = vmul.f32 %v12285_v0, %v7932_v60  ;;  %v8232_v8 = vmul.f32 %v12288_v50, %v7934_v30  ;;  %v14372_v0 = vld [vmem:[#allocation68_spill] sm:$0xff]  ;;  %v14375_v50 = vld [vmem:[#allocation79_spill] sm:$0xff]  ;;  %v9078_v48 = vcombine.high %v1876_v53, %v1880_v38  ;;  %v1887_v58 = vld [vmem:[#allocation7 + $0xcb0] sm:$0xff]  ;;  %v9075_v16 = vcombine.low %v1875_v10, %v1879_v18 }
 0x446   :  { %v13080_v52 = vadd.f32 %v8508_v2, %v8224_v28  ;;  %v1888_v26 = vld [vmem:[#allocation7 + $0xcb8] sm:$0xff]  ;;  %v9077_v34 = vcombine.low %v1876_v53, %v1880_v38  ;;  %v9084_v5 = vcombine.high %v1883_v39, %v1887_v58  ;;  %v1891_v57 = vld [vmem:[#allocation7 + $0xcd0] sm:$0xff]  ;;  %v9083_v28 = vcombine.low %v1883_v39, %v1887_v58 }
 0x447   :  { %v8516_v43 = vadd.f32 %v8230_v1, %v8229_v44  ;;  %6475 = vmatmul.mubr.bf16.gmra.mrb[236].mxu0 %v14370_v22  ;;  %v1884_v44 = vld [vmem:[#allocation7 + $0xc98] sm:$0xff]  ;;  %v1895_v36 = vld [vmem:[#allocation7 + $0xcf0] sm:$0xff] }
 0x448   :  { %7247 = vmatmul.mubr.bf16.gmra.mrb[236].mxu1 %v14370_v22  ;;  %6484 = vmatprep.mubr.bf16.mxu0 %v14371_v14  ;;  %v9086_v4 = vcombine.high %v1884_v44, %v1888_v26  ;;  %v1892_v59 = vld [vmem:[#allocation7 + $0xcd8] sm:$0xff]  ;;  %v9085_v2 = vcombine.low %v1884_v44, %v1888_v26  ;;  %v9092_v1 = vcombine.high %v1891_v57, %v1895_v36  ;;  %v14382_v30 = vld [vmem:[#allocation90_spill] sm:$0xff] }
 0x449   :  { %v8517_v12 = vadd.f32 %v8516_v43, %v8231_v47  ;;  %7256 = vmatprep.mubr.bf16.mxu1 %v14371_v14  ;;  %v1896_v60 = vld [vmem:[#allocation7 + $0xcf8] sm:$0xff]  ;;  %v1899_v43 = vld [vmem:[#allocation7 + $0xd10] sm:$0xff] }
 0x44a   :  { %v9094_v47 = vcombine.high %v1892_v59, %v1896_v60  ;;  %v1903_v22 = vld [vmem:[#allocation7 + $0xd30] sm:$0xff]  ;;  %v1904_v14 = vld [vmem:[#allocation7 + $0xd38] sm:$0xff] }
 0x44b   :  { %v13088_v3 = vadd.f32 %v8517_v12, %v8232_v8  ;;  %v14383_v8 = vld [vmem:[#allocation95_spill] sm:$0xff]  ;;  %v9099_v10 = vcombine.low %v1899_v43, %v1903_v22  ;;  %v14384_v38 = vld [vmem:[#allocation94_spill] sm:$0xff] }
 0x44c   :  { %v1900_v12 = vld [vmem:[#allocation7 + $0xd18] sm:$0xff] }
 0x44d   :  { %v9101_v18 = vcombine.low %v1900_v12, %v1904_v14  ;;  %v1920_v39 = vld [vmem:[#allocation7 + $0xdb8] sm:$0xff] }
 0x44f   :  { %6485 = vmatmul.mubr.bf16.gmra.mrb[240].mxu0 %v14372_v0 }
 0x450   :  { %7257 = vmatmul.mubr.bf16.gmra.mrb[240].mxu1 %v14372_v0  ;;  %6494 = vmatprep.mubr.bf16.mxu0 %v14373_v29  ;;  %v9091_v0 = vcombine.low %v1891_v57, %v1895_v36 }
 0x451   :  { %7266 = vmatprep.mubr.bf16.mxu1 %v14373_v29  ;;  %v9093_v29 = vcombine.low %v1892_v59, %v1896_v60  ;;  %v14386_v60 = vld [vmem:[#allocation98_spill] sm:$0xff] }
 0x457   :  { %6495 = vmatmul.mubr.bf16.gmra.mrb[244].mxu0 %v14374_v49 }
 0x458   :  { %7267 = vmatmul.mubr.bf16.gmra.mrb[244].mxu1 %v14374_v49  ;;  %6504 = vmatprep.mubr.bf16.mxu0 %v14375_v50  ;;  %v9100_v49 = vcombine.high %v1899_v43, %v1903_v22  ;;  %v1936_v43 = vld [vmem:[#allocation7 + $0xe38] sm:$0xff] }
 0x459   :  { %7276 = vmatprep.mubr.bf16.mxu1 %v14375_v50  ;;  %v9102_v50 = vcombine.high %v1900_v12, %v1904_v14 }
 0x45f   :  { %6505 = vmatmul.mubr.bf16.gmra.mrb[248].mxu0 %v14376_v54 }
 0x460   :  { %7277 = vmatmul.mubr.bf16.gmra.mrb[248].mxu1 %v14376_v54  ;;  %6514 = vmatprep.mubr.bf16.mxu0 %v14377_v40  ;;  %v1907_v54 = vld [vmem:[#allocation7 + $0xd50] sm:$0xff] }
 0x461   :  { %7286 = vmatprep.mubr.bf16.mxu1 %v14377_v40  ;;  %v1911_v40 = vld [vmem:[#allocation7 + $0xd70] sm:$0xff] }
 0x462   :  { %v9108_v53 = vcombine.high %v1907_v54, %v1911_v40  ;;  %v9107_v58 = vcombine.low %v1907_v54, %v1911_v40 }
 0x467   :  { %6515 = vmatmul.mubr.bf16.gmra.mrb[252].mxu0 %v14378_v19 }
 0x468   :  { %7287 = vmatmul.mubr.bf16.gmra.mrb[252].mxu1 %v14378_v19  ;;  %6557 = vmatprep.mubr.bf16.mxu0 %v14379_v7  ;;  %v1908_v19 = vld [vmem:[#allocation7 + $0xd58] sm:$0xff] }
 0x469   :  { %7329 = vmatprep.mubr.bf16.mxu1 %v14379_v7  ;;  %v1912_v7 = vld [vmem:[#allocation7 + $0xd78] sm:$0xff] }
 0x46f   :  { %6558 = vmatmul.mubr.bf16.vlgmr.msra.gmra.mrb[192].mxu0 %v14380_v24 }
 0x470   :  { %7330 = vmatmul.mubr.bf16.vlgmr.msra.gmra.mrb[192].mxu1 %v14380_v24  ;;  %6567 = vmatprep.mubr.bf16.mxu0 %v14381_v31  ;;  %v14385_v24 = vld [vmem:[#allocation99_spill] sm:$0xff] }
 0x471   :  { %6719 = vmatpush1.bf16.msra.mxu0 %v9067_v46  ;;  %7339 = vmatprep.mubr.bf16.mxu1 %v14381_v31  ;;  %v9110_v46 = vcombine.high %v1908_v19, %v1912_v7  ;;  %v9109_v31 = vcombine.low %v1908_v19, %v1912_v7  ;;  %v14388_v7 = vld [vmem:[#allocation102_spill] sm:$0xff] }
 0x472   :  { %7491 = vmatpush1.bf16.msra.mxu1 %v9069_v56  ;;  %6720 = vmatprep.subr.bf16.mxu0 %v9076_v63  ;;  %v1915_v56 = vld [vmem:[#allocation7 + $0xd90] sm:$0xff] }
 0x473   :  { %7492 = vmatprep.subr.bf16.mxu1 %v9078_v48  ;;  %v1919_v63 = vld [vmem:[#allocation7 + $0xdb0] sm:$0xff]  ;;  %v1916_v48 = vld [vmem:[#allocation7 + $0xd98] sm:$0xff] }
 0x474   :  { %v9116_v44 = vcombine.high %v1915_v56, %v1919_v63  ;;  %v9118_v26 = vcombine.high %v1916_v48, %v1920_v39  ;;  %v9115_v57 = vcombine.low %v1915_v56, %v1919_v63  ;;  %v9117_v36 = vcombine.low %v1916_v48, %v1920_v39  ;;  %v1952_v56 = vld [vmem:[#allocation7 + $0xeb8] sm:$0xff] }
 0x475   :  { %6721 = vmatpush1.bf16.msra.mxu0 %v9075_v16  ;;  %v1923_v16 = vld [vmem:[#allocation7 + $0xdd0] sm:$0xff] }
 0x476   :  { %7493 = vmatpush1.bf16.msra.mxu1 %v9077_v34  ;;  %6722 = vmatprep.subr.bf16.mxu0 %v9084_v5  ;;  %v1927_v34 = vld [vmem:[#allocation7 + $0xdf0] sm:$0xff]  ;;  %v1924_v5 = vld [vmem:[#allocation7 + $0xdd8] sm:$0xff] }
 0x477   :  { %6568 = vmatmul.mubr.bf16.gmra.mrb[196].mxu0 %v14382_v30  ;;  %7494 = vmatprep.subr.bf16.mxu1 %v9086_v4  ;;  %v1928_v4 = vld [vmem:[#allocation7 + $0xdf8] sm:$0xff]  ;;  %v9124_v59 = vcombine.high %v1923_v16, %v1927_v34  ;;  %v9123_v22 = vcombine.low %v1923_v16, %v1927_v34 }
 0x478   :  { %7340 = vmatmul.mubr.bf16.gmra.mrb[196].mxu1 %v14382_v30  ;;  %6577 = vmatprep.mubr.bf16.mxu0 %v14383_v8  ;;  %v14387_v30 = vld [vmem:[#allocation103_spill] sm:$0xff] }
 0x479   :  { %7349 = vmatprep.mubr.bf16.mxu1 %v14383_v8  ;;  %6723 = vmatpush1.bf16.msra.mxu0 %v9083_v28  ;;  %v9126_v28 = vcombine.high %v1924_v5, %v1928_v4  ;;  %v9125_v8 = vcombine.low %v1924_v5, %v1928_v4  ;;  %v14390_v4 = vld [vmem:[#allocation106_spill] sm:$0xff] }
 0x47a   :  { %7495 = vmatpush1.bf16.msra.mxu1 %v9085_v2  ;;  %6724 = vmatprep.subr.bf16.mxu0 %v9092_v1  ;;  %v1931_v2 = vld [vmem:[#allocation7 + $0xe10] sm:$0xff] }
 0x47b   :  { %7496 = vmatprep.subr.bf16.mxu1 %v9094_v47  ;;  %v1935_v1 = vld [vmem:[#allocation7 + $0xe30] sm:$0xff]  ;;  %v1932_v47 = vld [vmem:[#allocation7 + $0xe18] sm:$0xff] }
 0x47c   :  { %v9132_v12 = vcombine.high %v1931_v2, %v1935_v1  ;;  %v9134_v14 = vcombine.high %v1932_v47, %v1936_v43  ;;  %v9131_v54 = vcombine.low %v1931_v2, %v1935_v1  ;;  %v9133_v40 = vcombine.low %v1932_v47, %v1936_v43  ;;  %v1968_v2 = vld [vmem:[#allocation7 + $0xf38] sm:$0xff] }
 0x47d   :  { %6725 = vmatpush1.bf16.msra.mxu0 %v9091_v0  ;;  %v1939_v0 = vld [vmem:[#allocation7 + $0xe50] sm:$0xff] }
 0x47e   :  { %7497 = vmatpush1.bf16.msra.mxu1 %v9093_v29  ;;  %6726 = vmatprep.subr.bf16.mxu0 %v9100_v49  ;;  %v1943_v29 = vld [vmem:[#allocation7 + $0xe70] sm:$0xff]  ;;  %v1940_v49 = vld [vmem:[#allocation7 + $0xe58] sm:$0xff] }
 0x47f   :  { %6578 = vmatmul.mubr.bf16.gmra.mrb[200].mxu0 %v14384_v38  ;;  %7498 = vmatprep.subr.bf16.mxu1 %v9102_v50  ;;  %v1944_v50 = vld [vmem:[#allocation7 + $0xe78] sm:$0xff]  ;;  %v9140_v19 = vcombine.high %v1939_v0, %v1943_v29  ;;  %v9139_v63 = vcombine.low %v1939_v0, %v1943_v29 }
 0x480   :  { %7350 = vmatmul.mubr.bf16.gmra.mrb[200].mxu1 %v14384_v38  ;;  %6587 = vmatprep.mubr.bf16.mxu0 %v14385_v24  ;;  %v14389_v38 = vld [vmem:[#allocation107_spill] sm:$0xff] }
 0x481   :  { %7359 = vmatprep.mubr.bf16.mxu1 %v14385_v24  ;;  %6727 = vmatpush1.bf16.msra.mxu0 %v9099_v10  ;;  %v9142_v10 = vcombine.high %v1940_v49, %v1944_v50  ;;  %v9141_v24 = vcombine.low %v1940_v49, %v1944_v50  ;;  %v14392_v50 = vld [vmem:[#allocation110_spill] sm:$0xff] }
 0x482   :  { %7499 = vmatpush1.bf16.msra.mxu1 %v9101_v18  ;;  %6728 = vmatprep.subr.bf16.mxu0 %v9108_v53  ;;  %v1947_v18 = vld [vmem:[#allocation7 + $0xe90] sm:$0xff] }
 0x483   :  { %7500 = vmatprep.subr.bf16.mxu1 %v9110_v46  ;;  %v1951_v53 = vld [vmem:[#allocation7 + $0xeb0] sm:$0xff]  ;;  %v1948_v46 = vld [vmem:[#allocation7 + $0xe98] sm:$0xff] }
 0x484   :  { %v9148_v48 = vcombine.high %v1947_v18, %v1951_v53  ;;  %v9150_v39 = vcombine.high %v1948_v46, %v1952_v56  ;;  %v9147_v16 = vcombine.low %v1947_v18, %v1951_v53  ;;  %v9149_v34 = vcombine.low %v1948_v46, %v1952_v56  ;;  %v1984_v18 = vld [vmem:[#allocation7 + $0xfb8] sm:$0xff] }
 0x485   :  { %6729 = vmatpush1.bf16.msra.mxu0 %v9107_v58  ;;  %v1955_v58 = vld [vmem:[#allocation7 + $0xed0] sm:$0xff] }
 0x486   :  { %7501 = vmatpush1.bf16.msra.mxu1 %v9109_v31  ;;  %6730 = vmatprep.subr.bf16.mxu0 %v9116_v44  ;;  %v1959_v31 = vld [vmem:[#allocation7 + $0xef0] sm:$0xff]  ;;  %v1956_v44 = vld [vmem:[#allocation7 + $0xed8] sm:$0xff] }
 0x487   :  { %6588 = vmatmul.mubr.bf16.gmra.mrb[204].mxu0 %v14386_v60  ;;  %7502 = vmatprep.subr.bf16.mxu1 %v9118_v26  ;;  %v1960_v26 = vld [vmem:[#allocation7 + $0xef8] sm:$0xff]  ;;  %v9156_v5 = vcombine.high %v1955_v58, %v1959_v31  ;;  %v9155_v1 = vcombine.low %v1955_v58, %v1959_v31 }
 0x488   :  { %7360 = vmatmul.mubr.bf16.gmra.mrb[204].mxu1 %v14386_v60  ;;  %6597 = vmatprep.mubr.bf16.mxu0 %v14387_v30  ;;  %v14391_v60 = vld [vmem:[#allocation111_spill] sm:$0xff] }
 0x489   :  { %7369 = vmatprep.mubr.bf16.mxu1 %v14387_v30  ;;  %6731 = vmatpush1.bf16.msra.mxu0 %v9115_v57  ;;  %v9158_v57 = vcombine.high %v1956_v44, %v1960_v26  ;;  %v9157_v30 = vcombine.low %v1956_v44, %v1960_v26  ;;  %v14394_v26 = vld [vmem:[#allocation114_spill] sm:$0xff] }
 0x48a   :  { %7503 = vmatpush1.bf16.msra.mxu1 %v9117_v36  ;;  %6732 = vmatprep.subr.bf16.mxu0 %v9124_v59  ;;  %v1963_v36 = vld [vmem:[#allocation7 + $0xf10] sm:$0xff] }
 0x48b   :  { %7504 = vmatprep.subr.bf16.mxu1 %v9126_v28  ;;  %v1967_v59 = vld [vmem:[#allocation7 + $0xf30] sm:$0xff]  ;;  %v1964_v28 = vld [vmem:[#allocation7 + $0xf18] sm:$0xff] }
 0x48c   :  { %v9164_v47 = vcombine.high %v1963_v36, %v1967_v59  ;;  %v9166_v43 = vcombine.high %v1964_v28, %v1968_v2  ;;  %v9163_v0 = vcombine.low %v1963_v36, %v1967_v59  ;;  %v9165_v29 = vcombine.low %v1964_v28, %v1968_v2  ;;  %v14397_v36 = vld [vmem:[#allocation123_spill] sm:$0xff]  ;;  %v14398_v59 = vld [vmem:[#allocation122_spill] sm:$0xff] }
 0x48d   :  { %6733 = vmatpush1.bf16.msra.mxu0 %v9123_v22  ;;  %v1971_v22 = vld [vmem:[#allocation7 + $0xf50] sm:$0xff]  ;;  %v14401_v2 = vld [vmem:[#allocation131_spill] sm:$0xff] }
 0x48e   :  { %7505 = vmatpush1.bf16.msra.mxu1 %v9125_v8  ;;  %6734 = vmatprep.subr.bf16.mxu0 %v9132_v12  ;;  %v1975_v8 = vld [vmem:[#allocation7 + $0xf70] sm:$0xff]  ;;  %v1972_v12 = vld [vmem:[#allocation7 + $0xf58] sm:$0xff] }
 0x48f   :  { %6598 = vmatmul.mubr.bf16.gmra.mrb[208].mxu0 %v14388_v7  ;;  %7506 = vmatprep.subr.bf16.mxu1 %v9134_v14  ;;  %v1976_v14 = vld [vmem:[#allocation7 + $0xf78] sm:$0xff]  ;;  %v9172_v49 = vcombine.high %v1971_v22, %v1975_v8  ;;  %v9171_v53 = vcombine.low %v1971_v22, %v1975_v8  ;;  %v14400_v28 = vld [vmem:[#allocation126_spill] sm:$0xff] }
 0x490   :  { %7370 = vmatmul.mubr.bf16.gmra.mrb[208].mxu1 %v14388_v7  ;;  %6607 = vmatprep.mubr.bf16.mxu0 %v14389_v38  ;;  %v14393_v7 = vld [vmem:[#allocation115_spill] sm:$0xff]  ;;  %v14406_v22 = vld [vmem:[#allocation138_spill] sm:$0xff] }
 0x491   :  { %7379 = vmatprep.mubr.bf16.mxu1 %v14389_v38  ;;  %6735 = vmatpush1.bf16.msra.mxu0 %v9131_v54  ;;  %v9174_v54 = vcombine.high %v1972_v12, %v1976_v14  ;;  %v9173_v38 = vcombine.low %v1972_v12, %v1976_v14  ;;  %v14407_v8 = vld [vmem:[#allocation143_spill] sm:$0xff]  ;;  %v14408_v12 = vld [vmem:[#allocation142_spill] sm:$0xff] }
 0x492   :  { %7507 = vmatpush1.bf16.msra.mxu1 %v9133_v40  ;;  %6736 = vmatprep.subr.bf16.mxu0 %v9140_v19  ;;  %v1979_v40 = vld [vmem:[#allocation7 + $0xf90] sm:$0xff]  ;;  %v14409_v14 = vld [vmem:[#allocation147_spill] sm:$0xff] }
 0x493   :  { %7508 = vmatprep.subr.bf16.mxu1 %v9142_v10  ;;  %v1983_v19 = vld [vmem:[#allocation7 + $0xfb0] sm:$0xff]  ;;  %v1980_v10 = vld [vmem:[#allocation7 + $0xf98] sm:$0xff] }
 0x494   :  { %v9180_v46 = vcombine.high %v1979_v40, %v1983_v19  ;;  %v9182_v56 = vcombine.high %v1980_v10, %v1984_v18  ;;  %v9179_v58 = vcombine.low %v1979_v40, %v1983_v19  ;;  %v9181_v31 = vcombine.low %v1980_v10, %v1984_v18  ;;  %v14415_v40 = vld [vmem:[#allocation97_spill] sm:$0xff]  ;;  %v14416_v19 = vld [vmem:[#allocation96_spill] sm:$0xff] }
 0x495   :  { %6737 = vmatpush1.bf16.msra.mxu0 %v9139_v63  ;;  %v1987_v63 = vld [vmem:[#allocation7 + $0xfd0] sm:$0xff]  ;;  %v14418_v10 = vld [vmem:[#allocation100_spill] sm:$0xff]  ;;  %v14419_v18 = vld [vmem:[#allocation105_spill] sm:$0xff] }
 0x496   :  { %7509 = vmatpush1.bf16.msra.mxu1 %v9141_v24  ;;  %6738 = vmatprep.subr.bf16.mxu0 %v9148_v48  ;;  %v1991_v24 = vld [vmem:[#allocation7 + $0xff0] sm:$0xff]  ;;  %v1988_v48 = vld [vmem:[#allocation7 + $0xfd8] sm:$0xff] }
 0x497   :  { %6608 = vmatmul.mubr.bf16.gmra.mrb[212].mxu0 %v14390_v4  ;;  %7510 = vmatprep.subr.bf16.mxu1 %v9150_v39  ;;  %v1992_v39 = vld [vmem:[#allocation7 + $0xff8] sm:$0xff]  ;;  %v9188_v44 = vcombine.high %v1987_v63, %v1991_v24 }
 0x498   :  { %7380 = vmatmul.mubr.bf16.gmra.mrb[212].mxu1 %v14390_v4  ;;  %6617 = vmatprep.mubr.bf16.mxu0 %v14391_v60  ;;  %v9189_v4 = vcombine.low %v1988_v48, %v1992_v39 }
 0x499   :  { %7389 = vmatprep.mubr.bf16.mxu1 %v14391_v60  ;;  %6739 = vmatpush1.bf16.msra.mxu0 %v9147_v16  ;;  %v9190_v16 = vcombine.high %v1988_v48, %v1992_v39  ;;  %v14399_v60 = vld [vmem:[#allocation127_spill] sm:$0xff]  ;;  %v14426_v48 = vld [vmem:[#allocation116_spill] sm:$0xff]  ;;  %v14427_v39 = vld [vmem:[#allocation121_spill] sm:$0xff] }
 0x49a   :  { %7511 = vmatpush1.bf16.msra.mxu1 %v9149_v34  ;;  %6740 = vmatprep.subr.bf16.mxu0 %v9156_v5  ;;  %v14395_v34 = vld [vmem:[#allocation119_spill] sm:$0xff]  ;;  %v9187_v5 = vcombine.low %v1987_v63, %v1991_v24  ;;  %v14424_v63 = vld [vmem:[#allocation112_spill] sm:$0xff]  ;;  %v14425_v24 = vld [vmem:[#allocation117_spill] sm:$0xff] }
 0x49b   :  { %7512 = vmatprep.subr.bf16.mxu1 %v9158_v57  ;;  %v14396_v57 = vld [vmem:[#allocation118_spill] sm:$0xff] }
 0x49d   :  { %6741 = vmatpush1.bf16.msra.mxu0 %v9155_v1  ;;  %v14402_v1 = vld [vmem:[#allocation130_spill] sm:$0xff] }
 0x49e   :  { %7513 = vmatpush1.bf16.msra.mxu1 %v9157_v30  ;;  %6742 = vmatprep.subr.bf16.mxu0 %v9164_v47  ;;  %v14403_v30 = vld [vmem:[#allocation135_spill] sm:$0xff]  ;;  %v14404_v47 = vld [vmem:[#allocation134_spill] sm:$0xff] }
 0x49f   :  { %6618 = vmatmul.mubr.bf16.gmra.mrb[216].mxu0 %v14392_v50  ;;  %7514 = vmatprep.subr.bf16.mxu1 %v9166_v43  ;;  %v14405_v43 = vld [vmem:[#allocation139_spill] sm:$0xff] }
 0x4a0   :  { %7390 = vmatmul.mubr.bf16.gmra.mrb[216].mxu1 %v14392_v50  ;;  %6627 = vmatprep.mubr.bf16.mxu0 %v14393_v7  ;;  %v14413_v50 = vld [vmem:[#allocation93_spill] sm:$0xff] }
 0x4a1   :  { %7399 = vmatprep.mubr.bf16.mxu1 %v14393_v7  ;;  %6743 = vmatpush1.bf16.msra.mxu0 %v9163_v0  ;;  %v14410_v0 = vld [vmem:[#allocation146_spill] sm:$0xff]  ;;  %v14417_v7 = vld [vmem:[#allocation101_spill] sm:$0xff] }
 0x4a2   :  { %7515 = vmatpush1.bf16.msra.mxu1 %v9165_v29  ;;  %6744 = vmatprep.subr.bf16.mxu0 %v9172_v49  ;;  %v14411_v29 = vld [vmem:[#allocation89_spill] sm:$0xff]  ;;  %v14412_v49 = vld [vmem:[#allocation88_spill] sm:$0xff] }
 0x4a3   :  { %7516 = vmatprep.subr.bf16.mxu1 %v9174_v54  ;;  %v14414_v54 = vld [vmem:[#allocation92_spill] sm:$0xff] }
 0x4a5   :  { %6745 = vmatpush1.bf16.msra.mxu0 %v9171_v53  ;;  %v14420_v53 = vld [vmem:[#allocation104_spill] sm:$0xff] }
 0x4a6   :  { %7517 = vmatpush1.bf16.msra.mxu1 %v9173_v38  ;;  %6746 = vmatprep.subr.bf16.mxu0 %v9180_v46  ;;  %v14421_v38 = vld [vmem:[#allocation109_spill] sm:$0xff]  ;;  %v14422_v46 = vld [vmem:[#allocation108_spill] sm:$0xff] }
 0x4a7   :  { %6628 = vmatmul.mubr.bf16.gmra.mrb[220].mxu0 %v14394_v26  ;;  %7518 = vmatprep.subr.bf16.mxu1 %v9182_v56  ;;  %v14423_v56 = vld [vmem:[#allocation113_spill] sm:$0xff] }
 0x4a8   :  { %7400 = vmatmul.mubr.bf16.gmra.mrb[220].mxu1 %v14394_v26  ;;  %6637 = vmatprep.mubr.bf16.mxu0 %v14395_v34  ;;  %v14431_v26 = vld [vmem:[#allocation129_spill] sm:$0xff] }
 0x4a9   :  { %7409 = vmatprep.mubr.bf16.mxu1 %v14395_v34  ;;  %6747 = vmatpush1.bf16.msra.mxu0 %v9179_v58  ;;  %v14428_v58 = vld [vmem:[#allocation120_spill] sm:$0xff]  ;;  %v14433_v34 = vld [vmem:[#allocation133_spill] sm:$0xff] }
 0x4aa   :  { %7519 = vmatpush1.bf16.msra.mxu1 %v9181_v31  ;;  %6748 = vmatprep.subr.bf16.mxu0 %v9188_v44  ;;  %v14429_v31 = vld [vmem:[#allocation125_spill] sm:$0xff]  ;;  %v14430_v44 = vld [vmem:[#allocation124_spill] sm:$0xff] }
 0x4ab   :  { %7520 = vmatprep.subr.bf16.mxu1 %v9190_v16  ;;  %v14432_v16 = vld [vmem:[#allocation128_spill] sm:$0xff] }
 0x4ad   :  { %6749 = vmatpush1.bf16.msra.mxu0 %v9187_v5  ;;  %v14434_v5 = vld [vmem:[#allocation132_spill] sm:$0xff] }
 0x4ae   :  { %7521 = vmatpush1.bf16.msra.mxu1 %v9189_v4  ;;  %v14435_v4 = vld [vmem:[#allocation137_spill] sm:$0xff] }
 0x4af   :  { %6638 = vmatmul.mubr.bf16.gmra.mrb[224].mxu0 %v14396_v57 }
 0x4b0   :  { %7410 = vmatmul.mubr.bf16.gmra.mrb[224].mxu1 %v14396_v57  ;;  %6647 = vmatprep.mubr.bf16.mxu0 %v14397_v36  ;;  %v14436_v57 = vld [vmem:[#allocation136_spill] sm:$0xff] }
 0x4b1   :  { %7419 = vmatprep.mubr.bf16.mxu1 %v14397_v36  ;;  %v14437_v36 = vld [vmem:[#allocation141_spill] sm:$0xff] }
 0x4b7   :  { %6648 = vmatmul.mubr.bf16.gmra.mrb[228].mxu0 %v14398_v59 }
 0x4b8   :  { %7420 = vmatmul.mubr.bf16.gmra.mrb[228].mxu1 %v14398_v59  ;;  %6657 = vmatprep.mubr.bf16.mxu0 %v14399_v60  ;;  %v14438_v59 = vld [vmem:[#allocation140_spill] sm:$0xff] }
 0x4b9   :  { %7429 = vmatprep.mubr.bf16.mxu1 %v14399_v60  ;;  %v14439_v60 = vld [vmem:[#allocation145_spill] sm:$0xff] }
 0x4bf   :  { %6658 = vmatmul.mubr.bf16.gmra.mrb[232].mxu0 %v14400_v28 }
 0x4c0   :  { %7430 = vmatmul.mubr.bf16.gmra.mrb[232].mxu1 %v14400_v28  ;;  %6667 = vmatprep.mubr.bf16.mxu0 %v14401_v2  ;;  %v14440_v28 = vld [vmem:[#allocation144_spill] sm:$0xff] }
 0x4c1   :  { %7439 = vmatprep.mubr.bf16.mxu1 %v14401_v2  ;;  %v14441_v2 = vld [vmem:[#allocation149_spill] sm:$0xff] }
 0x4c7   :  { %6668 = vmatmul.mubr.bf16.gmra.mrb[236].mxu0 %v14402_v1 }
 0x4c8   :  { %7440 = vmatmul.mubr.bf16.gmra.mrb[236].mxu1 %v14402_v1  ;;  %6677 = vmatprep.mubr.bf16.mxu0 %v14403_v30  ;;  %v14442_v1 = vld [vmem:[#allocation148_spill] sm:$0xff] }
 0x4c9   :  { %7449 = vmatprep.mubr.bf16.mxu1 %v14403_v30  ;;  %v10224_v30 = vld [vmem:[#allocation8] sm:$0xff] }
 0x4cf   :  { %6678 = vmatmul.mubr.bf16.gmra.mrb[240].mxu0 %v14404_v47 }
 0x4d0   :  { %7450 = vmatmul.mubr.bf16.gmra.mrb[240].mxu1 %v14404_v47  ;;  %6687 = vmatprep.mubr.bf16.mxu0 %v14405_v43  ;;  %v14443_v47 = vld [vmem:[#allocation75_spill] sm:$0xff] }
 0x4d1   :  { %7459 = vmatprep.mubr.bf16.mxu1 %v14405_v43  ;;  %v13237_v43 = vrot.slane %v10224_v30, %v14443_v47 }
 0x4d7   :  { %6688 = vmatmul.mubr.bf16.gmra.mrb[244].mxu0 %v14406_v22 }
 0x4d8   :  { %7460 = vmatmul.mubr.bf16.gmra.mrb[244].mxu1 %v14406_v22  ;;  %6697 = vmatprep.mubr.bf16.mxu0 %v14407_v8  ;;  %v14444_v22 = vld [vmem:[#allocation80_spill] sm:$0xff] }
 0x4d9   :  { %7469 = vmatprep.mubr.bf16.mxu1 %v14407_v8  ;;  %v13240_v8 = vrot.slane %v10224_v30, %v14444_v22 }
 0x4df   :  { %6698 = vmatmul.mubr.bf16.gmra.mrb[248].mxu0 %v14408_v12 }
 0x4e0   :  { %7470 = vmatmul.mubr.bf16.gmra.mrb[248].mxu1 %v14408_v12  ;;  %6707 = vmatprep.mubr.bf16.mxu0 %v14409_v14  ;;  %v14445_v12 = vld [vmem:[#allocation78_spill] sm:$0xff] }
 0x4e1   :  { %7479 = vmatprep.mubr.bf16.mxu1 %v14409_v14  ;;  %v13243_v14 = vrot.slane %v10224_v30, %v14445_v12 }
 0x4e7   :  { %6708 = vmatmul.mubr.bf16.gmra.mrb[252].mxu0 %v14410_v0 }
 0x4e8   :  { %7480 = vmatmul.mubr.bf16.gmra.mrb[252].mxu1 %v14410_v0  ;;  %6750 = vmatprep.mubr.bf16.mxu0 %v14411_v29 }
 0x4e9   :  { %7522 = vmatprep.mubr.bf16.mxu1 %v14411_v29 }
 0x4ef   :  { %6751 = vmatmul.mubr.bf16.vlgmr.msra.gmra.mrb[192].mxu0 %v14412_v49 }
 0x4f0   :  { %7523 = vmatmul.mubr.bf16.vlgmr.msra.gmra.mrb[192].mxu1 %v14412_v49  ;;  %6760 = vmatprep.mubr.bf16.mxu0 %v14413_v50  ;;  %v10225_v49 = vld [vmem:[#allocation10] sm:$0xff] }
 0x4f1   :  { %7532 = vmatprep.mubr.bf16.mxu1 %v14413_v50  ;;  %v13247_v50 = vrot.slane %v10225_v49, %v14443_v47 }
 0x4f7   :  { %6761 = vmatmul.mubr.bf16.gmra.mrb[196].mxu0 %v14414_v54 }
 0x4f8   :  { %7533 = vmatmul.mubr.bf16.gmra.mrb[196].mxu1 %v14414_v54  ;;  %6770 = vmatprep.mubr.bf16.mxu0 %v14415_v40 }
 0x4f9   :  { %7542 = vmatprep.mubr.bf16.mxu1 %v14415_v40 }
 0x4ff   :  { %6771 = vmatmul.mubr.bf16.gmra.mrb[200].mxu0 %v14416_v19 }
 0x500   :  { %7543 = vmatmul.mubr.bf16.gmra.mrb[200].mxu1 %v14416_v19  ;;  %6780 = vmatprep.mubr.bf16.mxu0 %v14417_v7  ;;  %v14446_v19 = vld [vmem:[#allocation81_spill] sm:$0xff] }
 0x501   :  { %7552 = vmatprep.mubr.bf16.mxu1 %v14417_v7  ;;  %v13250_v7 = vrot.slane %v10224_v30, %v14446_v19  ;;  %v13271_v30 = vrot.slane %v10225_v49, %v14446_v19 }
 0x507   :  { %6781 = vmatmul.mubr.bf16.gmra.mrb[204].mxu0 %v14418_v10 }
 0x508   :  { %7553 = vmatmul.mubr.bf16.gmra.mrb[204].mxu1 %v14418_v10  ;;  %6790 = vmatprep.mubr.bf16.mxu0 %v14419_v18 }
 0x509   :  { %7562 = vmatprep.mubr.bf16.mxu1 %v14419_v18 }
 0x50f   :  { %6791 = vmatmul.mubr.bf16.gmra.mrb[208].mxu0 %v14420_v53 }
 0x510   :  { %7563 = vmatmul.mubr.bf16.gmra.mrb[208].mxu1 %v14420_v53  ;;  %6800 = vmatprep.mubr.bf16.mxu0 %v14421_v38  ;;  %v13255_v53 = vrot.slane %v10225_v49, %v14445_v12  ;;  %v14448_v12 = vld [vmem:[#allocation42_spill] sm:$0xff] }
 0x511   :  { %7572 = vmatprep.mubr.bf16.mxu1 %v14421_v38 }
 0x517   :  { %6801 = vmatmul.mubr.bf16.gmra.mrb[212].mxu0 %v14422_v46 }
 0x518   :  { %7573 = vmatmul.mubr.bf16.gmra.mrb[212].mxu1 %v14422_v46  ;;  %6810 = vmatprep.mubr.bf16.mxu0 %v14423_v56 }
 0x519   :  { %7582 = vmatprep.mubr.bf16.mxu1 %v14423_v56 }
 0x51f   :  { %6811 = vmatmul.mubr.bf16.gmra.mrb[216].mxu0 %v14424_v63 }
 0x520   :  { %7583 = vmatmul.mubr.bf16.gmra.mrb[216].mxu1 %v14424_v63  ;;  %6820 = vmatprep.mubr.bf16.mxu0 %v14425_v24 }
 0x521   :  { %7592 = vmatprep.mubr.bf16.mxu1 %v14425_v24 }
 0x527   :  { %6821 = vmatmul.mubr.bf16.gmra.mrb[220].mxu0 %v14426_v48 }
 0x528   :  { %7593 = vmatmul.mubr.bf16.gmra.mrb[220].mxu1 %v14426_v48  ;;  %6830 = vmatprep.mubr.bf16.mxu0 %v14427_v39 }
 0x529   :  { %7602 = vmatprep.mubr.bf16.mxu1 %v14427_v39  ;;  %v13259_v39 = vrot.slane %v10225_v49, %v14444_v22 }
 0x52f   :  { %6831 = vmatmul.mubr.bf16.gmra.mrb[224].mxu0 %v14428_v58 }
 0x530   :  { %7603 = vmatmul.mubr.bf16.gmra.mrb[224].mxu1 %v14428_v58  ;;  %6840 = vmatprep.mubr.bf16.mxu0 %v14429_v31 }
 0x531   :  { %7612 = vmatprep.mubr.bf16.mxu1 %v14429_v31 }
 0x537   :  { %6841 = vmatmul.mubr.bf16.gmra.mrb[228].mxu0 %v14430_v44 }
 0x538   :  { %7613 = vmatmul.mubr.bf16.gmra.mrb[228].mxu1 %v14430_v44  ;;  %6850 = vmatprep.mubr.bf16.mxu0 %v14431_v26 }
 0x539   :  { %7622 = vmatprep.mubr.bf16.mxu1 %v14431_v26 }
 0x53f   :  { %6851 = vmatmul.mubr.bf16.gmra.mrb[232].mxu0 %v14432_v16 }
 0x540   :  { %7623 = vmatmul.mubr.bf16.gmra.mrb[232].mxu1 %v14432_v16  ;;  %6860 = vmatprep.mubr.bf16.mxu0 %v14433_v34 }
 0x541   :  { %7632 = vmatprep.mubr.bf16.mxu1 %v14433_v34 }
 0x547   :  { %6861 = vmatmul.mubr.bf16.gmra.mrb[236].mxu0 %v14434_v5 }
 0x548   :  { %7633 = vmatmul.mubr.bf16.gmra.mrb[236].mxu1 %v14434_v5  ;;  %6870 = vmatprep.mubr.bf16.mxu0 %v14435_v4 }
 0x549   :  { %7642 = vmatprep.mubr.bf16.mxu1 %v14435_v4 }
 0x54f   :  { %6871 = vmatmul.mubr.bf16.gmra.mrb[240].mxu0 %v14436_v57 }
 0x550   :  { %7643 = vmatmul.mubr.bf16.gmra.mrb[240].mxu1 %v14436_v57  ;;  %6880 = vmatprep.mubr.bf16.mxu0 %v14437_v36 }
 0x551   :  { %7652 = vmatprep.mubr.bf16.mxu1 %v14437_v36 }
 0x557   :  { %6881 = vmatmul.mubr.bf16.gmra.mrb[244].mxu0 %v14438_v59 }
 0x558   :  { %7653 = vmatmul.mubr.bf16.gmra.mrb[244].mxu1 %v14438_v59  ;;  %6890 = vmatprep.mubr.bf16.mxu0 %v14439_v60 }
 0x559   :  { %7662 = vmatprep.mubr.bf16.mxu1 %v14439_v60  ;;  %v14447_v60 = vld [vmem:[#allocation39_spill] sm:$0xff] }
 0x55f   :  { %6891 = vmatmul.mubr.bf16.gmra.mrb[248].mxu0 %v14440_v28 }
 0x560   :  { %7663 = vmatmul.mubr.bf16.gmra.mrb[248].mxu1 %v14440_v28  ;;  %6900 = vmatprep.mubr.bf16.mxu0 %v14441_v2 }
 0x561   :  { %7672 = vmatprep.mubr.bf16.mxu1 %v14441_v2 }
 0x567   :  { %6901 = vmatmul.mubr.bf16.gmra.mrb[252].mxu0 %v14442_v1 }
 0x568   :  { %7673 = vmatmul.mubr.bf16.gmra.mrb[252].mxu1 %v14442_v1 }
 0x5c2   :  { %v6752_v0 = vpop.f32.mrb[192].mxu0 }
 0x5c3   :  { %v9319_v29 = vadd.f32 %v6752_v0, %v13237_v43  ;;  %v7524_v54 = vpop.f32.mrb[192].mxu1  ;;  %v6754_v40 = vpop.f32.mrb[193].mxu0 }
 0x5c4   :  { %v9383_v10 = vadd.f32 %v7524_v54, %v13240_v8  ;;  %v9320_v18 = vadd.f32 %v6754_v40, %v13243_v14  ;;  %v7526_v38 = vpop.f32.mrb[193].mxu1  ;;  %v6756_v46 = vpop.f32.mrb[194].mxu0 }
 0x5c5   :  { %v7687_v56 = vmax.f32 %v9319_v29, 0.0  ;;  %v9321_v63 = vadd.f32 %v6756_v46, %v13237_v43  ;;  %v7528_v24 = vpop.f32.mrb[194].mxu1  ;;  %v6758_v48 = vpop.f32.mrb[195].mxu0  ;;  %v9384_v34 = vadd.f32 %v7526_v38, %v13250_v7 }
 0x5c6   :  { %v7688_v58 = vmax.f32 %v9320_v18, 0.0  ;;  %v9322_v31 = vadd.f32 %v6758_v48, %v13243_v14  ;;  %v7530_v44 = vpop.f32.mrb[195].mxu1  ;;  %v7689_v16 = vmax.f32 %v9383_v10, 0.0  ;;  %v9385_v57 = vadd.f32 %v7528_v24, %v13240_v8 }
 0x5c7   :  { %v7985_v26 = vmul.f32 %v13247_v50, %v7687_v56  ;;  %v7695_v5 = vmax.f32 %v9321_v63, 0.0  ;;  %v9386_v59 = vadd.f32 %v7530_v44, %v13250_v7  ;;  %v7690_v22 = vmax.f32 %v9384_v34, 0.0 }
 0x5c8   :  { %v7986_v4 = vmul.f32 %v13255_v53, %v7688_v58  ;;  %v7696_v36 = vmax.f32 %v9322_v31, 0.0  ;;  %v7987_v18 = vmul.f32 %v13259_v39, %v7689_v16  ;;  %v7697_v38 = vmax.f32 %v9385_v57, 0.0 }
 0x5c9   :  { %v8240_v28 = vadd.f32 %v14447_v60, %v7985_v26  ;;  %v7993_v2 = vmul.f32 %v13247_v50, %v7695_v5  ;;  %v7698_v46 = vmax.f32 %v9386_v59, 0.0  ;;  %v7988_v60 = vmul.f32 %v13271_v30, %v7690_v22  ;;  %v14450_v22 = vld [vmem:[#allocation50_spill] sm:$0xff] }
 0x5ca   :  { %v7994_v1 = vmul.f32 %v13255_v53, %v7696_v36  ;;  %v6762_v47 = vpop.f32.mrb[196].mxu0 }
 0x5cb   :  { %v8249_v0 = vadd.f32 %v14448_v12, %v7993_v2  ;;  %v9323_v29 = vadd.f32 %v6762_v47, %v13237_v43  ;;  %v7534_v54 = vpop.f32.mrb[196].mxu1  ;;  %v6764_v40 = vpop.f32.mrb[197].mxu0  ;;  %v8241_v10 = vadd.f32 %v8240_v28, %v7986_v4  ;;  %v7995_v28 = vmul.f32 %v13259_v39, %v7697_v38  ;;  %v14449_v12 = vld [vmem:[#allocation47_spill] sm:$0xff] }
 0x5cc   :  { %v9324_v56 = vadd.f32 %v6764_v40, %v13243_v14  ;;  %v7536_v63 = vpop.f32.mrb[197].mxu1  ;;  %v6766_v24 = vpop.f32.mrb[198].mxu0  ;;  %v9387_v19 = vadd.f32 %v7534_v54, %v13240_v8  ;;  %v7996_v2 = vmul.f32 %v13271_v30, %v7698_v46 }
 0x5cd   :  { %v8250_v48 = vadd.f32 %v8249_v0, %v7994_v1  ;;  %v7703_v49 = vmax.f32 %v9323_v29, 0.0  ;;  %v9325_v58 = vadd.f32 %v6766_v24, %v13237_v43  ;;  %v7538_v31 = vpop.f32.mrb[198].mxu1  ;;  %v6768_v44 = vpop.f32.mrb[199].mxu0  ;;  %v9388_v34 = vadd.f32 %v7536_v63, %v13250_v7 }
 0x5ce   :  { %v7704_v26 = vmax.f32 %v9324_v56, 0.0  ;;  %v9389_v5 = vadd.f32 %v7538_v31, %v13240_v8  ;;  %v9326_v16 = vadd.f32 %v6768_v44, %v13243_v14  ;;  %v7540_v4 = vpop.f32.mrb[199].mxu1  ;;  %v7705_v29 = vmax.f32 %v9387_v19, 0.0 }
 0x5cf   :  { %v8001_v57 = vmul.f32 %v13247_v50, %v7703_v49  ;;  %v7711_v36 = vmax.f32 %v9325_v58, 0.0  ;;  %v9390_v59 = vadd.f32 %v7540_v4, %v13250_v7  ;;  %v8242_v40 = vadd.f32 %v8241_v10, %v7987_v18 }
 0x5d0   :  { %v8002_v1 = vmul.f32 %v13255_v53, %v7704_v26  ;;  %v7712_v47 = vmax.f32 %v9326_v16, 0.0  ;;  %v7706_v56 = vmax.f32 %v9388_v34, 0.0  ;;  %v7713_v63 = vmax.f32 %v9389_v5, 0.0 }
 0x5d1   :  { %v8258_v0 = vadd.f32 %v14449_v12, %v8001_v57  ;;  %v8009_v54 = vmul.f32 %v13247_v50, %v7711_v36  ;;  %v8251_v58 = vadd.f32 %v8250_v48, %v7995_v28  ;;  %v7714_v38 = vmax.f32 %v9390_v59, 0.0 }
 0x5d2   :  { %v8010_v24 = vmul.f32 %v13255_v53, %v7712_v47  ;;  %v6772_v49 = vpop.f32.mrb[200].mxu0  ;;  %v8243_v44 = vadd.f32 %v8242_v40, %v7988_v60  ;;  %v8003_v47 = vmul.f32 %v13259_v39, %v7705_v29  ;;  %v8004_v29 = vmul.f32 %v13271_v30, %v7706_v56 }
 0x5d3   :  { %v8267_v31 = vadd.f32 %v14450_v22, %v8009_v54  ;;  %v9327_v46 = vadd.f32 %v6772_v49, %v13237_v43  ;;  %v7544_v26 = vpop.f32.mrb[200].mxu1  ;;  %v6774_v16 = vpop.f32.mrb[201].mxu0  ;;  %v8252_v18 = vadd.f32 %v8251_v58, %v7996_v2  ;;  %v8259_v34 = vadd.f32 %v8258_v0, %v8002_v1 }
 0x5d4   :  { %v9391_v4 = vadd.f32 %v7544_v26, %v13240_v8  ;;  %v9328_v19 = vadd.f32 %v6774_v16, %v13243_v14  ;;  %v7546_v57 = vpop.f32.mrb[201].mxu1  ;;  %v6776_v10 = vpop.f32.mrb[202].mxu0  ;;  %8244 = vadd.xlane.f32.xlu0 %v8243_v44  ;;  %v8011_v2 = vmul.f32 %v13259_v39, %v7713_v63  ;;  %v8012_v58 = vmul.f32 %v13271_v30, %v7714_v38  ;;  %v14451_v44 = vld [vmem:[#allocation55_spill] sm:$0xff]  ;;  %v14452_v38 = vld [vmem:[#allocation14_spill] sm:$0xff] }
 0x5d5   :  { %v8268_v5 = vadd.f32 %v8267_v31, %v8010_v24  ;;  %v7719_v36 = vmax.f32 %v9327_v46, 0.0  ;;  %v9392_v48 = vadd.f32 %v7546_v57, %v13250_v7  ;;  %v9329_v59 = vadd.f32 %v6776_v10, %v13237_v43  ;;  %v7548_v60 = vpop.f32.mrb[202].mxu1  ;;  %v6778_v28 = vpop.f32.mrb[203].mxu0 }
 0x5d6   :  { %v7720_v12 = vmax.f32 %v9328_v19, 0.0  ;;  %v9393_v54 = vadd.f32 %v7548_v60, %v13240_v8  ;;  %v9330_v40 = vadd.f32 %v6778_v28, %v13243_v14  ;;  %v7550_v49 = vpop.f32.mrb[203].mxu1  ;;  %v7721_v26 = vmax.f32 %v9391_v4, 0.0 }
 0x5d7   :  { %v8017_v1 = vmul.f32 %v13247_v50, %v7719_v36  ;;  %v7727_v0 = vmax.f32 %v9329_v59, 0.0  ;;  %v9394_v24 = vadd.f32 %v7550_v49, %v13250_v7  ;;  %v7722_v16 = vmax.f32 %v9392_v48, 0.0 }
 0x5d8   :  { %v8018_v22 = vmul.f32 %v13255_v53, %v7720_v12  ;;  %v7728_v31 = vmax.f32 %v9330_v40, 0.0  ;;  %8253 = vadd.xlane.f32.xlu0 %v8252_v18  ;;  %v7729_v63 = vmax.f32 %v9393_v54, 0.0  ;;  %v8260_v10 = vadd.f32 %v8259_v34, %v8003_v47 }
 0x5d9   :  { %v8276_v46 = vadd.f32 %v14451_v44, %v8017_v1  ;;  %v8025_v19 = vmul.f32 %v13247_v50, %v7727_v0  ;;  %v8269_v59 = vadd.f32 %v8268_v5, %v8011_v2  ;;  %v7730_v12 = vmax.f32 %v9394_v24, 0.0 }
 0x5da   :  { %v8026_v57 = vmul.f32 %v13255_v53, %v7728_v31  ;;  %v6782_v36 = vpop.f32.mrb[204].mxu0  ;;  %v8261_v1 = vadd.f32 %v8260_v10, %v8004_v29  ;;  %v8020_v10 = vmul.f32 %v13271_v30, %v7722_v16 }
 0x5db   :  { %v8277_v60 = vadd.f32 %v8276_v46, %v8018_v22  ;;  %v8285_v28 = vadd.f32 %v14452_v38, %v8025_v19  ;;  %v9331_v40 = vadd.f32 %v6782_v36, %v13237_v43  ;;  %v7554_v56 = vpop.f32.mrb[204].mxu1  ;;  %v6784_v49 = vpop.f32.mrb[205].mxu0  ;;  %v8270_v0 = vadd.f32 %v8269_v59, %v8012_v58 }
 0x5dc   :  { %v9395_v4 = vadd.f32 %v7554_v56, %v13240_v8  ;;  %v9332_v48 = vadd.f32 %v6784_v49, %v13243_v14  ;;  %v7556_v18 = vpop.f32.mrb[205].mxu1  ;;  %v6786_v54 = vpop.f32.mrb[206].mxu0  ;;  %v8019_v22 = vmul.f32 %v13259_v39, %v7721_v26  ;;  %8262 = vadd.xlane.f32.xlu1 %v8261_v1  ;;  %v8027_v59 = vmul.f32 %v13259_v39, %v7729_v63  ;;  %v14454_v63 = vld [vmem:[#allocation58_spill] sm:$0xff] }
 0x5dd   :  { %v8286_v31 = vadd.f32 %v8285_v28, %v8026_v57  ;;  %v7735_v34 = vmax.f32 %v9331_v40, 0.0  ;;  %v9396_v5 = vadd.f32 %v7556_v18, %v13250_v7  ;;  %v9333_v47 = vadd.f32 %v6786_v54, %v13237_v43  ;;  %v7558_v2 = vpop.f32.mrb[206].mxu1  ;;  %v6788_v24 = vpop.f32.mrb[207].mxu0  ;;  %v14453_v40 = vld [vmem:[#allocation16_spill] sm:$0xff] }
 0x5de   :  { %v7736_v44 = vmax.f32 %v9332_v48, 0.0  ;;  %v9397_v29 = vadd.f32 %v7558_v2, %v13240_v8  ;;  %v9334_v46 = vadd.f32 %v6788_v24, %v13243_v14  ;;  %v7560_v19 = vpop.f32.mrb[207].mxu1  ;;  %v8028_v38 = vmul.f32 %v13271_v30, %v7730_v12 }
 0x5df   :  { %v8033_v58 = vmul.f32 %v13247_v50, %v7735_v34  ;;  %v7743_v57 = vmax.f32 %v9333_v47, 0.0  ;;  %v9398_v36 = vadd.f32 %v7560_v19, %v13250_v7  ;;  %v7737_v49 = vmax.f32 %v9395_v4, 0.0 }
 0x5e0   :  { %v8034_v26 = vmul.f32 %v13255_v53, %v7736_v44  ;;  %v7744_v28 = vmax.f32 %v9334_v46, 0.0  ;;  %v7738_v1 = vmax.f32 %v9396_v5, 0.0  ;;  %v7745_v18 = vmax.f32 %v9397_v29, 0.0  ;;  %8271 = vadd.xlane.f32.xlu1 %v8270_v0 }
 0x5e1   :  { %v8294_v56 = vadd.f32 %v14453_v40, %v8033_v58  ;;  %v8041_v48 = vmul.f32 %v13247_v50, %v7743_v57  ;;  %v8278_v54 = vadd.f32 %v8277_v60, %v8019_v22  ;;  %v8287_v47 = vadd.f32 %v8286_v31, %v8027_v59 }
 0x5e2   :  { %v8042_v16 = vmul.f32 %v13255_v53, %v7744_v28  ;;  %v6792_v34 = vpop.f32.mrb[208].mxu0  ;;  %v7746_v12 = vmax.f32 %v9398_v36, 0.0 }
 0x5e3   :  { %v8295_v2 = vadd.f32 %v8294_v56, %v8034_v26  ;;  %v8303_v24 = vadd.f32 %v14454_v63, %v8041_v48  ;;  %v9335_v44 = vadd.f32 %v6792_v34, %v13237_v43  ;;  %v7564_v46 = vpop.f32.mrb[208].mxu1  ;;  %v6794_v19 = vpop.f32.mrb[209].mxu0  ;;  %v8279_v58 = vadd.f32 %v8278_v54, %v8020_v10 }
 0x5e4   :  { %v9399_v4 = vadd.f32 %v7564_v46, %v13240_v8  ;;  %v9336_v5 = vadd.f32 %v6794_v19, %v13243_v14  ;;  %v7566_v29 = vpop.f32.mrb[209].mxu1  ;;  %v8288_v57 = vadd.f32 %v8287_v47, %v8028_v38  ;;  %v6796_v28 = vpop.f32.mrb[210].mxu0  ;;  %v8035_v26 = vmul.f32 %v13259_v39, %v7737_v49 }
 0x5e5   :  { %v8304_v0 = vadd.f32 %v8303_v24, %v8042_v16  ;;  %v7751_v60 = vmax.f32 %v9335_v44, 0.0  ;;  %v9400_v31 = vadd.f32 %v7566_v29, %v13250_v7  ;;  %v9337_v22 = vadd.f32 %v6796_v28, %v13237_v43  ;;  %v7568_v59 = vpop.f32.mrb[210].mxu1  ;;  %v6798_v36 = vpop.f32.mrb[211].mxu0  ;;  %8280 = vadd.xlane.f32.xlu0 %v8279_v58 }
 0x5e6   :  { %v7752_v40 = vmax.f32 %v9336_v5, 0.0  ;;  %8289 = vadd.xlane.f32.xlu1 %v8288_v57  ;;  %v9401_v10 = vadd.f32 %v7568_v59, %v13240_v8  ;;  %v9338_v56 = vadd.f32 %v6798_v36, %v13243_v14  ;;  %v7570_v48 = vpop.f32.mrb[211].mxu1  ;;  %v8036_v38 = vmul.f32 %v13271_v30, %v7738_v1 }
 0x5e7   :  { %v8049_v16 = vmul.f32 %v13247_v50, %v7751_v60  ;;  %v7759_v54 = vmax.f32 %v9337_v22, 0.0  ;;  %v9402_v34 = vadd.f32 %v7570_v48, %v13250_v7  ;;  %v8043_v47 = vmul.f32 %v13259_v39, %v7745_v18 }
 0x5e8   :  { %v8044_v63 = vmul.f32 %v13271_v30, %v7746_v12  ;;  %v8050_v49 = vmul.f32 %v13255_v53, %v7752_v40  ;;  %v7760_v24 = vmax.f32 %v9338_v56, 0.0  ;;  %v7753_v46 = vmax.f32 %v9399_v4, 0.0 }
 0x5e9   :  { %v8312_v44 = vadd.f32 %v12566_v45, %v8049_v16  ;;  %v7754_v19 = vmax.f32 %v9400_v31, 0.0  ;;  %v8057_v58 = vmul.f32 %v13247_v50, %v7759_v54  ;;  %v7761_v5 = vmax.f32 %v9401_v10, 0.0 }
 0x5ea   :  { %v8058_v1 = vmul.f32 %v13255_v53, %v7760_v24  ;;  %v8296_v29 = vadd.f32 %v8295_v2, %v8035_v26  ;;  %v6802_v57 = vpop.f32.mrb[212].mxu0  ;;  %v8305_v28 = vadd.f32 %v8304_v0, %v8043_v47  ;;  %v7762_v22 = vmax.f32 %v9402_v34, 0.0 }
 0x5eb   :  { %v8313_v60 = vadd.f32 %v8312_v44, %v8050_v49  ;;  %v8321_v18 = vadd.f32 %v12587_v55, %v8057_v58  ;;  %v9339_v12 = vadd.f32 %v6802_v57, %v13237_v43  ;;  %v7574_v59 = vpop.f32.mrb[212].mxu1  ;;  %v6804_v36 = vpop.f32.mrb[213].mxu0  ;;  %v8051_v54 = vmul.f32 %v13259_v39, %v7753_v46 }
 0x5ec   :  { %v8297_v40 = vadd.f32 %v8296_v29, %v8036_v38  ;;  %v9403_v45 = vadd.f32 %v7574_v59, %v13240_v8  ;;  %v9340_v4 = vadd.f32 %v6804_v36, %v13243_v14  ;;  %v7576_v31 = vpop.f32.mrb[213].mxu1  ;;  %v8306_v10 = vadd.f32 %v8305_v28, %v8044_v63  ;;  %v6806_v56 = vpop.f32.mrb[214].mxu0 }
 0x5ed   :  { %v8322_v48 = vadd.f32 %v8321_v18, %v8058_v1  ;;  %v7767_v2 = vmax.f32 %v9339_v12, 0.0  ;;  %v9404_v0 = vadd.f32 %v7576_v31, %v13250_v7  ;;  %v9341_v26 = vadd.f32 %v6806_v56, %v13237_v43  ;;  %v7578_v55 = vpop.f32.mrb[214].mxu1  ;;  %v6808_v16 = vpop.f32.mrb[215].mxu0 }
 0x5ee   :  { %8298 = vadd.xlane.f32.xlu0 %v8297_v40  ;;  %v7768_v34 = vmax.f32 %v9340_v4, 0.0  ;;  %8307 = vadd.xlane.f32.xlu1 %v8306_v10  ;;  %v9405_v38 = vadd.f32 %v7578_v55, %v13240_v8  ;;  %v9342_v47 = vadd.f32 %v6808_v16, %v13243_v14  ;;  %v7580_v49 = vpop.f32.mrb[215].mxu1  ;;  %v8052_v63 = vmul.f32 %v13271_v30, %v7754_v19 }
 0x5ef   :  { %v8065_v24 = vmul.f32 %v13247_v50, %v7767_v2  ;;  %v7775_v44 = vmax.f32 %v9341_v26, 0.0  ;;  %v9406_v58 = vadd.f32 %v7580_v49, %v13250_v7  ;;  %v8059_v1 = vmul.f32 %v13259_v39, %v7761_v5 }
 0x5f0   :  { %v8060_v29 = vmul.f32 %v13271_v30, %v7762_v22  ;;  %v8066_v46 = vmul.f32 %v13255_v53, %v7768_v34  ;;  %v7776_v57 = vmax.f32 %v9342_v47, 0.0  ;;  %v7769_v18 = vmax.f32 %v9403_v45, 0.0 }
 0x5f1   :  { %v8330_v28 = vadd.f32 %v12613_v11, %v8065_v24  ;;  %v7770_v12 = vmax.f32 %v9404_v0, 0.0  ;;  %v8073_v59 = vmul.f32 %v13247_v50, %v7775_v44  ;;  %v7777_v36 = vmax.f32 %v9405_v38, 0.0 }
 0x5f2   :  { %v8074_v19 = vmul.f32 %v13255_v53, %v7776_v57  ;;  %v8314_v40 = vadd.f32 %v8313_v60, %v8051_v54  ;;  %v6812_v4 = vpop.f32.mrb[216].mxu0  ;;  %v8323_v31 = vadd.f32 %v8322_v48, %v8059_v1  ;;  %v7778_v56 = vmax.f32 %v9406_v58, 0.0 }
 0x5f3   :  { %v8331_v10 = vadd.f32 %v8330_v28, %v8066_v46  ;;  %v8339_v5 = vadd.f32 %v12641_v32, %v8073_v59  ;;  %v9343_v22 = vadd.f32 %v6812_v4, %v13237_v43  ;;  %v7584_v2 = vpop.f32.mrb[216].mxu1  ;;  %v6814_v26 = vpop.f32.mrb[217].mxu0  ;;  %v8067_v49 = vmul.f32 %v13259_v39, %v7769_v18 }
 0x5f4   :  { %v8315_v55 = vadd.f32 %v8314_v40, %v8052_v63  ;;  %v9407_v11 = vadd.f32 %v7584_v2, %v13240_v8  ;;  %v9344_v45 = vadd.f32 %v6814_v26, %v13243_v14  ;;  %v7586_v0 = vpop.f32.mrb[217].mxu1  ;;  %v8324_v16 = vadd.f32 %v8323_v31, %v8060_v29  ;;  %v6816_v34 = vpop.f32.mrb[218].mxu0 }
 0x5f5   :  { %v8340_v38 = vadd.f32 %v8339_v5, %v8074_v19  ;;  %v7783_v60 = vmax.f32 %v9343_v22, 0.0  ;;  %v9408_v48 = vadd.f32 %v7586_v0, %v13250_v7  ;;  %v9345_v54 = vadd.f32 %v6816_v34, %v13237_v43  ;;  %v7588_v32 = vpop.f32.mrb[218].mxu1  ;;  %v6818_v47 = vpop.f32.mrb[219].mxu0 }
 0x5f6   :  { %8316 = vadd.xlane.f32.xlu0 %v8315_v55  ;;  %v7784_v24 = vmax.f32 %v9344_v45, 0.0  ;;  %8325 = vadd.xlane.f32.xlu1 %v8324_v16  ;;  %v9409_v63 = vadd.f32 %v7588_v32, %v13240_v8  ;;  %v9346_v44 = vadd.f32 %v6818_v47, %v13243_v14  ;;  %v7590_v58 = vpop.f32.mrb[219].mxu1  ;;  %v8068_v1 = vmul.f32 %v13271_v30, %v7770_v12 }
 0x5f7   :  { %v8081_v29 = vmul.f32 %v13247_v50, %v7783_v60  ;;  %v7791_v46 = vmax.f32 %v9345_v54, 0.0  ;;  %v9410_v57 = vadd.f32 %v7590_v58, %v13250_v7  ;;  %v8075_v28 = vmul.f32 %v13259_v39, %v7777_v36 }
 0x5f8   :  { %v8076_v59 = vmul.f32 %v13271_v30, %v7778_v56  ;;  %v8082_v18 = vmul.f32 %v13255_v53, %v7784_v24  ;;  %v7792_v19 = vmax.f32 %v9346_v44, 0.0  ;;  %v7785_v4 = vmax.f32 %v9407_v11, 0.0 }
 0x5f9   :  { %v8348_v40 = vadd.f32 %v12666_v42, %v8081_v29  ;;  %v7786_v31 = vmax.f32 %v9408_v48, 0.0  ;;  %v8089_v5 = vmul.f32 %v13247_v50, %v7791_v46  ;;  %v7793_v22 = vmax.f32 %v9409_v63, 0.0 }
 0x5fa   :  { %v8090_v12 = vmul.f32 %v13255_v53, %v7792_v19  ;;  %v8332_v2 = vadd.f32 %v8331_v10, %v8067_v49  ;;  %v6822_v26 = vpop.f32.mrb[220].mxu0  ;;  %v8341_v55 = vadd.f32 %v8340_v38, %v8075_v28  ;;  %v7794_v0 = vmax.f32 %v9410_v57, 0.0 }
 0x5fb   :  { %v8349_v45 = vadd.f32 %v8348_v40, %v8082_v18  ;;  %v8357_v36 = vadd.f32 %v12694_v25, %v8089_v5  ;;  %v9347_v56 = vadd.f32 %v6822_v26, %v13237_v43  ;;  %v7594_v16 = vpop.f32.mrb[220].mxu1  ;;  %v6824_v34 = vpop.f32.mrb[221].mxu0  ;;  %v8083_v63 = vmul.f32 %v13259_v39, %v7785_v4 }
 0x5fc   :  { %v8333_v60 = vadd.f32 %v8332_v2, %v8068_v1  ;;  %v9411_v42 = vadd.f32 %v7594_v16, %v13240_v8  ;;  %v9348_v11 = vadd.f32 %v6824_v34, %v13243_v14  ;;  %v7596_v48 = vpop.f32.mrb[221].mxu1  ;;  %v8342_v54 = vadd.f32 %v8341_v55, %v8076_v59  ;;  %v6826_v32 = vpop.f32.mrb[222].mxu0 }
 0x5fd   :  { %v8358_v47 = vadd.f32 %v8357_v36, %v8090_v12  ;;  %v7799_v10 = vmax.f32 %v9347_v56, 0.0  ;;  %v9412_v38 = vadd.f32 %v7596_v48, %v13250_v7  ;;  %v9349_v49 = vadd.f32 %v6826_v32, %v13237_v43  ;;  %v7598_v25 = vpop.f32.mrb[222].mxu1  ;;  %v6828_v24 = vpop.f32.mrb[223].mxu0 }
 0x5fe   :  { %8334 = vadd.xlane.f32.xlu0 %v8333_v60  ;;  %v7800_v44 = vmax.f32 %v9348_v11, 0.0  ;;  %8343 = vadd.xlane.f32.xlu1 %v8342_v54  ;;  %v9413_v58 = vadd.f32 %v7598_v25, %v13240_v8  ;;  %v9350_v1 = vadd.f32 %v6828_v24, %v13243_v14  ;;  %v7600_v29 = vpop.f32.mrb[223].mxu1  ;;  %v8084_v46 = vmul.f32 %v13271_v30, %v7786_v31 }
 0x5ff   :  { %v8097_v57 = vmul.f32 %v13247_v50, %v7799_v10  ;;  %v7807_v28 = vmax.f32 %v9349_v49, 0.0  ;;  %v9414_v59 = vadd.f32 %v7600_v29, %v13250_v7  ;;  %v8091_v18 = vmul.f32 %v13259_v39, %v7793_v22 }
 0x600   :  { %v8092_v19 = vmul.f32 %v13271_v30, %v7794_v0  ;;  %v8098_v40 = vmul.f32 %v13255_v53, %v7800_v44  ;;  %v7808_v4 = vmax.f32 %v9350_v1, 0.0  ;;  %v7801_v12 = vmax.f32 %v9411_v42, 0.0 }
 0x601   :  { %v8366_v5 = vadd.f32 %v12722_v27, %v8097_v57  ;;  %v7802_v2 = vmax.f32 %v9412_v38, 0.0  ;;  %v8105_v26 = vmul.f32 %v13247_v50, %v7807_v28  ;;  %v7809_v55 = vmax.f32 %v9413_v58, 0.0 }
 0x602   :  { %v8106_v31 = vmul.f32 %v13255_v53, %v7808_v4  ;;  %v8350_v36 = vadd.f32 %v8349_v45, %v8083_v63  ;;  %v6832_v56 = vpop.f32.mrb[224].mxu0  ;;  %v8359_v16 = vadd.f32 %v8358_v47, %v8091_v18  ;;  %v7810_v60 = vmax.f32 %v9414_v59, 0.0 }
 0x603   :  { %v8367_v34 = vadd.f32 %v8366_v5, %v8098_v40  ;;  %v8375_v22 = vadd.f32 %v12747_v41, %v8105_v26  ;;  %v9351_v0 = vadd.f32 %v6832_v56, %v13237_v43  ;;  %v7604_v11 = vpop.f32.mrb[224].mxu1  ;;  %v6834_v48 = vpop.f32.mrb[225].mxu0  ;;  %v8099_v63 = vmul.f32 %v13259_v39, %v7801_v12 }
 0x604   :  { %v8351_v54 = vadd.f32 %v8350_v36, %v8084_v46  ;;  %v9415_v27 = vadd.f32 %v7604_v11, %v13240_v8  ;;  %v9352_v42 = vadd.f32 %v6834_v48, %v13243_v14  ;;  %v7606_v32 = vpop.f32.mrb[225].mxu1  ;;  %v8360_v10 = vadd.f32 %v8359_v16, %v8092_v19  ;;  %v6836_v38 = vpop.f32.mrb[226].mxu0 }
 0x605   :  { %v8376_v49 = vadd.f32 %v8375_v22, %v8106_v31  ;;  %v7815_v45 = vmax.f32 %v9351_v0, 0.0  ;;  %v9416_v47 = vadd.f32 %v7606_v32, %v13250_v7  ;;  %v9353_v25 = vadd.f32 %v6836_v38, %v13237_v43  ;;  %v7608_v41 = vpop.f32.mrb[226].mxu1  ;;  %v6838_v24 = vpop.f32.mrb[227].mxu0 }
 0x606   :  { %8352 = vadd.xlane.f32.xlu0 %v8351_v54  ;;  %v7816_v44 = vmax.f32 %v9352_v42, 0.0  ;;  %8361 = vadd.xlane.f32.xlu1 %v8360_v10  ;;  %v9417_v58 = vadd.f32 %v7608_v41, %v13240_v8  ;;  %v9354_v1 = vadd.f32 %v6838_v24, %v13243_v14  ;;  %v7610_v29 = vpop.f32.mrb[227].mxu1  ;;  %v8100_v46 = vmul.f32 %v13271_v30, %v7802_v2 }
 0x607   :  { %v8113_v57 = vmul.f32 %v13247_v50, %v7815_v45  ;;  %v7823_v28 = vmax.f32 %v9353_v25, 0.0  ;;  %v9418_v59 = vadd.f32 %v7610_v29, %v13250_v7  ;;  %v8107_v18 = vmul.f32 %v13259_v39, %v7809_v55 }
 0x608   :  { %v8108_v19 = vmul.f32 %v13271_v30, %v7810_v60  ;;  %v8114_v40 = vmul.f32 %v13255_v53, %v7816_v44  ;;  %v7824_v4 = vmax.f32 %v9354_v1, 0.0  ;;  %v7817_v12 = vmax.f32 %v9415_v27, 0.0 }
 0x609   :  { %v8384_v5 = vadd.f32 %v12778_v37, %v8113_v57  ;;  %v7818_v26 = vmax.f32 %v9416_v47, 0.0  ;;  %v8121_v31 = vmul.f32 %v13247_v50, %v7823_v28  ;;  %v7825_v36 = vmax.f32 %v9417_v58, 0.0 }
 0x60a   :  { %v8122_v2 = vmul.f32 %v13255_v53, %v7824_v4  ;;  %v8368_v56 = vadd.f32 %v8367_v34, %v8099_v63  ;;  %v6842_v16 = vpop.f32.mrb[228].mxu0  ;;  %v8377_v22 = vadd.f32 %v8376_v49, %v8107_v18  ;;  %v7826_v11 = vmax.f32 %v9418_v59, 0.0 }
 0x60b   :  { %v8385_v0 = vadd.f32 %v8384_v5, %v8114_v40  ;;  %v8393_v55 = vadd.f32 %v12800_v9, %v8121_v31  ;;  %v9355_v60 = vadd.f32 %v6842_v16, %v13237_v43  ;;  %v7614_v48 = vpop.f32.mrb[228].mxu1  ;;  %v6844_v54 = vpop.f32.mrb[229].mxu0  ;;  %v8115_v41 = vmul.f32 %v13259_v39, %v7817_v12 }
 0x60c   :  { %v8369_v42 = vadd.f32 %v8368_v56, %v8100_v46  ;;  %v9419_v37 = vadd.f32 %v7614_v48, %v13240_v8  ;;  %v9356_v27 = vadd.f32 %v6844_v54, %v13243_v14  ;;  %v7616_v32 = vpop.f32.mrb[229].mxu1  ;;  %v8378_v10 = vadd.f32 %v8377_v22, %v8108_v19  ;;  %v6846_v38 = vpop.f32.mrb[230].mxu0 }
 0x60d   :  { %v8394_v45 = vadd.f32 %v8393_v55, %v8122_v2  ;;  %v7831_v34 = vmax.f32 %v9355_v60, 0.0  ;;  %v9420_v49 = vadd.f32 %v7616_v32, %v13250_v7  ;;  %v9357_v47 = vadd.f32 %v6846_v38, %v13237_v43  ;;  %v7618_v9 = vpop.f32.mrb[230].mxu1  ;;  %v6848_v25 = vpop.f32.mrb[231].mxu0 }
 0x60e   :  { %8370 = vadd.xlane.f32.xlu0 %v8369_v42  ;;  %v7832_v24 = vmax.f32 %v9356_v27, 0.0  ;;  %8379 = vadd.xlane.f32.xlu1 %v8378_v10  ;;  %v9421_v63 = vadd.f32 %v7618_v9, %v13240_v8  ;;  %v9358_v44 = vadd.f32 %v6848_v25, %v13243_v14  ;;  %v7620_v58 = vpop.f32.mrb[231].mxu1  ;;  %v8116_v1 = vmul.f32 %v13271_v30, %v7818_v26 }
 0x60f   :  { %v8129_v29 = vmul.f32 %v13247_v50, %v7831_v34  ;;  %v7839_v46 = vmax.f32 %v9357_v47, 0.0  ;;  %v9422_v57 = vadd.f32 %v7620_v58, %v13250_v7  ;;  %v8123_v28 = vmul.f32 %v13259_v39, %v7825_v36 }
 0x610   :  { %v8124_v59 = vmul.f32 %v13271_v30, %v7826_v11  ;;  %v8130_v18 = vmul.f32 %v13255_v53, %v7832_v24  ;;  %v7840_v19 = vmax.f32 %v9358_v44, 0.0  ;;  %v7833_v4 = vmax.f32 %v9419_v37, 0.0 }
 0x611   :  { %v8402_v40 = vadd.f32 %v12828_v61, %v8129_v29  ;;  %v7834_v5 = vmax.f32 %v9420_v49, 0.0  ;;  %v8137_v12 = vmul.f32 %v13247_v50, %v7839_v46  ;;  %v7841_v31 = vmax.f32 %v9421_v63, 0.0 }
 0x612   :  { %v8138_v26 = vmul.f32 %v13255_v53, %v7840_v19  ;;  %v8386_v2 = vadd.f32 %v8385_v0, %v8115_v41  ;;  %v6852_v56 = vpop.f32.mrb[232].mxu0  ;;  %v8395_v16 = vadd.f32 %v8394_v45, %v8123_v28  ;;  %v7842_v55 = vmax.f32 %v9422_v57, 0.0 }
 0x613   :  { %v8403_v22 = vadd.f32 %v8402_v40, %v8130_v18  ;;  %v8411_v36 = vadd.f32 %v12853_v6, %v8137_v12  ;;  %v9359_v11 = vadd.f32 %v6852_v56, %v13237_v43  ;;  %v7624_v60 = vpop.f32.mrb[232].mxu1  ;;  %v6854_v48 = vpop.f32.mrb[233].mxu0  ;;  %v8131_v49 = vmul.f32 %v13259_v39, %v7833_v4 }
 0x614   :  { %v8387_v54 = vadd.f32 %v8386_v2, %v8116_v1  ;;  %v9423_v61 = vadd.f32 %v7624_v60, %v13240_v8  ;;  %v9360_v42 = vadd.f32 %v6854_v48, %v13243_v14  ;;  %v7626_v37 = vpop.f32.mrb[233].mxu1  ;;  %v8396_v27 = vadd.f32 %v8395_v16, %v8124_v59  ;;  %v6856_v32 = vpop.f32.mrb[234].mxu0 }
 0x615   :  { %v8412_v10 = vadd.f32 %v8411_v36, %v8138_v26  ;;  %v7847_v0 = vmax.f32 %v9359_v11, 0.0  ;;  %v9424_v38 = vadd.f32 %v7626_v37, %v13250_v7  ;;  %v9361_v45 = vadd.f32 %v6856_v32, %v13237_v43  ;;  %v7628_v6 = vpop.f32.mrb[234].mxu1  ;;  %v6858_v34 = vpop.f32.mrb[235].mxu0 }
 0x616   :  { %8388 = vadd.xlane.f32.xlu0 %v8387_v54  ;;  %v7848_v47 = vmax.f32 %v9360_v42, 0.0  ;;  %8397 = vadd.xlane.f32.xlu1 %v8396_v27  ;;  %v9425_v9 = vadd.f32 %v7628_v6, %v13240_v8  ;;  %v9362_v25 = vadd.f32 %v6858_v34, %v13243_v14  ;;  %v7630_v41 = vpop.f32.mrb[235].mxu1  ;;  %v8132_v24 = vmul.f32 %v13271_v30, %v7834_v5 }
 0x617   :  { %v8145_v63 = vmul.f32 %v13247_v50, %v7847_v0  ;;  %v7855_v44 = vmax.f32 %v9361_v45, 0.0  ;;  %v9426_v58 = vadd.f32 %v7630_v41, %v13250_v7  ;;  %v8139_v1 = vmul.f32 %v13259_v39, %v7841_v31 }
 0x618   :  { %v8140_v29 = vmul.f32 %v13271_v30, %v7842_v55  ;;  %v8146_v46 = vmul.f32 %v13255_v53, %v7848_v47  ;;  %v7856_v57 = vmax.f32 %v9362_v25, 0.0  ;;  %v7849_v59 = vmax.f32 %v9423_v61, 0.0 }
 0x619   :  { %v8420_v28 = vadd.f32 %v12878_v21, %v8145_v63  ;;  %v7850_v18 = vmax.f32 %v9424_v38, 0.0  ;;  %v8153_v19 = vmul.f32 %v13247_v50, %v7855_v44  ;;  %v7857_v40 = vmax.f32 %v9425_v9, 0.0 }
 0x61a   :  { %v8154_v4 = vmul.f32 %v13255_v53, %v7856_v57  ;;  %v8404_v5 = vadd.f32 %v8403_v22, %v8131_v49  ;;  %v6862_v12 = vpop.f32.mrb[236].mxu0  ;;  %v8413_v26 = vadd.f32 %v8412_v10, %v8139_v1  ;;  %v7858_v56 = vmax.f32 %v9426_v58, 0.0 }
 0x61b   :  { %v8421_v2 = vadd.f32 %v8420_v28, %v8146_v46  ;;  %v8429_v31 = vadd.f32 %v12910_v35, %v8153_v19  ;;  %v9363_v16 = vadd.f32 %v6862_v12, %v13237_v43  ;;  %v7634_v36 = vpop.f32.mrb[236].mxu1  ;;  %v6864_v55 = vpop.f32.mrb[237].mxu0  ;;  %v8147_v10 = vmul.f32 %v13259_v39, %v7849_v59 }
 0x61c   :  { %v8405_v11 = vadd.f32 %v8404_v5, %v8132_v24  ;;  %v9427_v21 = vadd.f32 %v7634_v36, %v13240_v8  ;;  %v9364_v60 = vadd.f32 %v6864_v55, %v13243_v14  ;;  %v7636_v48 = vpop.f32.mrb[237].mxu1  ;;  %v8414_v54 = vadd.f32 %v8413_v26, %v8140_v29  ;;  %v6866_v61 = vpop.f32.mrb[238].mxu0 }
 0x61d   :  { %v8430_v42 = vadd.f32 %v8429_v31, %v8154_v4  ;;  %v7863_v22 = vmax.f32 %v9363_v16, 0.0  ;;  %v9428_v37 = vadd.f32 %v7636_v48, %v13250_v7  ;;  %v9365_v27 = vadd.f32 %v6866_v61, %v13237_v43  ;;  %v7638_v35 = vpop.f32.mrb[238].mxu1  ;;  %v6868_v32 = vpop.f32.mrb[239].mxu0 }
 0x61e   :  { %8406 = vadd.xlane.f32.xlu0 %v8405_v11  ;;  %v7864_v0 = vmax.f32 %v9364_v60, 0.0  ;;  %8415 = vadd.xlane.f32.xlu1 %v8414_v54  ;;  %v9429_v38 = vadd.f32 %v7638_v35, %v13240_v8  ;;  %v9366_v45 = vadd.f32 %v6868_v32, %v13243_v14  ;;  %v7640_v6 = vpop.f32.mrb[239].mxu1  ;;  %v8148_v34 = vmul.f32 %v13271_v30, %v7850_v18 }
 0x61f   :  { %v8161_v49 = vmul.f32 %v13247_v50, %v7863_v22  ;;  %v7871_v47 = vmax.f32 %v9365_v27, 0.0  ;;  %v9430_v9 = vadd.f32 %v7640_v6, %v13250_v7  ;;  %v8155_v25 = vmul.f32 %v13259_v39, %v7857_v40 }
 0x620   :  { %v8156_v41 = vmul.f32 %v13271_v30, %v7858_v56  ;;  %v8162_v24 = vmul.f32 %v13255_v53, %v7864_v0  ;;  %v7872_v63 = vmax.f32 %v9366_v45, 0.0  ;;  %v7865_v58 = vmax.f32 %v9427_v21, 0.0 }
 0x621   :  { %v8438_v44 = vadd.f32 %v12938_v51, %v8161_v49  ;;  %v7866_v1 = vmax.f32 %v9428_v37, 0.0  ;;  %v8169_v29 = vmul.f32 %v13247_v50, %v7871_v47  ;;  %v7873_v46 = vmax.f32 %v9429_v38, 0.0 }
 0x622   :  { %v8170_v57 = vmul.f32 %v13255_v53, %v7872_v63  ;;  %v8422_v28 = vadd.f32 %v8421_v2, %v8147_v10  ;;  %v6872_v59 = vpop.f32.mrb[240].mxu0  ;;  %v8431_v18 = vadd.f32 %v8430_v42, %v8155_v25  ;;  %v7874_v4 = vmax.f32 %v9430_v9, 0.0 }
 0x623   :  { %v8439_v19 = vadd.f32 %v8438_v44, %v8162_v24  ;;  %v8447_v40 = vadd.f32 %v12959_v20, %v8169_v29  ;;  %v9367_v5 = vadd.f32 %v6872_v59, %v13237_v43  ;;  %v7644_v12 = vpop.f32.mrb[240].mxu1  ;;  %v6874_v26 = vpop.f32.mrb[241].mxu0  ;;  %v8163_v54 = vmul.f32 %v13259_v39, %v7865_v58 }
 0x624   :  { %v8423_v31 = vadd.f32 %v8422_v28, %v8148_v34  ;;  %v9431_v51 = vadd.f32 %v7644_v12, %v13240_v8  ;;  %v9368_v56 = vadd.f32 %v6874_v26, %v13243_v14  ;;  %v7646_v16 = vpop.f32.mrb[241].mxu1  ;;  %v8432_v36 = vadd.f32 %v8431_v18, %v8156_v41  ;;  %v6876_v55 = vpop.f32.mrb[242].mxu0 }
 0x625   :  { %v8448_v11 = vadd.f32 %v8447_v40, %v8170_v57  ;;  %v7879_v2 = vmax.f32 %v9367_v5, 0.0  ;;  %v9432_v21 = vadd.f32 %v7646_v16, %v13250_v7  ;;  %v9369_v60 = vadd.f32 %v6876_v55, %v13237_v43  ;;  %v7648_v20 = vpop.f32.mrb[242].mxu1  ;;  %v6878_v48 = vpop.f32.mrb[243].mxu0 }
 0x626   :  { %8424 = vadd.xlane.f32.xlu0 %v8423_v31  ;;  %v7880_v61 = vmax.f32 %v9368_v56, 0.0  ;;  %8433 = vadd.xlane.f32.xlu1 %v8432_v36  ;;  %v9433_v42 = vadd.f32 %v7648_v20, %v13240_v8  ;;  %v9370_v22 = vadd.f32 %v6878_v48, %v13243_v14  ;;  %v7650_v37 = vpop.f32.mrb[243].mxu1  ;;  %v8164_v27 = vmul.f32 %v13271_v30, %v7866_v1 }
 0x627   :  { %v8177_v35 = vmul.f32 %v13247_v50, %v7879_v2  ;;  %v7887_v32 = vmax.f32 %v9369_v60, 0.0  ;;  %v9434_v10 = vadd.f32 %v7650_v37, %v13250_v7  ;;  %v8171_v0 = vmul.f32 %v13259_v39, %v7873_v46 }
 0x628   :  { %v8172_v38 = vmul.f32 %v13271_v30, %v7874_v4  ;;  %v8178_v45 = vmul.f32 %v13255_v53, %v7880_v61  ;;  %v7888_v6 = vmax.f32 %v9370_v22, 0.0  ;;  %v7881_v49 = vmax.f32 %v9431_v51, 0.0 }
 0x629   :  { %v8456_v34 = vadd.f32 %v12994_v23, %v8177_v35  ;;  %v7882_v47 = vmax.f32 %v9432_v21, 0.0  ;;  %v8185_v9 = vmul.f32 %v13247_v50, %v7887_v32  ;;  %v7889_v25 = vmax.f32 %v9433_v42, 0.0 }
 0x62a   :  { %v8186_v41 = vmul.f32 %v13255_v53, %v7888_v6  ;;  %v8440_v24 = vadd.f32 %v8439_v19, %v8163_v54  ;;  %v6882_v63 = vpop.f32.mrb[244].mxu0  ;;  %v8449_v44 = vadd.f32 %v8448_v11, %v8171_v0  ;;  %v7890_v29 = vmax.f32 %v9434_v10, 0.0 }
 0x62b   :  { %v8457_v58 = vadd.f32 %v8456_v34, %v8178_v45  ;;  %v8465_v1 = vadd.f32 %v13016_v13, %v8185_v9  ;;  %v9371_v46 = vadd.f32 %v6882_v63, %v13237_v43  ;;  %v7654_v57 = vpop.f32.mrb[244].mxu1  ;;  %v6884_v28 = vpop.f32.mrb[245].mxu0  ;;  %v8179_v56 = vmul.f32 %v13259_v39, %v7881_v49 }
 0x62c   :  { %v8441_v59 = vadd.f32 %v8440_v24, %v8164_v27  ;;  %v9435_v23 = vadd.f32 %v7654_v57, %v13240_v8  ;;  %v9372_v18 = vadd.f32 %v6884_v28, %v13243_v14  ;;  %v7656_v40 = vpop.f32.mrb[245].mxu1  ;;  %v8450_v4 = vadd.f32 %v8449_v44, %v8172_v38  ;;  %v6886_v5 = vpop.f32.mrb[246].mxu0 }
 0x62d   :  { %v8466_v12 = vadd.f32 %v8465_v1, %v8186_v41  ;;  %v7895_v19 = vmax.f32 %v9371_v46, 0.0  ;;  %v9436_v26 = vadd.f32 %v7656_v40, %v13250_v7  ;;  %v9373_v31 = vadd.f32 %v6886_v5, %v13237_v43  ;;  %v7658_v13 = vpop.f32.mrb[246].mxu1  ;;  %v6888_v51 = vpop.f32.mrb[247].mxu0 }
 0x62e   :  { %8442 = vadd.xlane.f32.xlu0 %v8441_v59  ;;  %v7896_v16 = vmax.f32 %v9372_v18, 0.0  ;;  %8451 = vadd.xlane.f32.xlu1 %v8450_v4  ;;  %v9437_v36 = vadd.f32 %v7658_v13, %v13240_v8  ;;  %v9374_v55 = vadd.f32 %v6888_v51, %v13243_v14  ;;  %v7660_v11 = vpop.f32.mrb[247].mxu1  ;;  %v8180_v2 = vmul.f32 %v13271_v30, %v7882_v47 }
 0x62f   :  { %v8193_v21 = vmul.f32 %v13247_v50, %v7895_v19  ;;  %v7903_v60 = vmax.f32 %v9373_v31, 0.0  ;;  %v9438_v20 = vadd.f32 %v7660_v11, %v13250_v7  ;;  %v8187_v48 = vmul.f32 %v13259_v39, %v7889_v25 }
 0x630   :  { %v8188_v54 = vmul.f32 %v13271_v30, %v7890_v29  ;;  %v8194_v61 = vmul.f32 %v13255_v53, %v7896_v16  ;;  %v7904_v42 = vmax.f32 %v9374_v55, 0.0  ;;  %v7897_v37 = vmax.f32 %v9435_v23, 0.0 }
 0x631   :  { %v8474_v22 = vadd.f32 %v13038_v15, %v8193_v21  ;;  %v7898_v27 = vmax.f32 %v9436_v26, 0.0  ;;  %v8201_v35 = vmul.f32 %v13247_v50, %v7903_v60  ;;  %v7905_v32 = vmax.f32 %v9437_v36, 0.0 }
 0x632   :  { %v8202_v10 = vmul.f32 %v13255_v53, %v7904_v42  ;;  %v8458_v0 = vadd.f32 %v8457_v58, %v8179_v56  ;;  %v6892_v38 = vpop.f32.mrb[248].mxu0  ;;  %v8467_v45 = vadd.f32 %v8466_v12, %v8187_v48  ;;  %v7906_v49 = vmax.f32 %v9438_v20, 0.0 }
 0x633   :  { %v8475_v6 = vadd.f32 %v8474_v22, %v8194_v61  ;;  %v8483_v34 = vadd.f32 %v13051_v33, %v8201_v35  ;;  %v9375_v47 = vadd.f32 %v6892_v38, %v13237_v43  ;;  %v7664_v9 = vpop.f32.mrb[248].mxu1  ;;  %v6894_v25 = vpop.f32.mrb[249].mxu0  ;;  %v8195_v59 = vmul.f32 %v13259_v39, %v7897_v37 }
 0x634   :  { %v8459_v41 = vadd.f32 %v8458_v0, %v8180_v2  ;;  %v9439_v15 = vadd.f32 %v7664_v9, %v13240_v8  ;;  %v9376_v24 = vadd.f32 %v6894_v25, %v13243_v14  ;;  %v7666_v63 = vpop.f32.mrb[249].mxu1  ;;  %v8468_v44 = vadd.f32 %v8467_v45, %v8188_v54  ;;  %v6896_v1 = vpop.f32.mrb[250].mxu0 }
 0x635   :  { %v8484_v29 = vadd.f32 %v8483_v34, %v8202_v10  ;;  %v7911_v58 = vmax.f32 %v9375_v47, 0.0  ;;  %v9440_v46 = vadd.f32 %v7666_v63, %v13250_v7  ;;  %v9377_v57 = vadd.f32 %v6896_v1, %v13237_v43  ;;  %v7668_v33 = vpop.f32.mrb[250].mxu1  ;;  %v6898_v28 = vpop.f32.mrb[251].mxu0 }
 0x636   :  { %8460 = vadd.xlane.f32.xlu0 %v8459_v41  ;;  %v7913_v23 = vmax.f32 %v9439_v15, 0.0  ;;  %v7912_v18 = vmax.f32 %v9376_v24, 0.0  ;;  %8469 = vadd.xlane.f32.xlu1 %v8468_v44  ;;  %v9378_v40 = vadd.f32 %v6898_v28, %v13243_v14  ;;  %v7670_v4 = vpop.f32.mrb[251].mxu1  ;;  %v8196_v5 = vmul.f32 %v13271_v30, %v7898_v27 }
 0x637   :  { %v8209_v12 = vmul.f32 %v13247_v50, %v7911_v58  ;;  %v7919_v19 = vmax.f32 %v9377_v57, 0.0  ;;  %v9441_v26 = vadd.f32 %v7668_v33, %v13240_v8  ;;  %v8203_v31 = vmul.f32 %v13259_v39, %v7905_v32 }
 0x638   :  { %v8204_v13 = vmul.f32 %v13271_v30, %v7906_v49  ;;  %v8210_v51 = vmul.f32 %v13255_v53, %v7912_v18  ;;  %v7920_v56 = vmax.f32 %v9378_v40, 0.0  ;;  %v7914_v36 = vmax.f32 %v9440_v46, 0.0 }
 0x639   :  { %v8492_v16 = vadd.f32 %v13062_v17, %v8209_v12  ;;  %v8217_v55 = vmul.f32 %v13247_v50, %v7919_v19  ;;  %v9442_v11 = vadd.f32 %v7670_v4, %v13250_v7  ;;  %v8211_v2 = vmul.f32 %v13259_v39, %v7913_v23 }
 0x63a   :  { %v8218_v21 = vmul.f32 %v13255_v53, %v7920_v56  ;;  %v8476_v60 = vadd.f32 %v8475_v6, %v8195_v59  ;;  %v6902_v20 = vpop.f32.mrb[252].mxu0  ;;  %v8485_v48 = vadd.f32 %v8484_v29, %v8203_v31  ;;  %v7921_v42 = vmax.f32 %v9441_v26, 0.0 }
 0x63b   :  { %v8493_v54 = vadd.f32 %v8492_v16, %v8210_v51  ;;  %v8501_v61 = vadd.f32 %v13076_v62, %v8217_v55  ;;  %v9379_v22 = vadd.f32 %v6902_v20, %v13237_v43  ;;  %v7674_v37 = vpop.f32.mrb[252].mxu1  ;;  %v6904_v17 = vpop.f32.mrb[253].mxu0  ;;  %v7922_v9 = vmax.f32 %v9442_v11, 0.0 }
 0x63c   :  { %v8477_v27 = vadd.f32 %v8476_v60, %v8196_v5  ;;  %v9443_v35 = vadd.f32 %v7674_v37, %v13240_v8  ;;  %v9380_v32 = vadd.f32 %v6904_v17, %v13243_v14  ;;  %v7676_v10 = vpop.f32.mrb[253].mxu1  ;;  %v8486_v0 = vadd.f32 %v8485_v48, %v8204_v13  ;;  %v6906_v38 = vpop.f32.mrb[254].mxu0 }
 0x63d   :  { %v8502_v45 = vadd.f32 %v8501_v61, %v8218_v21  ;;  %v7927_v6 = vmax.f32 %v9379_v22, 0.0  ;;  %v9444_v34 = vadd.f32 %v7676_v10, %v13250_v7  ;;  %v9381_v49 = vadd.f32 %v6906_v38, %v13237_v43  ;;  %v7678_v62 = vpop.f32.mrb[254].mxu1  ;;  %v6908_v47 = vpop.f32.mrb[255].mxu0 }
 0x63e   :  { %8478 = vadd.xlane.f32.xlu0 %v8477_v27  ;;  %v7928_v25 = vmax.f32 %v9380_v32, 0.0  ;;  %8487 = vadd.xlane.f32.xlu1 %v8486_v0  ;;  %v9445_v41 = vadd.f32 %v7678_v62, %v13240_v8  ;;  %v9382_v15 = vadd.f32 %v6908_v47, %v13243_v14  ;;  %v7680_v24 = vpop.f32.mrb[255].mxu1  ;;  %v7929_v44 = vmax.f32 %v9443_v35, 0.0 }
 0x63f   :  { %v8225_v63 = vmul.f32 %v13247_v50, %v7927_v6  ;;  %v7935_v1 = vmax.f32 %v9381_v49, 0.0  ;;  %v9446_v29 = vadd.f32 %v7680_v24, %v13250_v7  ;;  %v8212_v58 = vmul.f32 %v13271_v30, %v7914_v36 }
 0x640   :  { %v8219_v43 = vmul.f32 %v13259_v39, %v7921_v42  ;;  %v8226_v46 = vmul.f32 %v13255_v53, %v7928_v25  ;;  %v7936_v57 = vmax.f32 %v9382_v15, 0.0  ;;  %v7930_v28 = vmax.f32 %v9444_v34, 0.0 }
 0x641   :  { %v8510_v33 = vadd.f32 %v13080_v52, %v8225_v63  ;;  %v8233_v8 = vmul.f32 %v13247_v50, %v7935_v1  ;;  %v7937_v14 = vmax.f32 %v9445_v41, 0.0  ;;  %v8220_v59 = vmul.f32 %v13271_v30, %v7922_v9 }
 0x642   :  { %v8234_v23 = vmul.f32 %v13255_v53, %v7936_v57  ;;  %v8494_v18 = vadd.f32 %v8493_v54, %v8211_v2  ;;  %v8503_v40 = vadd.f32 %v8502_v45, %v8219_v43  ;;  %v8227_v7 = vmul.f32 %v13259_v39, %v7929_v44 }
 0x643   :  { %v8511_v4 = vadd.f32 %v8510_v33, %v8226_v46  ;;  %v8519_v5 = vadd.f32 %v13088_v3, %v8233_v8  ;;  %v7938_v12 = vmax.f32 %v9446_v29, 0.0  ;;  %v8228_v52 = vmul.f32 %v13271_v30, %v7930_v28 }
 0x644   :  { %v8495_v19 = vadd.f32 %v8494_v18, %v8212_v58  ;;  %v8504_v26 = vadd.f32 %v8503_v40, %v8220_v59  ;;  %v8235_v31 = vmul.f32 %v13259_v39, %v7937_v14  ;;  %v13551_v3 = vstv %s13719_s6 }
 0x645   :  { %v8520_v50 = vadd.f32 %v8519_v5, %v8234_v23  ;;  %v8512_v13 = vadd.f32 %v8511_v4, %v8227_v7  ;;  %v8236_v53 = vmul.f32 %v13271_v30, %v7938_v12 }
 0x646   :  { %8496 = vadd.xlane.f32.xlu0 %v8495_v19  ;;  %8505 = vadd.xlane.f32.xlu1 %v8504_v26 }
 0x647   :  { %v8513_v51 = vadd.f32 %v8512_v13, %v8228_v52  ;;  %v8521_v56 = vadd.f32 %v8520_v50, %v8235_v31 }
 0x649   :  { %v8522_v16 = vadd.f32 %v8521_v56, %v8236_v53 }
 0x64a   :  { %8514 = vadd.xlane.f32.xlu0 %v8513_v51 }
 0x64b   :  { %8523 = vadd.xlane.f32.xlu1 %v8522_v16 }
 0x661   :  { %v8245_v36 = vpop.xlane.xlu0 %8244 }
 0x662   :  { %v8527_v39 = vadd.f32 %v13551_v3, %v8245_v36 }
 0x664   :  { %8560 = vst.msk [vmem:[%s13720_s7] sm:$0xff] %vm8559_vm1, %v8527_v39 }
 0x665   :  { %v8254_v30 = vpop.xlane.xlu0 %8253 }
 0x666   :  { %v8528_v55 = vadd.f32 %v13551_v3, %v8254_v30 }
 0x668   :  { %8561 = vst.msk [vmem:[%s13720_s7 + $0x8] sm:$0xff] %vm8559_vm1, %v8528_v55 }
 0x669   :  { %v8263_v11 = vpop.xlane.xlu1 %8262 }
 0x66a   :  { %v8529_v2 = vadd.f32 %v13551_v3, %v8263_v11 }
 0x66c   :  { %8562 = vst.msk [vmem:[%s13720_s7 + $0x10] sm:$0xff] %vm8559_vm1, %v8529_v2 }
 0x66d   :  { %v8272_v21 = vpop.xlane.xlu1 %8271 }
 0x66e   :  { %v8530_v60 = vadd.f32 %v13551_v3, %v8272_v21 }
 0x670   :  { %8563 = vst.msk [vmem:[%s13720_s7 + $0x18] sm:$0xff] %vm8559_vm1, %v8530_v60 }
 0x672   :  { %v8281_v20 = vpop.xlane.xlu0 %8280 }
 0x673   :  { %v8290_v48 = vpop.xlane.xlu1 %8289  ;;  %v8531_v54 = vadd.f32 %v13551_v3, %v8281_v20 }
 0x674   :  { %v8532_v61 = vadd.f32 %v13551_v3, %v8290_v48 }
 0x675   :  { %8564 = vst.msk [vmem:[%s13720_s7 + $0x20] sm:$0xff] %vm8559_vm1, %v8531_v54 }
 0x676   :  { %8565 = vst.msk [vmem:[%s13720_s7 + $0x28] sm:$0xff] %vm8559_vm1, %v8532_v61 }
 0x67b   :  { %v8299_v42 = vpop.xlane.xlu0 %8298  ;;  %v8308_v22 = vpop.xlane.xlu1 %8307 }
 0x67c   :  { %v8533_v37 = vadd.f32 %v13551_v3, %v8299_v42  ;;  %v8534_v17 = vadd.f32 %v13551_v3, %v8308_v22 }
 0x67e   :  { %8566 = vst.msk [vmem:[%s13720_s7 + $0x30] sm:$0xff] %vm8559_vm1, %v8533_v37  ;;  %8567 = vst.msk [vmem:[%s13720_s7 + $0x38] sm:$0xff] %vm8559_vm1, %v8534_v17 }
 0x683   :  { %v8317_v27 = vpop.xlane.xlu0 %8316  ;;  %v8326_v35 = vpop.xlane.xlu1 %8325 }
 0x684   :  { %v8535_v32 = vadd.f32 %v13551_v3, %v8317_v27  ;;  %v8536_v10 = vadd.f32 %v13551_v3, %v8326_v35 }
 0x686   :  { %8568 = vst.msk [vmem:[%s13720_s7 + $0x40] sm:$0xff] %vm8559_vm1, %v8535_v32  ;;  %8569 = vst.msk [vmem:[%s13720_s7 + $0x48] sm:$0xff] %vm8559_vm1, %v8536_v10 }
 0x68b   :  { %v8335_v0 = vpop.xlane.xlu0 %8334  ;;  %v8344_v38 = vpop.xlane.xlu1 %8343 }
 0x68c   :  { %v8537_v45 = vadd.f32 %v13551_v3, %v8335_v0  ;;  %v8538_v6 = vadd.f32 %v13551_v3, %v8344_v38 }
 0x68e   :  { %8570 = vst.msk [vmem:[%s13720_s7 + $0x50] sm:$0xff] %vm8559_vm1, %v8537_v45  ;;  %8571 = vst.msk [vmem:[%s13720_s7 + $0x58] sm:$0xff] %vm8559_vm1, %v8538_v6 }
 0x693   :  { %v8353_v34 = vpop.xlane.xlu0 %8352  ;;  %v8362_v49 = vpop.xlane.xlu1 %8361 }
 0x694   :  { %v8539_v62 = vadd.f32 %v13551_v3, %v8353_v34  ;;  %v8540_v47 = vadd.f32 %v13551_v3, %v8362_v49 }
 0x696   :  { %8572 = vst.msk [vmem:[%s13720_s7 + $0x60] sm:$0xff] %vm8559_vm1, %v8539_v62  ;;  %8573 = vst.msk [vmem:[%s13720_s7 + $0x68] sm:$0xff] %vm8559_vm1, %v8540_v47 }
 0x69b   :  { %v8371_v9 = vpop.xlane.xlu0 %8370  ;;  %v8380_v25 = vpop.xlane.xlu1 %8379 }
 0x69c   :  { %v8541_v41 = vadd.f32 %v13551_v3, %v8371_v9  ;;  %v8542_v15 = vadd.f32 %v13551_v3, %v8380_v25 }
 0x69e   :  { %8574 = vst.msk [vmem:[%s13720_s7 + $0x70] sm:$0xff] %vm8559_vm1, %v8541_v41  ;;  %8575 = vst.msk [vmem:[%s13720_s7 + $0x78] sm:$0xff] %vm8559_vm1, %v8542_v15 }
 0x6a3   :  { %v8389_v24 = vpop.xlane.xlu0 %8388  ;;  %v8398_v63 = vpop.xlane.xlu1 %8397 }
 0x6a4   :  { %v8543_v44 = vadd.f32 %v13551_v3, %v8389_v24  ;;  %v8544_v1 = vadd.f32 %v13551_v3, %v8398_v63 }
 0x6a6   :  { %8576 = vst.msk [vmem:[%s13720_s7 + $0x80] sm:$0xff] %vm8559_vm1, %v8543_v44  ;;  %8577 = vst.msk [vmem:[%s13720_s7 + $0x88] sm:$0xff] %vm8559_vm1, %v8544_v1 }
 0x6ab   :  { %v8407_v29 = vpop.xlane.xlu0 %8406  ;;  %v8416_v58 = vpop.xlane.xlu1 %8415 }
 0x6ac   :  { %v8545_v43 = vadd.f32 %v13551_v3, %v8407_v29  ;;  %v8546_v46 = vadd.f32 %v13551_v3, %v8416_v58 }
 0x6ae   :  { %8578 = vst.msk [vmem:[%s13720_s7 + $0x90] sm:$0xff] %vm8559_vm1, %v8545_v43  ;;  %8579 = vst.msk [vmem:[%s13720_s7 + $0x98] sm:$0xff] %vm8559_vm1, %v8546_v46 }
 0x6b3   :  { %v8425_v57 = vpop.xlane.xlu0 %8424  ;;  %v8434_v33 = vpop.xlane.xlu1 %8433 }
 0x6b4   :  { %v8547_v28 = vadd.f32 %v13551_v3, %v8425_v57  ;;  %v8548_v8 = vadd.f32 %v13551_v3, %v8434_v33 }
 0x6b6   :  { %8580 = vst.msk [vmem:[%s13720_s7 + $0xa0] sm:$0xff] %vm8559_vm1, %v8547_v28  ;;  %8581 = vst.msk [vmem:[%s13720_s7 + $0xa8] sm:$0xff] %vm8559_vm1, %v8548_v8 }
 0x6bb   :  { %v8443_v14 = vpop.xlane.xlu0 %8442  ;;  %v8452_v59 = vpop.xlane.xlu1 %8451 }
 0x6bc   :  { %v8549_v23 = vadd.f32 %v13551_v3, %v8443_v14  ;;  %v8550_v18 = vadd.f32 %v13551_v3, %v8452_v59 }
 0x6be   :  { %8582 = vst.msk [vmem:[%s13720_s7 + $0xb0] sm:$0xff] %vm8559_vm1, %v8549_v23  ;;  %8583 = vst.msk [vmem:[%s13720_s7 + $0xb8] sm:$0xff] %vm8559_vm1, %v8550_v18 }
 0x6c3   :  { %v8461_v40 = vpop.xlane.xlu0 %8460  ;;  %v8470_v7 = vpop.xlane.xlu1 %8469 }
 0x6c4   :  { %v8551_v4 = vadd.f32 %v13551_v3, %v8461_v40  ;;  %v8552_v5 = vadd.f32 %v13551_v3, %v8470_v7 }
 0x6c6   :  { %8584 = vst.msk [vmem:[%s13720_s7 + $0xc0] sm:$0xff] %vm8559_vm1, %v8551_v4  ;;  %8585 = vst.msk [vmem:[%s13720_s7 + $0xc8] sm:$0xff] %vm8559_vm1, %v8552_v5 }
 0x6cb   :  { %v8479_v12 = vpop.xlane.xlu0 %8478  ;;  %v8488_v19 = vpop.xlane.xlu1 %8487 }
 0x6cc   :  { %v8553_v26 = vadd.f32 %v13551_v3, %v8479_v12  ;;  %v8554_v52 = vadd.f32 %v13551_v3, %v8488_v19 }
 0x6ce   :  { %8586 = vst.msk [vmem:[%s13720_s7 + $0xd0] sm:$0xff] %vm8559_vm1, %v8553_v26  ;;  %8587 = vst.msk [vmem:[%s13720_s7 + $0xd8] sm:$0xff] %vm8559_vm1, %v8554_v52 }
 0x6d3   :  { %v8497_v31 = vpop.xlane.xlu0 %8496  ;;  %v8506_v50 = vpop.xlane.xlu1 %8505 }
 0x6d4   :  { %v8555_v13 = vadd.f32 %v13551_v3, %v8497_v31  ;;  %v8556_v53 = vadd.f32 %v13551_v3, %v8506_v50 }
 0x6d6   :  { %8588 = vst.msk [vmem:[%s13720_s7 + $0xe0] sm:$0xff] %vm8559_vm1, %v8555_v13  ;;  %8589 = vst.msk [vmem:[%s13720_s7 + $0xe8] sm:$0xff] %vm8559_vm1, %v8556_v53 }
 0x6d7   :  { %v8515_v51 = vpop.xlane.xlu0 %8514 }
 0x6d8   :  { %v8557_v56 = vadd.f32 %v13551_v3, %v8515_v51  ;;  %v8524_v16 = vpop.xlane.xlu1 %8523 }
 0x6d9   :  { %v8558_v36 = vadd.f32 %v13551_v3, %v8524_v16 }
 0x6da   :  { %8590 = vst.msk [vmem:[%s13720_s7 + $0xf0] sm:$0xff] %vm8559_vm1, %v8557_v56 }
 0x6db   :  { %8591 = vst.msk [vmem:[%s13720_s7 + $0xf8] sm:$0xff] %vm8559_vm1, %v8558_v36 }
 0x6dc   :  { %8596 = vsyncpa [#allocation4], 1 }
 0x6dd   :  { %8597 = vsyncpa [#allocation6], 1 }
 0x6de   :  { %8598 = vsyncpa [#allocation9], 1 }

</bundles_post_ra>
